<compile_context>
chip_gen: v5e
topology: v5e:2x2
jax: 0.10.0
libtpu: 0.0.40
codegen_flags: <defaults>
</compile_context>

<pallas_src>
import functools
import math

import jax
import jax.numpy as jnp
import numpy as np
from jax.experimental import pallas as pl
from jax.experimental.pallas import tpu as pltpu

_EPS = 1e-5  # nn.BatchNorm2d default


def _conv_block(x, w, gamma, beta, *, pool):
    """One ConvBlock on in-VMEM values: conv3x3(pad=1) + BN(train) + ReLU [+ pool].

    x:     (N, H, W, Cin)  bf16 activations
    w:     (9*Cin, Cout)   bf16 conv weights, rows ordered (dy, dx, cin)
    gamma: (1, Cout) f32   BN scale
    beta:  (1, Cout) f32   BN shift
    returns (N, Ho, Wo, Cout) f32
    """
    N, H, W, Cin = x.shape
    Cout = w.shape[-1]

    # pad=1 zero border: H pad is a free major-dim concat, W pad is the one
    # sublane-dim concat.
    zrow = jnp.zeros((N, 1, W, Cin), x.dtype)
    xp = jnp.concatenate([zrow, x, zrow], axis=1)             # (N, H+2, W,   Cin)
    zcol = jnp.zeros((N, H + 2, 1, Cin), x.dtype)
    xp = jnp.concatenate([zcol, xp, zcol], axis=2)            # (N, H+2, W+2, Cin)

    # im2col: 3 sublane-shifted (dx) copies assembled once on the lane axis;
    # the dy offsets are free major-dim slices of that buffer.
    x3 = jnp.concatenate([xp[:, :, dx:dx + W, :] for dx in range(3)],
                         axis=-1)                             # (N, H+2, W, 3*Cin)
    patches = jnp.concatenate([x3[:, dy:dy + H, :, :] for dy in range(3)],
                              axis=-1)                        # (N, H, W, 9*Cin)
    patches = patches.reshape(N * H * W, 9 * Cin)

    # Single MXU matmul: bf16 operands, f32 accumulation.  Conv bias omitted:
    # it cancels exactly with the batch-mean subtraction below.
    acc = jnp.dot(patches, w, preferred_element_type=jnp.float32)   # (NP, Cout) f32

    # BatchNorm2d, training mode: batch statistics over N*H*W per channel,
    # biased variance, eps inside rsqrt, one pass (sum + sum of squares), f32.
    inv_np = 1.0 / float(N * H * W)
    mean = jnp.sum(acc, axis=0, keepdims=True) * inv_np              # (1, Cout)
    ex2 = jnp.sum(acc * acc, axis=0, keepdims=True) * inv_np
    var = ex2 - mean * mean
    scale = jax.lax.rsqrt(var + _EPS) * gamma                        # (1, Cout)
    y = (acc - mean) * scale + beta
    y = jnp.maximum(y, 0.0)                                          # ReLU
    y = y.reshape(N, H, W, Cout)

    if pool:                                                         # MaxPool2d(2)
        Ho, Wo = H // 2, W // 2
        y = y.reshape(N, Ho, 2, W, Cout)      # split H: free (major dim)
        y = jnp.max(y, axis=2)                # (N, Ho, W, Cout)   VPU maximum
        y = y.reshape(N, Ho, Wo, 2, Cout)     # split W: the one sublane pass
        y = jnp.max(y, axis=3)                # (N, Ho, Wo, Cout)
    return y


def _convnet_kernel(x_ref, *refs, pool_flags):
    """Fused ConvNetS trunk: all ConvBlocks in one kernel, activations in VMEM."""
    out_ref = refs[-1]
    prm = refs[:-1]                           # (w, gamma, beta) per layer
    depth = len(prm) // 3
    x = x_ref[...]                            # bf16 (N, H, W, Cin0)
    for l in range(depth):
        w = prm[3 * l][...]
        gamma = prm[3 * l + 1][...]
        beta = prm[3 * l + 2][...]
        y = _conv_block(x, w, gamma, beta, pool=pool_flags[l])       # f32
        # Next layer's matmul operand is bf16; keep the network output f32.
        x = y if l == depth - 1 else y.astype(jnp.bfloat16)
    out_ref[...] = x                          # (N, Hf, Wf, 64) f32


def convnet_s_forward(x_nchw, params):
    """ConvNetS.forward: out = x[:, 0:1, :, :]; trunk(out); Flatten."""
    N, _, H, W = x_nchw.shape

    # Channel slice + NCHW -> NHWC (C == 1, so this is just a reshape) and
    # zero-pad Cin 1 -> 8 (lane/MXU friendly; zero channels contribute 0).
    x0 = jnp.transpose(x_nchw[:, 0:1, :, :], (0, 2, 3, 1))
    x0 = jnp.pad(x0, ((0, 0), (0, 0), (0, 0), (0, 8 - x0.shape[-1])))
    x0 = x0.astype(jnp.bfloat16)

    args = [x0]
    pool_flags = []
    Ho, Wo = H, W
    for i, (w, b, gamma, beta, pool) in enumerate(params):
        kh, kw, cin, cout = w.shape
        if i == 0 and cin < 8:                        # match the input channel pad
            w = jnp.pad(w, ((0, 0), (0, 0), (0, 8 - cin), (0, 0)))
            cin = 8
        # (3,3,Cin,Cout) -> (9*Cin, Cout); row order (dy, dx, cin) matches the
        # in-kernel im2col lane order.  The conv bias `b` is intentionally not
        # passed: training-mode BN makes it cancel exactly.
        args += [w.reshape(kh * kw * cin, cout).astype(jnp.bfloat16),
                 gamma.reshape(1, cout).astype(jnp.float32),
                 beta.reshape(1, cout).astype(jnp.float32)]
        pool_flags.append(bool(pool))
        if pool:
            Ho, Wo = Ho // 2, Wo // 2
    cout = params[-1][0].shape[-1]

    vmem = pl.BlockSpec(memory_space=pltpu.MemorySpace.VMEM)
    out_nhwc = pl.pallas_call(
        functools.partial(_convnet_kernel, pool_flags=tuple(pool_flags)),
        out_shape=jax.ShapeDtypeStruct((N, Ho, Wo, cout), jnp.float32),
        in_specs=[vmem] * len(args),
        out_specs=vmem,
    )(*args)

    # Flatten in PyTorch (C, H, W) order.
    out = jnp.transpose(out_nhwc, (0, 3, 1, 2))
    return out.reshape(N, -1)


def init_params(key, depth):
    """Deterministic parameters matching the module's shapes / init_layer scheme."""
    params = []
    for i in range(depth):
        indim = 1 if i == 0 else 64
        outdim = 64
        key, k1, k2 = jax.random.split(key, 3)
        n = 3 * 3 * outdim                                  # init_layer for Conv2d
        w = jax.random.normal(k1, (3, 3, indim, outdim), jnp.float32) * math.sqrt(2.0 / n)
        bound = 1.0 / math.sqrt(indim * 9)                  # default conv bias init
        b = jax.random.uniform(k2, (outdim,), jnp.float32, -bound, bound)
        gamma = jnp.ones((outdim,), jnp.float32)            # init_layer for BN
        beta = jnp.zeros((outdim,), jnp.float32)
        params.append((w, b, gamma, beta, i < 4))           # pool only for i < 4
    return params


def reference_forward(x_nchw, params, conv_dtype=jnp.float32, eps=_EPS):
    """Pure-JAX NCHW reference mirroring the PyTorch forward semantics.

    `conv_dtype` controls only the conv operand precision (the Pallas kernel
    feeds the MXU bf16 operands with f32 accumulation); the bias add, BN,
    ReLU and pooling always run in f32, as in the kernel.
    """
    out = x_nchw[:, 0:1, :, :]
    for (w, b, gamma, beta, pool) in params:
        y = jax.lax.conv_general_dilated(
            out.astype(conv_dtype), w.astype(conv_dtype),
            window_strides=(1, 1), padding=((1, 1), (1, 1)),
            dimension_numbers=("NCHW", "HWIO", "NCHW"),
            preferred_element_type=jnp.float32,
            precision=jax.lax.Precision.HIGHEST)
        y = y + b[None, :, None, None]                      # bias kept in the reference
        mean = jnp.mean(y, axis=(0, 2, 3), keepdims=True)
        var = jnp.mean((y - mean) ** 2, axis=(0, 2, 3), keepdims=True)
        y = (y - mean) / jnp.sqrt(var + eps)
        y = y * gamma[None, :, None, None] + beta[None, :, None, None]
        y = jnp.maximum(y, 0.0)
        if pool:
            y = jax.lax.reduce_window(y, -jnp.inf, jax.lax.max,
                                      (1, 1, 2, 2), (1, 1, 2, 2), "VALID")
        out = y
    return out.reshape(out.shape[0], -1)


if __name__ == "__main__":
    depth = 4
    N, C, H, W = 2, 3, 16, 16                               # spatial: 16 -> 8 -> 4 -> 2 -> 1
    x = jax.random.normal(jax.random.PRNGKey(0), (N, C, H, W), jnp.float32)
    params = init_params(jax.random.PRNGKey(1), depth)

    out = convnet_s_forward(x, params)
    out = jax.block_until_ready(out)
    assert out.shape == (N, 64), out.shape

    # (1) Structural correctness: compare against a reference using the same
    #     conv operand precision (bf16 operands, f32 accumulation) -- tight.
    ref_bf16 = reference_forward(x, params, conv_dtype=jnp.bfloat16)
    np.testing.assert_allclose(np.asarray(out), np.asarray(ref_bf16),
                               rtol=2e-3, atol=2e-3)

    # (2) bf16-matmul vs full-f32 reference sanity bound (relative RMS error).
    ref_f32 = np.asarray(reference_forward(x, params, conv_dtype=jnp.float32))
    err = np.asarray(out) - ref_f32
    rel_rms = np.sqrt(np.mean(err ** 2)) / (np.sqrt(np.mean(ref_f32 ** 2)) + 1e-12)
    assert rel_rms < 5e-2, f"bf16 conv deviates from f32 reference: rel_rms={rel_rms}"

    print("KERNEL_OK")
</pallas_src>

<mosaic_0001>
module attributes {stable_mosaic.version = 11 : i64} {
  func.func @_convnet_kernel(%arg0: memref<2x16x16x8xbf16, #tpu.memory_space<vmem>>, %arg1: memref<72x64xbf16, #tpu.memory_space<vmem>>, %arg2: memref<1x64xf32, #tpu.memory_space<vmem>>, %arg3: memref<1x64xf32, #tpu.memory_space<vmem>>, %arg4: memref<576x64xbf16, #tpu.memory_space<vmem>>, %arg5: memref<1x64xf32, #tpu.memory_space<vmem>>, %arg6: memref<1x64xf32, #tpu.memory_space<vmem>>, %arg7: memref<576x64xbf16, #tpu.memory_space<vmem>>, %arg8: memref<1x64xf32, #tpu.memory_space<vmem>>, %arg9: memref<1x64xf32, #tpu.memory_space<vmem>>, %arg10: memref<576x64xbf16, #tpu.memory_space<vmem>>, %arg11: memref<1x64xf32, #tpu.memory_space<vmem>>, %arg12: memref<1x64xf32, #tpu.memory_space<vmem>>, %arg13: memref<2x1x1x64xf32, #tpu.memory_space<vmem>>) attributes {dimension_semantics = [], scalar_prefetch = 0 : i64, scratch_operands = 0 : i64, tpu.core_type = #tpu.core_type<tc>} {
    %c0 = arith.constant 0 : index
    %c0_0 = arith.constant 0 : index
    %c0_1 = arith.constant 0 : index
    %c0_2 = arith.constant 0 : index
    %0 = vector.load %arg0[%c0, %c0_0, %c0_1, %c0_2] : memref<2x16x16x8xbf16, #tpu.memory_space<vmem>>, vector<2x16x16x8xbf16>
    %c0_3 = arith.constant 0 : index
    %c0_4 = arith.constant 0 : index
    %1 = vector.load %arg1[%c0_3, %c0_4] : memref<72x64xbf16, #tpu.memory_space<vmem>>, vector<72x64xbf16>
    %c0_5 = arith.constant 0 : index
    %c0_6 = arith.constant 0 : index
    %2 = vector.load %arg2[%c0_5, %c0_6] : memref<1x64xf32, #tpu.memory_space<vmem>>, vector<1x64xf32>
    %c0_7 = arith.constant 0 : index
    %c0_8 = arith.constant 0 : index
    %3 = vector.load %arg3[%c0_7, %c0_8] : memref<1x64xf32, #tpu.memory_space<vmem>>, vector<1x64xf32>
    %cst = arith.constant 0.000000e+00 : bf16
    %4 = vector.broadcast %cst : bf16 to vector<2x1x16x8xbf16>
    %5 = tpu.concatenate %4, %0, %4 in 1 : vector<2x1x16x8xbf16>, vector<2x16x16x8xbf16>, vector<2x1x16x8xbf16> -> vector<2x18x16x8xbf16>
    %cst_9 = arith.constant 0.000000e+00 : bf16
    %6 = vector.broadcast %cst_9 : bf16 to vector<2x18x1x8xbf16>
    %7 = tpu.concatenate %6, %5, %6 in 2 : vector<2x18x1x8xbf16>, vector<2x18x16x8xbf16>, vector<2x18x1x8xbf16> -> vector<2x18x18x8xbf16>
    %8 = vector.extract_strided_slice %7 {offsets = [0, 0, 0, 0], sizes = [2, 18, 16, 8], strides = [1, 1, 1, 1]} : vector<2x18x18x8xbf16> to vector<2x18x16x8xbf16>
    %9 = vector.extract_strided_slice %7 {offsets = [0, 0, 1, 0], sizes = [2, 18, 16, 8], strides = [1, 1, 1, 1]} : vector<2x18x18x8xbf16> to vector<2x18x16x8xbf16>
    %10 = vector.extract_strided_slice %7 {offsets = [0, 0, 2, 0], sizes = [2, 18, 16, 8], strides = [1, 1, 1, 1]} : vector<2x18x18x8xbf16> to vector<2x18x16x8xbf16>
    %11 = tpu.concatenate %8, %9, %10 in 3 : vector<2x18x16x8xbf16>, vector<2x18x16x8xbf16>, vector<2x18x16x8xbf16> -> vector<2x18x16x24xbf16>
    %12 = vector.extract_strided_slice %11 {offsets = [0, 0, 0, 0], sizes = [2, 16, 16, 24], strides = [1, 1, 1, 1]} : vector<2x18x16x24xbf16> to vector<2x16x16x24xbf16>
    %13 = vector.extract_strided_slice %11 {offsets = [0, 1, 0, 0], sizes = [2, 16, 16, 24], strides = [1, 1, 1, 1]} : vector<2x18x16x24xbf16> to vector<2x16x16x24xbf16>
    %14 = vector.extract_strided_slice %11 {offsets = [0, 2, 0, 0], sizes = [2, 16, 16, 24], strides = [1, 1, 1, 1]} : vector<2x18x16x24xbf16> to vector<2x16x16x24xbf16>
    %15 = tpu.concatenate %12, %13, %14 in 3 : vector<2x16x16x24xbf16>, vector<2x16x16x24xbf16>, vector<2x16x16x24xbf16> -> vector<2x16x16x72xbf16>
    %16 = vector.shape_cast %15 : vector<2x16x16x72xbf16> to vector<512x72xbf16>
    %cst_10 = arith.constant dense<0.000000e+00> : vector<512x64xf32>
    %17 = tpu.matmul %16, %1, %cst_10 {dimension_numbers = #tpu.dot_dimension_numbers<[1], [0], [0], [1], [0, 0, 1, 1], [], []>} : vector<512x72xbf16>, vector<72x64xbf16>, vector<512x64xf32> -> vector<512x64xf32>
    %cst_11 = arith.constant dense<0.000000e+00> : vector<64xf32>
    %18 = vector.multi_reduction <add>, %17, %cst_11 [0] : vector<512x64xf32> to vector<64xf32>
    %19 = vector.shape_cast %18 : vector<64xf32> to vector<1x64xf32>
    %cst_12 = arith.constant 0.001953125 : f32
    %20 = vector.broadcast %cst_12 : f32 to vector<1x64xf32>
    %21 = arith.mulf %19, %20 : vector<1x64xf32>
    %22 = arith.mulf %17, %17 : vector<512x64xf32>
    %cst_13 = arith.constant dense<0.000000e+00> : vector<64xf32>
    %23 = vector.multi_reduction <add>, %22, %cst_13 [0] : vector<512x64xf32> to vector<64xf32>
    %24 = vector.shape_cast %23 : vector<64xf32> to vector<1x64xf32>
    %cst_14 = arith.constant 0.001953125 : f32
    %25 = vector.broadcast %cst_14 : f32 to vector<1x64xf32>
    %26 = arith.mulf %24, %25 : vector<1x64xf32>
    %27 = arith.mulf %21, %21 : vector<1x64xf32>
    %28 = arith.subf %26, %27 : vector<1x64xf32>
    %cst_15 = arith.constant 9.99999974E-6 : f32
    %29 = vector.broadcast %cst_15 : f32 to vector<1x64xf32>
    %30 = arith.addf %28, %29 : vector<1x64xf32>
    %31 = math.rsqrt %30 : vector<1x64xf32>
    %32 = arith.mulf %31, %2 : vector<1x64xf32>
    %33 = vector.broadcast %21 : vector<1x64xf32> to vector<512x64xf32>
    %34 = arith.subf %17, %33 : vector<512x64xf32>
    %35 = vector.broadcast %32 : vector<1x64xf32> to vector<512x64xf32>
    %36 = arith.mulf %34, %35 : vector<512x64xf32>
    %37 = vector.broadcast %3 : vector<1x64xf32> to vector<512x64xf32>
    %38 = arith.addf %36, %37 : vector<512x64xf32>
    %cst_16 = arith.constant 0.000000e+00 : f32
    %39 = vector.broadcast %cst_16 : f32 to vector<512x64xf32>
    %40 = arith.maximumf %38, %39 : vector<512x64xf32>
    %41 = vector.shape_cast %40 : vector<512x64xf32> to vector<2x16x16x64xf32>
    %42 = vector.shape_cast %41 : vector<2x16x16x64xf32> to vector<2x8x2x16x64xf32>
    %cst_17 = arith.constant dense<0xFF800000> : vector<2x8x16x64xf32>
    %43 = vector.multi_reduction <maximumf>, %42, %cst_17 [2] : vector<2x8x2x16x64xf32> to vector<2x8x16x64xf32>
    %44 = vector.shape_cast %43 : vector<2x8x16x64xf32> to vector<2x8x8x2x64xf32>
    %cst_18 = arith.constant dense<0xFF800000> : vector<2x8x8x64xf32>
    %45 = vector.multi_reduction <maximumf>, %44, %cst_18 [3] : vector<2x8x8x2x64xf32> to vector<2x8x8x64xf32>
    %46 = arith.truncf %45 : vector<2x8x8x64xf32> to vector<2x8x8x64xbf16>
    %c0_19 = arith.constant 0 : index
    %c0_20 = arith.constant 0 : index
    %47 = vector.load %arg4[%c0_19, %c0_20] : memref<576x64xbf16, #tpu.memory_space<vmem>>, vector<576x64xbf16>
    %c0_21 = arith.constant 0 : index
    %c0_22 = arith.constant 0 : index
    %48 = vector.load %arg5[%c0_21, %c0_22] : memref<1x64xf32, #tpu.memory_space<vmem>>, vector<1x64xf32>
    %c0_23 = arith.constant 0 : index
    %c0_24 = arith.constant 0 : index
    %49 = vector.load %arg6[%c0_23, %c0_24] : memref<1x64xf32, #tpu.memory_space<vmem>>, vector<1x64xf32>
    %cst_25 = arith.constant 0.000000e+00 : bf16
    %50 = vector.broadcast %cst_25 : bf16 to vector<2x1x8x64xbf16>
    %51 = tpu.concatenate %50, %46, %50 in 1 : vector<2x1x8x64xbf16>, vector<2x8x8x64xbf16>, vector<2x1x8x64xbf16> -> vector<2x10x8x64xbf16>
    %cst_26 = arith.constant 0.000000e+00 : bf16
    %52 = vector.broadcast %cst_26 : bf16 to vector<2x10x1x64xbf16>
    %53 = tpu.concatenate %52, %51, %52 in 2 : vector<2x10x1x64xbf16>, vector<2x10x8x64xbf16>, vector<2x10x1x64xbf16> -> vector<2x10x10x64xbf16>
    %54 = vector.extract_strided_slice %53 {offsets = [0, 0, 0, 0], sizes = [2, 10, 8, 64], strides = [1, 1, 1, 1]} : vector<2x10x10x64xbf16> to vector<2x10x8x64xbf16>
    %55 = vector.extract_strided_slice %53 {offsets = [0, 0, 1, 0], sizes = [2, 10, 8, 64], strides = [1, 1, 1, 1]} : vector<2x10x10x64xbf16> to vector<2x10x8x64xbf16>
    %56 = vector.extract_strided_slice %53 {offsets = [0, 0, 2, 0], sizes = [2, 10, 8, 64], strides = [1, 1, 1, 1]} : vector<2x10x10x64xbf16> to vector<2x10x8x64xbf16>
    %57 = tpu.concatenate %54, %55, %56 in 3 : vector<2x10x8x64xbf16>, vector<2x10x8x64xbf16>, vector<2x10x8x64xbf16> -> vector<2x10x8x192xbf16>
    %58 = vector.extract_strided_slice %57 {offsets = [0, 0, 0, 0], sizes = [2, 8, 8, 192], strides = [1, 1, 1, 1]} : vector<2x10x8x192xbf16> to vector<2x8x8x192xbf16>
    %59 = vector.extract_strided_slice %57 {offsets = [0, 1, 0, 0], sizes = [2, 8, 8, 192], strides = [1, 1, 1, 1]} : vector<2x10x8x192xbf16> to vector<2x8x8x192xbf16>
    %60 = vector.extract_strided_slice %57 {offsets = [0, 2, 0, 0], sizes = [2, 8, 8, 192], strides = [1, 1, 1, 1]} : vector<2x10x8x192xbf16> to vector<2x8x8x192xbf16>
    %61 = tpu.concatenate %58, %59, %60 in 3 : vector<2x8x8x192xbf16>, vector<2x8x8x192xbf16>, vector<2x8x8x192xbf16> -> vector<2x8x8x576xbf16>
    %62 = vector.shape_cast %61 : vector<2x8x8x576xbf16> to vector<128x576xbf16>
    %cst_27 = arith.constant dense<0.000000e+00> : vector<128x64xf32>
    %63 = tpu.matmul %62, %47, %cst_27 {dimension_numbers = #tpu.dot_dimension_numbers<[1], [0], [0], [1], [0, 0, 1, 1], [], []>} : vector<128x576xbf16>, vector<576x64xbf16>, vector<128x64xf32> -> vector<128x64xf32>
    %cst_28 = arith.constant dense<0.000000e+00> : vector<64xf32>
    %64 = vector.multi_reduction <add>, %63, %cst_28 [0] : vector<128x64xf32> to vector<64xf32>
    %65 = vector.shape_cast %64 : vector<64xf32> to vector<1x64xf32>
    %cst_29 = arith.constant 7.812500e-03 : f32
    %66 = vector.broadcast %cst_29 : f32 to vector<1x64xf32>
    %67 = arith.mulf %65, %66 : vector<1x64xf32>
    %68 = arith.mulf %63, %63 : vector<128x64xf32>
    %cst_30 = arith.constant dense<0.000000e+00> : vector<64xf32>
    %69 = vector.multi_reduction <add>, %68, %cst_30 [0] : vector<128x64xf32> to vector<64xf32>
    %70 = vector.shape_cast %69 : vector<64xf32> to vector<1x64xf32>
    %cst_31 = arith.constant 7.812500e-03 : f32
    %71 = vector.broadcast %cst_31 : f32 to vector<1x64xf32>
    %72 = arith.mulf %70, %71 : vector<1x64xf32>
    %73 = arith.mulf %67, %67 : vector<1x64xf32>
    %74 = arith.subf %72, %73 : vector<1x64xf32>
    %cst_32 = arith.constant 9.99999974E-6 : f32
    %75 = vector.broadcast %cst_32 : f32 to vector<1x64xf32>
    %76 = arith.addf %74, %75 : vector<1x64xf32>
    %77 = math.rsqrt %76 : vector<1x64xf32>
    %78 = arith.mulf %77, %48 : vector<1x64xf32>
    %79 = vector.broadcast %67 : vector<1x64xf32> to vector<128x64xf32>
    %80 = arith.subf %63, %79 : vector<128x64xf32>
    %81 = vector.broadcast %78 : vector<1x64xf32> to vector<128x64xf32>
    %82 = arith.mulf %80, %81 : vector<128x64xf32>
    %83 = vector.broadcast %49 : vector<1x64xf32> to vector<128x64xf32>
    %84 = arith.addf %82, %83 : vector<128x64xf32>
    %cst_33 = arith.constant 0.000000e+00 : f32
    %85 = vector.broadcast %cst_33 : f32 to vector<128x64xf32>
    %86 = arith.maximumf %84, %85 : vector<128x64xf32>
    %87 = vector.shape_cast %86 : vector<128x64xf32> to vector<2x8x8x64xf32>
    %88 = vector.shape_cast %87 : vector<2x8x8x64xf32> to vector<2x4x2x8x64xf32>
    %cst_34 = arith.constant dense<0xFF800000> : vector<2x4x8x64xf32>
    %89 = vector.multi_reduction <maximumf>, %88, %cst_34 [2] : vector<2x4x2x8x64xf32> to vector<2x4x8x64xf32>
    %90 = vector.shape_cast %89 : vector<2x4x8x64xf32> to vector<2x4x4x2x64xf32>
    %cst_35 = arith.constant dense<0xFF800000> : vector<2x4x4x64xf32>
    %91 = vector.multi_reduction <maximumf>, %90, %cst_35 [3] : vector<2x4x4x2x64xf32> to vector<2x4x4x64xf32>
    %92 = arith.truncf %91 : vector<2x4x4x64xf32> to vector<2x4x4x64xbf16>
    %c0_36 = arith.constant 0 : index
    %c0_37 = arith.constant 0 : index
    %93 = vector.load %arg7[%c0_36, %c0_37] : memref<576x64xbf16, #tpu.memory_space<vmem>>, vector<576x64xbf16>
    %c0_38 = arith.constant 0 : index
    %c0_39 = arith.constant 0 : index
    %94 = vector.load %arg8[%c0_38, %c0_39] : memref<1x64xf32, #tpu.memory_space<vmem>>, vector<1x64xf32>
    %c0_40 = arith.constant 0 : index
    %c0_41 = arith.constant 0 : index
    %95 = vector.load %arg9[%c0_40, %c0_41] : memref<1x64xf32, #tpu.memory_space<vmem>>, vector<1x64xf32>
    %cst_42 = arith.constant 0.000000e+00 : bf16
    %96 = vector.broadcast %cst_42 : bf16 to vector<2x1x4x64xbf16>
    %97 = tpu.concatenate %96, %92, %96 in 1 : vector<2x1x4x64xbf16>, vector<2x4x4x64xbf16>, vector<2x1x4x64xbf16> -> vector<2x6x4x64xbf16>
    %cst_43 = arith.constant 0.000000e+00 : bf16
    %98 = vector.broadcast %cst_43 : bf16 to vector<2x6x1x64xbf16>
    %99 = tpu.concatenate %98, %97, %98 in 2 : vector<2x6x1x64xbf16>, vector<2x6x4x64xbf16>, vector<2x6x1x64xbf16> -> vector<2x6x6x64xbf16>
    %100 = vector.extract_strided_slice %99 {offsets = [0, 0, 0, 0], sizes = [2, 6, 4, 64], strides = [1, 1, 1, 1]} : vector<2x6x6x64xbf16> to vector<2x6x4x64xbf16>
    %101 = vector.extract_strided_slice %99 {offsets = [0, 0, 1, 0], sizes = [2, 6, 4, 64], strides = [1, 1, 1, 1]} : vector<2x6x6x64xbf16> to vector<2x6x4x64xbf16>
    %102 = vector.extract_strided_slice %99 {offsets = [0, 0, 2, 0], sizes = [2, 6, 4, 64], strides = [1, 1, 1, 1]} : vector<2x6x6x64xbf16> to vector<2x6x4x64xbf16>
    %103 = tpu.concatenate %100, %101, %102 in 3 : vector<2x6x4x64xbf16>, vector<2x6x4x64xbf16>, vector<2x6x4x64xbf16> -> vector<2x6x4x192xbf16>
    %104 = vector.extract_strided_slice %103 {offsets = [0, 0, 0, 0], sizes = [2, 4, 4, 192], strides = [1, 1, 1, 1]} : vector<2x6x4x192xbf16> to vector<2x4x4x192xbf16>
    %105 = vector.extract_strided_slice %103 {offsets = [0, 1, 0, 0], sizes = [2, 4, 4, 192], strides = [1, 1, 1, 1]} : vector<2x6x4x192xbf16> to vector<2x4x4x192xbf16>
    %106 = vector.extract_strided_slice %103 {offsets = [0, 2, 0, 0], sizes = [2, 4, 4, 192], strides = [1, 1, 1, 1]} : vector<2x6x4x192xbf16> to vector<2x4x4x192xbf16>
    %107 = tpu.concatenate %104, %105, %106 in 3 : vector<2x4x4x192xbf16>, vector<2x4x4x192xbf16>, vector<2x4x4x192xbf16> -> vector<2x4x4x576xbf16>
    %108 = vector.shape_cast %107 : vector<2x4x4x576xbf16> to vector<32x576xbf16>
    %cst_44 = arith.constant dense<0.000000e+00> : vector<32x64xf32>
    %109 = tpu.matmul %108, %93, %cst_44 {dimension_numbers = #tpu.dot_dimension_numbers<[1], [0], [0], [1], [0, 0, 1, 1], [], []>} : vector<32x576xbf16>, vector<576x64xbf16>, vector<32x64xf32> -> vector<32x64xf32>
    %cst_45 = arith.constant dense<0.000000e+00> : vector<64xf32>
    %110 = vector.multi_reduction <add>, %109, %cst_45 [0] : vector<32x64xf32> to vector<64xf32>
    %111 = vector.shape_cast %110 : vector<64xf32> to vector<1x64xf32>
    %cst_46 = arith.constant 3.125000e-02 : f32
    %112 = vector.broadcast %cst_46 : f32 to vector<1x64xf32>
    %113 = arith.mulf %111, %112 : vector<1x64xf32>
    %114 = arith.mulf %109, %109 : vector<32x64xf32>
    %cst_47 = arith.constant dense<0.000000e+00> : vector<64xf32>
    %115 = vector.multi_reduction <add>, %114, %cst_47 [0] : vector<32x64xf32> to vector<64xf32>
    %116 = vector.shape_cast %115 : vector<64xf32> to vector<1x64xf32>
    %cst_48 = arith.constant 3.125000e-02 : f32
    %117 = vector.broadcast %cst_48 : f32 to vector<1x64xf32>
    %118 = arith.mulf %116, %117 : vector<1x64xf32>
    %119 = arith.mulf %113, %113 : vector<1x64xf32>
    %120 = arith.subf %118, %119 : vector<1x64xf32>
    %cst_49 = arith.constant 9.99999974E-6 : f32
    %121 = vector.broadcast %cst_49 : f32 to vector<1x64xf32>
    %122 = arith.addf %120, %121 : vector<1x64xf32>
    %123 = math.rsqrt %122 : vector<1x64xf32>
    %124 = arith.mulf %123, %94 : vector<1x64xf32>
    %125 = vector.broadcast %113 : vector<1x64xf32> to vector<32x64xf32>
    %126 = arith.subf %109, %125 : vector<32x64xf32>
    %127 = vector.broadcast %124 : vector<1x64xf32> to vector<32x64xf32>
    %128 = arith.mulf %126, %127 : vector<32x64xf32>
    %129 = vector.broadcast %95 : vector<1x64xf32> to vector<32x64xf32>
    %130 = arith.addf %128, %129 : vector<32x64xf32>
    %cst_50 = arith.constant 0.000000e+00 : f32
    %131 = vector.broadcast %cst_50 : f32 to vector<32x64xf32>
    %132 = arith.maximumf %130, %131 : vector<32x64xf32>
    %133 = vector.shape_cast %132 : vector<32x64xf32> to vector<2x4x4x64xf32>
    %134 = vector.shape_cast %133 : vector<2x4x4x64xf32> to vector<2x2x2x4x64xf32>
    %cst_51 = arith.constant dense<0xFF800000> : vector<2x2x4x64xf32>
    %135 = vector.multi_reduction <maximumf>, %134, %cst_51 [2] : vector<2x2x2x4x64xf32> to vector<2x2x4x64xf32>
    %136 = vector.shape_cast %135 : vector<2x2x4x64xf32> to vector<2x2x2x2x64xf32>
    %cst_52 = arith.constant dense<0xFF800000> : vector<2x2x2x64xf32>
    %137 = vector.multi_reduction <maximumf>, %136, %cst_52 [3] : vector<2x2x2x2x64xf32> to vector<2x2x2x64xf32>
    %138 = arith.truncf %137 : vector<2x2x2x64xf32> to vector<2x2x2x64xbf16>
    %c0_53 = arith.constant 0 : index
    %c0_54 = arith.constant 0 : index
    %139 = vector.load %arg10[%c0_53, %c0_54] : memref<576x64xbf16, #tpu.memory_space<vmem>>, vector<576x64xbf16>
    %c0_55 = arith.constant 0 : index
    %c0_56 = arith.constant 0 : index
    %140 = vector.load %arg11[%c0_55, %c0_56] : memref<1x64xf32, #tpu.memory_space<vmem>>, vector<1x64xf32>
    %c0_57 = arith.constant 0 : index
    %c0_58 = arith.constant 0 : index
    %141 = vector.load %arg12[%c0_57, %c0_58] : memref<1x64xf32, #tpu.memory_space<vmem>>, vector<1x64xf32>
    %cst_59 = arith.constant 0.000000e+00 : bf16
    %142 = vector.broadcast %cst_59 : bf16 to vector<2x1x2x64xbf16>
    %143 = tpu.concatenate %142, %138, %142 in 1 : vector<2x1x2x64xbf16>, vector<2x2x2x64xbf16>, vector<2x1x2x64xbf16> -> vector<2x4x2x64xbf16>
    %cst_60 = arith.constant 0.000000e+00 : bf16
    %144 = vector.broadcast %cst_60 : bf16 to vector<2x4x1x64xbf16>
    %145 = tpu.concatenate %144, %143, %144 in 2 : vector<2x4x1x64xbf16>, vector<2x4x2x64xbf16>, vector<2x4x1x64xbf16> -> vector<2x4x4x64xbf16>
    %146 = vector.extract_strided_slice %145 {offsets = [0, 0, 0, 0], sizes = [2, 4, 2, 64], strides = [1, 1, 1, 1]} : vector<2x4x4x64xbf16> to vector<2x4x2x64xbf16>
    %147 = vector.extract_strided_slice %145 {offsets = [0, 0, 1, 0], sizes = [2, 4, 2, 64], strides = [1, 1, 1, 1]} : vector<2x4x4x64xbf16> to vector<2x4x2x64xbf16>
    %148 = vector.extract_strided_slice %145 {offsets = [0, 0, 2, 0], sizes = [2, 4, 2, 64], strides = [1, 1, 1, 1]} : vector<2x4x4x64xbf16> to vector<2x4x2x64xbf16>
    %149 = tpu.concatenate %146, %147, %148 in 3 : vector<2x4x2x64xbf16>, vector<2x4x2x64xbf16>, vector<2x4x2x64xbf16> -> vector<2x4x2x192xbf16>
    %150 = vector.extract_strided_slice %149 {offsets = [0, 0, 0, 0], sizes = [2, 2, 2, 192], strides = [1, 1, 1, 1]} : vector<2x4x2x192xbf16> to vector<2x2x2x192xbf16>
    %151 = vector.extract_strided_slice %149 {offsets = [0, 1, 0, 0], sizes = [2, 2, 2, 192], strides = [1, 1, 1, 1]} : vector<2x4x2x192xbf16> to vector<2x2x2x192xbf16>
    %152 = vector.extract_strided_slice %149 {offsets = [0, 2, 0, 0], sizes = [2, 2, 2, 192], strides = [1, 1, 1, 1]} : vector<2x4x2x192xbf16> to vector<2x2x2x192xbf16>
    %153 = tpu.concatenate %150, %151, %152 in 3 : vector<2x2x2x192xbf16>, vector<2x2x2x192xbf16>, vector<2x2x2x192xbf16> -> vector<2x2x2x576xbf16>
    %154 = vector.shape_cast %153 : vector<2x2x2x576xbf16> to vector<8x576xbf16>
    %cst_61 = arith.constant dense<0.000000e+00> : vector<8x64xf32>
    %155 = tpu.matmul %154, %139, %cst_61 {dimension_numbers = #tpu.dot_dimension_numbers<[1], [0], [0], [1], [0, 0, 1, 1], [], []>} : vector<8x576xbf16>, vector<576x64xbf16>, vector<8x64xf32> -> vector<8x64xf32>
    %cst_62 = arith.constant dense<0.000000e+00> : vector<64xf32>
    %156 = vector.multi_reduction <add>, %155, %cst_62 [0] : vector<8x64xf32> to vector<64xf32>
    %157 = vector.shape_cast %156 : vector<64xf32> to vector<1x64xf32>
    %cst_63 = arith.constant 1.250000e-01 : f32
    %158 = vector.broadcast %cst_63 : f32 to vector<1x64xf32>
    %159 = arith.mulf %157, %158 : vector<1x64xf32>
    %160 = arith.mulf %155, %155 : vector<8x64xf32>
    %cst_64 = arith.constant dense<0.000000e+00> : vector<64xf32>
    %161 = vector.multi_reduction <add>, %160, %cst_64 [0] : vector<8x64xf32> to vector<64xf32>
    %162 = vector.shape_cast %161 : vector<64xf32> to vector<1x64xf32>
    %cst_65 = arith.constant 1.250000e-01 : f32
    %163 = vector.broadcast %cst_65 : f32 to vector<1x64xf32>
    %164 = arith.mulf %162, %163 : vector<1x64xf32>
    %165 = arith.mulf %159, %159 : vector<1x64xf32>
    %166 = arith.subf %164, %165 : vector<1x64xf32>
    %cst_66 = arith.constant 9.99999974E-6 : f32
    %167 = vector.broadcast %cst_66 : f32 to vector<1x64xf32>
    %168 = arith.addf %166, %167 : vector<1x64xf32>
    %169 = math.rsqrt %168 : vector<1x64xf32>
    %170 = arith.mulf %169, %140 : vector<1x64xf32>
    %171 = vector.broadcast %159 : vector<1x64xf32> to vector<8x64xf32>
    %172 = arith.subf %155, %171 : vector<8x64xf32>
    %173 = vector.broadcast %170 : vector<1x64xf32> to vector<8x64xf32>
    %174 = arith.mulf %172, %173 : vector<8x64xf32>
    %175 = vector.broadcast %141 : vector<1x64xf32> to vector<8x64xf32>
    %176 = arith.addf %174, %175 : vector<8x64xf32>
    %cst_67 = arith.constant 0.000000e+00 : f32
    %177 = vector.broadcast %cst_67 : f32 to vector<8x64xf32>
    %178 = arith.maximumf %176, %177 : vector<8x64xf32>
    %179 = vector.shape_cast %178 : vector<8x64xf32> to vector<2x2x2x64xf32>
    %180 = vector.shape_cast %179 : vector<2x2x2x64xf32> to vector<2x1x2x2x64xf32>
    %cst_68 = arith.constant dense<0xFF800000> : vector<2x1x2x64xf32>
    %181 = vector.multi_reduction <maximumf>, %180, %cst_68 [2] : vector<2x1x2x2x64xf32> to vector<2x1x2x64xf32>
    %182 = vector.shape_cast %181 : vector<2x1x2x64xf32> to vector<2x1x1x2x64xf32>
    %cst_69 = arith.constant dense<0xFF800000> : vector<2x1x1x64xf32>
    %183 = vector.multi_reduction <maximumf>, %182, %cst_69 [3] : vector<2x1x1x2x64xf32> to vector<2x1x1x64xf32>
    %c0_70 = arith.constant 0 : index
    %c0_71 = arith.constant 0 : index
    %c0_72 = arith.constant 0 : index
    %c0_73 = arith.constant 0 : index
    %184 = vector.load %arg13[%c0_70, %c0_71, %c0_72, %c0_73] : memref<2x1x1x64xf32, #tpu.memory_space<vmem>>, vector<2x1x1x64xf32>
    tpu.vector_store %arg13[%c0_70, %c0_71, %c0_72, %c0_73], %183 {strides = array<i32>} : memref<2x1x1x64xf32, #tpu.memory_space<vmem>>, vector<2x1x1x64xf32>,
    return
  }
}

</mosaic_0001>

<bundles_post_ra>
// kernel: tpu_custom_call.1
= control target key start
LH: loop header
LB: loop body
LE: loop exit
PB: predicated region body
PF: predicated region fallthrough
CT: control target
= control target key end

     0   :  { %vm578_vm0 = vcmask 1040384   ;;  %vm579_vm1 = vsmask.f32 256  ;;  %v14754_v11 = vmov 0  ;;  %vm647_vm3 = vsmask.f32 7424  ;;  %s14550_s0 = inlined_call_operand.vmem [shape: bf16[2,16,16,8], index: 0, kind: input, shape index: {}]   ;;  %s14551_s1 = inlined_call_operand.vmem [shape: bf16[72,64], index: 1, kind: input, shape index: {}]   ;;  %s14552_s2 = inlined_call_operand.vmem [shape: f32[1,64], index: 2, kind: input, shape index: {}]   ;;  %s14553_s3 = inlined_call_operand.vmem [shape: f32[1,64], index: 3, kind: input, shape index: {}]   ;;  %s14554_s4 = inlined_call_operand.vmem [shape: bf16[576,64], index: 4, kind: input, shape index: {}]   ;;  %s14555_s5 = inlined_call_operand.vmem [shape: f32[1,64], index: 5, kind: input, shape index: {}]   ;;  %s14556_s6 = inlined_call_operand.vmem [shape: f32[1,64], index: 6, kind: input, shape index: {}]   ;;  %s14557_s7 = inlined_call_operand.vmem [shape: bf16[576,64], index: 7, kind: input, shape index: {}]   ;;  %s14558_s8 = inlined_call_operand.vmem [shape: f32[1,64], index: 8, kind: input, shape index: {}]   ;;  %s14559_s9 = inlined_call_operand.vmem [shape: f32[1,64], index: 9, kind: input, shape index: {}]   ;;  %s14560_s10 = inlined_call_operand.vmem [shape: bf16[576,64], index: 10, kind: input, shape index: {}]   ;;  %s14561_s11 = inlined_call_operand.vmem [shape: f32[1,64], index: 11, kind: input, shape index: {}]   ;;  %s14562_s12 = inlined_call_operand.vmem [shape: f32[1,64], index: 12, kind: input, shape index: {}]   ;;  %s14563_s13 = inlined_call_operand.hbm [shape: f32[2,1,1,64], index: 13, kind: output, shape index: {}]  }
   0x1   :  { %v8643_v0 = vld [vmem:[%s14550_s0 + $0x10] sm:$0xff]  ;;  %v8641_v1 = vld [vmem:[%s14550_s0] sm:$0xff]  ;;  %v8642_v2 = vld [vmem:[%s14550_s0 + $0x8] sm:$0xff]  ;;  %vm1176_vm4 = vcmask 1046528  }
   0x2   :  { %v303_v3 = vshrl.u32 %v8643_v0, 16  ;;  %v306_v4 = vshll.u32 %v8643_v0, 16  ;;  %v8644_v5 = vld [vmem:[%s14550_s0 + $0x18] sm:$0xff]  ;;  %v289_v6 = vshrl.u32 %v8641_v1, 16  ;;  %v292_v7 = vshll.u32 %v8641_v1, 16  ;;  %vm8932_vm2 = vmand %vm578_vm0, %vm579_vm1 }
   0x3   :  { %v296_v8 = vshrl.u32 %v8642_v2, 16  ;;  %v299_v10 = vshll.u32 %v8642_v2, 16  ;;  %v14755_v11 = vsel %vm8932_vm2, 4294967295, %v14754_v11  ;;  %v310_v16 = vshrl.u32 %v8644_v5, 16 }
   0x4   :  { %v305_v9 = vrot.slane %v303_v3, 7  ;;  %14756 = vst [vmem:[#allocation5_spill] sm:$0xff] %v14755_v11  ;;  %v291_v12 = vrot.slane %v289_v6, 7 }
   0x5   :  { %v298_v13 = vrot.slane %v296_v8, 7 }
   0x6   :  { %v308_v14 = vor.u32 %v306_v4, %v305_v9  ;;  %v617_v15 = vsel %vm8932_vm2, %v305_v9, 0  ;;  %v294_v18 = vor.u32 %v292_v7, %v291_v12  ;;  %v615_v19 = vsel %vm8932_vm2, %v291_v12, 0 }
   0x7   :  { %v692_v17 = vshll.u32 %v617_v15, 16  ;;  %v668_v21 = vshll.u32 %v615_v19, 16  ;;  %v1181_v22 = vrot.slane %v615_v19, 1  ;;  %v301_v23 = vor.u32 %v299_v10, %v298_v13 }
   0x8   :  { %v8942_v20 = vsel %vm8932_vm2, 0, %v308_v14 }
   0x9   :  { %18 = vsyncpa [#allocation3], 0  ;;  %v685_v24 = vshrl.u32 %v8942_v20, 16  ;;  %v687_v25 = vshll.u32 %v8942_v20, 16  ;;  %v8948_v26 = vsel %vm8932_vm2, 0, %v294_v18  ;;  %v313_v27 = vshll.u32 %v8644_v5, 16 }
   0xa   :  { %v661_v28 = vshrl.u32 %v8948_v26, 16  ;;  %v663_v29 = vshll.u32 %v8948_v26, 16  ;;  %v1180_v30 = vrot.slane %v8948_v26, 1  ;;  %v312_v31 = vrot.slane %v310_v16, 7  ;;  %s8841_s16 = smov 16   ;;  %s8843_s17 = smov 8  }
   0xb   :  { %v689_v32 = vrot.slane %v687_v25, 1  ;;  %v694_v33 = vrot.slane %v692_v17, 1  ;;  %v8955_v34 = vsel %vm8932_vm2, 0, %v301_v23  ;;  %v616_v35 = vsel %vm8932_vm2, %v298_v13, 0  ;;  %v8645_v16 = vld [vmem:[%s14550_s0 + $0x20] sm:$0xff]  ;;  %s8844_s22 = smov 48  }
   0xc   :  { %v665_v36 = vrot.slane %v663_v29, 1  ;;  %v670_v37 = vrot.slane %v668_v21, 1  ;;  %v1182_v38 = vsel %vm1176_vm4, %v1180_v30, %v1181_v22  ;;  %v675_v39 = vshll.u32 %v8955_v34, 16  ;;  %s8845_s25 = smov 24   ;;  %s8010_s15 = sshll.u32 %s14563_s13, 4  ;;  %s8011_s15 = int_to_ptr.hbm [resolvable:$true] %s8010_s15 }
   0xd   :  { %v690_v40 = vor.u32 %v689_v32, %v685_v24  ;;  %1278 = vrot.lane.b32.xlu1 %v1182_v38, %s8841_s16  ;;  %v673_v41 = vshrl.u32 %v8955_v34, 16  ;;  %v680_v42 = vshll.u32 %v616_v35, 16  ;;  %v1183_v43 = vrot.slane %v8955_v34, 1  ;;  %s8847_s18 = smov [#allocation2]  }
   0xe   :  { %v666_v44 = vor.u32 %v665_v36, %v661_v28  ;;  %v677_v45 = vrot.slane %v675_v39, 1  ;;  %v1184_v46 = vrot.slane %v616_v35, 1  ;;  %v315_v47 = vor.u32 %v313_v27, %v312_v31  ;;  %s8008_s19 = sshll.u32 %s8847_s18, 4  ;;  %s8009_s19 = int_to_ptr.vmem [resolvable:$true] %s8008_s19 }
   0xf   :  { %v695_v48 = vsel %vm647_vm3, %v690_v40, %v694_v33  ;;  %v8842_v49 = vmov 0   ;;  %vm14628_vm5 = vcmask 1042432   ;;  %v1186_v53 = vrot.slane %v8942_v20, 1 }
  0x10   :  { %v284_v50 = vrot.slane %v8842_v49, 7  ;;  %1050 = vrot.lane.b32.xlu2 %v695_v48, %s8843_s17  ;;  %v671_v51 = vsel %vm647_vm3, %v666_v44, %v670_v37  ;;  %v8969_v52 = vsel %vm8932_vm2, 0, %v315_v47  ;;  %v1187_v54 = vrot.slane %v617_v15, 1  ;;  %v8646_v48 = vld [vmem:[%s14550_s0 + $0x28] sm:$0xff] }
  0x11   :  { %1046 = vrot.lane.b32.xlu0 %v671_v51, %s8843_s17  ;;  %v682_v55 = vrot.slane %v680_v42, 1  ;;  %v618_v56 = vsel %vm8932_vm2, %v312_v31, 0  ;;  %v678_v57 = vor.u32 %v677_v45, %v673_v41  ;;  %v1185_v58 = vsel %vm1176_vm4, %v1183_v43, %v1184_v46  ;;  %v8647_v41 = vld [vmem:[%s14550_s0 + $0x30] sm:$0xff] }
  0x12   :  { %v699_v59 = vshll.u32 %v8969_v52, 16  ;;  %vm6514_vm6 = vsmask.f32 2304  ;;  %v8979_v60 = vsel %vm8932_vm2, 0, %v284_v50  ;;  %v14758_v61 = vmov 0 }
  0x13   :  { %14757 = vst [vmem:[#allocation6_spill] sm:$0xff] %v8979_v60  ;;  %vm8982_vm7 = vmand %vm14628_vm5, %vm6514_vm6  ;;  %v1188_v63 = vsel %vm1176_vm4, %v1186_v53, %v1187_v54  ;;  %v697_v0 = vshrl.u32 %v8969_v52, 16  ;;  %v704_v1 = vshll.u32 %v618_v56, 16  ;;  %v683_v3 = vsel %vm647_vm3, %v678_v57, %v682_v55  ;;  %v8648_v57 = vld [vmem:[%s14550_s0 + $0x38] sm:$0xff] }
  0x14   :  { %v14759_v61 = vsel %vm8982_vm7, 4294967295, %v14758_v61  ;;  %v8989_v62 = vsel %vm8982_vm7, %v8979_v60, 0  ;;  %v701_v4 = vrot.slane %v699_v59, 1  ;;  %v1189_v5 = vrot.slane %v8969_v52, 1 }
  0x15   :  { %14760 = vst [vmem:[#allocation7_spill] sm:$0xff] %v14759_v61  ;;  %1280 = vrot.lane.b32.xlu1 %v1185_v58, %s8841_s16  ;;  %v8995_v2 = vrot.slane %v8989_v62, 1  ;;  %v1190_v6 = vrot.slane %v618_v56, 1  ;;  %v706_v8 = vrot.slane %v704_v1, 1  ;;  %v614_v12 = vsel %vm8932_vm2, %v284_v50, 0 }
  0x16   :  { %14761 = vst [vmem:[#allocation8_spill] sm:$0xff] %v8989_v62  ;;  %v702_v7 = vor.u32 %v701_v4, %v697_v0  ;;  %v1177_v13 = vrot.slane %v8979_v60, 1  ;;  %v1178_v14 = vrot.slane %v614_v12, 1  ;;  %v317_v17 = vshrl.u32 %v8645_v16, 16 }
  0x17   :  { %14762 = vst [vmem:[#allocation9_spill] sm:$0xff] %v8995_v2  ;;  %v1191_v9 = vsel %vm1176_vm4, %v1189_v5, %v1190_v6  ;;  %v320_v19 = vshll.u32 %v8645_v16, 16  ;;  %v651_v32 = vshll.u32 %v8979_v60, 16  ;;  %v649_v33 = vshrl.u32 %v8979_v60, 16 }
  0x18   :  { %6809 = vst [vmem:[#allocation1 + $0x23] ss:$4 sm:$0xff] %v8995_v2  ;;  %1282 = vrot.lane.b32.xlu2 %v1188_v63, %s8841_s16  ;;  %v707_v10 = vsel %vm647_vm3, %v702_v7, %v706_v8  ;;  %v1179_v15 = vsel %vm1176_vm4, %v1177_v13, %v1178_v14  ;;  %v319_v18 = vrot.slane %v317_v17, 7  ;;  %v656_v36 = vshll.u32 %v614_v12, 16 }
  0x19   :  { %1048 = vrot.lane.b32.xlu0 %v683_v3, %s8843_s17  ;;  %v653_v35 = vrot.slane %v651_v32, 1  ;;  %vm1342_vm8 = vcmask 64512   ;;  %v331_v42 = vshrl.u32 %v8647_v41, 16  ;;  %vm1409_vm9 = vcmask 130048  }
  0x1a   :  { %v322_v21 = vor.u32 %v320_v19, %v319_v18  ;;  %v9021_v24 = vsel %vm8932_vm2, %v319_v18, 0  ;;  %v658_v38 = vrot.slane %v656_v36, 1  ;;  %v334_v46 = vshll.u32 %v8647_v41, 16 }
  0x1b   :  { %v716_v28 = vshll.u32 %v9021_v24, 16  ;;  %v654_v37 = vor.u32 %v653_v35, %v649_v33  ;;  %v333_v45 = vrot.slane %v331_v42, 7  ;;  %v324_v50 = vshrl.u32 %v8646_v48, 16 }
  0x1c   :  { %v9016_v22 = vsel %vm8932_vm2, 0, %v322_v21  ;;  %v327_v54 = vshll.u32 %v8646_v48, 16  ;;  %v338_v58 = vshrl.u32 %v8648_v57, 16  ;;  %v341_v3 = vshll.u32 %v8648_v57, 16 }
  0x1d   :  { %1284 = vrot.lane.b32.xlu1 %v1191_v9, %s8841_s16  ;;  %v711_v23 = vshll.u32 %v9016_v22, 16  ;;  %v709_v25 = vshrl.u32 %v9016_v22, 16  ;;  %v718_v30 = vrot.slane %v716_v28, 1  ;;  %v659_v39 = vsel %vm647_vm3, %v654_v37, %v658_v38 }
  0x1e   :  { %v336_v49 = vor.u32 %v334_v46, %v333_v45  ;;  %v9050_v51 = vsel %vm8932_vm2, %v333_v45, 0  ;;  %v326_v53 = vrot.slane %v324_v50, 7  ;;  %v340_v1 = vrot.slane %v338_v58, 7  ;;  %v8676_v58 = vld [vmem:[%s14551_s1 + $0x18] sm:$0xff] }
  0x1f   :  { %v713_v27 = vrot.slane %v711_v23, 1  ;;  %v1199_v56 = vrot.slane %v9050_v51, 1  ;;  %v1192_v13 = vrot.slane %v9016_v22, 1  ;;  %v1193_v14 = vrot.slane %v9021_v24, 1 }
  0x20   :  { %1044 = vrot.lane.b32.xlu2 %v659_v39, %s8843_s17  ;;  %v329_v63 = vor.u32 %v327_v54, %v326_v53  ;;  %v343_v5 = vor.u32 %v341_v3, %v340_v1  ;;  %v620_v17 = vsel %vm8932_vm2, %v326_v53, 0  ;;  %v740_v46 = vshll.u32 %v9050_v51, 16  ;;  %v118_v51 = vld [vmem:[%s14551_s1 + $0x20] sm:$0xf]  ;;  %v8675_v3 = vld [vmem:[%s14551_s1 + $0x10] sm:$0xff] }
  0x21   :  { %1052 = vrot.lane.b32.xlu0 %v707_v10, %s8843_s17  ;;  %v714_v29 = vor.u32 %v713_v27, %v709_v25  ;;  %v622_v10 = vsel %vm8932_vm2, %v340_v1, 0  ;;  %v1194_v27 = vsel %vm1176_vm4, %v1192_v13, %v1193_v14  ;;  %v1196_v38 = vrot.slane %v620_v17, 1 }
  0x22   :  { %v9065_v7 = vsel %vm8932_vm2, 0, %v329_v63  ;;  %v9072_v9 = vsel %vm8932_vm2, 0, %v343_v5  ;;  %v752_v16 = vshll.u32 %v622_v10, 16  ;;  %v1202_v53 = vrot.slane %v622_v10, 1  ;;  %v8674_v5 = vld [vmem:[%s14551_s1 + $0x8] sm:$0xff] }
  0x23   :  { %v719_v31 = vsel %vm647_vm3, %v714_v29, %v718_v30  ;;  %v747_v12 = vshll.u32 %v9072_v9, 16  ;;  %v721_v28 = vshrl.u32 %v9065_v7, 16  ;;  %v728_v30 = vshll.u32 %v620_v17, 16 }
  0x24   :  { %v754_v19 = vrot.slane %v752_v16, 1  ;;  %v1201_v50 = vrot.slane %v9072_v9, 1  ;;  %vm1856_vm10 = vcmask 1043456   ;;  %vm1635_vm11 = vcmask 195584  }
  0x25   :  { %v749_v18 = vrot.slane %v747_v12, 1  ;;  %v730_v35 = vrot.slane %v728_v30, 1  ;;  %v8673_v12 = vld [vmem:[%s14551_s1] sm:$0xff]  ;;  %vm1791_vm12 = vcmask 588800   ;;  %vm1700_vm13 = vcmask 392192  }
  0x26   :  { %v1203_v54 = vsel %vm1176_vm4, %v1201_v50, %v1202_v53  ;;  %vm2029_vm14 = vcmask 523264   ;;  %vm4439_vm6 = vcmask 1041409  }
  0x29   :  { %1276 = vrot.lane.b32.xlu0 %v1179_v15, %s8841_s16  ;;  %v723_v15 = vshll.u32 %v9065_v7, 16 }
  0x2b   :  { %v725_v29 = vrot.slane %v723_v15, 1 }
  0x2d   :  { %v726_v33 = vor.u32 %v725_v29, %v721_v28 }
  0x2f   :  { %v731_v36 = vsel %vm647_vm3, %v726_v33, %v730_v35  ;;  %v8650_v35 = vld [vmem:[%s14550_s0 + $0x48] sm:$0xff] }
  0x31   :  { %1054 = vrot.lane.b32.xlu0 %v719_v31, %s8843_s17 }
  0x6a   :  { %v1051_v40 = vpop.permute.xlu2 %1050 }
  0x6b   :  { %v1350_v43 = vsel %vm1342_vm8, %v8942_v20, %v1051_v40  ;;  %v9046_v20 = vsel %vm8932_vm2, 0, %v336_v49  ;;  %v742_v49 = vrot.slane %v740_v46, 1 }
  0x6c   :  { %v1198_v55 = vrot.slane %v9046_v20, 1  ;;  %v735_v39 = vshll.u32 %v9046_v20, 16 }
  0x6e   :  { %v1200_v0 = vsel %vm1176_vm4, %v1198_v55, %v1199_v56  ;;  %v737_v45 = vrot.slane %v735_v39, 1  ;;  %v1781_v55 = vunpack.c.l.b16 %v118_v51  ;;  %v352_v39 = vshrl.u32 %v8650_v35, 16 }
  0x70   :  { %v1786_v56 = vpack.c.b16 %v1781_v55, %v1781_v55 }
  0x72   :  { %v1283_v44 = vpop.permute.xlu2 %1282  ;;  %v1858_v57 = vsel %vm1856_vm10, %v1786_v56, 0 }
  0x73   :  { %v9037_v47 = vsel %vm1409_vm9, %v1350_v43, %v1283_v44  ;;  %v733_v44 = vshrl.u32 %v9046_v20, 16  ;;  %1863 = vmatpush.bf16.msra.mxu0 %v1858_v57  ;;  %8785 = vmatpush.bf16.msra.mxu1 %v1858_v57 }
  0x74   :  { %1575 = vrot.lane.b32.xlu0 %v9037_v47, %s8844_s22  ;;  %8786 = vmatpush.bf16.msra.mxu3 %v1858_v57 }
  0x75   :  { %v738_v48 = vor.u32 %v737_v45, %v733_v44 }
  0x77   :  { %1864 = vmatpush.bf16.msra.mxu0 %v8676_v58  ;;  %8787 = vmatpush.bf16.msra.mxu1 %v8676_v58 }
  0x78   :  { %8788 = vmatpush.bf16.msra.mxu3 %v8676_v58 }
  0x7b   :  { %1865 = vmatpush.bf16.msra.mxu0 %v8675_v3  ;;  %8789 = vmatpush.bf16.msra.mxu1 %v8675_v3 }
  0x7c   :  { %1512 = vrot.lane.b32.xlu0 %v9037_v47, %s8845_s25  ;;  %8790 = vmatpush.bf16.msra.mxu3 %v8675_v3 }
  0x7f   :  { %v1279_v59 = vpop.permute.xlu1 %1278  ;;  %1866 = vmatpush.bf16.msra.mxu0 %v8674_v5  ;;  %8791 = vmatpush.bf16.msra.mxu1 %v8674_v5 }
  0x80   :  { %8792 = vmatpush.bf16.msra.mxu3 %v8674_v5 }
  0x83   :  { %v1047_v4 = vpop.permute.xlu0 %1046  ;;  %1867 = vmatpush.bf16.msra.mxu0 %v8673_v12  ;;  %8793 = vmatpush.bf16.msra.mxu1 %v8673_v12 }
  0x84   :  { %v1346_v6 = vsel %vm1342_vm8, %v8948_v26, %v1047_v4  ;;  %1290 = vrot.lane.b32.xlu0 %v1200_v0, %s8841_s16  ;;  %v745_v26 = vshrl.u32 %v9072_v9, 16  ;;  %8794 = vmatpush.bf16.msra.mxu3 %v8673_v12 }
  0x85   :  { %v9068_v8 = vsel %vm1409_vm9, %v1346_v6, %v1279_v59  ;;  %v8649_v59 = vld [vmem:[%s14550_s0 + $0x40] sm:$0xff] }
  0x86   :  { %1508 = vrot.lane.b32.xlu1 %v9068_v8, %s8845_s25  ;;  %v750_v23 = vor.u32 %v749_v18, %v745_v26  ;;  %v345_v63 = vshrl.u32 %v8649_v59, 16  ;;  %v348_v1 = vshll.u32 %v8649_v59, 16 }
  0x87   :  { %v1281_v21 = vpop.permute.xlu1 %1280 }
  0x88   :  { %v755_v31 = vsel %vm647_vm3, %v750_v23, %v754_v19  ;;  %v347_v0 = vrot.slane %v345_v63, 7 }
  0x8a   :  { %v350_v4 = vor.u32 %v348_v1, %v347_v0  ;;  %v9144_v26 = vsel %vm8932_vm2, %v347_v0, 0 }
  0x8b   :  { %v1049_v25 = vpop.permute.xlu0 %1048  ;;  %v764_v15 = vshll.u32 %v9144_v26, 16 }
  0x8c   :  { %v1348_v24 = vsel %vm1342_vm8, %v8955_v34, %v1049_v25  ;;  %1060 = vrot.lane.b32.xlu0 %v755_v31, %s8843_s17  ;;  %v1195_v34 = vrot.slane %v9065_v7, 1  ;;  %v9139_v6 = vsel %vm8932_vm2, 0, %v350_v4 }
  0x8d   :  { %v9091_v32 = vsel %vm1409_vm9, %v1348_v24, %v1281_v21  ;;  %v759_v10 = vshll.u32 %v9139_v6, 16  ;;  %v757_v13 = vshrl.u32 %v9139_v6, 16  ;;  %v766_v17 = vrot.slane %v764_v15, 1  ;;  %v1045_v21 = vpop.permute.xlu2 %1044 }
  0x8e   :  { %1286 = vrot.lane.b32.xlu1 %v1194_v27, %s8841_s16  ;;  %1573 = vrot.lane.b32.xlu2 %v9091_v32, %s8844_s22  ;;  %v1197_v42 = vsel %vm1176_vm4, %v1195_v34, %v1196_v38  ;;  %v1344_v29 = vsel %vm1342_vm8, %v8979_v60, %v1045_v21  ;;  %v8652_v38 = vld [vmem:[%s14550_s0 + $0x58] sm:$0xff] }
  0x8f   :  { %v1285_v41 = vpop.permute.xlu1 %1284  ;;  %v761_v14 = vrot.slane %v759_v10, 1  ;;  %v369_v55 = vshll.u32 %v8652_v38, 16  ;;  %v1205_v10 = vrot.slane %v9144_v26, 1 }
  0x91   :  { %v762_v16 = vor.u32 %v761_v14, %v757_v13 }
  0x93   :  { %v1053_v37 = vpop.permute.xlu0 %1052  ;;  %v767_v18 = vsel %vm647_vm3, %v762_v16, %v766_v17 }
  0x94   :  { %v1352_v40 = vsel %vm1342_vm8, %v8969_v52, %v1053_v37  ;;  %v743_v52 = vsel %vm647_vm3, %v738_v48, %v742_v49  ;;  %v8651_v37 = vld [vmem:[%s14550_s0 + $0x50] sm:$0xff]  ;;  %v354_v48 = vrot.slane %v352_v39, 7  ;;  %v355_v49 = vshll.u32 %v8650_v35, 16 }
  0x95   :  { %v9107_v43 = vsel %vm1409_vm9, %v1352_v40, %v1285_v41  ;;  %v359_v40 = vshrl.u32 %v8651_v37, 16 }
  0x96   :  { %1056 = vrot.lane.b32.xlu1 %v731_v36, %s8843_s17  ;;  %1510 = vrot.lane.b32.xlu2 %v9091_v32, %s8845_s25  ;;  %v357_v56 = vor.u32 %v355_v49, %v354_v48  ;;  %v624_v13 = vsel %vm8932_vm2, %v354_v48, 0 }
  0x97   :  { %v361_v53 = vrot.slane %v359_v40, 7  ;;  %v776_v21 = vshll.u32 %v624_v13, 16 }
  0x98   :  { %v9191_v63 = vsel %vm8932_vm2, 0, %v357_v56 }
  0x99   :  { %v625_v4 = vsel %vm8932_vm2, %v361_v53, 0  ;;  %v771_v12 = vshll.u32 %v9191_v63, 16  ;;  %v769_v26 = vshrl.u32 %v9191_v63, 16  ;;  %v1207_v35 = vrot.slane %v9191_v63, 1 }
  0x9a   :  { %v1211_v15 = vrot.slane %v625_v4, 1 }
  0x9b   :  { %v1277_v19 = vpop.permute.xlu0 %1276 }
  0x9c   :  { %v9158_v31 = vsel %vm1409_vm9, %v1344_v29, %v1277_v19  ;;  %v773_v19 = vrot.slane %v771_v12, 1  ;;  %v8654_v12 = vld [vmem:[%s14550_s0 + $0x68] sm:$0xff] }
  0x9e   :  { %1288 = vrot.lane.b32.xlu2 %v1197_v42, %s8841_s16  ;;  %1577 = vrot.lane.b32.xlu1 %v9107_v43, %s8844_s22  ;;  %v366_v42 = vshrl.u32 %v8652_v38, 16 }
  0xa3   :  { %v1055_v23 = vpop.permute.xlu0 %1054 }
  0xa4   :  { %v1354_v41 = vsel %vm1342_vm8, %v9016_v22, %v1055_v23  ;;  %v368_v22 = vrot.slane %v366_v42, 7 }
  0xa6   :  { %1058 = vrot.lane.b32.xlu2 %v743_v52, %s8843_s17  ;;  %1514 = vrot.lane.b32.xlu1 %v9107_v43, %s8845_s25  ;;  %v371_v58 = vor.u32 %v369_v55, %v368_v22  ;;  %v626_v17 = vsel %vm8932_vm2, %v368_v22, 0 }
  0xa7   :  { %v800_v29 = vshll.u32 %v626_v17, 16 }
  0xa8   :  { %v9209_v5 = vsel %vm8932_vm2, 0, %v371_v58 }
  0xa9   :  { %v795_v16 = vshll.u32 %v9209_v5, 16  ;;  %v802_v38 = vrot.slane %v800_v29, 1  ;;  %v1213_v56 = vrot.slane %v9209_v5, 1 }
  0xae   :  { %1292 = vrot.lane.b32.xlu1 %v1203_v54, %s8841_s16  ;;  %v362_v54 = vshll.u32 %v8651_v37, 16 }
  0xb0   :  { %v364_v57 = vor.u32 %v362_v54, %v361_v53 }
  0xb2   :  { %v9197_v1 = vsel %vm8932_vm2, 0, %v364_v57  ;;  %v1214_v57 = vrot.slane %v626_v17, 1 }
  0xb3   :  { %v1210_v14 = vrot.slane %v9197_v1, 1  ;;  %v783_v37 = vshll.u32 %v9197_v1, 16  ;;  %v781_v42 = vshrl.u32 %v9197_v1, 16 }
  0xb4   :  { %v1215_v58 = vsel %vm1176_vm4, %v1213_v56, %v1214_v57  ;;  %v8655_v57 = vld [vmem:[%s14550_s0 + $0x70] sm:$0xff] }
  0xb6   :  { %1062 = vrot.lane.b32.xlu1 %v767_v18, %s8843_s17 }
  0xe6   :  { %v1576_v27 = vpop.permute.xlu0 %1575 }
  0xe8   :  { %v1574_v25 = vpop.permute.xlu2 %1573 }
  0xee   :  { %v9155_v30 = vpop.permute.xlu0 %1512 }
  0xf0   :  { %v1511_v28 = vpop.permute.xlu2 %1510 }
  0xf6   :  { %v1291_v44 = vpop.permute.xlu0 %1290 }
  0xf8   :  { %v1509_v24 = vpop.permute.xlu1 %1508  ;;  %v1289_v33 = vpop.permute.xlu2 %1288 }
  0xf9   :  { %v1637_v36 = vsel %vm1635_vm11, %v9158_v31, %v1509_v24  ;;  %v774_v24 = vor.u32 %v773_v19, %v769_v26 }
  0xfa   :  { %v1702_v34 = vsel %vm1700_vm13, %v1637_v36, %v1574_v25  ;;  %v1212_v25 = vsel %vm1176_vm4, %v1210_v14, %v1211_v15  ;;  %v1208_v36 = vrot.slane %v624_v13, 1  ;;  %v380_v15 = vshrl.u32 %v8654_v12, 16 }
  0xfb   :  { %8166 = vmatmul.msk.bf16.vlgmr.msra.gmra.mxu0 %vm1791_vm12, %v1702_v34 }
  0xfc   :  { %v382_v19 = vrot.slane %v380_v15, 7 }
 0x100   :  { %v1287_v45 = vpop.permute.xlu1 %1286  ;;  %v1059_v46 = vpop.permute.xlu2 %1058 }
 0x101   :  { %v1358_v52 = vsel %vm1342_vm8, %v9046_v20, %v1059_v46  ;;  %v9178_v50 = vsel %vm1409_vm9, %v1354_v41, %v1287_v45  ;;  %v1639_v20 = vsel %vm1635_vm11, %v9068_v8, %v1511_v28  ;;  %v797_v28 = vrot.slane %v795_v16, 1 }
 0x102   :  { %1579 = vrot.lane.b32.xlu2 %v9178_v50, %s8844_s22  ;;  %v9183_v51 = vsel %vm1409_vm9, %v1358_v52, %v1291_v44  ;;  %v1704_v8 = vsel %vm1700_vm13, %v1639_v20, %v1576_v27  ;;  %v793_v27 = vshrl.u32 %v9209_v5, 16  ;;  %v1209_v41 = vsel %vm1176_vm4, %v1207_v35, %v1208_v36  ;;  %v1061_v52 = vpop.permute.xlu0 %1060 }
 0x103   :  { %1583 = vrot.lane.b32.xlu1 %v9183_v51, %s8844_s22  ;;  %v785_v44 = vrot.slane %v783_v37, 1  ;;  %v788_v45 = vshll.u32 %v625_v4, 16  ;;  %v1641_v46 = vsel %vm1635_vm11, %v9091_v32, %v9155_v30  ;;  %v1360_v22 = vsel %vm1342_vm8, %v9072_v9, %v1061_v52  ;;  %v8653_v9 = vld [vmem:[%s14550_s0 + $0x60] sm:$0xff] }
 0x104   :  { %v798_v34 = vor.u32 %v797_v28, %v793_v27 }
 0x105   :  { %v786_v53 = vor.u32 %v785_v44, %v781_v42  ;;  %v790_v54 = vrot.slane %v788_v45, 1 }
 0x106   :  { %v803_v48 = vsel %vm647_vm3, %v798_v34, %v802_v38 }
 0x107   :  { %v791_v32 = vsel %vm647_vm3, %v786_v53, %v790_v54 }
 0x108   :  { %v1057_v59 = vpop.permute.xlu1 %1056 }
 0x109   :  { %v1356_v0 = vsel %vm1342_vm8, %v9065_v7, %v1057_v59  ;;  %v1204_v7 = vrot.slane %v9139_v6, 1 }
 0x10a   :  { %1516 = vrot.lane.b32.xlu2 %v9178_v50, %s8845_s25  ;;  %v9202_v3 = vsel %vm1409_vm9, %v1356_v0, %v1289_v33  ;;  %v778_v33 = vrot.slane %v776_v21, 1  ;;  %v383_v21 = vshll.u32 %v8654_v12, 16 }
 0x10b   :  { %1581 = vrot.lane.b32.xlu0 %v9202_v3, %s8844_s22  ;;  %8167 = vmatmul.msk.bf16.gmra.mxu0 %vm1791_vm12, %v1704_v8  ;;  %v1206_v18 = vsel %vm1176_vm4, %v1204_v7, %v1205_v10  ;;  %v373_v8 = vshrl.u32 %v8653_v9, 16  ;;  %v376_v7 = vshll.u32 %v8653_v9, 16  ;;  %v387_v9 = vshrl.u32 %v8655_v57, 16 }
 0x10c   :  { %1520 = vrot.lane.b32.xlu1 %v9183_v51, %s8845_s25  ;;  %v779_v39 = vsel %vm647_vm3, %v774_v24, %v778_v33  ;;  %v385_v24 = vor.u32 %v383_v21, %v382_v19 }
 0x10d   :  { %v375_v4 = vrot.slane %v373_v8, 7 }
 0x10e   :  { %v9290_v36 = vsel %vm8932_vm2, 0, %v385_v24 }
 0x10f   :  { %v378_v13 = vor.u32 %v376_v7, %v375_v4  ;;  %v817_v42 = vshrl.u32 %v9290_v36, 16  ;;  %v389_v7 = vrot.slane %v387_v9, 7 }
 0x110   :  { %v1578_v23 = vpop.permute.xlu1 %1577 }
 0x111   :  { %v1706_v49 = vsel %vm1700_vm13, %v1641_v46, %v1578_v23  ;;  %v9273_v16 = vsel %vm8932_vm2, 0, %v378_v13 }
 0x112   :  { %1294 = vrot.lane.b32.xlu2 %v1206_v18, %s8841_s16  ;;  %v807_v17 = vshll.u32 %v9273_v16, 16  ;;  %v627_v18 = vsel %vm8932_vm2, %v375_v4, 0  ;;  %v805_v23 = vshrl.u32 %v9273_v16, 16  ;;  %v1216_v34 = vrot.slane %v9273_v16, 1 }
 0x113   :  { %1518 = vrot.lane.b32.xlu0 %v9202_v3, %s8845_s25  ;;  %v812_v28 = vshll.u32 %v627_v18, 16  ;;  %v1217_v38 = vrot.slane %v627_v18, 1 }
 0x114   :  { %1298 = vrot.lane.b32.xlu1 %v1212_v25, %s8841_s16  ;;  %v809_v25 = vrot.slane %v807_v17, 1 }
 0x116   :  { %v810_v29 = vor.u32 %v809_v25, %v805_v23 }
 0x118   :  { %v1515_v40 = vpop.permute.xlu1 %1514 }
 0x119   :  { %v1643_v20 = vsel %vm1635_vm11, %v9037_v47, %v1515_v40  ;;  %v628_v40 = vsel %vm8932_vm2, %v382_v19, 0 }
 0x11a   :  { %1064 = vrot.lane.b32.xlu2 %v779_v39, %s8843_s17  ;;  %v819_v39 = vshll.u32 %v9290_v36, 16  ;;  %v824_v45 = vshll.u32 %v628_v40, 16 }
 0x11b   :  { %1296 = vrot.lane.b32.xlu0 %v1209_v41, %s8841_s16  ;;  %8168 = vmatmul.msk.bf16.gmra.mxu0 %vm1791_vm12, %v1706_v49  ;;  %v1218_v41 = vsel %vm1176_vm4, %v1216_v34, %v1217_v38 }
 0x11c   :  { %1068 = vrot.lane.b32.xlu1 %v803_v48, %s8843_s17  ;;  %v821_v44 = vrot.slane %v819_v39, 1 }
 0x11e   :  { %v822_v54 = vor.u32 %v821_v44, %v817_v42 }
 0x120   :  { %v1293_v55 = vpop.permute.xlu1 %1292 }
 0x121   :  { %v9251_v30 = vsel %vm1409_vm9, %v1360_v22, %v1293_v55  ;;  %v826_v22 = vrot.slane %v824_v45, 1 }
 0x122   :  { %1585 = vrot.lane.b32.xlu2 %v9251_v30, %s8844_s22 }
 0x123   :  { %1066 = vrot.lane.b32.xlu0 %v791_v32, %s8843_s17  ;;  %v827_v55 = vsel %vm647_vm3, %v822_v54, %v826_v22 }
 0x128   :  { %v1063_v14 = vpop.permute.xlu1 %1062 }
 0x129   :  { %v1362_v47 = vsel %vm1342_vm8, %v9139_v6, %v1063_v14  ;;  %v814_v6 = vrot.slane %v812_v28, 1  ;;  %v1219_v28 = vrot.slane %v9290_v36, 1 }
 0x12a   :  { %1522 = vrot.lane.b32.xlu2 %v9251_v30, %s8845_s25 }
 0x12b   :  { %v815_v33 = vsel %vm647_vm3, %v810_v29, %v814_v6  ;;  %v1220_v29 = vrot.slane %v628_v40, 1  ;;  %v629_v6 = vsel %vm8932_vm2, %v389_v7, 0 }
 0x12c   :  { %v836_v39 = vshll.u32 %v629_v6, 16  ;;  %v1223_v45 = vrot.slane %v629_v6, 1 }
 0x12e   :  { %v838_v44 = vrot.slane %v836_v39, 1 }
 0x132   :  { %1300 = vrot.lane.b32.xlu2 %v1215_v58, %s8841_s16  ;;  %v8656_v58 = vld [vmem:[%s14550_s0 + $0x78] sm:$0xff] }
 0x13a   :  { %1070 = vrot.lane.b32.xlu2 %v815_v33, %s8843_s17 }
 0x15c   :  { %v1580_v59 = vpop.permute.xlu2 %1579 }
 0x15d   :  { %v1708_v0 = vsel %vm1700_vm13, %v1643_v20, %v1580_v59 }
 0x15e   :  { %8169 = vmatmul.msk.bf16.gmra.mxu0 %vm1791_vm12, %v1708_v0  ;;  %v394_v0 = vshrl.u32 %v8656_v58, 16 }
 0x164   :  { %v1517_v10 = vpop.permute.xlu2 %1516 }
 0x165   :  { %v1645_v48 = vsel %vm1635_vm11, %v9107_v43, %v1517_v10  ;;  %v390_v10 = vshll.u32 %v8655_v57, 16 }
 0x167   :  { %v392_v17 = vor.u32 %v390_v10, %v389_v7 }
 0x169   :  { %v9335_v19 = vsel %vm8932_vm2, 0, %v392_v17 }
 0x16a   :  { %v829_v34 = vshrl.u32 %v9335_v19, 16 }
 0x16c   :  { %v1295_v26 = vpop.permute.xlu2 %1294 }
 0x16d   :  { %v9282_v27 = vsel %vm1409_vm9, %v1362_v47, %v1295_v26 }
 0x16e   :  { %1587 = vrot.lane.b32.xlu0 %v9282_v27, %s8844_s22 }
 0x174   :  { %v1065_v35 = vpop.permute.xlu2 %1064 }
 0x175   :  { %v1584_v37 = vpop.permute.xlu1 %1583  ;;  %v1364_v20 = vsel %vm1342_vm8, %v9191_v63, %v1065_v35  ;;  %v397_v63 = vshll.u32 %v8656_v58, 16 }
 0x176   :  { %1524 = vrot.lane.b32.xlu0 %v9282_v27, %s8845_s25 }
 0x17c   :  { %v1586_v46 = vpop.permute.xlu2 %1585 }
 0x17d   :  { %v1582_v49 = vpop.permute.xlu0 %1581 }
 0x17e   :  { %v1521_v52 = vpop.permute.xlu1 %1520  ;;  %1302 = vrot.lane.b32.xlu0 %v1218_v41, %s8841_s16  ;;  %v1710_v53 = vsel %vm1700_vm13, %v1645_v48, %v1582_v49 }
 0x17f   :  { %8170 = vmatmul.msk.bf16.gmra.mxu0 %vm1791_vm12, %v1710_v53  ;;  %v1649_v35 = vsel %vm1635_vm11, %v9202_v3, %v1521_v52  ;;  %v1222_v3 = vrot.slane %v9335_v19, 1 }
 0x180   :  { %v1714_v40 = vsel %vm1700_vm13, %v1649_v35, %v1586_v46 }
 0x181   :  { %v1224_v49 = vsel %vm1176_vm4, %v1222_v3, %v1223_v45 }
 0x184   :  { %v9306_v32 = vpop.permute.xlu2 %1522 }
 0x185   :  { %v1519_v56 = vpop.permute.xlu0 %1518  ;;  %v1651_v57 = vsel %vm1635_vm11, %v9183_v51, %v9306_v32  ;;  %v8658_v51 = vld [vmem:[%s14550_s0 + $0x88] sm:$0xff]  ;;  %v8657_v32 = vld [vmem:[%s14550_s0 + $0x80] sm:$0xff] }
 0x186   :  { %v1299_v43 = vpop.permute.xlu1 %1298  ;;  %1072 = vrot.lane.b32.xlu0 %v827_v55, %s8843_s17  ;;  %v1647_v59 = vsel %vm1635_vm11, %v9178_v50, %v1519_v56  ;;  %v396_v50 = vrot.slane %v394_v0, 7 }
 0x187   :  { %v1712_v13 = vsel %vm1700_vm13, %v1647_v59, %v1584_v37  ;;  %v1221_v37 = vsel %vm1176_vm4, %v1219_v28, %v1220_v29  ;;  %v8659_v29 = vld [vmem:[%s14550_s0 + $0x90] sm:$0xff] }
 0x188   :  { %v399_v18 = vor.u32 %v397_v63, %v396_v50  ;;  %v630_v25 = vsel %vm8932_vm2, %v396_v50, 0  ;;  %v404_v63 = vshll.u32 %v8657_v32, 16  ;;  %v415_v35 = vshrl.u32 %v8659_v29, 16 }
 0x189   :  { %v1226_v33 = vrot.slane %v630_v25, 1  ;;  %v848_v54 = vshll.u32 %v630_v25, 16 }
 0x18a   :  { %v9346_v23 = vsel %vm8932_vm2, 0, %v399_v18 }
 0x18b   :  { %v1225_v24 = vrot.slane %v9346_v23, 1  ;;  %v843_v48 = vshll.u32 %v9346_v23, 16  ;;  %v841_v52 = vshrl.u32 %v9346_v23, 16  ;;  %v850_v55 = vrot.slane %v848_v54, 1  ;;  %v8660_v54 = vld [vmem:[%s14550_s0 + $0x98] sm:$0xff] }
 0x18c   :  { %v1301_v4 = vpop.permute.xlu2 %1300 }
 0x18d   :  { %v1297_v8 = vpop.permute.xlu0 %1296  ;;  %v1227_v41 = vsel %vm1176_vm4, %v1225_v24, %v1226_v33  ;;  %v845_v53 = vrot.slane %v843_v48, 1 }
 0x18e   :  { %v1069_v12 = vpop.permute.xlu1 %1068  ;;  %v9321_v14 = vsel %vm1409_vm9, %v1364_v20, %v1297_v8 }
 0x18f   :  { %v1368_v15 = vsel %vm1342_vm8, %v9209_v5, %v1069_v12  ;;  %8171 = vmatmul.msk.bf16.gmra.mxu0 %vm1791_vm12, %v1712_v13  ;;  %1589 = vrot.lane.b32.xlu1 %v9321_v14, %s8844_s22  ;;  %v846_v22 = vor.u32 %v845_v53, %v841_v52  ;;  %v411_v13 = vshll.u32 %v8658_v51, 16 }
 0x190   :  { %v9329_v47 = vsel %vm1409_vm9, %v1368_v15, %v1301_v4  ;;  %v408_v4 = vshrl.u32 %v8658_v51, 16 }
 0x191   :  { %1593 = vrot.lane.b32.xlu0 %v9329_v47, %s8844_s22  ;;  %v851_v56 = vsel %vm647_vm3, %v846_v22, %v850_v55 }
 0x192   :  { %v410_v12 = vrot.slane %v408_v4, 7 }
 0x194   :  { %v1071_v20 = vpop.permute.xlu2 %1070  ;;  %v413_v17 = vor.u32 %v411_v13, %v410_v12  ;;  %v632_v6 = vsel %vm8932_vm2, %v410_v12, 0 }
 0x195   :  { %v1067_v26 = vpop.permute.xlu0 %1066  ;;  %v1370_v59 = vsel %vm1342_vm8, %v9273_v16, %v1071_v20  ;;  %v401_v16 = vshrl.u32 %v8657_v32, 16 }
 0x196   :  { %v1366_v5 = vsel %vm1342_vm8, %v9197_v1, %v1067_v26  ;;  %v831_v1 = vshll.u32 %v9335_v19, 16  ;;  %v9405_v25 = vsel %vm8932_vm2, 0, %v413_v17 }
 0x197   :  { %1526 = vrot.lane.b32.xlu1 %v9321_v14, %s8845_s25  ;;  %v9342_v21 = vsel %vm1409_vm9, %v1366_v5, %v1299_v43  ;;  %v403_v50 = vrot.slane %v401_v16, 7  ;;  %v865_v39 = vshrl.u32 %v9405_v25, 16  ;;  %v1231_v16 = vrot.slane %v9405_v25, 1 }
 0x198   :  { %1591 = vrot.lane.b32.xlu2 %v9342_v21, %s8844_s22  ;;  %v833_v38 = vrot.slane %v831_v1, 1  ;;  %v867_v1 = vshll.u32 %v9405_v25, 16 }
 0x199   :  { %1530 = vrot.lane.b32.xlu0 %v9329_v47, %s8845_s25  ;;  %v406_v26 = vor.u32 %v404_v63, %v403_v50  ;;  %v631_v33 = vsel %vm8932_vm2, %v403_v50, 0 }
 0x19a   :  { %v834_v42 = vor.u32 %v833_v38, %v829_v34  ;;  %v860_v45 = vshll.u32 %v631_v33, 16 }
 0x19c   :  { %v839_v46 = vsel %vm647_vm3, %v834_v42, %v838_v44  ;;  %v862_v55 = vrot.slane %v860_v45, 1 }
 0x19f   :  { %8172 = vmatmul.msk.bf16.gmra.mxu0 %vm1791_vm12, %v1714_v40  ;;  %1304 = vrot.lane.b32.xlu1 %v1221_v37, %s8841_s16  ;;  %v869_v40 = vrot.slane %v867_v1, 1 }
 0x1a0   :  { %1528 = vrot.lane.b32.xlu2 %v9342_v21, %s8845_s25 }
 0x1a1   :  { %1308 = vrot.lane.b32.xlu0 %v1227_v41, %s8841_s16  ;;  %v872_v41 = vshll.u32 %v632_v6, 16  ;;  %v870_v52 = vor.u32 %v869_v40, %v865_v39 }
 0x1a3   :  { %v874_v53 = vrot.slane %v872_v41, 1 }
 0x1a7   :  { %1074 = vrot.lane.b32.xlu1 %v839_v46, %s8843_s17 }
 0x1a8   :  { %1306 = vrot.lane.b32.xlu2 %v1224_v49, %s8841_s16  ;;  %v417_v49 = vrot.slane %v415_v35, 7 }
 0x1aa   :  { %v633_v50 = vsel %vm8932_vm2, %v417_v49, 0 }
 0x1b0   :  { %1076 = vrot.lane.b32.xlu2 %v851_v56, %s8843_s17 }
 0x1e0   :  { %v1588_v43 = vpop.permute.xlu0 %1587 }
 0x1e1   :  { %v1716_v58 = vsel %vm1700_vm13, %v1651_v57, %v1588_v43  ;;  %v422_v57 = vshrl.u32 %v8660_v54, 16 }
 0x1e2   :  { %8173 = vmatmul.msk.bf16.gmra.mxu0 %vm1791_vm12, %v1716_v58  ;;  %v875_v58 = vsel %vm647_vm3, %v870_v52, %v874_v53  ;;  %v8661_v53 = vld [vmem:[%s14550_s0 + $0xa0] sm:$0xff] }
 0x1e8   :  { %v1525_v9 = vpop.permute.xlu0 %1524 }
 0x1e9   :  { %v1653_v7 = vsel %vm1635_vm11, %v9251_v30, %v1525_v9  ;;  %v9409_v30 = vsel %vm8932_vm2, 0, %v406_v26 }
 0x1ea   :  { %v855_v24 = vshll.u32 %v9409_v30, 16  ;;  %v853_v44 = vshrl.u32 %v9409_v30, 16 }
 0x1ec   :  { %v857_v3 = vrot.slane %v855_v24, 1  ;;  %v1235_v24 = vrot.slane %v633_v50, 1 }
 0x1ee   :  { %v858_v22 = vor.u32 %v857_v3, %v853_v44 }
 0x1f0   :  { %v1303_v0 = vpop.permute.xlu0 %1302  ;;  %v863_v20 = vsel %vm647_vm3, %v858_v22, %v862_v55  ;;  %v432_v55 = vshll.u32 %v8661_v53, 16 }
 0x1f1   :  { %v9387_v8 = vsel %vm1409_vm9, %v1370_v59, %v1303_v0  ;;  %v424_v59 = vrot.slane %v422_v57, 7  ;;  %v425_v0 = vshll.u32 %v8660_v54, 16  ;;  %v429_v54 = vshrl.u32 %v8661_v53, 16 }
 0x1f2   :  { %1595 = vrot.lane.b32.xlu1 %v9387_v8, %s8844_s22  ;;  %v1592_v18 = vpop.permute.xlu2 %1591 }
 0x1f3   :  { %v427_v13 = vor.u32 %v425_v0, %v424_v59  ;;  %v431_v22 = vrot.slane %v429_v54, 7 }
 0x1f8   :  { %v1073_v28 = vpop.permute.xlu0 %1072 }
 0x1f9   :  { %v1372_v37 = vsel %vm1342_vm8, %v9290_v36, %v1073_v28  ;;  %v418_v36 = vshll.u32 %v8659_v29, 16  ;;  %v884_v28 = vshll.u32 %v633_v50, 16  ;;  %v9465_v29 = vsel %vm8932_vm2, 0, %v427_v13 }
 0x1fa   :  { %1532 = vrot.lane.b32.xlu1 %v9387_v8, %s8845_s25  ;;  %v1529_v38 = vpop.permute.xlu2 %1528  ;;  %v889_v41 = vshrl.u32 %v9465_v29, 16 }
 0x1fb   :  { %v420_v56 = vor.u32 %v418_v36, %v417_v49  ;;  %v1657_v63 = vsel %vm1635_vm11, %v9321_v14, %v1529_v38  ;;  %v1237_v36 = vrot.slane %v9465_v29, 1 }
 0x1fd   :  { %v9444_v32 = vsel %vm8932_vm2, 0, %v420_v56  ;;  %v434_v56 = vor.u32 %v432_v55, %v431_v22 }
 0x1fe   :  { %v879_v12 = vshll.u32 %v9444_v32, 16  ;;  %v877_v26 = vshrl.u32 %v9444_v32, 16 }
 0x1ff   :  { %v9499_v57 = vsel %vm8932_vm2, 0, %v434_v56 }
 0x201   :  { %v1590_v10 = vpop.permute.xlu1 %1589 }
 0x202   :  { %v1718_v15 = vsel %vm1700_vm13, %v1653_v7, %v1590_v10  ;;  %v1307_v43 = vpop.permute.xlu2 %1306  ;;  %v1232_v7 = vrot.slane %v632_v6, 1  ;;  %v1228_v10 = vrot.slane %v9409_v30, 1  ;;  %v1234_v6 = vrot.slane %v9444_v32, 1 }
 0x203   :  { %8174 = vmatmul.msk.bf16.gmra.mxu0 %vm1791_vm12, %v1718_v15 }
 0x204   :  { %v1233_v17 = vsel %vm1176_vm4, %v1231_v16, %v1232_v7  ;;  %v1236_v40 = vsel %vm1176_vm4, %v1234_v6, %v1235_v24 }
 0x209   :  { %v1527_v5 = vpop.permute.xlu1 %1526 }
 0x20a   :  { %v1655_v34 = vsel %vm1635_vm11, %v9282_v27, %v1527_v5  ;;  %v1594_v27 = vpop.permute.xlu0 %1593  ;;  %v881_v5 = vrot.slane %v879_v12, 1  ;;  %v1077_v14 = vpop.permute.xlu2 %1076 }
 0x20b   :  { %v1720_v48 = vsel %vm1700_vm13, %v1655_v34, %v1592_v18  ;;  %v1722_v1 = vsel %vm1700_vm13, %v1657_v63, %v1594_v27  ;;  %v634_v34 = vsel %vm8932_vm2, %v424_v59, 0  ;;  %v1376_v38 = vsel %vm1342_vm8, %v9346_v23, %v1077_v14  ;;  %v9514_v12 = vpop.f32.mrf.mxu0 }
 0x20c   :  { %v882_v35 = vor.u32 %v881_v5, %v877_v26  ;;  %v896_v44 = vshll.u32 %v634_v34, 16  ;;  %v1238_v27 = vrot.slane %v634_v34, 1 }
 0x20e   :  { %v898_v49 = vrot.slane %v896_v44, 1  ;;  %v1239_v52 = vsel %vm1176_vm4, %v1237_v36, %v1238_v27 }
 0x211   :  { %v1305_v42 = vpop.permute.xlu1 %1304 }
 0x212   :  { %v9428_v46 = vsel %vm1409_vm9, %v1372_v37, %v1305_v42  ;;  %v1531_v15 = vpop.permute.xlu0 %1530  ;;  %v886_v37 = vrot.slane %v884_v28, 1 }
 0x213   :  { %8175 = vmatmul.msk.bf16.gmra.mxu0 %vm1791_vm12, %v1720_v48  ;;  %1534 = vrot.lane.b32.xlu0 %v9428_v46, %s8845_s25  ;;  %v1659_v0 = vsel %vm1635_vm11, %v9342_v21, %v1531_v15  ;;  %v9519_v15 = vpop.f32.mrf.mxu0 }
 0x214   :  { %1597 = vrot.lane.b32.xlu2 %v9428_v46, %s8844_s22  ;;  %v887_v3 = vsel %vm647_vm3, %v882_v35, %v886_v37  ;;  %v8662_v35 = vld [vmem:[%s14550_s0 + $0xa8] sm:$0xff] }
 0x219   :  { %v1075_v9 = vpop.permute.xlu1 %1074 }
 0x21a   :  { %v1374_v51 = vsel %vm1342_vm8, %v9335_v19, %v1075_v9  ;;  %v1229_v19 = vrot.slane %v631_v33, 1  ;;  %v891_v33 = vshll.u32 %v9465_v29, 16  ;;  %v1309_v39 = vpop.permute.xlu0 %1308  ;;  %v901_v9 = vshrl.u32 %v9499_v57, 16 }
 0x21b   :  { %1080 = vrot.lane.b32.xlu0 %v875_v58, %s8843_s17  ;;  %v9448_v4 = vsel %vm1409_vm9, %v1374_v51, %v1307_v43  ;;  %v1443_v45 = vsel %vm1409_vm9, %v1376_v38, %v1309_v39  ;;  %v903_v43 = vshll.u32 %v9499_v57, 16  ;;  %v9504_v58 = vsel %vm8932_vm2, %v431_v22, 0  ;;  %v8664_v38 = vld [vmem:[%s14550_s0 + $0xb8] sm:$0xff] }
 0x21c   :  { %1078 = vrot.lane.b32.xlu2 %v863_v20, %s8843_s17  ;;  %1599 = vrot.lane.b32.xlu1 %v9448_v4, %s8844_s22  ;;  %v1230_v18 = vsel %vm1176_vm4, %v1228_v10, %v1229_v19  ;;  %v893_v42 = vrot.slane %v891_v33, 1  ;;  %v908_v59 = vshll.u32 %v9504_v58, 16  ;;  %v439_v22 = vshll.u32 %v8662_v35, 16 }
 0x21d   :  { %v905_v20 = vrot.slane %v903_v43, 1 }
 0x21e   :  { %v894_v48 = vor.u32 %v893_v42, %v889_v41  ;;  %v910_v10 = vrot.slane %v908_v59, 1 }
 0x21f   :  { %v906_v7 = vor.u32 %v905_v20, %v901_v9  ;;  %v453_v9 = vshll.u32 %v8664_v38, 16 }
 0x220   :  { %v899_v23 = vsel %vm647_vm3, %v894_v48, %v898_v49 }
 0x221   :  { %v911_v19 = vsel %vm647_vm3, %v906_v7, %v910_v10  ;;  %v1240_v7 = vrot.slane %v9499_v57, 1 }
 0x223   :  { %1536 = vrot.lane.b32.xlu0 %v9448_v4, %s8845_s25  ;;  %8176 = vmatmul.msk.bf16.gmra.mxu0 %vm1791_vm12, %v1722_v1 }
 0x224   :  { %1312 = vrot.lane.b32.xlu2 %v1233_v17, %s8841_s16  ;;  %1310 = vrot.lane.b32.xlu1 %v1230_v18, %s8841_s16  ;;  %v8669_v17 = vld [vmem:[%s14550_s0 + $0xe0] sm:$0xff]  ;;  %v9525_v18 = vpop.f32.mrf.mxu0 }
 0x225   :  { %v485_v26 = vshrl.u32 %v8669_v17, 16  ;;  %v488_v14 = vshll.u32 %v8669_v17, 16 }
 0x227   :  { %v487_v1 = vrot.slane %v485_v26, 7 }
 0x229   :  { %v490_v6 = vor.u32 %v488_v14, %v487_v1 }
 0x22b   :  { %1314 = vrot.lane.b32.xlu0 %v1236_v40, %s8841_s16  ;;  %v9537_v34 = vsel %vm8932_vm2, 0, %v490_v6 }
 0x22c   :  { %1082 = vrot.lane.b32.xlu2 %v887_v3, %s8843_s17  ;;  %1601 = vrot.lane.b32.xlu1 %v1443_v45, %s8844_s22  ;;  %v9530_v33 = vpop.f32.mrf.mxu0  ;;  %v999_v49 = vshll.u32 %v9537_v34, 16  ;;  %v997_v27 = vshrl.u32 %v9537_v34, 16 }
 0x233   :  { %1084 = vrot.lane.b32.xlu0 %v899_v23, %s8843_s17  ;;  %v436_v23 = vshrl.u32 %v8662_v35, 16 }
 0x234   :  { %1603 = vrot.lane.b32.xlu2 %v9158_v31, %s8844_s22  ;;  %1538 = vrot.lane.b32.xlu1 %v1443_v45, %s8845_s25  ;;  %v9560_v55 = vpop.f32.mrf.mxu0 }
 0x235   :  { %v438_v54 = vrot.slane %v436_v23, 7 }
 0x23c   :  { %1316 = vrot.lane.b32.xlu1 %v1239_v52, %s8841_s16  ;;  %v1001_v52 = vrot.slane %v999_v49, 1 }
 0x23e   :  { %v1002_v10 = vor.u32 %v1001_v52, %v997_v27  ;;  %v1264_v27 = vrot.slane %v9537_v34, 1 }
 0x244   :  { %1086 = vrot.lane.b32.xlu1 %v911_v19, %s8843_s17 }
 0x264   :  { %v1596_v51 = vpop.permute.xlu1 %1595 }
 0x265   :  { %v1724_v16 = vsel %vm1700_vm13, %v1659_v0, %v1596_v51  ;;  %v8665_v51 = vld [vmem:[%s14550_s0 + $0xc0] sm:$0xff] }
 0x266   :  { %8177 = vmatmul.msk.bf16.gmra.mxu0 %vm1791_vm12, %v1724_v16  ;;  %v457_v26 = vshrl.u32 %v8665_v51, 16 }
 0x26c   :  { %v1533_v13 = vpop.permute.xlu1 %1532 }
 0x26d   :  { %v1661_v50 = vsel %vm1635_vm11, %v9329_v47, %v1533_v13  ;;  %v8668_v47 = vld [vmem:[%s14550_s0 + $0xd8] sm:$0xff]  ;;  %v441_v13 = vor.u32 %v439_v22, %v438_v54 }
 0x26e   :  { %v1598_v63 = vpop.permute.xlu2 %1597  ;;  %v478_v24 = vshrl.u32 %v8668_v47, 16  ;;  %v481_v3 = vshll.u32 %v8668_v47, 16 }
 0x26f   :  { %v1726_v21 = vsel %vm1700_vm13, %v1661_v50, %v1598_v63 }
 0x270   :  { %v480_v44 = vrot.slane %v478_v24, 7 }
 0x272   :  { %v483_v36 = vor.u32 %v481_v3, %v480_v44  ;;  %v642_v17 = vsel %vm8932_vm2, %v480_v44, 0 }
 0x273   :  { %v992_v24 = vshll.u32 %v642_v17, 16 }
 0x274   :  { %v9566_v0 = vsel %vm8932_vm2, 0, %v483_v36 }
 0x275   :  { %v987_v50 = vshll.u32 %v9566_v0, 16  ;;  %v985_v47 = vshrl.u32 %v9566_v0, 16  ;;  %v1261_v44 = vrot.slane %v9566_v0, 1  ;;  %v994_v36 = vrot.slane %v992_v24, 1 }
 0x276   :  { %8178 = vmatmul.msk.bf16.gmra.mxu0 %vm1791_vm12, %v1726_v21  ;;  %v1079_v5 = vpop.permute.xlu2 %1078 }
 0x277   :  { %v1378_v20 = vsel %vm1342_vm8, %v9409_v30, %v1079_v5  ;;  %v1241_v30 = vrot.slane %v9504_v58, 1  ;;  %v9589_v58 = vsel %vm8932_vm2, 0, %v441_v13  ;;  %v989_v6 = vrot.slane %v987_v50, 1 }
 0x278   :  { %v915_v3 = vshll.u32 %v9589_v58, 16  ;;  %v913_v22 = vshrl.u32 %v9589_v58, 16 }
 0x27e   :  { %v1313_v39 = vpop.permute.xlu2 %1312 }
 0x285   :  { %v1535_v28 = vpop.permute.xlu0 %1534 }
 0x286   :  { %v1663_v40 = vsel %vm1635_vm11, %v9387_v8, %v1535_v28  ;;  %v9556_v8 = vsel %vm8932_vm2, %v487_v1, 0  ;;  %v1083_v21 = vpop.permute.xlu2 %1082  ;;  %v1242_v28 = vsel %vm1176_vm4, %v1240_v7, %v1241_v30 }
 0x287   :  { %v1004_v53 = vshll.u32 %v9556_v8, 16  ;;  %v1382_v5 = vsel %vm1342_vm8, %v9444_v32, %v1083_v21  ;;  %v1265_v52 = vrot.slane %v9556_v8, 1 }
 0x289   :  { %v1006_v19 = vrot.slane %v1004_v53, 1  ;;  %v1266_v8 = vsel %vm1176_vm4, %v1264_v27, %v1265_v52 }
 0x28b   :  { %v1007_v1 = vsel %vm647_vm3, %v1002_v10, %v1006_v19  ;;  %v8670_v10 = vld [vmem:[%s14550_s0 + $0xe8] sm:$0xff] }
 0x28d   :  { %v1081_v37 = vpop.permute.xlu0 %1080 }
 0x28e   :  { %v1380_v41 = vsel %vm1342_vm8, %v9405_v25, %v1081_v37  ;;  %v1600_v42 = vpop.permute.xlu1 %1599  ;;  %v450_v25 = vshrl.u32 %v8664_v38, 16 }
 0x28f   :  { %v1728_v45 = vsel %vm1700_vm13, %v1663_v40, %v1600_v42  ;;  %v9548_v48 = vsel %vm1409_vm9, %v1380_v41, %v1313_v39  ;;  %v459_v39 = vrot.slane %v457_v26, 7  ;;  %v460_v40 = vshll.u32 %v8665_v51, 16  ;;  %v9601_v41 = vpop.f32.mrf.mxu0  ;;  %v8663_v51 = vld [vmem:[%s14550_s0 + $0xb0] sm:$0xff] }
 0x290   :  { %8179 = vmatmul.msk.bf16.gmra.mxu0 %vm1791_vm12, %v1728_v45  ;;  %1605 = vrot.lane.b32.xlu0 %v9548_v48, %s8844_s22  ;;  %v452_v43 = vrot.slane %v450_v25, 7  ;;  %v9612_v45 = vsel %vm8932_vm2, %v438_v54, 0  ;;  %v990_v25 = vor.u32 %v989_v6, %v985_v47  ;;  %v492_v47 = vshrl.u32 %v8670_v10, 16 }
 0x291   :  { %v462_v53 = vor.u32 %v460_v40, %v459_v39  ;;  %v920_v54 = vshll.u32 %v9612_v45, 16  ;;  %v446_v40 = vshll.u32 %v8663_v51, 16  ;;  %v1244_v27 = vrot.slane %v9612_v45, 1  ;;  %v8671_v45 = vld [vmem:[%s14550_s0 + $0xf0] sm:$0xff] }
 0x292   :  { %v455_v63 = vor.u32 %v453_v9, %v452_v43  ;;  %v638_v49 = vsel %vm8932_vm2, %v452_v43, 0  ;;  %v995_v7 = vsel %vm647_vm3, %v990_v25, %v994_v36  ;;  %v9654_v25 = vpop.permute.xlu2 %1603  ;;  %v1243_v36 = vrot.slane %v9589_v58, 1 }
 0x293   :  { %v944_v9 = vshll.u32 %v638_v49, 16  ;;  %v9631_v30 = vsel %vm8932_vm2, 0, %v462_v53  ;;  %v922_v50 = vrot.slane %v920_v54, 1  ;;  %v1250_v26 = vrot.slane %v638_v49, 1 }
 0x294   :  { %v9594_v35 = vsel %vm8932_vm2, 0, %v455_v63  ;;  %v494_v49 = vrot.slane %v492_v47, 7 }
 0x295   :  { %v1537_v56 = vpop.permute.xlu0 %1536  ;;  %v939_v23 = vshll.u32 %v9594_v35, 16  ;;  %v937_v43 = vshrl.u32 %v9594_v35, 16  ;;  %v946_v63 = vrot.slane %v944_v9, 1 }
 0x296   :  { %v1311_v59 = vpop.permute.xlu1 %1310  ;;  %v1665_v32 = vsel %vm1635_vm11, %v9428_v46, %v1537_v56  ;;  %v1262_v46 = vrot.slane %v642_v17, 1  ;;  %v917_v56 = vrot.slane %v915_v3, 1  ;;  %v1249_v17 = vrot.slane %v9594_v35, 1 }
 0x297   :  { %v9572_v16 = vsel %vm1409_vm9, %v1378_v20, %v1311_v59  ;;  %v941_v59 = vrot.slane %v939_v23, 1  ;;  %v9636_v19 = vpop.f32.mrf.mxu0  ;;  %v495_v23 = vshll.u32 %v8670_v10, 16 }
 0x298   :  { %1540 = vrot.lane.b32.xlu2 %v9572_v16, %s8845_s25  ;;  %1542 = vrot.lane.b32.xlu0 %v9548_v48, %s8845_s25  ;;  %v1263_v20 = vsel %vm1176_vm4, %v1261_v44, %v1262_v46  ;;  %v918_v13 = vor.u32 %v917_v56, %v913_v22  ;;  %v949_v44 = vshrl.u32 %v9631_v30, 16 }
 0x299   :  { %v942_v21 = vor.u32 %v941_v59, %v937_v43  ;;  %v497_v54 = vor.u32 %v495_v23, %v494_v49  ;;  %v502_v23 = vshll.u32 %v8671_v45, 16 }
 0x29a   :  { %v923_v6 = vsel %vm647_vm3, %v918_v13, %v922_v50 }
 0x29b   :  { %v947_v24 = vsel %vm647_vm3, %v942_v21, %v946_v63  ;;  %v1252_v63 = vrot.slane %v9631_v30, 1 }
 0x29d   :  { %v1315_v14 = vpop.permute.xlu0 %1314 }
 0x29e   :  { %v1602_v37 = vpop.permute.xlu1 %1601  ;;  %v9599_v38 = vsel %vm1409_vm9, %v1382_v5, %v1315_v14  ;;  %v443_v5 = vshrl.u32 %v8663_v51, 16  ;;  %v639_v14 = vsel %vm8932_vm2, %v459_v39, 0  ;;  %v8666_v39 = vld [vmem:[%s14550_s0 + $0xc8] sm:$0xff] }
 0x29f   :  { %v1730_v42 = vsel %vm1700_vm13, %v1665_v32, %v1602_v37  ;;  %1607 = vrot.lane.b32.xlu1 %v9599_v38, %s8844_s22  ;;  %v1251_v32 = vsel %vm1176_vm4, %v1249_v17, %v1250_v26  ;;  %v956_v46 = vshll.u32 %v639_v14, 16  ;;  %v9663_v53 = vpop.f32.mrf.mxu0  ;;  %v464_v9 = vshrl.u32 %v8666_v39, 16 }
 0x2a0   :  { %1318 = vrot.lane.b32.xlu2 %v1242_v28, %s8841_s16  ;;  %1102 = vrot.lane.b32.xlu0 %v1007_v1, %s8843_s17  ;;  %v951_v28 = vshll.u32 %v9631_v30, 16  ;;  %v445_v37 = vrot.slane %v443_v5, 7  ;;  %v467_v13 = vshll.u32 %v8666_v39, 16  ;;  %v1253_v21 = vrot.slane %v639_v14, 1 }
 0x2a1   :  { %8180 = vmatmul.msk.bf16.gmra.mxu0 %vm1791_vm12, %v1730_v42  ;;  %v958_v56 = vrot.slane %v956_v46, 1  ;;  %v466_v10 = vrot.slane %v464_v9, 7 }
 0x2a2   :  { %v953_v3 = vrot.slane %v951_v28, 1  ;;  %v448_v52 = vor.u32 %v446_v40, %v445_v37  ;;  %v637_v17 = vsel %vm8932_vm2, %v445_v37, 0  ;;  %v1254_v46 = vsel %vm1176_vm4, %v1252_v63, %v1253_v21 }
 0x2a4   :  { %v954_v22 = vor.u32 %v953_v3, %v949_v44  ;;  %v9669_v43 = vsel %vm8932_vm2, 0, %v448_v52 }
 0x2a5   :  { %v1085_v51 = vpop.permute.xlu0 %1084  ;;  %v927_v50 = vshll.u32 %v9669_v43, 16 }
 0x2a6   :  { %v1539_v1 = vpop.permute.xlu1 %1538  ;;  %v959_v59 = vsel %vm647_vm3, %v954_v22, %v958_v56  ;;  %v1384_v5 = vsel %vm1342_vm8, %v9465_v29, %v1085_v51  ;;  %v1246_v56 = vrot.slane %v9669_v43, 1 }
 0x2a7   :  { %1332 = vrot.lane.b32.xlu1 %v1263_v20, %s8841_s16  ;;  %v1667_v42 = vsel %vm1635_vm11, %v9448_v4, %v1539_v1  ;;  %v1245_v20 = vsel %vm1176_vm4, %v1243_v36, %v1244_v27  ;;  %v929_v40 = vrot.slane %v927_v50, 1 }
 0x2a8   :  { %1100 = vrot.lane.b32.xlu2 %v995_v7, %s8843_s17  ;;  %1334 = vrot.lane.b32.xlu0 %v1266_v8, %s8841_s16  ;;  %v1732_v4 = vsel %vm1700_vm13, %v1667_v42, %v9654_v25  ;;  %v9677_v7 = vsel %vm8932_vm2, 0, %v497_v54  ;;  %v644_v8 = vsel %vm8932_vm2, %v494_v49, 0  ;;  %v932_v42 = vshll.u32 %v637_v17, 16 }
 0x2a9   :  { %v1011_v26 = vshll.u32 %v9677_v7, 16  ;;  %v1267_v1 = vrot.slane %v9677_v7, 1  ;;  %v1268_v47 = vrot.slane %v644_v8, 1  ;;  %v1009_v37 = vshrl.u32 %v9677_v7, 16 }
 0x2aa   :  { %v1016_v3 = vshll.u32 %v644_v8, 16  ;;  %v934_v36 = vrot.slane %v932_v42, 1  ;;  %v1247_v54 = vrot.slane %v637_v17, 1 }
 0x2ab   :  { %v1013_v44 = vrot.slane %v1011_v26, 1  ;;  %v1269_v29 = vsel %vm1176_vm4, %v1267_v1, %v1268_v47  ;;  %v8667_v1 = vld [vmem:[%s14550_s0 + $0xd0] sm:$0xff] }
 0x2ac   :  { %v1018_v52 = vrot.slane %v1016_v3, 1  ;;  %v1248_v50 = vsel %vm1176_vm4, %v1246_v56, %v1247_v54  ;;  %v471_v47 = vshrl.u32 %v8667_v1, 16 }
 0x2ad   :  { %v1014_v27 = vor.u32 %v1013_v44, %v1009_v37  ;;  %v474_v44 = vshll.u32 %v8667_v1, 16 }
 0x2ae   :  { %v1317_v28 = vpop.permute.xlu1 %1316  ;;  %v473_v37 = vrot.slane %v471_v47, 7 }
 0x2af   :  { %1088 = vrot.lane.b32.xlu1 %v923_v6, %s8843_s17  ;;  %v499_v6 = vshrl.u32 %v8671_v45, 16  ;;  %v9695_v14 = vsel %vm1409_vm9, %v1384_v5, %v1317_v28  ;;  %v1019_v45 = vsel %vm647_vm3, %v1014_v27, %v1018_v52 }
 0x2b0   :  { %1092 = vrot.lane.b32.xlu2 %v947_v24, %s8843_s17  ;;  %1324 = vrot.lane.b32.xlu0 %v1251_v32, %s8841_s16  ;;  %v469_v24 = vor.u32 %v467_v13, %v466_v10  ;;  %v925_v32 = vshrl.u32 %v9669_v43, 16 }
 0x2b1   :  { %8181 = vmatmul.msk.bf16.gmra.mxu0 %vm1791_vm12, %v1732_v4  ;;  %v501_v49 = vrot.slane %v499_v6, 7 }
 0x2b2   :  { %v9702_v39 = vsel %vm8932_vm2, 0, %v469_v24  ;;  %v930_v4 = vor.u32 %v929_v40, %v925_v32 }
 0x2b3   :  { %v963_v22 = vshll.u32 %v9702_v39, 16  ;;  %v504_v9 = vor.u32 %v502_v23, %v501_v49  ;;  %v961_v51 = vshrl.u32 %v9702_v39, 16  ;;  %v645_v28 = vsel %vm8932_vm2, %v501_v49, 0 }
 0x2b4   :  { %v1028_v40 = vshll.u32 %v645_v28, 16 }
 0x2b5   :  { %v965_v8 = vrot.slane %v963_v22, 1  ;;  %v9718_v63 = vsel %vm8932_vm2, 0, %v504_v9  ;;  %v1271_v22 = vrot.slane %v645_v28, 1 }
 0x2b6   :  { %v1023_v17 = vshll.u32 %v9718_v63, 16  ;;  %v1021_v24 = vshrl.u32 %v9718_v63, 16  ;;  %v1270_v52 = vrot.slane %v9718_v63, 1 }
 0x2b7   :  { %1320 = vrot.lane.b32.xlu1 %v1245_v20, %s8841_s16  ;;  %v640_v20 = vsel %vm8932_vm2, %v466_v10, 0  ;;  %v1255_v10 = vrot.slane %v9702_v39, 1  ;;  %v966_v26 = vor.u32 %v965_v8, %v961_v51 }
 0x2b8   :  { %1094 = vrot.lane.b32.xlu2 %v959_v59, %s8843_s17  ;;  %1544 = vrot.lane.b32.xlu0 %v9599_v38, %s8845_s25  ;;  %v935_v59 = vsel %vm647_vm3, %v930_v4, %v934_v36  ;;  %v968_v13 = vshll.u32 %v640_v20, 16  ;;  %v1256_v21 = vrot.slane %v640_v20, 1  ;;  %v1025_v32 = vrot.slane %v1023_v17, 1  ;;  %v9751_v20 = vpop.f32.mrf.mxu0 }
 0x2b9   :  { %v641_v4 = vsel %vm8932_vm2, %v473_v37, 0  ;;  %v1272_v54 = vsel %vm1176_vm4, %v1270_v52, %v1271_v22 }
 0x2ba   :  { %v970_v5 = vrot.slane %v968_v13, 1  ;;  %v1257_v6 = vsel %vm1176_vm4, %v1255_v10, %v1256_v21  ;;  %v1026_v3 = vor.u32 %v1025_v32, %v1021_v24  ;;  %v1259_v27 = vrot.slane %v641_v4, 1 }
 0x2bc   :  { %v971_v42 = vsel %vm647_vm3, %v966_v26, %v970_v5 }
 0x2bf   :  { %1609 = vrot.lane.b32.xlu1 %v9695_v14, %s8844_s22 }
 0x2c0   :  { %1326 = vrot.lane.b32.xlu2 %v1254_v46, %s8841_s16  ;;  %1336 = vrot.lane.b32.xlu0 %v1269_v29, %s8841_s16  ;;  %v1030_v46 = vrot.slane %v1028_v40, 1  ;;  %v476_v29 = vor.u32 %v474_v44, %v473_v37  ;;  %v9764_v5 = vpop.f32.mrf.mxu0 }
 0x2c2   :  { %v1031_v49 = vsel %vm647_vm3, %v1026_v3, %v1030_v46  ;;  %v9738_v23 = vsel %vm8932_vm2, 0, %v476_v29 }
 0x2c3   :  { %v1258_v36 = vrot.slane %v9738_v23, 1  ;;  %v973_v8 = vshrl.u32 %v9738_v23, 16 }
 0x2c5   :  { %v1260_v56 = vsel %vm1176_vm4, %v1258_v36, %v1259_v27 }
 0x2c7   :  { %1090 = vrot.lane.b32.xlu1 %v935_v59, %s8843_s17  ;;  %v1087_v59 = vpop.permute.xlu1 %1086 }
 0x2c8   :  { %1104 = vrot.lane.b32.xlu2 %v1019_v45, %s8843_s17  ;;  %1322 = vrot.lane.b32.xlu0 %v1248_v50, %s8841_s16  ;;  %v975_v45 = vshll.u32 %v9738_v23, 16  ;;  %v1386_v51 = vsel %vm1342_vm8, %v9499_v57, %v1087_v59  ;;  %v980_v50 = vshll.u32 %v641_v4, 16  ;;  %v9772_v24 = vpop.f32.mrf.mxu0 }
 0x2ca   :  { %v977_v13 = vrot.slane %v975_v45, 1  ;;  %v982_v26 = vrot.slane %v980_v50, 1 }
 0x2cc   :  { %v978_v17 = vor.u32 %v977_v13, %v973_v8 }
 0x2ce   :  { %v983_v57 = vsel %vm647_vm3, %v978_v17, %v982_v26 }
 0x2cf   :  { %1328 = vrot.lane.b32.xlu1 %v1257_v6, %s8841_s16 }
 0x2d0   :  { %1096 = vrot.lane.b32.xlu2 %v971_v42, %s8843_s17  ;;  %v8672_v42 = vld [vmem:[%s14550_s0 + $0xf8] sm:$0xff]  ;;  %v9780_v36 = vpop.f32.mrf.mxu0 }
 0x2d1   :  { %v506_v37 = vshrl.u32 %v8672_v42, 16  ;;  %v509_v4 = vshll.u32 %v8672_v42, 16 }
 0x2d7   :  { %1106 = vrot.lane.b32.xlu1 %v1031_v49, %s8843_s17  ;;  %v508_v49 = vrot.slane %v506_v37, 7 }
 0x2d8   :  { %1546 = vrot.lane.b32.xlu2 %v9695_v14, %s8845_s25 }
 0x2d9   :  { %v511_v27 = vor.u32 %v509_v4, %v508_v49 }
 0x2db   :  { %v9794_v45 = vsel %vm8932_vm2, 0, %v511_v27 }
 0x2dc   :  { %v1033_v50 = vshrl.u32 %v9794_v45, 16 }
 0x2df   :  { %1330 = vrot.lane.b32.xlu1 %v1260_v56, %s8841_s16 }
 0x2e0   :  { %1338 = vrot.lane.b32.xlu2 %v1272_v54, %s8841_s16 }
 0x2f2   :  { %v1541_v9 = vpop.permute.xlu2 %1540 }
 0x2f3   :  { %v1669_v28 = vsel %vm1635_vm11, %v9158_v31, %v1541_v9 }
 0x2fa   :  { %v1319_v10 = vpop.permute.xlu2 %1318 }
 0x2fb   :  { %v9758_v21 = vsel %vm1409_vm9, %v1386_v51, %v1319_v10  ;;  %v646_v51 = vsel %vm8932_vm2, %v508_v49, 0 }
 0x2fc   :  { %1611 = vrot.lane.b32.xlu0 %v9758_v21, %s8844_s22  ;;  %1548 = vrot.lane.b32.xlu1 %v9758_v21, %s8845_s25  ;;  %v1040_v17 = vshll.u32 %v646_v51, 16 }
 0x302   :  { %v1101_v1 = vpop.permute.xlu2 %1100  ;;  %v1606_v47 = vpop.permute.xlu0 %1605 }
 0x303   :  { %v1734_v6 = vsel %vm1700_vm13, %v1669_v28, %v1606_v47  ;;  %v1400_v52 = vsel %vm1342_vm8, %v9566_v0, %v1101_v1  ;;  %v1042_v1 = vrot.slane %v1040_v17, 1  ;;  %v9821_v47 = vpop.f32.mrf.mxu0 }
 0x304   :  { %1098 = vrot.lane.b32.xlu0 %v983_v57, %s8843_s17  ;;  %8182 = vmatmul.msk.bf16.gmra.mxu0 %vm1791_vm12, %v1734_v6 }
 0x30a   :  { %v1093_v32 = vpop.permute.xlu2 %1092  ;;  %v1543_v40 = vpop.permute.xlu0 %1542 }
 0x30b   :  { %v1671_v31 = vsel %vm1635_vm11, %v9572_v16, %v1543_v40  ;;  %v1392_v8 = vsel %vm1342_vm8, %v9594_v35, %v1093_v32  ;;  %v9841_v27 = vpop.f32.mrf.mxu0 }
 0x311   :  { %v1608_v44 = vpop.permute.xlu1 %1607 }
 0x312   :  { %v1736_v3 = vsel %vm1700_vm13, %v1671_v31, %v1608_v44  ;;  %v1095_v46 = vpop.permute.xlu2 %1094  ;;  %v1103_v29 = vpop.permute.xlu0 %1102  ;;  %v1273_v31 = vrot.slane %v9794_v45, 1  ;;  %v1274_v44 = vrot.slane %v646_v51, 1 }
 0x313   :  { %v1394_v22 = vsel %vm1342_vm8, %v9631_v30, %v1095_v46  ;;  %v1402_v16 = vsel %vm1342_vm8, %v9537_v34, %v1103_v29  ;;  %v1035_v34 = vshll.u32 %v9794_v45, 16 }
 0x314   :  { %8183 = vmatmul.msk.bf16.gmra.mxu0 %vm1791_vm12, %v1736_v3  ;;  %v1275_v3 = vsel %vm1176_vm4, %v1273_v31, %v1274_v44  ;;  %vm2956_vm4 = vcmask 517120  }
 0x315   :  { %v1037_v10 = vrot.slane %v1035_v34, 1 }
 0x317   :  { %v1038_v28 = vor.u32 %v1037_v10, %v1033_v50 }
 0x319   :  { %v1333_v56 = vpop.permute.xlu1 %1332  ;;  %v1043_v32 = vsel %vm647_vm3, %v1038_v28, %v1042_v1 }
 0x31a   :  { %v1327_v54 = vpop.permute.xlu2 %1326  ;;  %v1335_v9 = vpop.permute.xlu0 %1334  ;;  %v9790_v59 = vsel %vm1409_vm9, %v1400_v52, %v1333_v56 }
 0x31b   :  { %1562 = vrot.lane.b32.xlu2 %v9790_v59, %s8845_s25  ;;  %v9799_v0 = vsel %vm1409_vm9, %v1394_v22, %v1327_v54  ;;  %v9802_v30 = vsel %vm1409_vm9, %v1402_v16, %v1335_v9  ;;  %v9857_v54 = vpop.f32.mrf.mxu0 }
 0x31c   :  { %1619 = vrot.lane.b32.xlu1 %v9799_v0, %s8844_s22  ;;  %1627 = vrot.lane.b32.xlu0 %v9802_v30, %s8844_s22 }
 0x321   :  { %v1089_v13 = vpop.permute.xlu1 %1088 }
 0x322   :  { %v1325_v26 = vpop.permute.xlu0 %1324  ;;  %v1388_v35 = vsel %vm1342_vm8, %v9589_v58, %v1089_v13  ;;  %v1105_v37 = vpop.permute.xlu2 %1104 }
 0x323   :  { %v9815_v57 = vsel %vm1409_vm9, %v1392_v8, %v1325_v26  ;;  %v1404_v58 = vsel %vm1342_vm8, %v9677_v7, %v1105_v37 }
 0x324   :  { %1564 = vrot.lane.b32.xlu1 %v9802_v30, %s8845_s25  ;;  %1554 = vrot.lane.b32.xlu2 %v9815_v57, %s8845_s25 }
 0x329   :  { %v1321_v6 = vpop.permute.xlu1 %1320 }
 0x32a   :  { %v1545_v40 = vpop.permute.xlu0 %1544  ;;  %v9827_v42 = vsel %vm1409_vm9, %v1388_v35, %v1321_v6 }
 0x32b   :  { %1613 = vrot.lane.b32.xlu0 %v9827_v42, %s8844_s22  ;;  %v1673_v46 = vsel %vm1635_vm11, %v9548_v48, %v1545_v40  ;;  %v1097_v48 = vpop.permute.xlu2 %1096 }
 0x32c   :  { %1556 = vrot.lane.b32.xlu1 %v9799_v0, %s8845_s25  ;;  %1108 = vrot.lane.b32.xlu2 %v1043_v32, %s8843_s17  ;;  %v1396_v9 = vsel %vm1342_vm8, %v9702_v39, %v1097_v48 }
 0x331   :  { %v1610_v29 = vpop.permute.xlu1 %1609 }
 0x332   :  { %v1738_v49 = vsel %vm1700_vm13, %v1673_v46, %v1610_v29  ;;  %v1337_v4 = vpop.permute.xlu0 %1336 }
 0x333   :  { %1340 = vrot.lane.b32.xlu0 %v1275_v3, %s8841_s16  ;;  %8184 = vmatmul.msk.bf16.gmra.mxu0 %vm1791_vm12, %v1738_v49  ;;  %v9846_v52 = vsel %vm1409_vm9, %v1404_v58, %v1337_v4  ;;  %v1547_v34 = vpop.permute.xlu2 %1546 }
 0x334   :  { %1566 = vrot.lane.b32.xlu1 %v9846_v52, %s8845_s25  ;;  %1629 = vrot.lane.b32.xlu2 %v9846_v52, %s8844_s22  ;;  %v1675_v1 = vsel %vm1635_vm11, %v9599_v38, %v1547_v34 }
 0x339   :  { %v1091_v7 = vpop.permute.xlu1 %1090 }
 0x33a   :  { %v1390_v22 = vsel %vm1342_vm8, %v9669_v43, %v1091_v7  ;;  %v1323_v16 = vpop.permute.xlu0 %1322  ;;  %v9869_v43 = vpop.f32.mrf.mxu0 }
 0x33b   :  { %1550 = vrot.lane.b32.xlu0 %v9827_v42, %s8845_s25  ;;  %v1457_v56 = vsel %vm1409_vm9, %v1390_v22, %v1323_v16  ;;  %v1339_v13 = vpop.permute.xlu2 %1338 }
 0x33c   :  { %1615 = vrot.lane.b32.xlu2 %v1457_v56, %s8844_s22 }
 0x341   :  { %v1329_v51 = vpop.permute.xlu1 %1328 }
 0x342   :  { %v9863_v8 = vsel %vm1409_vm9, %v1396_v9, %v1329_v51  ;;  %v9881_v17 = vpop.f32.mrf.mxu0 }
 0x343   :  { %1621 = vrot.lane.b32.xlu0 %v9863_v8, %s8844_s22  ;;  %1558 = vrot.lane.b32.xlu1 %v9863_v8, %s8845_s25 }
 0x349   :  { %v1107_v50 = vpop.permute.xlu1 %1106 }
 0x34a   :  { %v1406_v10 = vsel %vm1342_vm8, %v9718_v63, %v1107_v50  ;;  %v9887_v63 = vpop.f32.mrf.mxu0 }
 0x34b   :  { %1552 = vrot.lane.b32.xlu0 %v1457_v56, %s8845_s25  ;;  %v9875_v39 = vsel %vm1409_vm9, %v1406_v10, %v1339_v13 }
 0x34c   :  { %1568 = vrot.lane.b32.xlu1 %v9875_v39, %s8845_s25  ;;  %1631 = vrot.lane.b32.xlu2 %v9875_v39, %s8844_s22 }
 0x351   :  { %v1331_v37 = vpop.permute.xlu1 %1330 }
 0x352   :  { %v9889_v26 = vpop.f32.mrf.mxu0 }
 0x354   :  { %1625 = vrot.lane.b32.xlu1 %v9790_v59, %s8844_s22  ;;  %1617 = vrot.lane.b32.xlu2 %v9815_v57, %s8844_s22 }
 0x35a   :  { %v9891_v28 = vpop.f32.mrf.mxu0 }
 0x362   :  { %v9897_v32 = vpop.f32.mrf.mxu0 }
 0x36a   :  { %v9903_v3 = vpop.f32.mrf.mxu0 }
 0x36e   :  { %v1612_v35 = vpop.permute.xlu0 %1611  ;;  %v1549_v46 = vpop.permute.xlu1 %1548 }
 0x36f   :  { %v1740_v6 = vsel %vm1700_vm13, %v1675_v1, %v1612_v35  ;;  %v1677_v50 = vsel %vm1635_vm11, %v9695_v14, %v1549_v46 }
 0x370   :  { %8185 = vmatmul.msk.bf16.gmra.mxu0 %vm1791_vm12, %v1740_v6 }
 0x372   :  { %v9906_v29 = vpop.f32.mrf.mxu0 }
 0x375   :  { %v1563_v58 = vpop.permute.xlu2 %1562 }
 0x376   :  { %v1099_v40 = vpop.permute.xlu0 %1098 }
 0x377   :  { %v1398_v31 = vsel %vm1342_vm8, %v9738_v23, %v1099_v40 }
 0x378   :  { %v1465_v44 = vsel %vm1409_vm9, %v1398_v31, %v1331_v37 }
 0x379   :  { %1623 = vrot.lane.b32.xlu0 %v1465_v44, %s8844_s22  ;;  %v1691_v23 = vsel %vm1635_vm11, %v1465_v44, %v1563_v58 }
 0x37a   :  { %v9914_v9 = vpop.f32.mrf.mxu0 }
 0x37e   :  { %v1555_v38 = vpop.permute.xlu2 %1554 }
 0x37f   :  { %v1683_v4 = vsel %vm1635_vm11, %v1457_v56, %v1555_v38 }
 0x381   :  { %1560 = vrot.lane.b32.xlu0 %v1465_v44, %s8845_s25 }
 0x382   :  { %v9916_v13 = vpop.f32.mrf.mxu0 }
 0x386   :  { %v1109_v49 = vpop.permute.xlu2 %1108 }
 0x387   :  { %v1408_v37 = vsel %vm1342_vm8, %v9794_v45, %v1109_v49  ;;  %vm4441_vm8 = vcmask 1042434  }
 0x38a   :  { %v9928_v44 = vpop.f32.mrf.mxu0 }
 0x38e   :  { %v1620_v48 = vpop.permute.xlu1 %1619  ;;  %v1628_v7 = vpop.permute.xlu0 %1627 }
 0x38f   :  { %v1748_v22 = vsel %vm1700_vm13, %v1683_v4, %v1620_v48  ;;  %v1756_v16 = vsel %vm1700_vm13, %v1691_v23, %v1628_v7  ;;  %v1630_v51 = vpop.permute.xlu2 %1629 }
 0x390   :  { %8189 = vmatmul.msk.bf16.vlgmr.msra.gmra.mxu1 %vm1791_vm12, %v1748_v22  ;;  %8193 = vmatmul.msk.bf16.vlgmr.msra.gmra.mxu3 %vm1791_vm12, %v1756_v16 }
 0x392   :  { %v9934_v4 = vpop.f32.mrf.mxu0 }
 0x393   :  { %v2190_v2 = vmul.f32 %v9934_v4, %v9934_v4 }
 0x396   :  { %v1565_v34 = vpop.permute.xlu1 %1564 }
 0x397   :  { %v1693_v56 = vsel %vm1635_vm11, %v9790_v59, %v1565_v34  ;;  %v1616_v40 = vpop.permute.xlu2 %1615 }
 0x398   :  { %v1758_v6 = vsel %vm1700_vm13, %v1693_v56, %v1630_v51 }
 0x39a   :  { %v9947_v22 = vpop.f32.mrf.mxu0 }
 0x39d   :  { %v1614_v10 = vpop.permute.xlu0 %1613 }
 0x39e   :  { %v1742_v1 = vsel %vm1700_vm13, %v1677_v50, %v1614_v10  ;;  %v1557_v35 = vpop.permute.xlu1 %1556 }
 0x39f   :  { %8186 = vmatmul.msk.bf16.gmra.mxu0 %vm1791_vm12, %v1742_v1 }
 0x3a0   :  { %8194 = vmatmul.msk.bf16.gmra.mxu3 %vm1791_vm12, %v1758_v6 }
 0x3a2   :  { %v9953_v56 = vpop.f32.mrf.mxu0 }
 0x3a5   :  { %v1341_v31 = vpop.permute.xlu0 %1340 }
 0x3a6   :  { %v1475_v59 = vsel %vm1409_vm9, %v1408_v37, %v1341_v31  ;;  %v1567_v14 = vpop.permute.xlu1 %1566  ;;  %v1632_v38 = vpop.permute.xlu2 %1631  ;;  %vm4443_vm9 = vcmask 1043459  }
 0x3a7   :  { %1633 = vrot.lane.b32.xlu2 %v1475_v59, %s8844_s22  ;;  %v1695_v58 = vsel %vm1635_vm11, %v9802_v30, %v1567_v14  ;;  %v1685_v30 = vsel %vm1635_vm11, %v9815_v57, %v1557_v35 }
 0x3a8   :  { %v1760_v49 = vsel %vm1700_vm13, %v1695_v58, %v1632_v38 }
 0x3aa   :  { %v9955_v50 = vpop.f32.mrf.mxu0 }
 0x3ad   :  { %v1551_v46 = vpop.permute.xlu0 %1550 }
 0x3ae   :  { %v1679_v48 = vsel %vm1635_vm11, %v9758_v21, %v1551_v46  ;;  %v1618_v16 = vpop.permute.xlu2 %1617 }
 0x3af   :  { %1570 = vrot.lane.b32.xlu2 %v1475_v59, %s8845_s25  ;;  %v1744_v45 = vsel %vm1700_vm13, %v1679_v48, %v1616_v40 }
 0x3b0   :  { %8187 = vmatmul.msk.bf16.gmra.mxu0 %vm1791_vm12, %v1744_v45  ;;  %8195 = vmatmul.msk.bf16.gmra.mxu3 %vm1791_vm12, %v1760_v49 }
 0x3b2   :  { %v9957_v57 = vpop.f32.mrf.mxu0 }
 0x3b3   :  { %v2089_v62 = vsel %vm2029_vm14, %v9957_v57, 0.0 }
 0x3b5   :  { %v1622_v7 = vpop.permute.xlu0 %1621  ;;  %v1559_v1 = vpop.permute.xlu1 %1558 }
 0x3b6   :  { %v1750_v23 = vsel %vm1700_vm13, %v1685_v30, %v1622_v7  ;;  %v1687_v6 = vsel %vm1635_vm11, %v9799_v0, %v1559_v1 }
 0x3b7   :  { %8190 = vmatmul.msk.bf16.gmra.mxu1 %vm1791_vm12, %v1750_v23 }
 0x3ba   :  { %v9959_v10 = vpop.f32.mrf.mxu0 }
 0x3bb   :  { %v2195_v61 = vmul.f32 %v9959_v10, %v9959_v10 }
 0x3bd   :  { %v1553_v21 = vpop.permute.xlu0 %1552 }
 0x3be   :  { %v1681_v34 = vsel %vm1635_vm11, %v9827_v42, %v1553_v21  ;;  %v1569_v37 = vpop.permute.xlu1 %1568  ;;  %v2031_v21 = vsel %vm2029_vm14, %v9519_v15, 0.0 }
 0x3bf   :  { %v1746_v51 = vsel %vm1700_vm13, %v1681_v34, %v1618_v16  ;;  %v1697_v0 = vsel %vm1635_vm11, %v9846_v52, %v1569_v37  ;;  %v2164_v52 = vmul.f32 %v9514_v12, %v9514_v12  ;;  %v2166_v16 = vmul.f32 %v9525_v18, %v9525_v18 }
 0x3c0   :  { %8188 = vmatmul.msk.bf16.gmra.mxu0 %vm1791_vm12, %v1746_v51  ;;  %v2030_v51 = vsel %vm2029_vm14, %v9514_v12, 0.0 }
 0x3c1   :  { %v2231_v37 = vsel %vm2029_vm14, %v2166_v16, 0.0 }
 0x3c2   :  { %v9961_v35 = vpop.f32.mrf.mxu0 }
 0x3c6   :  { %v1626_v58 = vpop.permute.xlu1 %1625 }
 0x3ca   :  { %v9967_v31 = vpop.f32.mrf.mxu0 }
 0x3cb   :  { %14763 = vst [vmem:[#allocation10_spill] sm:$0xff] %v9967_v31 }
 0x3d2   :  { %v9971_v38 = vpop.f32.mrf.mxu0 }
 0x3da   :  { %v9979_v49 = vpop.f32.mrf.mxu0 }
 0x3db   :  { %v2099_v11 = vsel %vm2029_vm14, %v9979_v49, 0.0 }
 0x3e2   :  { %v9981_v7 = vpop.f32.mrf.mxu0 }
 0x3e3   :  { %14764 = vst [vmem:[#allocation11_spill] sm:$0xff] %v9981_v7 }
 0x3eb   :  { %v1624_v40 = vpop.permute.xlu0 %1623 }
 0x3ec   :  { %v1752_v42 = vsel %vm1700_vm13, %v1687_v6, %v1624_v40  ;;  %v2167_v6 = vmul.f32 %v9530_v33, %v9530_v33  ;;  %v2032_v40 = vadd.f32 %v2031_v21, %v2030_v51  ;;  %v2170_v21 = vmul.f32 %v9636_v19, %v9636_v19 }
 0x3ed   :  { %8191 = vmatmul.msk.bf16.gmra.mxu1 %vm1791_vm12, %v1752_v42  ;;  %v2228_v42 = vsel %vm2029_vm14, %v2164_v52, 0.0  ;;  %v2039_v52 = vsel %vm2029_vm14, %v9601_v41, 0.0 }
 0x3f3   :  { %v1561_v59 = vpop.permute.xlu0 %1560 }
 0x3f4   :  { %v1689_v14 = vsel %vm1635_vm11, %v9863_v8, %v1561_v59  ;;  %v2165_v8 = vmul.f32 %v9519_v15, %v9519_v15  ;;  %v2168_v59 = vmul.f32 %v9560_v55, %v9560_v55 }
 0x3f5   :  { %v1754_v46 = vsel %vm1700_vm13, %v1689_v14, %v1626_v58 }
 0x3f6   :  { %v2229_v1 = vsel %vm2029_vm14, %v2165_v8, 0.0  ;;  %v10014_v8 = vpop.f32.mrf.mxu0 }
 0x3f7   :  { %v2230_v14 = vadd.f32 %v2229_v1, %v2228_v42  ;;  %14765 = vst [vmem:[#allocation12_spill] sm:$0xff] %v10014_v8  ;;  %v2041_v1 = vsel %vm2029_vm14, %v9636_v19, 0.0  ;;  %v2239_v42 = vsel %vm2029_vm14, %v2170_v21, 0.0  ;;  %v2174_v21 = vmul.f32 %v9772_v24, %v9772_v24 }
 0x3fd   :  { %8192 = vmatmul.msk.bf16.gmra.mxu1 %vm1791_vm12, %v1754_v46  ;;  %v2233_v46 = vsel %vm2029_vm14, %v2167_v6, 0.0 }
 0x401   :  { %v1634_v48 = vpop.permute.xlu2 %1633 }
 0x402   :  { %v1762_v45 = vsel %vm1700_vm13, %v1697_v0, %v1634_v48  ;;  %v2037_v0 = vsel %vm2029_vm14, %v9560_v55, 0.0  ;;  %v2169_v48 = vmul.f32 %v9601_v41, %v9601_v41 }
 0x403   :  { %8196 = vmatmul.msk.bf16.gmra.mxu3 %vm1791_vm12, %v1762_v45  ;;  %v2232_v45 = vadd.f32 %v2231_v37, %v2230_v14  ;;  %v2043_v37 = vsel %vm2029_vm14, %v9663_v53, 0.0 }
 0x404   :  { %v2237_v51 = vsel %vm2029_vm14, %v2169_v48, 0.0 }
 0x405   :  { %v2234_v16 = vadd.f32 %v2233_v46, %v2232_v45  ;;  %v2045_v46 = vsel %vm2029_vm14, %v9751_v20, 0.0 }
 0x409   :  { %v1571_v30 = vpop.permute.xlu2 %1570 }
 0x40a   :  { %v1699_v23 = vsel %vm1635_vm11, %v9875_v39, %v1571_v30  ;;  %v2033_v39 = vsel %vm2029_vm14, %v9525_v18, 0.0  ;;  %vm4445_vm11 = vcmask 1044484  }
 0x40b   :  { %v1763_v34 = vsel %vm1700_vm13, %v1699_v23, %v9654_v25  ;;  %v2035_v25 = vsel %vm2029_vm14, %v9530_v33, 0.0  ;;  %v2034_v58 = vadd.f32 %v2033_v39, %v2032_v40  ;;  %v2235_v23 = vsel %vm2029_vm14, %v2168_v59, 0.0 }
 0x40c   :  { %v2171_v39 = vmul.f32 %v9663_v53, %v9663_v53  ;;  %v2236_v6 = vadd.f32 %v2235_v23, %v2234_v16  ;;  %vm4449_vm13 = vcmask 1046534  }
 0x40d   :  { %v2036_v30 = vadd.f32 %v2035_v25, %v2034_v58  ;;  %v2172_v25 = vmul.f32 %v9751_v20, %v9751_v20 }
 0x40e   :  { %v2238_v59 = vadd.f32 %v2237_v51, %v2236_v6  ;;  %v2241_v58 = vsel %vm2029_vm14, %v2171_v39, 0.0  ;;  %v2175_v39 = vmul.f32 %v9780_v36, %v9780_v36 }
 0x40f   :  { %v2243_v23 = vsel %vm2029_vm14, %v2172_v25, 0.0  ;;  %v2176_v25 = vmul.f32 %v9821_v47, %v9821_v47 }
 0x410   :  { %v2240_v48 = vadd.f32 %v2239_v42, %v2238_v59  ;;  %v2247_v42 = vsel %vm2029_vm14, %v2174_v21, 0.0  ;;  %v2178_v21 = vmul.f32 %v9857_v54, %v9857_v54 }
 0x412   :  { %v2242_v16 = vadd.f32 %v2241_v58, %v2240_v48  ;;  %v2249_v58 = vsel %vm2029_vm14, %v2175_v39, 0.0  ;;  %v2057_v39 = vsel %vm2029_vm14, %v9857_v54, 0.0 }
 0x413   :  { %8197 = vmatmul.msk.bf16.gmra.mxu3 %vm1791_vm12, %v1763_v34  ;;  %v2038_v34 = vadd.f32 %v2037_v0, %v2036_v30  ;;  %v2173_v0 = vmul.f32 %v9764_v5, %v9764_v5  ;;  %v10036_v30 = vpop.f32.mrf.mxu0  ;;  %vm4447_vm12 = vcmask 1045509  }
 0x414   :  { %14766 = vst [vmem:[#allocation13_spill] sm:$0xff] %v10036_v30  ;;  %v2244_v6 = vadd.f32 %v2243_v23, %v2242_v16  ;;  %v2251_v23 = vsel %vm2029_vm14, %v2176_v25, 0.0  ;;  %v2059_v25 = vsel %vm2029_vm14, %v9869_v43, 0.0 }
 0x415   :  { %v2040_v40 = vadd.f32 %v2039_v52, %v2038_v34  ;;  %v2047_v52 = vsel %vm2029_vm14, %v9764_v5, 0.0  ;;  %v2245_v51 = vsel %vm2029_vm14, %v2173_v0, 0.0  ;;  %v2177_v0 = vmul.f32 %v9841_v27, %v9841_v27 }
 0x416   :  { %v2246_v59 = vadd.f32 %v2245_v51, %v2244_v6  ;;  %v2179_v6 = vmul.f32 %v9869_v43, %v9869_v43 }
 0x417   :  { %v2042_v14 = vadd.f32 %v2041_v1, %v2040_v40  ;;  %v2049_v1 = vsel %vm2029_vm14, %v9772_v24, 0.0 }
 0x418   :  { %v2248_v48 = vadd.f32 %v2247_v42, %v2246_v59  ;;  %v2180_v59 = vmul.f32 %v9881_v17, %v9881_v17 }
 0x419   :  { %v2044_v45 = vadd.f32 %v2043_v37, %v2042_v14  ;;  %v2051_v37 = vsel %vm2029_vm14, %v9780_v36, 0.0 }
 0x41b   :  { %v2046_v34 = vadd.f32 %v2045_v46, %v2044_v45  ;;  %v2053_v46 = vsel %vm2029_vm14, %v9821_v47, 0.0  ;;  %v10063_v51 = vpop.f32.mrf.mxu0 }
 0x41d   :  { %v2048_v40 = vadd.f32 %v2047_v52, %v2046_v34  ;;  %v2055_v52 = vsel %vm2029_vm14, %v9841_v27, 0.0  ;;  %v2250_v34 = vadd.f32 %v2249_v58, %v2248_v48  ;;  %v2181_v48 = vmul.f32 %v9887_v63, %v9887_v63 }
 0x41f   :  { %v2050_v14 = vadd.f32 %v2049_v1, %v2048_v40  ;;  %v2253_v1 = vsel %vm2029_vm14, %v2177_v0, 0.0  ;;  %v2252_v40 = vadd.f32 %v2251_v23, %v2250_v34  ;;  %v2061_v0 = vsel %vm2029_vm14, %v9881_v17, 0.0 }
 0x421   :  { %v2052_v45 = vadd.f32 %v2051_v37, %v2050_v14  ;;  %v2255_v37 = vsel %vm2029_vm14, %v2178_v21, 0.0  ;;  %v2254_v58 = vadd.f32 %v2253_v1, %v2252_v40  ;;  %v2063_v21 = vsel %vm2029_vm14, %v9887_v63, 0.0 }
 0x422   :  { %v2065_v40 = vsel %vm2029_vm14, %v9889_v26, 0.0 }
 0x423   :  { %v2054_v16 = vadd.f32 %v2053_v46, %v2052_v45  ;;  %v2257_v46 = vsel %vm2029_vm14, %v2179_v6, 0.0  ;;  %v2256_v45 = vadd.f32 %v2255_v37, %v2254_v58  ;;  %v2261_v6 = vsel %vm2029_vm14, %v2181_v48, 0.0 }
 0x424   :  { %v2184_v58 = vmul.f32 %v9897_v32, %v9897_v32 }
 0x425   :  { %v2056_v42 = vadd.f32 %v2055_v52, %v2054_v16  ;;  %v2259_v52 = vsel %vm2029_vm14, %v2180_v59, 0.0  ;;  %v2182_v16 = vmul.f32 %v9889_v26, %v9889_v26  ;;  %v2258_v1 = vadd.f32 %v2257_v46, %v2256_v45 }
 0x426   :  { %v2069_v45 = vsel %vm2029_vm14, %v9897_v32, 0.0 }
 0x427   :  { %v2058_v14 = vadd.f32 %v2057_v39, %v2056_v42  ;;  %v10085_v39 = vpop.f32.mrf.mxu0  ;;  %v2183_v42 = vmul.f32 %v9891_v28, %v9891_v28  ;;  %v2260_v37 = vadd.f32 %v2259_v52, %v2258_v1  ;;  %v2263_v59 = vsel %vm2029_vm14, %v2182_v16, 0.0 }
 0x428   :  { %14767 = vst [vmem:[#allocation14_spill] sm:$0xff] %v10085_v39  ;;  %v2267_v16 = vsel %vm2029_vm14, %v2184_v58, 0.0  ;;  %v2186_v1 = vmul.f32 %v9906_v29, %v9906_v29 }
 0x429   :  { %v2060_v23 = vadd.f32 %v2059_v25, %v2058_v14  ;;  %v2067_v14 = vsel %vm2029_vm14, %v9891_v28, 0.0  ;;  %v2265_v48 = vsel %vm2029_vm14, %v2183_v42, 0.0 }
 0x42a   :  { %v2271_v58 = vsel %vm2029_vm14, %v2186_v1, 0.0 }
 0x42b   :  { %v2062_v34 = vadd.f32 %v2061_v0, %v2060_v23  ;;  %v2262_v0 = vadd.f32 %v2261_v6, %v2260_v37  ;;  %v2185_v23 = vmul.f32 %v9903_v3, %v9903_v3  ;;  %v2073_v37 = vsel %vm2029_vm14, %v9906_v29, 0.0 }
 0x42d   :  { %v2064_v25 = vadd.f32 %v2063_v21, %v2062_v34  ;;  %v2264_v52 = vadd.f32 %v2263_v59, %v2262_v0  ;;  %v2071_v34 = vsel %vm2029_vm14, %v9903_v3, 0.0  ;;  %v2269_v42 = vsel %vm2029_vm14, %v2185_v23, 0.0 }
 0x42e   :  { %v2075_v0 = vsel %vm2029_vm14, %v9914_v9, 0.0 }
 0x42f   :  { %v2066_v46 = vadd.f32 %v2065_v40, %v2064_v25  ;;  %v2266_v6 = vadd.f32 %v2265_v48, %v2264_v52  ;;  %v2187_v25 = vmul.f32 %v9914_v9, %v9914_v9  ;;  %v2188_v48 = vmul.f32 %v9916_v13, %v9916_v13 }
 0x431   :  { %v2068_v21 = vadd.f32 %v2067_v14, %v2066_v46  ;;  %v2268_v59 = vadd.f32 %v2267_v16, %v2266_v6  ;;  %v10112_v46 = vpop.f32.mrf.mxu0  ;;  %v2273_v52 = vsel %vm2029_vm14, %v2187_v25, 0.0  ;;  %v2189_v16 = vmul.f32 %v9928_v44, %v9928_v44 }
 0x432   :  { %14768 = vst [vmem:[#allocation15_spill] sm:$0xff] %v10112_v46  ;;  %v2275_v1 = vsel %vm2029_vm14, %v2188_v48, 0.0  ;;  %v2079_v6 = vsel %vm2029_vm14, %v9928_v44, 0.0  ;;  %v2279_v48 = vsel %vm2029_vm14, %v2190_v2, 0.0  ;;  %v2193_v2 = vmul.f32 %v9955_v50, %v9955_v50 }
 0x433   :  { %v2070_v40 = vadd.f32 %v2069_v45, %v2068_v21  ;;  %v2270_v23 = vadd.f32 %v2269_v42, %v2268_v59  ;;  %v2077_v21 = vsel %vm2029_vm14, %v9916_v13, 0.0  ;;  %v2277_v25 = vsel %vm2029_vm14, %v2189_v16, 0.0 }
 0x434   :  { %v2081_v59 = vsel %vm2029_vm14, %v9934_v4, 0.0 }
 0x435   :  { %v2072_v14 = vadd.f32 %v2071_v34, %v2070_v40  ;;  %v2272_v34 = vadd.f32 %v2271_v58, %v2270_v23  ;;  %v2192_v23 = vmul.f32 %v9953_v56, %v9953_v56 }
 0x437   :  { %v2074_v45 = vadd.f32 %v2073_v37, %v2072_v14  ;;  %v2274_v37 = vadd.f32 %v2273_v52, %v2272_v34  ;;  %v2191_v14 = vmul.f32 %v9947_v22, %v9947_v22  ;;  %v10139_v34 = vpop.f32.mrf.mxu1 }
 0x438   :  { %14769 = vst [vmem:[#allocation16_spill] sm:$0xff] %v10139_v34 }
 0x439   :  { %v2076_v40 = vadd.f32 %v2075_v0, %v2074_v45  ;;  %v2276_v58 = vadd.f32 %v2275_v1, %v2274_v37  ;;  %v2083_v45 = vsel %vm2029_vm14, %v9947_v22, 0.0  ;;  %v10141_v16 = vpop.f32.mrf.mxu0  ;;  %v2085_v1 = vsel %vm2029_vm14, %v9953_v56, 0.0 }
 0x43a   :  { %14770 = vst [vmem:[#allocation17_spill] sm:$0xff] %v10141_v16 }
 0x43b   :  { %v2078_v42 = vadd.f32 %v2077_v21, %v2076_v40  ;;  %v2278_v52 = vadd.f32 %v2277_v25, %v2276_v58  ;;  %v2281_v40 = vsel %vm2029_vm14, %v2191_v14, 0.0  ;;  %v2087_v25 = vsel %vm2029_vm14, %v9955_v50, 0.0 }
 0x43c   :  { %v2285_v14 = vsel %vm2029_vm14, %v2193_v2, 0.0 }
 0x43d   :  { %v2080_v0 = vadd.f32 %v2079_v6, %v2078_v42  ;;  %v2280_v6 = vadd.f32 %v2279_v48, %v2278_v52  ;;  %v2283_v42 = vsel %vm2029_vm14, %v2192_v23, 0.0  ;;  %v10158_v52 = vpop.f32.mrf.mxu3 }
 0x43e   :  { %14771 = vst [vmem:[#allocation18_spill] sm:$0xff] %v10158_v52 }
 0x43f   :  { %v2082_v21 = vadd.f32 %v2081_v59, %v2080_v0  ;;  %v2194_v59 = vmul.f32 %v9957_v57, %v9957_v57  ;;  %v2282_v58 = vadd.f32 %v2281_v40, %v2280_v6  ;;  %v2196_v40 = vmul.f32 %v9961_v35, %v9961_v35 }
 0x440   :  { %v2289_v6 = vsel %vm2029_vm14, %v2195_v61, 0.0  ;;  %v2198_v61 = vmul.f32 %v9971_v38, %v9971_v38 }
 0x441   :  { %v2084_v37 = vadd.f32 %v2083_v45, %v2082_v21  ;;  %v2284_v48 = vadd.f32 %v2283_v42, %v2282_v58  ;;  %v2287_v23 = vsel %vm2029_vm14, %v2194_v59, 0.0  ;;  %v2091_v21 = vsel %vm2029_vm14, %v9959_v10, 0.0  ;;  %v10172_v59 = vpop.f32.mrf.mxu0 }
 0x442   :  { %v2197_v42 = vmul.f32 %v9967_v31, %v9967_v31  ;;  %14773 = vst [vmem:[#allocation20_spill] sm:$0xff] %v10172_v59  ;;  %v2291_v60 = vsel %vm2029_vm14, %v2196_v40, 0.0  ;;  %v2295_v40 = vsel %vm2029_vm14, %v2198_v61, 0.0 }
 0x443   :  { %v2086_v0 = vadd.f32 %v2085_v1, %v2084_v37  ;;  %v2286_v1 = vadd.f32 %v2285_v14, %v2284_v48  ;;  %v2093_v37 = vsel %vm2029_vm14, %v9961_v35, 0.0  ;;  %v2095_v14 = vsel %vm2029_vm14, %v9967_v31, 0.0 }
 0x444   :  { %v2200_v31 = vmul.f32 %v9981_v7, %v9981_v7 }
 0x445   :  { %v2088_v45 = vadd.f32 %v2087_v25, %v2086_v0  ;;  %v2288_v25 = vadd.f32 %v2287_v23, %v2286_v1  ;;  %v10170_v0 = vpop.f32.mrf.mxu1  ;;  %v2097_v23 = vsel %vm2029_vm14, %v9971_v38, 0.0 }
 0x446   :  { %14772 = vst [vmem:[#allocation19_spill] sm:$0xff] %v10170_v0 }
 0x447   :  { %v2090_v2 = vadd.f32 %v2089_v62, %v2088_v45  ;;  %v2290_v62 = vadd.f32 %v2289_v6, %v2288_v25  ;;  %v2293_v45 = vsel %vm2029_vm14, %v2197_v42, 0.0  ;;  %v10189_v25 = vpop.f32.mrf.mxu3 }
 0x448   :  { %14774 = vst [vmem:[#allocation21_spill] sm:$0xff] %v10189_v25 }
 0x449   :  { %v2092_v58 = vadd.f32 %v2091_v21, %v2090_v2  ;;  %v2199_v21 = vmul.f32 %v9979_v49, %v9979_v49  ;;  %v2292_v1 = vadd.f32 %v2291_v60, %v2290_v62  ;;  %v2201_v60 = vmul.f32 %v10014_v8, %v10014_v8 }
 0x44b   :  { %v2094_v48 = vadd.f32 %v2093_v37, %v2092_v58  ;;  %v2294_v6 = vadd.f32 %v2293_v45, %v2292_v1  ;;  %v2297_v42 = vsel %vm2029_vm14, %v2199_v21, 0.0  ;;  %v2101_v58 = vsel %vm2029_vm14, %v9981_v7, 0.0 }
 0x44c   :  { %v2103_v45 = vsel %vm2029_vm14, %v10014_v8, 0.0  ;;  %v2301_v7 = vsel %vm2029_vm14, %v2201_v60, 0.0  ;;  %v2107_v8 = vsel %vm2029_vm14, %v10063_v51, 0.0 }
 0x44d   :  { %v2096_v2 = vadd.f32 %v2095_v14, %v2094_v48  ;;  %v2296_v14 = vadd.f32 %v2295_v40, %v2294_v6  ;;  %v10196_v62 = vpop.f32.mrf.mxu1  ;;  %v2299_v48 = vsel %vm2029_vm14, %v2200_v31, 0.0  ;;  %v2105_v40 = vsel %vm2029_vm14, %v10036_v30, 0.0 }
 0x44e   :  { %14775 = vst [vmem:[#allocation22_spill] sm:$0xff] %v10196_v62 }
 0x44f   :  { %v2098_v37 = vadd.f32 %v2097_v23, %v2096_v2  ;;  %v2202_v23 = vmul.f32 %v10036_v30, %v10036_v30  ;;  %v2298_v1 = vadd.f32 %v2297_v42, %v2296_v14  ;;  %v10203_v2 = vpop.f32.mrf.mxu0  ;;  %v2204_v42 = vmul.f32 %v10085_v39, %v10085_v39 }
 0x450   :  { %14776 = vst [vmem:[#allocation23_spill] sm:$0xff] %v10203_v2  ;;  %v2205_v30 = vmul.f32 %v10112_v46, %v10112_v46 }
 0x451   :  { %v2100_v61 = vadd.f32 %v2099_v11, %v2098_v37  ;;  %v2203_v11 = vmul.f32 %v10063_v51, %v10063_v51  ;;  %v2300_v6 = vadd.f32 %v2299_v48, %v2298_v1  ;;  %v2303_v37 = vsel %vm2029_vm14, %v2202_v23, 0.0  ;;  %v10220_v1 = vpop.f32.mrf.mxu3 }
 0x452   :  { %14777 = vst [vmem:[#allocation24_spill] sm:$0xff] %v10220_v1  ;;  %v2307_v23 = vsel %vm2029_vm14, %v2204_v42, 0.0 }
 0x453   :  { %v2102_v21 = vadd.f32 %v2101_v58, %v2100_v61  ;;  %v2302_v58 = vadd.f32 %v2301_v7, %v2300_v6  ;;  %v2305_v60 = vsel %vm2029_vm14, %v2203_v11, 0.0  ;;  %v2109_v61 = vsel %vm2029_vm14, %v10085_v39, 0.0 }
 0x454   :  { %v2206_v7 = vmul.f32 %v10141_v16, %v10141_v16 }
 0x455   :  { %v2104_v31 = vadd.f32 %v2103_v45, %v2102_v21  ;;  %v2304_v48 = vadd.f32 %v2303_v37, %v2302_v58  ;;  %v2111_v21 = vsel %vm2029_vm14, %v10112_v46, 0.0  ;;  %v10227_v6 = vpop.f32.mrf.mxu1  ;;  %v2113_v37 = vsel %vm2029_vm14, %v10141_v16, 0.0 }
 0x456   :  { %14778 = vst [vmem:[#allocation25_spill] sm:$0xff] %v10227_v6  ;;  %v2311_v46 = vsel %vm2029_vm14, %v2206_v7, 0.0  ;;  %v2117_v16 = vsel %vm2029_vm14, %v10203_v2, 0.0 }
 0x457   :  { %v2106_v14 = vadd.f32 %v2105_v40, %v2104_v31  ;;  %v2306_v40 = vadd.f32 %v2305_v60, %v2304_v48  ;;  %v2309_v31 = vsel %vm2029_vm14, %v2205_v30, 0.0  ;;  %v2115_v60 = vsel %vm2029_vm14, %v10172_v59, 0.0 }
 0x459   :  { %v2108_v45 = vadd.f32 %v2107_v8, %v2106_v14  ;;  %v2207_v8 = vmul.f32 %v10172_v59, %v10172_v59  ;;  %v2308_v58 = vadd.f32 %v2307_v23, %v2306_v40  ;;  %v10234_v14 = vpop.f32.mrf.mxu0  ;;  %v10249_v59 = vpop.f32.mrf.mxu3 }
 0x45a   :  { %14779 = vst [vmem:[#allocation26_spill] sm:$0xff] %v10234_v14  ;;  %v2209_v23 = vmul.f32 %v10234_v14, %v10234_v14 }
 0x45b   :  { %v2110_v11 = vadd.f32 %v2109_v61, %v2108_v45  ;;  %v2208_v61 = vmul.f32 %v10203_v2, %v10203_v2  ;;  %v2310_v48 = vadd.f32 %v2309_v31, %v2308_v58  ;;  %v2313_v45 = vsel %vm2029_vm14, %v2207_v8, 0.0  ;;  %14780 = vst [vmem:[#allocation27_spill] sm:$0xff] %v10249_v59 }
 0x45c   :  { %v2317_v8 = vsel %vm2029_vm14, %v2209_v23, 0.0  ;;  %v2210_v2 = vmul.f32 %v10139_v34, %v10139_v34 }
 0x45d   :  { %v2112_v42 = vadd.f32 %v2111_v21, %v2110_v11  ;;  %v2312_v21 = vadd.f32 %v2311_v46, %v2310_v48  ;;  %v2315_v7 = vsel %vm2029_vm14, %v2208_v61, 0.0  ;;  %v2119_v11 = vsel %vm2029_vm14, %v10234_v14, 0.0 }
 0x45e   :  { %v2319_v48 = vsel %vm2029_vm14, %v2210_v2, 0.0  ;;  %v2125_v2 = vsel %vm2029_vm14, %v10196_v62, 0.0 }
 0x45f   :  { %v2114_v30 = vadd.f32 %v2113_v37, %v2112_v42  ;;  %v2314_v39 = vadd.f32 %v2313_v45, %v2312_v21 }
 0x461   :  { %v2116_v40 = vadd.f32 %v2115_v60, %v2114_v30  ;;  %v2316_v58 = vadd.f32 %v2315_v7, %v2314_v39  ;;  %v2121_v60 = vsel %vm2029_vm14, %v10139_v34, 0.0  ;;  %v2211_v30 = vmul.f32 %v10170_v0, %v10170_v0  ;;  %v10265_v23 = vpop.f32.mrf.mxu3 }
 0x462   :  { %v2123_v39 = vsel %vm2029_vm14, %v10170_v0, 0.0  ;;  %14783 = vst [vmem:[#allocation30_spill] sm:$0xff] %v10265_v23  ;;  %v2212_v7 = vmul.f32 %v10196_v62, %v10196_v62 }
 0x463   :  { %v2118_v31 = vadd.f32 %v2117_v16, %v2116_v40  ;;  %v2318_v46 = vadd.f32 %v2317_v8, %v2316_v58  ;;  %v2321_v40 = vsel %vm2029_vm14, %v2211_v30, 0.0  ;;  %v2213_v58 = vmul.f32 %v10227_v6, %v10227_v6 }
 0x464   :  { %v2323_v8 = vsel %vm2029_vm14, %v2212_v7, 0.0 }
 0x465   :  { %v2120_v42 = vadd.f32 %v2119_v11, %v2118_v31  ;;  %v2320_v16 = vadd.f32 %v2319_v48, %v2318_v46 }
 0x467   :  { %v2122_v61 = vadd.f32 %v2121_v60, %v2120_v42  ;;  %v2322_v11 = vadd.f32 %v2321_v40, %v2320_v16 }
 0x469   :  { %v2124_v21 = vadd.f32 %v2123_v39, %v2122_v61  ;;  %v2324_v46 = vadd.f32 %v2323_v8, %v2322_v11  ;;  %v2127_v61 = vsel %vm2029_vm14, %v10227_v6, 0.0  ;;  %v2325_v39 = vsel %vm2029_vm14, %v2213_v58, 0.0  ;;  %v10291_v11 = vpop.f32.mrf.mxu3 }
 0x46a   :  { %v10251_v37 = vpop.f32.mrf.mxu1  ;;  %14785 = vst [vmem:[#allocation32_spill] sm:$0xff] %v10291_v11 }
 0x46b   :  { %14781 = vst [vmem:[#allocation28_spill] sm:$0xff] %v10251_v37  ;;  %v2126_v31 = vadd.f32 %v2125_v2, %v2124_v21  ;;  %v2214_v42 = vmul.f32 %v10251_v37, %v10251_v37  ;;  %v2129_v48 = vsel %vm2029_vm14, %v10251_v37, 0.0  ;;  %v2326_v8 = vadd.f32 %v2325_v39, %v2324_v46 }
 0x46c   :  { %v2137_v39 = vsel %vm2029_vm14, %v10158_v52, 0.0 }
 0x46d   :  { %v2128_v16 = vadd.f32 %v2127_v61, %v2126_v31  ;;  %v2327_v21 = vsel %vm2029_vm14, %v2214_v42, 0.0 }
 0x46e   :  { %v2328_v31 = vadd.f32 %v2327_v21, %v2326_v8  ;;  %v2139_v8 = vsel %vm2029_vm14, %v10189_v25, 0.0 }
 0x46f   :  { %v2130_v2 = vadd.f32 %v2129_v48, %v2128_v16 }
 0x472   :  { %v10261_v45 = vpop.f32.mrf.mxu1 }
 0x473   :  { %14782 = vst [vmem:[#allocation29_spill] sm:$0xff] %v10261_v45  ;;  %v2215_v30 = vmul.f32 %v10261_v45, %v10261_v45  ;;  %v2131_v40 = vsel %vm2029_vm14, %v10261_v45, 0.0  ;;  %v2218_v45 = vmul.f32 %v10158_v52, %v10158_v52 }
 0x474   :  { %v2132_v61 = vadd.f32 %v2131_v40, %v2130_v2 }
 0x475   :  { %v2329_v37 = vsel %vm2029_vm14, %v2215_v30, 0.0  ;;  %v2335_v2 = vsel %vm2029_vm14, %v2218_v45, 0.0 }
 0x476   :  { %v2330_v62 = vadd.f32 %v2329_v37, %v2328_v31 }
 0x47a   :  { %v10277_v60 = vpop.f32.mrf.mxu1 }
 0x47b   :  { %14784 = vst [vmem:[#allocation31_spill] sm:$0xff] %v10277_v60  ;;  %v2216_v7 = vmul.f32 %v10277_v60, %v10277_v60  ;;  %v2133_v6 = vsel %vm2029_vm14, %v10277_v60, 0.0 }
 0x47c   :  { %v2134_v42 = vadd.f32 %v2133_v6, %v2132_v61  ;;  %v2219_v6 = vmul.f32 %v10189_v25, %v10189_v25 }
 0x47d   :  { %v2331_v58 = vsel %vm2029_vm14, %v2216_v7, 0.0 }
 0x47e   :  { %v2332_v30 = vadd.f32 %v2331_v58, %v2330_v62  ;;  %v2220_v62 = vmul.f32 %v10220_v1, %v10220_v1  ;;  %v2337_v58 = vsel %vm2029_vm14, %v2219_v6, 0.0  ;;  %v2222_v6 = vmul.f32 %v10265_v23, %v10265_v23 }
 0x480   :  { %v2339_v45 = vsel %vm2029_vm14, %v2220_v62, 0.0  ;;  %v2223_v62 = vmul.f32 %v10291_v11, %v10291_v11 }
 0x482   :  { %v10297_v0 = vpop.f32.mrf.mxu1 }
 0x483   :  { %14786 = vst [vmem:[#allocation33_spill] sm:$0xff] %v10297_v0  ;;  %v2135_v48 = vsel %vm2029_vm14, %v10297_v0, 0.0  ;;  %v2217_v46 = vmul.f32 %v10297_v0, %v10297_v0 }
 0x484   :  { %v2136_v16 = vadd.f32 %v2135_v48, %v2134_v42  ;;  %v2141_v42 = vsel %vm2029_vm14, %v10220_v1, 0.0  ;;  %v2221_v48 = vmul.f32 %v10249_v59, %v10249_v59 }
 0x485   :  { %v2333_v37 = vsel %vm2029_vm14, %v2217_v46, 0.0 }
 0x486   :  { %v2138_v21 = vadd.f32 %v2137_v39, %v2136_v16  ;;  %v2334_v40 = vadd.f32 %v2333_v37, %v2332_v30  ;;  %v10310_v7 = vpop.f32.mrf.mxu3  ;;  %v2143_v16 = vsel %vm2029_vm14, %v10249_v59, 0.0 }
 0x487   :  { %14787 = vst [vmem:[#allocation34_spill] sm:$0xff] %v10310_v7 }
 0x488   :  { %v2140_v31 = vadd.f32 %v2139_v8, %v2138_v21  ;;  %v2336_v61 = vadd.f32 %v2335_v2, %v2334_v40  ;;  %v2341_v21 = vsel %vm2029_vm14, %v2221_v48, 0.0  ;;  %v2145_v8 = vsel %vm2029_vm14, %v10265_v23, 0.0 }
 0x48a   :  { %v2338_v46 = vadd.f32 %v2337_v58, %v2336_v61  ;;  %v2142_v30 = vadd.f32 %v2141_v42, %v2140_v31  ;;  %v2343_v31 = vsel %vm2029_vm14, %v2222_v6, 0.0  ;;  %v2147_v42 = vsel %vm2029_vm14, %v10291_v11, 0.0 }
 0x48c   :  { %v2144_v39 = vadd.f32 %v2143_v16, %v2142_v30  ;;  %v2340_v37 = vadd.f32 %v2339_v45, %v2338_v46  ;;  %v2345_v46 = vsel %vm2029_vm14, %v2223_v62, 0.0  ;;  %v2224_v30 = vmul.f32 %v10310_v7, %v10310_v7 }
 0x48e   :  { %v2342_v40 = vadd.f32 %v2341_v21, %v2340_v37  ;;  %v10328_v2 = vpop.f32.mrf.mxu3  ;;  %v2146_v61 = vadd.f32 %v2145_v8, %v2144_v39  ;;  %v2149_v39 = vsel %vm2029_vm14, %v10310_v7, 0.0  ;;  %v2347_v21 = vsel %vm2029_vm14, %v2224_v30, 0.0 }
 0x48f   :  { %v2225_v6 = vmul.f32 %v10328_v2, %v10328_v2 }
 0x490   :  { %v2344_v58 = vadd.f32 %v2343_v31, %v2342_v40  ;;  %v2148_v48 = vadd.f32 %v2147_v42, %v2146_v61  ;;  %v2151_v61 = vsel %vm2029_vm14, %v10328_v2, 0.0 }
 0x492   :  { %v2346_v45 = vadd.f32 %v2345_v46, %v2344_v58  ;;  %v2150_v37 = vadd.f32 %v2149_v39, %v2148_v48  ;;  %v2349_v58 = vsel %vm2029_vm14, %v2225_v6, 0.0 }
 0x494   :  { %v2348_v8 = vadd.f32 %v2347_v21, %v2346_v45  ;;  %v2152_v62 = vadd.f32 %v2151_v61, %v2150_v37 }
 0x496   :  { %v10340_v16 = vpop.f32.mrf.mxu3  ;;  %v2350_v46 = vadd.f32 %v2349_v58, %v2348_v8 }
 0x497   :  { %14788 = vst [vmem:[#allocation35_spill] sm:$0xff] %v10340_v16  ;;  %v2226_v40 = vmul.f32 %v10340_v16, %v10340_v16  ;;  %v2153_v31 = vsel %vm2029_vm14, %v10340_v16, 0.0 }
 0x498   :  { %v2154_v48 = vadd.f32 %v2153_v31, %v2152_v62 }
 0x499   :  { %v2351_v42 = vsel %vm2029_vm14, %v2226_v40, 0.0 }
 0x49a   :  { %v2352_v21 = vadd.f32 %v2351_v42, %v2350_v46 }
 0x49e   :  { %v10355_v30 = vpop.f32.mrf.mxu3 }
 0x49f   :  { %v2155_v39 = vsel %vm2029_vm14, %v10355_v30, 0.0  ;;  %v2227_v45 = vmul.f32 %v10355_v30, %v10355_v30 }
 0x4a0   :  { %v2156_v11 = vadd.f32 %v2155_v39, %v2154_v48 }
 0x4a1   :  { %v2353_v23 = vsel %vm2029_vm14, %v2227_v45, 0.0 }
 0x4a2   :  { %v2157_v59 = vrot.slane %v2156_v11, 4  ;;  %v2354_v37 = vadd.f32 %v2353_v23, %v2352_v21  ;;  %v14790_v21 = vld [vmem:[#allocation11_spill] sm:$0xff] }
 0x4a4   :  { %v2158_v61 = vadd.f32 %v2157_v59, %v2156_v11  ;;  %v2355_v6 = vrot.slane %v2354_v37, 4 }
 0x4a6   :  { %v2159_v1 = vrot.slane %v2158_v61, 2  ;;  %v2356_v40 = vadd.f32 %v2355_v6, %v2354_v37 }
 0x4a8   :  { %v2160_v31 = vadd.f32 %v2159_v1, %v2158_v61  ;;  %v2357_v8 = vrot.slane %v2356_v40, 2 }
 0x4aa   :  { %v2161_v62 = vrot.slane %v2160_v31, 1  ;;  %v2358_v58 = vadd.f32 %v2357_v8, %v2356_v40 }
 0x4ac   :  { %v2162_v25 = vadd.f32 %v2161_v62, %v2160_v31  ;;  %v2359_v52 = vrot.slane %v2358_v58, 1 }
 0x4ae   :  { %v10362_v0 = vmul.f32 0.001953125, %v2162_v25  ;;  %v2360_v60 = vadd.f32 %v2359_v52, %v2358_v58 }
 0x4b0   :  { %v2361_v34 = vmul.f32 0.001953125, %v2360_v60  ;;  %v2362_v42 = vmul.f32 %v10362_v0, %v10362_v0  ;;  %v2437_v23 = vsub.f32 %v10328_v2, %v10362_v0  ;;  %v2439_v1 = vsub.f32 %v10355_v30, %v10362_v0 }
 0x4b1   :  { %v2384_v6 = vsub.f32 %v9751_v20, %v10362_v0  ;;  %v2385_v40 = vsub.f32 %v9764_v5, %v10362_v0  ;;  %v2386_v31 = vsub.f32 %v9772_v24, %v10362_v0  ;;  %v2387_v8 = vsub.f32 %v9780_v36, %v10362_v0  ;;  %v14789_v24 = vld [vmem:[#allocation10_spill] sm:$0xff]  ;;  %v14792_v5 = vld [vmem:[#allocation13_spill] sm:$0xff]  ;;  %v14795_v20 = vld [vmem:[#allocation15_spill] sm:$0xff] }
 0x4b2   :  { %v2363_v48 = vsub.f32 %v2361_v34, %v2362_v42  ;;  %v14801_v25 = vsub.f32 %v9514_v12, %v10362_v0 }
 0x4b4   :  { %v2364_v46 = vadd.f32 1e-05, %v2363_v48 }
 0x4b6   :  { %8807 = vrsqrt.f32 %v2364_v46  ;;  %vm2371_vm15 = vweird.f32 %v2364_v46 }
 0x4bc   :  { %v8808_v59 = vpop.eup %8807 }
 0x4bd   :  { %v2366_v11 = vmul.f32 %v8808_v59, %v2364_v46  ;;  %vm2372_vm1 = vweird.f32 %v8808_v59 }
 0x4be   :  { %vm2373_vm3 = vmor %vm2371_vm15, %vm2372_vm1  ;;  %vm4451_vm15 = vcmask 1047559   ;;  %vm4718_vm1 = vcmask 1044480  }
 0x4bf   :  { %v2367_v37 = vmul.f32 %v8808_v59, %v2366_v11  ;;  %v10463_v11 = vld [vmem:[%s14553_s3] ss:$0 sm:$0xff]  ;;  %s8846_s3 = smov 64  }
 0x4c0   :  { %14794 = vst [vmem:[#allocation10_spill] sm:$0xff] %v10463_v11 }
 0x4c1   :  { %v2368_v42 = vmul.f32 0.5, %v2367_v37 }
 0x4c3   :  { %v2369_v37 = vsub.f32 1.5, %v2368_v42  ;;  %v119_v42 = vld [vmem:[%s14552_s2] sm:$0x1] }
 0x4c5   :  { %v2370_v48 = vmul.f32 %v8808_v59, %v2369_v37 }
 0x4c7   :  { %v2374_v58 = vsel %vm2373_vm3, %v8808_v59, %v2370_v48  ;;  %v14791_v59 = vld [vmem:[#allocation12_spill] sm:$0xff]  ;;  %vm4719_vm3 = vsmask.f32 4352 }
 0x4c8   :  { %v2375_v36 = vmul.f32 %v2374_v58, %v119_v42  ;;  %v14793_v58 = vld [vmem:[#allocation14_spill] sm:$0xff]  ;;  %vm10854_vm5 = vmand %vm4718_vm1, %vm4719_vm3  ;;  %vm7230_vm1 = vcmask 519168   ;;  %vm7252_vm3 = vcmask 1043458  }
 0x4ca   :  { %v10465_v37 = vperm.slane %v2375_v36, 0  ;;  %v14825_v36 = vsub.f32 %v9601_v41, %v10362_v0 }
 0x4cc   :  { %v2502_v45 = vmul.f32 %v10465_v37, %v2437_v23  ;;  %v2504_v46 = vmul.f32 %v10465_v37, %v2439_v1  ;;  %v2449_v42 = vmul.f32 %v10465_v37, %v2384_v6  ;;  %v2450_v34 = vmul.f32 %v10465_v37, %v2385_v40 }
 0x4cd   :  { %v2451_v48 = vmul.f32 %v10465_v37, %v2386_v31  ;;  %v2452_v52 = vmul.f32 %v10465_v37, %v2387_v8  ;;  %v10497_v2 = vmul.f32 %v10465_v37, %v14801_v25  ;;  %v14803_v23 = vsub.f32 %v9519_v15, %v10362_v0 }
 0x4ce   :  { %v2569_v1 = vadd.f32 %v10463_v11, %v2502_v45  ;;  %v2571_v6 = vadd.f32 %v10463_v11, %v2504_v46  ;;  %v2516_v8 = vadd.f32 %v10463_v11, %v2449_v42  ;;  %v2517_v12 = vadd.f32 %v10463_v11, %v2450_v34 }
 0x4cf   :  { %14802 = vst [vmem:[#allocation11_spill] sm:$0xff] %v10497_v2  ;;  %v10503_v30 = vmul.f32 %v10465_v37, %v14803_v23  ;;  %v2518_v25 = vadd.f32 %v10463_v11, %v2451_v48  ;;  %v14806_v2 = vsub.f32 %v9525_v18, %v10362_v0  ;;  %v14808_v45 = vsub.f32 %v9530_v33, %v10362_v0 }
 0x4d0   :  { %v2633_v23 = vmax.f32 %v2569_v1, 0.0  ;;  %v2635_v31 = vmax.f32 %v2571_v6, 0.0  ;;  %v2519_v42 = vadd.f32 %v10463_v11, %v2452_v52  ;;  %v14823_v1 = vsub.f32 %v9560_v55, %v10362_v0 }
 0x4d1   :  { %14804 = vst [vmem:[#allocation12_spill] sm:$0xff] %v10503_v30  ;;  %v10516_v15 = vmul.f32 %v10465_v37, %v14806_v2  ;;  %v10522_v46 = vmul.f32 %v10465_v37, %v14808_v45  ;;  %v2580_v30 = vmax.f32 %v2516_v8, 0.0  ;;  %v2582_v7 = vmax.f32 %v2518_v25, 0.0 }
 0x4d2   :  { %v2729_v33 = vsel %vm2029_vm14, %v2633_v23, -inf  ;;  %v2730_v45 = vsel %vm2029_vm14, %v2635_v31, -inf  ;;  %v2583_v25 = vmax.f32 %v2519_v42, 0.0  ;;  %v14816_v31 = vsub.f32 %v9821_v47, %v10362_v0 }
 0x4d3   :  { %14807 = vst [vmem:[#allocation13_spill] sm:$0xff] %v10516_v15  ;;  %v2648_v52 = vsel %vm2029_vm14, %v2580_v30, -inf  ;;  %v2731_v8 = vmax.f32 %v2729_v33, %v2730_v45  ;;  %v2649_v16 = vsel %vm2029_vm14, %v2582_v7, -inf  ;;  %v2581_v15 = vmax.f32 %v2517_v12, 0.0 }
 0x4d4   :  { %14809 = vst [vmem:[#allocation14_spill] sm:$0xff] %v10522_v46  ;;  %v2650_v2 = vmax.f32 %v2648_v52, %v2649_v16  ;;  %v10545_v23 = vmul.f32 %v10465_v37, %v14816_v31  ;;  %v2652_v12 = vsel %vm2029_vm14, %v2583_v25, -inf  ;;  %v10569_v34 = vmul.f32 %v10465_v37, %v14823_v1 }
 0x4d5   :  { %v2857_v6 = vrot.slane %v2731_v8, 2  ;;  %v2858_v30 = vrot.slane %v2731_v8, 4  ;;  %v2859_v33 = vrot.slane %v2731_v8, 6  ;;  %v3825_v45 = vsel %vm2956_vm4, %v2731_v8, -inf }
 0x4d6   :  { %14817 = vst [vmem:[#allocation15_spill] sm:$0xff] %v10545_v23  ;;  %v3826_v48 = vrot.slane %v3825_v45, 4  ;;  %v2776_v42 = vrot.slane %v2650_v2, 2  ;;  %v2777_v52 = vrot.slane %v2650_v2, 4  ;;  %v2778_v31 = vrot.slane %v2650_v2, 6 }
 0x4d7   :  { %v3832_v16 = vsel %vm2956_vm4, %v2857_v6, -inf  ;;  %v3839_v47 = vsel %vm2956_vm4, %v2858_v30, -inf  ;;  %v2651_v40 = vsel %vm2029_vm14, %v2581_v15, -inf  ;;  %v3846_v18 = vsel %vm2956_vm4, %v2859_v33, -inf  ;;  %14824 = vst [vmem:[#allocation36_spill] sm:$0xff] %v10569_v34 }
 0x4d8   :  { %v3827_v23 = vmax.f32 %v3825_v45, %v3826_v48  ;;  %v3069_v7 = vsel %vm2956_vm4, %v2650_v2, -inf  ;;  %v3076_v6 = vsel %vm2956_vm4, %v2776_v42, -inf  ;;  %v3833_v30 = vrot.slane %v3832_v16, 4 }
 0x4d9   :  { %v3840_v46 = vrot.slane %v3839_v47, 4  ;;  %v3070_v15 = vrot.slane %v3069_v7, 4  ;;  %v3077_v8 = vrot.slane %v3076_v6, 4  ;;  %v3083_v33 = vsel %vm2956_vm4, %v2777_v52, -inf }
 0x4da   :  { %v3090_v25 = vsel %vm2956_vm4, %v2778_v31, -inf  ;;  %v3828_v2 = vrot.slane %v3827_v23, 2  ;;  %v3847_v11 = vrot.slane %v3846_v18, 4  ;;  %v2653_v42 = vmax.f32 %v2651_v40, %v2652_v12 }
 0x4db   :  { %v10577_v45 = vmul.f32 %v10465_v37, %v14825_v36  ;;  %v3071_v48 = vmax.f32 %v3069_v7, %v3070_v15  ;;  %v3078_v55 = vmax.f32 %v3076_v6, %v3077_v8  ;;  %v3084_v60 = vrot.slane %v3083_v33, 4 }
 0x4dc   :  { %v3091_v1 = vrot.slane %v3090_v25, 4  ;;  %v3834_v34 = vmax.f32 %v3832_v16, %v3833_v30  ;;  %v3841_v14 = vmax.f32 %v3839_v47, %v3840_v46  ;;  %v14827_v52 = vsub.f32 %v9636_v19, %v10362_v0 }
 0x4dd   :  { %14826 = vst [vmem:[#allocation37_spill] sm:$0xff] %v10577_v45  ;;  %v14829_v40 = vsub.f32 %v9663_v53, %v10362_v0  ;;  %v3072_v36 = vrot.slane %v3071_v48, 2  ;;  %v3079_v12 = vrot.slane %v3078_v55, 2  ;;  %v3085_v7 = vmax.f32 %v3083_v33, %v3084_v60 }
 0x4de   :  { %v10583_v31 = vmul.f32 %v10465_v37, %v14827_v52  ;;  %v3092_v8 = vmax.f32 %v3090_v25, %v3091_v1  ;;  %v3829_v6 = vmax.f32 %v3827_v23, %v3828_v2  ;;  %v10591_v15 = vmax.f32 %v3846_v18, %v3847_v11 }
 0x4df   :  { %v10589_v41 = vmul.f32 %v10465_v37, %v14829_v40  ;;  %v2779_v46 = vrot.slane %v2653_v42, 2  ;;  %v2780_v16 = vrot.slane %v2653_v42, 4  ;;  %v3073_v47 = vmax.f32 %v3071_v48, %v3072_v36 }
 0x4e0   :  { %14828 = vst [vmem:[#allocation38_spill] sm:$0xff] %v10583_v31  ;;  %v3080_v19 = vmax.f32 %v3078_v55, %v3079_v12  ;;  %v3086_v30 = vrot.slane %v3085_v7, 2  ;;  %v3093_v52 = vrot.slane %v3092_v8, 2  ;;  %v3835_v31 = vrot.slane %v3834_v34, 2 }
 0x4e1   :  { %14830 = vst [vmem:[#allocation39_spill] sm:$0xff] %v10589_v41  ;;  %v3842_v45 = vrot.slane %v3841_v14, 2  ;;  %v2781_v62 = vrot.slane %v2653_v42, 6  ;;  %v3097_v53 = vsel %vm2956_vm4, %v2653_v42, -inf  ;;  %v3074_v40 = vrot.slane %v3073_v47, 1 }
 0x4e2   :  { %14831 = vst [vmem:[#allocation40_spill] sm:$0xff] %v10591_v15  ;;  %v3081_v41 = vrot.slane %v3080_v19, 1  ;;  %v3087_v39 = vmax.f32 %v3085_v7, %v3086_v30  ;;  %v3094_v61 = vmax.f32 %v3092_v8, %v3093_v52  ;;  %v3830_v60 = vrot.slane %v3829_v6, 1 }
 0x4e3   :  { %v3098_v11 = vrot.slane %v3097_v53, 4  ;;  %v3104_v18 = vsel %vm2956_vm4, %v2779_v46, -inf  ;;  %v3075_v33 = vmax.f32 %v3073_v47, %v3074_v40  ;;  %v10596_v55 = vmax.f32 %v3834_v34, %v3835_v31 }
 0x4e4   :  { %v3082_v48 = vmax.f32 %v3080_v19, %v3081_v41  ;;  %v3088_v25 = vrot.slane %v3087_v39, 1  ;;  %v3095_v2 = vrot.slane %v3094_v61, 1  ;;  %v10598_v1 = vmax.f32 %v3841_v14, %v3842_v45 }
 0x4e5   :  { %14832 = vst [vmem:[#allocation41_spill] sm:$0xff] %v10596_v55  ;;  %v3099_v42 = vmax.f32 %v3097_v53, %v3098_v11  ;;  %v3105_v36 = vrot.slane %v3104_v18, 4  ;;  %v3111_v8 = vsel %vm2956_vm4, %v2780_v16, -inf  ;;  %v3118_v30 = vsel %vm2956_vm4, %v2781_v62, -inf }
 0x4e6   :  { %14833 = vst [vmem:[#allocation42_spill] sm:$0xff] %v10598_v1  ;;  %v3089_v12 = vmax.f32 %v3087_v39, %v3088_v25  ;;  %v3096_v7 = vmax.f32 %v3094_v61, %v3095_v2  ;;  %v3112_v46 = vrot.slane %v3111_v8, 4  ;;  %v3119_v47 = vrot.slane %v3118_v30, 4 }
 0x4e7   :  { %v3100_v52 = vrot.slane %v3099_v42, 2  ;;  %v3106_v23 = vmax.f32 %v3104_v18, %v3105_v36  ;;  %v3869_v41 = vpack.c.bf16 %v3075_v33, %v3075_v33  ;;  %v3870_v19 = vpack.c.bf16 %v3082_v48, %v3082_v48  ;;  %v14925_v18 = vld [vmem:[#allocation36_spill] sm:$0xff] }
 0x4e8   :  { %v3871_v40 = vpack.c.bf16 %v3089_v12, %v3089_v12  ;;  %v3872_v15 = vpack.c.bf16 %v3096_v7, %v3096_v7  ;;  %v3113_v14 = vmax.f32 %v3111_v8, %v3112_v46  ;;  %v3120_v45 = vmax.f32 %v3118_v30, %v3119_v47 }
 0x4e9   :  { %v3101_v34 = vmax.f32 %v3099_v42, %v3100_v52  ;;  %v3107_v31 = vrot.slane %v3106_v23, 2  ;;  %v4199_v53 = vperm.slane %v3869_v41, 0  ;;  %v4200_v11 = vperm.slane %v3870_v19, 0 }
 0x4ea   :  { %v4201_v39 = vperm.slane %v3871_v40, 0  ;;  %v4202_v61 = vperm.slane %v3872_v15, 0  ;;  %v3114_v2 = vrot.slane %v3113_v14, 2  ;;  %v3121_v62 = vrot.slane %v3120_v45, 2 }
 0x4eb   :  { %v3102_v25 = vrot.slane %v3101_v34, 1  ;;  %v3108_v16 = vmax.f32 %v3106_v23, %v3107_v31  ;;  %v10602_v1 = vmax.f32 %v3829_v6, %v3830_v60  ;;  %v4327_v33 = vunpack.c.l.b16 %v4199_v53 }
 0x4ec   :  { %v4328_v48 = vunpack.c.l.b16 %v4200_v11  ;;  %v3115_v42 = vmax.f32 %v3113_v14, %v3114_v2  ;;  %v3122_v7 = vmax.f32 %v3120_v45, %v3121_v62  ;;  %v4329_v8 = vunpack.c.l.b16 %v4201_v39 }
 0x4ed   :  { %14834 = vst [vmem:[#allocation43_spill] sm:$0xff] %v10602_v1  ;;  %v3103_v36 = vmax.f32 %v3101_v34, %v3102_v25  ;;  %v3109_v12 = vrot.slane %v3108_v16, 1  ;;  %v4330_v30 = vunpack.c.l.b16 %v4202_v61  ;;  %v14835_v34 = vsub.f32 %v9841_v27, %v10362_v0 }
 0x4ee   :  { %v3116_v15 = vrot.slane %v3115_v42, 1  ;;  %v3123_v46 = vrot.slane %v3122_v7, 1  ;;  %v4460_v6 = vsel %vm4439_vm6, %v4328_v48, %v4327_v33  ;;  %v14836_v14 = vsub.f32 %v9857_v54, %v10362_v0 }
 0x4ef   :  { %v3110_v52 = vmax.f32 %v3108_v16, %v3109_v12  ;;  %v3873_v23 = vpack.c.bf16 %v3103_v36, %v3103_v36  ;;  %v4461_v40 = vsel %vm4441_vm8, %v4329_v8, %v4460_v6  ;;  %v10611_v31 = vmul.f32 %v10465_v37, %v14835_v34 }
 0x4f0   :  { %v3117_v60 = vmax.f32 %v3115_v42, %v3116_v15  ;;  %v3124_v47 = vmax.f32 %v3122_v7, %v3123_v46  ;;  %v10617_v45 = vmul.f32 %v10465_v37, %v14836_v14  ;;  %v4462_v25 = vsel %vm4443_vm9, %v4330_v30, %v4461_v40 }
 0x4f1   :  { %v3874_v41 = vpack.c.bf16 %v3110_v52, %v3110_v52  ;;  %v4203_v19 = vperm.slane %v3873_v23, 0  ;;  %v14837_v16 = vsub.f32 %v9869_v43, %v10362_v0  ;;  %v14838_v2 = vsub.f32 %v9881_v17, %v10362_v0 }
 0x4f2   :  { %v3875_v53 = vpack.c.bf16 %v3117_v60, %v3117_v60  ;;  %v3876_v11 = vpack.c.bf16 %v3124_v47, %v3124_v47  ;;  %v14839_v62 = vsub.f32 %v9887_v63, %v10362_v0  ;;  %v14840_v42 = vsub.f32 %v9889_v26, %v10362_v0 }
 0x4f3   :  { %v4204_v39 = vperm.slane %v3874_v41, 0  ;;  %v4331_v61 = vunpack.c.l.b16 %v4203_v19  ;;  %v10624_v27 = vmul.f32 %v10465_v37, %v14837_v16  ;;  %v10630_v54 = vmul.f32 %v10465_v37, %v14838_v2 }
 0x4f4   :  { %v10636_v33 = vmul.f32 %v10465_v37, %v14839_v62  ;;  %v4205_v48 = vperm.slane %v3875_v53, 0  ;;  %v4206_v36 = vperm.slane %v3876_v11, 0  ;;  %v10643_v17 = vmul.f32 %v10465_v37, %v14840_v42 }
 0x4f5   :  { %v4332_v12 = vunpack.c.l.b16 %v4204_v39  ;;  %v4463_v43 = vsel %vm4445_vm11, %v4331_v61, %v4462_v25  ;;  %v14841_v7 = vsub.f32 %v9891_v28, %v10362_v0  ;;  %v14842_v8 = vsub.f32 %v9897_v32, %v10362_v0 }
 0x4f6   :  { %v14843_v52 = vsub.f32 %v9903_v3, %v10362_v0  ;;  %v4333_v15 = vunpack.c.l.b16 %v4205_v48  ;;  %v4334_v46 = vunpack.c.l.b16 %v4206_v36  ;;  %v14844_v28 = vsub.f32 %v9906_v29, %v10362_v0 }
 0x4f7   :  { %v10649_v63 = vmul.f32 %v10465_v37, %v14841_v7  ;;  %v10655_v30 = vmul.f32 %v10465_v37, %v14842_v8  ;;  %v4464_v23 = vsel %vm4447_vm12, %v4332_v12, %v4463_v43  ;;  %v14845_v32 = vsub.f32 %v9914_v9, %v10362_v0 }
 0x4f8   :  { %v10661_v26 = vmul.f32 %v10465_v37, %v14843_v52  ;;  %v10668_v6 = vmul.f32 %v10465_v37, %v14844_v28  ;;  %v14846_v3 = vsub.f32 %v9916_v13, %v10362_v0  ;;  %v14847_v41 = vsub.f32 %v9928_v44, %v10362_v0  ;;  %v14866_v28 = vld [vmem:[#allocation20_spill] sm:$0xff] }
 0x4f9   :  { %v10674_v60 = vmul.f32 %v10465_v37, %v14845_v32  ;;  %v14848_v19 = vsub.f32 %v9934_v4, %v10362_v0  ;;  %v4465_v40 = vsel %vm4449_vm13, %v4333_v15, %v4464_v23  ;;  %v14849_v13 = vsub.f32 %v9947_v22, %v10362_v0 }
 0x4fa   :  { %v10680_v47 = vmul.f32 %v10465_v37, %v14846_v3  ;;  %v10686_v29 = vmul.f32 %v10465_v37, %v14847_v41  ;;  %v14850_v44 = vsub.f32 %v9953_v56, %v10362_v0  ;;  %v14851_v4 = vsub.f32 %v9955_v50, %v10362_v0  ;;  %v14868_v3 = vld [vmem:[#allocation23_spill] sm:$0xff] }
 0x4fb   :  { %v10692_v9 = vmul.f32 %v10465_v37, %v14848_v19  ;;  %v10699_v34 = vmul.f32 %v10465_v37, %v14849_v13  ;;  %v4466_v11 = vsel %vm4451_vm15, %v4334_v46, %v4465_v40  ;;  %v14852_v22 = vsub.f32 %v9957_v57, %v10362_v0  ;;  %v14864_v46 = vld [vmem:[#allocation17_spill] sm:$0xff]  ;;  %v14870_v19 = vld [vmem:[#allocation26_spill] sm:$0xff] }
 0x4fc   :  { %v10705_v14 = vmul.f32 %v10465_v37, %v14850_v44  ;;  %v10711_v53 = vmul.f32 %v10465_v37, %v14851_v4  ;;  %v14853_v56 = vsub.f32 %v9959_v10, %v10362_v0  ;;  %v14854_v50 = vsub.f32 %v9961_v35, %v10362_v0  ;;  %v14873_v4 = vld [vmem:[#allocation16_spill] sm:$0xff] }
 0x4fd   :  { %v10718_v39 = vmul.f32 %v10465_v37, %v14852_v22  ;;  %v4560_v16 = vpack.c.b16 %v4466_v11, %v4466_v11  ;;  %v14855_v2 = vsub.f32 %v14789_v24, %v10362_v0  ;;  %v14856_v62 = vsub.f32 %v9971_v38, %v10362_v0 }
 0x4fe   :  { %v10724_v61 = vmul.f32 %v10465_v37, %v14853_v56  ;;  %v10730_v25 = vmul.f32 %v10465_v37, %v14854_v50  ;;  %v14857_v48 = vsub.f32 %v9979_v49, %v10362_v0  ;;  %v14858_v36 = vsub.f32 %v14790_v21, %v10362_v0  ;;  %v14876_v56 = vld [vmem:[#allocation19_spill] sm:$0xff] }
 0x4ff   :  { %v10736_v57 = vmul.f32 %v10465_v37, %v14855_v2  ;;  %v10742_v10 = vmul.f32 %v10465_v37, %v14856_v62  ;;  %v14859_v12 = vsub.f32 %v14791_v59, %v10362_v0  ;;  %v14860_v43 = vsub.f32 %v14792_v5, %v10362_v0  ;;  %v14879_v2 = vld [vmem:[#allocation22_spill] sm:$0xff] }
 0x500   :  { %v10748_v35 = vmul.f32 %v10465_v37, %v14857_v48  ;;  %v10754_v24 = vmul.f32 %v10465_v37, %v14858_v36  ;;  %v14861_v42 = vsub.f32 %v10063_v51, %v10362_v0  ;;  %v4589_v7 = vshrl.u32 %v4560_v16, 16  ;;  %v14882_v36 = vld [vmem:[#allocation25_spill] sm:$0xff] }
 0x501   :  { %v10760_v38 = vmul.f32 %v10465_v37, %v14859_v12  ;;  %v10766_v49 = vmul.f32 %v10465_v37, %v14860_v43  ;;  %v4592_v8 = vshll.u32 %v4560_v16, 16  ;;  %v14862_v59 = vsub.f32 %v14793_v58, %v10362_v0 }
 0x502   :  { %v10772_v21 = vmul.f32 %v10465_v37, %v14861_v42  ;;  %v14863_v5 = vsub.f32 %v14795_v20, %v10362_v0  ;;  %v14865_v51 = vsub.f32 %v14864_v46, %v10362_v0  ;;  %v14867_v32 = vsub.f32 %v14866_v28, %v10362_v0  ;;  %v14885_v42 = vld [vmem:[#allocation28_spill] sm:$0xff]  ;;  %v14891_v28 = vld [vmem:[#allocation31_spill] sm:$0xff] }
 0x503   :  { %v10778_v52 = vmul.f32 %v10465_v37, %v14862_v59  ;;  %v14869_v41 = vsub.f32 %v14868_v3, %v10362_v0  ;;  %v14871_v40 = vsub.f32 %v14870_v19, %v10362_v0  ;;  %v4591_v44 = vrot.slane %v4589_v7, 7 }
 0x504   :  { %v10784_v15 = vmul.f32 %v10465_v37, %v14863_v5  ;;  %v10790_v23 = vmul.f32 %v10465_v37, %v14865_v51  ;;  %v10796_v58 = vmul.f32 %v10465_v37, %v14867_v32  ;;  %v14874_v11 = vsub.f32 %v14873_v4, %v10362_v0  ;;  %v14888_v5 = vld [vmem:[#allocation29_spill] sm:$0xff] }
 0x505   :  { %v10802_v20 = vmul.f32 %v10465_v37, %v14869_v41  ;;  %v10808_v13 = vmul.f32 %v10465_v37, %v14871_v40  ;;  %v14877_v50 = vsub.f32 %v14876_v56, %v10362_v0  ;;  %v14880_v62 = vsub.f32 %v14879_v2, %v10362_v0  ;;  %v14897_v40 = vld [vmem:[#allocation33_spill] sm:$0xff]  ;;  %v14900_v56 = vld [vmem:[#allocation18_spill] sm:$0xff] }
 0x506   :  { %v10814_v22 = vmul.f32 %v10465_v37, %v14874_v11  ;;  %v14883_v12 = vsub.f32 %v14882_v36, %v10362_v0  ;;  %v14886_v7 = vsub.f32 %v14885_v42, %v10362_v0  ;;  %v14889_v46 = vsub.f32 %v14888_v5, %v10362_v0  ;;  %v14906_v36 = vld [vmem:[#allocation24_spill] sm:$0xff] }
 0x507   :  { %14872 = vst [vmem:[#allocation17_spill] sm:$0xff] %v10808_v13  ;;  %v10820_v16 = vmul.f32 %v10465_v37, %v14877_v50  ;;  %v10826_v48 = vmul.f32 %v10465_v37, %v14880_v62  ;;  %v14892_v32 = vsub.f32 %v14891_v28, %v10362_v0  ;;  %v4594_v41 = vor.u32 %v4592_v8, %v4591_v44  ;;  %v14903_v62 = vld [vmem:[#allocation21_spill] sm:$0xff]  ;;  %v14912_v28 = vld [vmem:[#allocation30_spill] sm:$0xff] }
 0x508   :  { %14875 = vst [vmem:[#allocation20_spill] sm:$0xff] %v10814_v22  ;;  %v10832_v43 = vmul.f32 %v10465_v37, %v14883_v12  ;;  %v10838_v59 = vmul.f32 %v10465_v37, %v14886_v7  ;;  %v10844_v51 = vmul.f32 %v10465_v37, %v14889_v46  ;;  %v14894_v19 = vmov 0  ;;  %v14909_v7 = vld [vmem:[#allocation27_spill] sm:$0xff] }
 0x509   :  { %14878 = vst [vmem:[#allocation23_spill] sm:$0xff] %v10820_v16  ;;  %v10850_v3 = vmul.f32 %v10465_v37, %v14892_v32  ;;  %v14895_v19 = vsel %vm10854_vm5, 4294967295, %v14894_v19  ;;  %v14898_v4 = vsub.f32 %v14897_v40, %v10362_v0  ;;  %v14901_v50 = vsub.f32 %v14900_v56, %v10362_v0 }
 0x50a   :  { %14881 = vst [vmem:[#allocation26_spill] sm:$0xff] %v10826_v48  ;;  %v14904_v8 = vsub.f32 %v14903_v62, %v10362_v0  ;;  %v14907_v12 = vsub.f32 %v14906_v36, %v10362_v0  ;;  %v14910_v5 = vsub.f32 %v14909_v7, %v10362_v0  ;;  %v14913_v32 = vsub.f32 %v14912_v28, %v10362_v0  ;;  %v14919_v36 = vld [vmem:[#allocation34_spill] sm:$0xff]  ;;  %v14930_v62 = vld [vmem:[#allocation39_spill] sm:$0xff] }
 0x50b   :  { %14884 = vst [vmem:[#allocation16_spill] sm:$0xff] %v10832_v43  ;;  %v10862_v11 = vmul.f32 %v10465_v37, %v14898_v4  ;;  %v10868_v2 = vmul.f32 %v10465_v37, %v14901_v50  ;;  %v14915_v4 = vld [vmem:[#allocation32_spill] sm:$0xff] }
 0x50c   :  { %14887 = vst [vmem:[#allocation19_spill] sm:$0xff] %v10838_v59  ;;  %v10874_v44 = vmul.f32 %v10465_v37, %v14904_v8  ;;  %v10880_v42 = vmul.f32 %v10465_v37, %v14907_v12  ;;  %v10886_v46 = vmul.f32 %v10465_v37, %v14910_v5  ;;  %v10892_v40 = vmul.f32 %v10465_v37, %v14913_v32  ;;  %v14922_v5 = vld [vmem:[#allocation35_spill] sm:$0xff] }
 0x50d   :  { %14890 = vst [vmem:[#allocation22_spill] sm:$0xff] %v10844_v51  ;;  %v14916_v56 = vsub.f32 %v14915_v4, %v10362_v0  ;;  %v4704_v8 = vsel %vm8932_vm2, 0, %v4594_v41  ;;  %v14920_v12 = vsub.f32 %v14919_v36, %v10362_v0  ;;  %v14923_v28 = vsub.f32 %v14922_v5, %v10362_v0  ;;  %v14926_v4 = vld [vmem:[#allocation10_spill] sm:$0xff]  ;;  %v14928_v41 = vld [vmem:[#allocation37_spill] sm:$0xff] }
 0x50e   :  { %14893 = vst [vmem:[#allocation25_spill] sm:$0xff] %v10850_v3  ;;  %v2512_v1 = vadd.f32 %v14926_v4, %v14925_v18  ;;  %v2513_v55 = vadd.f32 %v14926_v4, %v14928_v41  ;;  %v14929_v36 = vld [vmem:[#allocation38_spill] sm:$0xff] }
 0x50f   :  { %14896 = vst [vmem:[#allocation28_spill] sm:$0xff] %v14895_v19  ;;  %v10898_v50 = vmul.f32 %v10465_v37, %v14916_v56  ;;  %v10906_v7 = vmul.f32 %v10465_v37, %v14920_v12  ;;  %v10912_v32 = vmul.f32 %v10465_v37, %v14923_v28  ;;  %v10918_v56 = vsel %vm10854_vm5, %v4704_v8, 0  ;;  %v14931_v28 = vld [vmem:[#allocation11_spill] sm:$0xff] }
 0x510   :  { %14899 = vst [vmem:[#allocation29_spill] sm:$0xff] %v10862_v11  ;;  %v2514_v12 = vadd.f32 %v14926_v4, %v14929_v36  ;;  %v4760_v0 = vshrl.u32 %v10918_v56, 16  ;;  %v4762_v37 = vshll.u32 %v10918_v56, 16  ;;  %v2576_v5 = vmax.f32 %v2512_v1, 0.0 }
 0x511   :  { %14902 = vst [vmem:[#allocation31_spill] sm:$0xff] %v10868_v2  ;;  %v10930_v18 = vadd.f32 %v14926_v4, %v14931_v28  ;;  %v2577_v8 = vmax.f32 %v2513_v55, 0.0 }
 0x512   :  { %14905 = vst [vmem:[#allocation33_spill] sm:$0xff] %v10874_v44  ;;  %v2578_v19 = vmax.f32 %v2514_v12, 0.0  ;;  %v4764_v36 = vrot.slane %v4762_v37, 1  ;;  %v14939_v12 = vld [vmem:[#allocation15_spill] sm:$0xff] }
 0x513   :  { %14908 = vst [vmem:[#allocation18_spill] sm:$0xff] %v10880_v42  ;;  %v2645_v55 = vsel %vm2029_vm14, %v2577_v8, -inf }
 0x514   :  { %14911 = vst [vmem:[#allocation21_spill] sm:$0xff] %v10886_v46  ;;  %v2643_v28 = vsel %vm2029_vm14, %v2578_v19, -inf  ;;  %v4765_v37 = vor.u32 %v4764_v36, %v4760_v0  ;;  %v10962_v19 = vadd.f32 %v14926_v4, %v10624_v27 }
 0x515   :  { %14914 = vst [vmem:[#allocation24_spill] sm:$0xff] %v10892_v40  ;;  %v2642_v40 = vsel %vm2029_vm14, %v2576_v5, -inf }
 0x516   :  { %14917 = vst [vmem:[#allocation27_spill] sm:$0xff] %v10898_v50  ;;  %v14933_v50 = vld [vmem:[#allocation12_spill] sm:$0xff]  ;;  %v2644_v5 = vmax.f32 %v2642_v40, %v2643_v28  ;;  %v10970_v40 = vadd.f32 %v14926_v4, %v10636_v33  ;;  %4863 = vrot.lane.b32.xlu2 %v4765_v37, %s8846_s3 }
 0x517   :  { %14921 = vst [vmem:[#allocation30_spill] sm:$0xff] %v10906_v7  ;;  %v2515_v7 = vadd.f32 %v14926_v4, %v14930_v62  ;;  %v10934_v41 = vadd.f32 %v14926_v4, %v14933_v50  ;;  %v14935_v62 = vld [vmem:[#allocation13_spill] sm:$0xff]  ;;  %v10950_v50 = vadd.f32 %v14926_v4, %v14939_v12 }
 0x518   :  { %14924 = vst [vmem:[#allocation32_spill] sm:$0xff] %v10912_v32  ;;  %v10939_v46 = vadd.f32 %v14926_v4, %v14935_v62  ;;  %v10954_v62 = vadd.f32 %v14926_v4, %v10611_v31  ;;  %v2770_v31 = vrot.slane %v2644_v5, 2  ;;  %v2771_v0 = vrot.slane %v2644_v5, 4 }
 0x519   :  { %14927 = vst [vmem:[#allocation34_spill] sm:$0xff] %v10918_v56  ;;  %v2579_v32 = vmax.f32 %v2515_v7, 0.0  ;;  %v14937_v56 = vld [vmem:[#allocation14_spill] sm:$0xff]  ;;  %v2772_v8 = vrot.slane %v2644_v5, 6  ;;  %v3013_v27 = vsel %vm2956_vm4, %v2644_v5, -inf }
 0x51a   :  { %14932 = vst [vmem:[#allocation35_spill] sm:$0xff] %v10930_v18  ;;  %v10943_v1 = vadd.f32 %v14926_v4, %v14937_v56  ;;  %v10958_v56 = vadd.f32 %v14926_v4, %v10617_v45  ;;  %v3027_v12 = vsel %vm2956_vm4, %v2771_v0, -inf }
 0x51b   :  { %14934 = vst [vmem:[#allocation36_spill] sm:$0xff] %v10934_v41  ;;  %v2646_v7 = vsel %vm2029_vm14, %v2579_v32, -inf  ;;  %v10966_v32 = vadd.f32 %v14926_v4, %v10630_v54  ;;  %v3020_v54 = vsel %vm2956_vm4, %v2770_v31, -inf  ;;  %v3034_v33 = vsel %vm2956_vm4, %v2772_v8, -inf }
 0x51c   :  { %14936 = vst [vmem:[#allocation10_spill] sm:$0xff] %v10939_v46  ;;  %v2647_v41 = vmax.f32 %v2645_v55, %v2646_v7  ;;  %v3014_v7 = vrot.slane %v3013_v27, 4  ;;  %v3035_v37 = vrot.slane %v3034_v33, 4 }
 0x51d   :  { %14938 = vst [vmem:[#allocation37_spill] sm:$0xff] %v10943_v1 }
 0x51e   :  { %14940 = vst [vmem:[#allocation38_spill] sm:$0xff] %v10950_v50  ;;  %v2773_v45 = vrot.slane %v2647_v41, 2  ;;  %v2774_v36 = vrot.slane %v2647_v41, 4  ;;  %v2775_v28 = vrot.slane %v2647_v41, 6  ;;  %v3041_v55 = vsel %vm2956_vm4, %v2647_v41, -inf }
 0x51f   :  { %14941 = vst [vmem:[#allocation39_spill] sm:$0xff] %v10954_v62  ;;  %v3036_v46 = vmax.f32 %v3034_v33, %v3035_v37 }
 0x520   :  { %14942 = vst [vmem:[#allocation11_spill] sm:$0xff] %v10958_v56  ;;  %v3015_v56 = vmax.f32 %v3013_v27, %v3014_v7  ;;  %v3048_v62 = vsel %vm2956_vm4, %v2773_v45, -inf  ;;  %v3055_v50 = vsel %vm2956_vm4, %v2774_v36, -inf  ;;  %v3062_v5 = vsel %vm2956_vm4, %v2775_v28, -inf }
 0x521   :  { %14943 = vst [vmem:[#allocation12_spill] sm:$0xff] %v10962_v19  ;;  %v3042_v19 = vrot.slane %v3041_v55, 4  ;;  %v3049_v42 = vrot.slane %v3048_v62, 4  ;;  %v3056_v0 = vrot.slane %v3055_v50, 4  ;;  %v3063_v44 = vrot.slane %v3062_v5, 4 }
 0x522   :  { %14944 = vst [vmem:[#allocation13_spill] sm:$0xff] %v10966_v32  ;;  %v3028_v32 = vrot.slane %v3027_v12, 4  ;;  %v3016_v31 = vrot.slane %v3015_v56, 2  ;;  %v3037_v11 = vrot.slane %v3036_v46, 2 }
 0x523   :  { %14945 = vst [vmem:[#allocation14_spill] sm:$0xff] %v10970_v40  ;;  %v3021_v40 = vrot.slane %v3020_v54, 4  ;;  %v3043_v18 = vmax.f32 %v3041_v55, %v3042_v19  ;;  %v3050_v27 = vmax.f32 %v3048_v62, %v3049_v42  ;;  %v3057_v7 = vmax.f32 %v3055_v50, %v3056_v0 }
 0x524   :  { %v3029_v41 = vmax.f32 %v3027_v12, %v3028_v32  ;;  %v3017_v51 = vmax.f32 %v3015_v56, %v3016_v31  ;;  %v3064_v45 = vmax.f32 %v3062_v5, %v3063_v44  ;;  %v3038_v43 = vmax.f32 %v3036_v46, %v3037_v11 }
 0x525   :  { %v3022_v1 = vmax.f32 %v3020_v54, %v3021_v40  ;;  %v3044_v3 = vrot.slane %v3043_v18, 2  ;;  %v3051_v32 = vrot.slane %v3050_v27, 2  ;;  %v3058_v54 = vrot.slane %v3057_v7, 2 }
 0x526   :  { %v3030_v2 = vrot.slane %v3029_v41, 2  ;;  %v3018_v40 = vrot.slane %v3017_v51, 1  ;;  %v3065_v19 = vrot.slane %v3064_v45, 2  ;;  %v3039_v33 = vrot.slane %v3038_v43, 1 }
 0x527   :  { %v3023_v8 = vrot.slane %v3022_v1, 2  ;;  %v3045_v28 = vmax.f32 %v3043_v18, %v3044_v3  ;;  %v3052_v16 = vmax.f32 %v3050_v27, %v3051_v32  ;;  %v3059_v22 = vmax.f32 %v3057_v7, %v3058_v54 }
 0x528   :  { %v3031_v36 = vmax.f32 %v3029_v41, %v3030_v2  ;;  %v3019_v48 = vmax.f32 %v3017_v51, %v3018_v40  ;;  %v3066_v13 = vmax.f32 %v3064_v45, %v3065_v19  ;;  %v3040_v50 = vmax.f32 %v3038_v43, %v3039_v33 }
 0x529   :  { %v3024_v59 = vmax.f32 %v3022_v1, %v3023_v8  ;;  %v3046_v37 = vrot.slane %v3045_v28, 1  ;;  %v3053_v1 = vrot.slane %v3052_v16, 1  ;;  %v3060_v2 = vrot.slane %v3059_v22, 1 }
 0x52a   :  { %v3032_v12 = vrot.slane %v3031_v36, 1  ;;  %v3067_v11 = vrot.slane %v3066_v13, 1  ;;  %v3861_v3 = vpack.c.bf16 %v3019_v48, %v3019_v48  ;;  %v3864_v62 = vpack.c.bf16 %v3040_v50, %v3040_v50 }
 0x52b   :  { %v3025_v55 = vrot.slane %v3024_v59, 1  ;;  %v3047_v44 = vmax.f32 %v3045_v28, %v3046_v37  ;;  %v3054_v41 = vmax.f32 %v3052_v16, %v3053_v1  ;;  %v3061_v31 = vmax.f32 %v3059_v22, %v3060_v2 }
 0x52c   :  { %v3033_v42 = vmax.f32 %v3031_v36, %v3032_v12  ;;  %v3068_v0 = vmax.f32 %v3066_v13, %v3067_v11  ;;  %v4191_v8 = vperm.slane %v3861_v3, 0  ;;  %v4194_v7 = vperm.slane %v3864_v62, 0 }
 0x52d   :  { %v3026_v56 = vmax.f32 %v3024_v59, %v3025_v55  ;;  %v3865_v5 = vpack.c.bf16 %v3047_v44, %v3047_v44  ;;  %v3866_v59 = vpack.c.bf16 %v3054_v41, %v3054_v41  ;;  %v3867_v36 = vpack.c.bf16 %v3061_v31, %v3061_v31 }
 0x52e   :  { %v3863_v18 = vpack.c.bf16 %v3033_v42, %v3033_v42  ;;  %v3868_v43 = vpack.c.bf16 %v3068_v0, %v3068_v0  ;;  %v4319_v28 = vunpack.c.l.b16 %v4191_v8  ;;  %v4322_v54 = vunpack.c.l.b16 %v4194_v7 }
 0x52f   :  { %v3862_v46 = vpack.c.bf16 %v3026_v56, %v3026_v56  ;;  %v4195_v45 = vperm.slane %v3865_v5, 0  ;;  %v4196_v19 = vperm.slane %v3866_v59, 0  ;;  %v4197_v55 = vperm.slane %v3867_v36, 0  ;;  %v14955_v36 = vld [vmem:[#allocation22_spill] sm:$0xff] }
 0x530   :  { %v4193_v27 = vperm.slane %v3863_v18, 0  ;;  %v4198_v12 = vperm.slane %v3868_v43, 0  ;;  %v10983_v22 = vadd.f32 %v14926_v4, %v10643_v17  ;;  %v10988_v16 = vadd.f32 %v14926_v4, %v10649_v63 }
 0x531   :  { %v4192_v51 = vperm.slane %v3862_v46, 0  ;;  %v4323_v48 = vunpack.c.l.b16 %v4195_v45  ;;  %v10992_v33 = vadd.f32 %v14926_v4, %v10655_v30  ;;  %v10996_v37 = vadd.f32 %v14926_v4, %v10661_v26  ;;  %v14953_v45 = vld [vmem:[#allocation19_spill] sm:$0xff] }
 0x532   :  { %v4321_v32 = vunpack.c.l.b16 %v4193_v27  ;;  %14946 = vst [vmem:[#allocation15_spill] sm:$0xff] %v10983_v22  ;;  %v4324_v56 = vunpack.c.l.b16 %v4196_v19  ;;  %v4325_v42 = vunpack.c.l.b16 %v4197_v55  ;;  %v4326_v50 = vunpack.c.l.b16 %v4198_v12  ;;  %v14951_v27 = vld [vmem:[#allocation16_spill] sm:$0xff]  ;;  %v14963_v55 = vld [vmem:[#allocation33_spill] sm:$0xff] }
 0x533   :  { %v4320_v40 = vunpack.c.l.b16 %v4192_v51  ;;  %v11002_v1 = vadd.f32 %v14926_v4, %v10668_v6  ;;  %v11006_v63 = vadd.f32 %v14926_v4, %v10674_v60  ;;  %v11010_v30 = vadd.f32 %v14926_v4, %v10680_v47 }
 0x534   :  { %v11015_v2 = vadd.f32 %v14926_v4, %v10686_v29  ;;  %v11019_v11 = vadd.f32 %v14926_v4, %v10692_v9  ;;  %v11023_v6 = vadd.f32 %v14926_v4, %v10699_v34  ;;  %v11028_v47 = vadd.f32 %v14926_v4, %v10705_v14 }
 0x535   :  { %v4453_v13 = vsel %vm4439_vm6, %v4320_v40, %v4319_v28  ;;  %v11032_v3 = vadd.f32 %v14926_v4, %v10711_v53  ;;  %v11036_v29 = vadd.f32 %v14926_v4, %v10718_v39  ;;  %v11041_v34 = vadd.f32 %v14926_v4, %v10724_v61  ;;  %v14957_v28 = vld [vmem:[#allocation25_spill] sm:$0xff] }
 0x536   :  { %v4454_v17 = vsel %vm4441_vm8, %v4321_v32, %v4453_v13  ;;  %v11045_v46 = vadd.f32 %v14926_v4, %v10730_v25  ;;  %v11049_v14 = vadd.f32 %v14926_v4, %v10736_v57  ;;  %v11054_v39 = vadd.f32 %v14926_v4, %v10742_v10  ;;  %v14959_v32 = vld [vmem:[#allocation29_spill] sm:$0xff]  ;;  %v14965_v13 = vld [vmem:[#allocation18_spill] sm:$0xff] }
 0x537   :  { %v4455_v44 = vsel %vm4443_vm9, %v4322_v54, %v4454_v17  ;;  %v11058_v18 = vadd.f32 %v14926_v4, %v10748_v35  ;;  %v11062_v61 = vadd.f32 %v14926_v4, %v10754_v24  ;;  %v11066_v62 = vadd.f32 %v14926_v4, %v10760_v38 }
 0x538   :  { %v4456_v26 = vsel %vm4445_vm11, %v4323_v48, %v4455_v44  ;;  %v11070_v57 = vadd.f32 %v14926_v4, %v10766_v49  ;;  %v11074_v10 = vadd.f32 %v14926_v4, %v10772_v21  ;;  %v11078_v35 = vadd.f32 %v14926_v4, %v10778_v52  ;;  %v14947_v52 = vld [vmem:[#allocation17_spill] sm:$0xff]  ;;  %v14961_v48 = vld [vmem:[#allocation31_spill] sm:$0xff]  ;;  %v14969_v44 = vld [vmem:[#allocation24_spill] sm:$0xff] }
 0x539   :  { %v4457_v60 = vsel %vm4447_vm12, %v4324_v56, %v4456_v26  ;;  %v11082_v24 = vadd.f32 %v14926_v4, %v10784_v15  ;;  %v11086_v38 = vadd.f32 %v14926_v4, %v10790_v23  ;;  %v11090_v49 = vadd.f32 %v14926_v4, %v10796_v58  ;;  %v14948_v15 = vld [vmem:[#allocation20_spill] sm:$0xff]  ;;  %v14949_v23 = vld [vmem:[#allocation23_spill] sm:$0xff]  ;;  %v14950_v58 = vld [vmem:[#allocation26_spill] sm:$0xff] }
 0x53a   :  { %v4458_v9 = vsel %vm4449_vm13, %v4325_v42, %v4457_v60  ;;  %v11094_v21 = vadd.f32 %v14926_v4, %v10802_v20  ;;  %v11098_v31 = vadd.f32 %v14926_v4, %v14947_v52  ;;  %v11102_v0 = vadd.f32 %v14926_v4, %v14948_v15  ;;  %v14971_v60 = vld [vmem:[#allocation27_spill] sm:$0xff] }
 0x53b   :  { %v4459_v53 = vsel %vm4451_vm15, %v4326_v50, %v4458_v9  ;;  %v11106_v8 = vadd.f32 %v14926_v4, %v14949_v23  ;;  %v11110_v51 = vadd.f32 %v14926_v4, %v14950_v58  ;;  %v11114_v20 = vadd.f32 %v14926_v4, %v14951_v27  ;;  %v14967_v50 = vld [vmem:[#allocation21_spill] sm:$0xff]  ;;  %v14978_v23 = vld [vmem:[#allocation36_spill] sm:$0xff] }
 0x53c   :  { %v4559_v25 = vpack.c.b16 %v4459_v53, %v4459_v53  ;;  %v11118_v59 = vadd.f32 %v14926_v4, %v14953_v45  ;;  %v11122_v43 = vadd.f32 %v14926_v4, %v14955_v36  ;;  %v11126_v40 = vadd.f32 %v14926_v4, %v14957_v28  ;;  %v14973_v53 = vld [vmem:[#allocation30_spill] sm:$0xff]  ;;  %v14981_v28 = vld [vmem:[#allocation37_spill] sm:$0xff] }
 0x53d   :  { %14952 = vst [vmem:[#allocation17_spill] sm:$0xff] %v11114_v20  ;;  %v11130_v54 = vadd.f32 %v14926_v4, %v14959_v32  ;;  %v11134_v19 = vadd.f32 %v14926_v4, %v14961_v48  ;;  %v11138_v12 = vadd.f32 %v14926_v4, %v14963_v55  ;;  %v11142_v56 = vadd.f32 %v14926_v4, %v14965_v13  ;;  %v14980_v45 = vld [vmem:[#allocation10_spill] sm:$0xff] }
 0x53e   :  { %v4582_v5 = vshrl.u32 %v4559_v25, 16  ;;  %v4585_v41 = vshll.u32 %v4559_v25, 16  ;;  %14954 = vst [vmem:[#allocation20_spill] sm:$0xff] %v11118_v59  ;;  %v11146_v17 = vadd.f32 %v14926_v4, %v14967_v50  ;;  %v11150_v26 = vadd.f32 %v14926_v4, %v14969_v44 }
 0x53f   :  { %14956 = vst [vmem:[#allocation23_spill] sm:$0xff] %v11122_v43  ;;  %v11154_v9 = vadd.f32 %v14926_v4, %v14971_v60  ;;  %v11158_v25 = vadd.f32 %v14926_v4, %v14973_v53  ;;  %v2573_v58 = vmax.f32 %v14978_v23, 0.0  ;;  %v2574_v36 = vmax.f32 %v14980_v45, 0.0 }
 0x540   :  { %v4584_v7 = vrot.slane %v4582_v5, 7  ;;  %14958 = vst [vmem:[#allocation26_spill] sm:$0xff] %v11126_v40  ;;  %v14975_v5 = vld [vmem:[#allocation32_spill] sm:$0xff]  ;;  %v2575_v32 = vmax.f32 %v14981_v28, 0.0 }
 0x541   :  { %14960 = vst [vmem:[#allocation16_spill] sm:$0xff] %v11130_v54  ;;  %v11162_v52 = vadd.f32 %v14926_v4, %v14975_v5  ;;  %v2639_v44 = vsel %vm2029_vm14, %v2573_v58, -inf }
 0x542   :  { %14962 = vst [vmem:[#allocation19_spill] sm:$0xff] %v11134_v19  ;;  %v4587_v42 = vor.u32 %v4585_v41, %v4584_v7  ;;  %v14977_v41 = vld [vmem:[#allocation35_spill] sm:$0xff]  ;;  %v2640_v23 = vsel %vm2029_vm14, %v2575_v32, -inf }
 0x543   :  { %14964 = vst [vmem:[#allocation22_spill] sm:$0xff] %v11138_v12  ;;  %v2572_v15 = vmax.f32 %v14977_v41, 0.0  ;;  %v2637_v41 = vsel %vm2029_vm14, %v2574_v36, -inf  ;;  %v2641_v28 = vmax.f32 %v2639_v44, %v2640_v23 }
 0x544   :  { %14966 = vst [vmem:[#allocation25_spill] sm:$0xff] %v11142_v56  ;;  %v4703_v7 = vsel %vm8932_vm2, 0, %v4587_v42 }
 0x545   :  { %14968 = vst [vmem:[#allocation29_spill] sm:$0xff] %v11146_v17  ;;  %v11173_v50 = vsel %vm10854_vm5, %v4703_v7, 0  ;;  %v2636_v4 = vsel %vm2029_vm14, %v2572_v15, -inf  ;;  %v2768_v17 = vrot.slane %v2641_v28, 4  ;;  %v2769_v32 = vrot.slane %v2641_v28, 6 }
 0x546   :  { %14970 = vst [vmem:[#allocation31_spill] sm:$0xff] %v11150_v26  ;;  %v4753_v5 = vshrl.u32 %v11173_v50, 16  ;;  %v4755_v42 = vshll.u32 %v11173_v50, 16  ;;  %v2638_v45 = vmax.f32 %v2636_v4, %v2637_v41  ;;  %v2767_v26 = vrot.slane %v2641_v28, 2 }
 0x547   :  { %14972 = vst [vmem:[#allocation33_spill] sm:$0xff] %v11154_v9  ;;  %v2985_v13 = vsel %vm2956_vm4, %v2641_v28, -inf }
 0x548   :  { %14974 = vst [vmem:[#allocation18_spill] sm:$0xff] %v11158_v25  ;;  %v4757_v27 = vrot.slane %v4755_v42, 1  ;;  %v2764_v60 = vrot.slane %v2638_v45, 2  ;;  %v2765_v9 = vrot.slane %v2638_v45, 4  ;;  %v2957_v4 = vsel %vm2956_vm4, %v2638_v45, -inf }
 0x549   :  { %14976 = vst [vmem:[#allocation21_spill] sm:$0xff] %v11162_v52  ;;  %v2958_v44 = vrot.slane %v2957_v4, 4 }
 0x54a   :  { %14984 = vst [vmem:[#allocation24_spill] sm:$0xff] %v11173_v50  ;;  %v2766_v50 = vrot.slane %v2638_v45, 6  ;;  %v4758_v36 = vor.u32 %v4757_v27, %v4753_v5  ;;  %v2964_v41 = vsel %vm2956_vm4, %v2764_v60, -inf  ;;  %v2971_v42 = vsel %vm2956_vm4, %v2765_v9, -inf }
 0x54b   :  { %v2965_v25 = vrot.slane %v2964_v41, 4  ;;  %v2972_v53 = vrot.slane %v2971_v42, 4  ;;  %v2959_v48 = vmax.f32 %v2957_v4, %v2958_v44  ;;  %v2986_v27 = vrot.slane %v2985_v13, 4 }
 0x54c   :  { %v2978_v23 = vsel %vm2956_vm4, %v2766_v50, -inf  ;;  %4861 = vrot.lane.b32.xlu1 %v4758_v36, %s8846_s3  ;;  %v2992_v5 = vsel %vm2956_vm4, %v2767_v26, -inf  ;;  %v2999_v45 = vsel %vm2956_vm4, %v2768_v17, -inf  ;;  %v3006_v36 = vsel %vm2956_vm4, %v2769_v32, -inf }
 0x54d   :  { %v2979_v52 = vrot.slane %v2978_v23, 4  ;;  %v2966_v58 = vmax.f32 %v2964_v41, %v2965_v25  ;;  %v2973_v22 = vmax.f32 %v2971_v42, %v2972_v53  ;;  %v2993_v15 = vrot.slane %v2992_v5, 4 }
 0x54e   :  { %v2960_v9 = vrot.slane %v2959_v48, 2  ;;  %v2987_v7 = vmax.f32 %v2985_v13, %v2986_v27  ;;  %v3000_v50 = vrot.slane %v2999_v45, 4  ;;  %v3007_v54 = vrot.slane %v3006_v36, 4 }
 0x54f   :  { %v2980_v60 = vmax.f32 %v2978_v23, %v2979_v52  ;;  %v2967_v55 = vrot.slane %v2966_v58, 2  ;;  %v2974_v56 = vrot.slane %v2973_v22, 2  ;;  %v2994_v19 = vmax.f32 %v2992_v5, %v2993_v15 }
 0x550   :  { %v2961_v28 = vmax.f32 %v2959_v48, %v2960_v9  ;;  %v2988_v4 = vrot.slane %v2987_v7, 2  ;;  %v3001_v44 = vmax.f32 %v2999_v45, %v3000_v50  ;;  %v3008_v42 = vmax.f32 %v3006_v36, %v3007_v54 }
 0x551   :  { %v2981_v12 = vrot.slane %v2980_v60, 2  ;;  %v2968_v26 = vmax.f32 %v2966_v58, %v2967_v55  ;;  %v2975_v40 = vmax.f32 %v2973_v22, %v2974_v56  ;;  %v2995_v25 = vrot.slane %v2994_v19, 2 }
 0x552   :  { %v2962_v53 = vrot.slane %v2961_v28, 1  ;;  %v2989_v52 = vmax.f32 %v2987_v7, %v2988_v4  ;;  %v3002_v41 = vrot.slane %v3001_v44, 2  ;;  %v3009_v15 = vrot.slane %v3008_v42, 2 }
 0x553   :  { %v2982_v17 = vmax.f32 %v2980_v60, %v2981_v12  ;;  %v2969_v13 = vrot.slane %v2968_v26, 1  ;;  %v2976_v23 = vrot.slane %v2975_v40, 1  ;;  %v2996_v32 = vmax.f32 %v2994_v19, %v2995_v25 }
 0x554   :  { %v2963_v43 = vmax.f32 %v2961_v28, %v2962_v53  ;;  %v2990_v59 = vrot.slane %v2989_v52, 1  ;;  %v3003_v20 = vmax.f32 %v3001_v44, %v3002_v41  ;;  %v3010_v12 = vmax.f32 %v3008_v42, %v3009_v15 }
 0x555   :  { %v2983_v27 = vrot.slane %v2982_v17, 1  ;;  %v2970_v48 = vmax.f32 %v2968_v26, %v2969_v13  ;;  %v2977_v5 = vmax.f32 %v2975_v40, %v2976_v23  ;;  %v2997_v9 = vrot.slane %v2996_v32, 1 }
 0x556   :  { %v2991_v55 = vmax.f32 %v2989_v52, %v2990_v59  ;;  %v3004_v22 = vrot.slane %v3003_v20, 1  ;;  %v3853_v56 = vpack.c.bf16 %v2963_v43, %v2963_v43  ;;  %v3011_v36 = vrot.slane %v3010_v12, 1 }
 0x557   :  { %v2984_v45 = vmax.f32 %v2982_v17, %v2983_v27  ;;  %v2998_v58 = vmax.f32 %v2996_v32, %v2997_v9  ;;  %v3854_v7 = vpack.c.bf16 %v2970_v48, %v2970_v48  ;;  %v3855_v60 = vpack.c.bf16 %v2977_v5, %v2977_v5 }
 0x558   :  { %v3005_v50 = vmax.f32 %v3003_v20, %v3004_v22  ;;  %v3857_v4 = vpack.c.bf16 %v2991_v55, %v2991_v55  ;;  %v4183_v19 = vperm.slane %v3853_v56, 0  ;;  %v3012_v26 = vmax.f32 %v3010_v12, %v3011_v36 }
 0x559   :  { %v3856_v54 = vpack.c.bf16 %v2984_v45, %v2984_v45  ;;  %v3858_v28 = vpack.c.bf16 %v2998_v58, %v2998_v58  ;;  %v4184_v25 = vperm.slane %v3854_v7, 0  ;;  %v4185_v44 = vperm.slane %v3855_v60, 0 }
 0x55a   :  { %v3859_v40 = vpack.c.bf16 %v3005_v50, %v3005_v50  ;;  %v4187_v17 = vperm.slane %v3857_v4, 0  ;;  %v4311_v41 = vunpack.c.l.b16 %v4183_v19  ;;  %v3860_v13 = vpack.c.bf16 %v3012_v26, %v3012_v26 }
 0x55b   :  { %v4186_v53 = vperm.slane %v3856_v54, 0  ;;  %v4188_v59 = vperm.slane %v3858_v28, 0  ;;  %v4312_v52 = vunpack.c.l.b16 %v4184_v25  ;;  %v4313_v42 = vunpack.c.l.b16 %v4185_v44  ;;  %v15006_v28 = vld [vmem:[#allocation38_spill] sm:$0xff] }
 0x55c   :  { %v4189_v23 = vperm.slane %v3859_v40, 0  ;;  %v4315_v27 = vunpack.c.l.b16 %v4187_v17  ;;  %v2592_v48 = vmax.f32 %v10992_v33, 0.0  ;;  %v2593_v5 = vmax.f32 %v10996_v37, 0.0 }
 0x55d   :  { %v4314_v43 = vunpack.c.l.b16 %v4186_v53  ;;  %v4316_v32 = vunpack.c.l.b16 %v4188_v59  ;;  %v4440_v15 = vsel %vm4439_vm6, %v4312_v52, %v4311_v41  ;;  %v4190_v45 = vperm.slane %v3860_v13, 0 }
 0x55e   :  { %v4317_v9 = vunpack.c.l.b16 %v4189_v23  ;;  %v4442_v55 = vsel %vm4441_vm8, %v4313_v42, %v4440_v15  ;;  %v2594_v22 = vmax.f32 %v11002_v1, 0.0  ;;  %v2595_v56 = vmax.f32 %v11006_v63, 0.0  ;;  %v14993_v23 = vld [vmem:[#allocation26_spill] sm:$0xff] }
 0x55f   :  { %v4444_v12 = vsel %vm4443_vm9, %v4314_v43, %v4442_v55  ;;  %v4318_v60 = vunpack.c.l.b16 %v4190_v45  ;;  %v14992_v43 = vld [vmem:[#allocation23_spill] sm:$0xff]  ;;  %v2666_v42 = vsel %vm2029_vm14, %v2592_v48, -inf  ;;  %v15007_v40 = vmax.f32 %v15006_v28, 0.0 }
 0x560   :  { %v4446_v54 = vsel %vm4445_vm11, %v4315_v27, %v4444_v12  ;;  %v2667_v52 = vsel %vm2029_vm14, %v2594_v22, -inf  ;;  %v15009_v48 = vld [vmem:[#allocation11_spill] sm:$0xff] }
 0x561   :  { %v4448_v50 = vsel %vm4447_vm12, %v4316_v32, %v4446_v54  ;;  %v2668_v1 = vmax.f32 %v2666_v42, %v2667_v52  ;;  %v11259_v19 = vsel %vm2029_vm14, %v15007_v40, -inf  ;;  %v15010_v22 = vmax.f32 %v15009_v48, 0.0 }
 0x562   :  { %v4450_v63 = vsel %vm4449_vm13, %v4317_v9, %v4448_v50  ;;  %15008 = vst [vmem:[#allocation30_spill] sm:$0xff] %v11259_v19 }
 0x563   :  { %v4452_v44 = vsel %vm4451_vm15, %v4318_v60, %v4450_v63  ;;  %v14990_v60 = vld [vmem:[#allocation17_spill] sm:$0xff]  ;;  %v14991_v63 = vld [vmem:[#allocation20_spill] sm:$0xff]  ;;  %v11264_v4 = vsel %vm2029_vm14, %v15010_v22, -inf  ;;  %v2795_v42 = vrot.slane %v2668_v1, 4  ;;  %v3237_v28 = vsel %vm2956_vm4, %v2668_v1, -inf }
 0x564   :  { %v4558_v17 = vpack.c.b16 %v4452_v44, %v4452_v44  ;;  %15011 = vst [vmem:[#allocation32_spill] sm:$0xff] %v11264_v4  ;;  %v3238_v37 = vrot.slane %v3237_v28, 4 }
 0x565   :  { %v3251_v48 = vsel %vm2956_vm4, %v2795_v42, -inf }
 0x566   :  { %v4575_v27 = vshrl.u32 %v4558_v17, 16  ;;  %v4578_v32 = vshll.u32 %v4558_v17, 16  ;;  %v3252_v7 = vrot.slane %v3251_v48, 4  ;;  %v3239_v4 = vmax.f32 %v3237_v28, %v3238_v37 }
 0x568   :  { %v4577_v50 = vrot.slane %v4575_v27, 7  ;;  %v3240_v41 = vrot.slane %v3239_v4, 2 }
 0x56a   :  { %v4580_v55 = vor.u32 %v4578_v32, %v4577_v50  ;;  %v2669_v32 = vsel %vm2029_vm14, %v2593_v5, -inf  ;;  %v2670_v50 = vsel %vm2029_vm14, %v2595_v56, -inf  ;;  %v2794_v56 = vrot.slane %v2668_v1, 2 }
 0x56b   :  { %v2671_v53 = vmax.f32 %v2669_v32, %v2670_v50  ;;  %v3241_v37 = vmax.f32 %v3239_v4, %v3240_v41 }
 0x56c   :  { %v4702_v59 = vsel %vm8932_vm2, 0, %v4580_v55  ;;  %v2796_v55 = vrot.slane %v2668_v1, 6  ;;  %v3244_v40 = vsel %vm2956_vm4, %v2794_v56, -inf }
 0x56d   :  { %v11254_v54 = vsel %vm10854_vm5, %v4702_v59, 0  ;;  %v2797_v59 = vrot.slane %v2671_v53, 2  ;;  %v2798_v36 = vrot.slane %v2671_v53, 4  ;;  %v2799_v32 = vrot.slane %v2671_v53, 6 }
 0x56e   :  { %15005 = vst [vmem:[#allocation27_spill] sm:$0xff] %v11254_v54  ;;  %v4746_v52 = vshrl.u32 %v11254_v54, 16  ;;  %v4748_v5 = vshll.u32 %v11254_v54, 16  ;;  %v3245_v22 = vrot.slane %v3244_v40, 4  ;;  %v3258_v33 = vsel %vm2956_vm4, %v2796_v55, -inf }
 0x56f   :  { %v3259_v20 = vrot.slane %v3258_v33, 4  ;;  %v3265_v54 = vsel %vm2956_vm4, %v2671_v53, -inf  ;;  %v3272_v19 = vsel %vm2956_vm4, %v2797_v59, -inf  ;;  %v3279_v42 = vsel %vm2956_vm4, %v2798_v36, -inf }
 0x570   :  { %v4750_v50 = vrot.slane %v4748_v5, 1  ;;  %v3246_v12 = vmax.f32 %v3244_v40, %v3245_v22  ;;  %v3253_v5 = vmax.f32 %v3251_v48, %v3252_v7  ;;  %v3266_v13 = vrot.slane %v3265_v54, 4 }
 0x571   :  { %v3260_v1 = vmax.f32 %v3258_v33, %v3259_v20  ;;  %v3273_v56 = vrot.slane %v3272_v19, 4  ;;  %v3286_v44 = vsel %vm2956_vm4, %v2799_v32, -inf  ;;  %v3280_v26 = vrot.slane %v3279_v42, 4 }
 0x572   :  { %v4751_v58 = vor.u32 %v4750_v50, %v4746_v52  ;;  %v3247_v55 = vrot.slane %v3246_v12, 2  ;;  %v3254_v52 = vrot.slane %v3253_v5, 2  ;;  %v3267_v50 = vmax.f32 %v3265_v54, %v3266_v13 }
 0x573   :  { %v3261_v27 = vrot.slane %v3260_v1, 2  ;;  %v3274_v53 = vmax.f32 %v3272_v19, %v3273_v56  ;;  %v3287_v59 = vrot.slane %v3286_v44, 4  ;;  %v3281_v20 = vmax.f32 %v3279_v42, %v3280_v26 }
 0x574   :  { %4859 = vrot.lane.b32.xlu0 %v4751_v58, %s8846_s3  ;;  %v3248_v28 = vmax.f32 %v3246_v12, %v3247_v55  ;;  %v3255_v7 = vmax.f32 %v3253_v5, %v3254_v52  ;;  %v3268_v40 = vrot.slane %v3267_v50, 2  ;;  %v3242_v22 = vrot.slane %v3241_v37, 1 }
 0x575   :  { %v3262_v48 = vmax.f32 %v3260_v1, %v3261_v27  ;;  %v3275_v58 = vrot.slane %v3274_v53, 2  ;;  %v3288_v33 = vmax.f32 %v3286_v44, %v3287_v59  ;;  %v3282_v17 = vrot.slane %v3281_v20, 2 }
 0x576   :  { %v3249_v36 = vrot.slane %v3248_v28, 1  ;;  %v3256_v25 = vrot.slane %v3255_v7, 1  ;;  %v3269_v32 = vmax.f32 %v3267_v50, %v3268_v40  ;;  %v3243_v54 = vmax.f32 %v3241_v37, %v3242_v22 }
 0x577   :  { %v3263_v9 = vrot.slane %v3262_v48, 1  ;;  %v3276_v45 = vmax.f32 %v3274_v53, %v3275_v58  ;;  %v3289_v13 = vrot.slane %v3288_v33, 2  ;;  %v3283_v12 = vmax.f32 %v3281_v20, %v3282_v17 }
 0x578   :  { %v3250_v19 = vmax.f32 %v3248_v28, %v3249_v36  ;;  %v3257_v56 = vmax.f32 %v3255_v7, %v3256_v25  ;;  %v3270_v15 = vrot.slane %v3269_v32, 1  ;;  %v3893_v1 = vpack.c.bf16 %v3243_v54, %v3243_v54 }
 0x579   :  { %v3264_v4 = vmax.f32 %v3262_v48, %v3263_v9  ;;  %v3277_v41 = vrot.slane %v3276_v45, 1  ;;  %v3290_v5 = vmax.f32 %v3288_v33, %v3289_v13  ;;  %v3284_v55 = vrot.slane %v3283_v12, 1  ;;  %v15012_v13 = vld [vmem:[#allocation39_spill] sm:$0xff] }
 0x57a   :  { %v3271_v27 = vmax.f32 %v3269_v32, %v3270_v15  ;;  %v3894_v26 = vpack.c.bf16 %v3250_v19, %v3250_v19  ;;  %v3895_v44 = vpack.c.bf16 %v3257_v56, %v3257_v56  ;;  %v4223_v53 = vperm.slane %v3893_v1, 0  ;;  %v15014_v56 = vld [vmem:[#allocation12_spill] sm:$0xff] }
 0x57b   :  { %v3278_v42 = vmax.f32 %v3276_v45, %v3277_v41  ;;  %v3291_v52 = vrot.slane %v3290_v5, 1  ;;  %v3896_v50 = vpack.c.bf16 %v3264_v4, %v3264_v4  ;;  %v3285_v37 = vmax.f32 %v3283_v12, %v3284_v55 }
 0x57c   :  { %v3897_v59 = vpack.c.bf16 %v3271_v27, %v3271_v27  ;;  %v4224_v40 = vperm.slane %v3894_v26, 0  ;;  %v4225_v58 = vperm.slane %v3895_v44, 0  ;;  %v4351_v48 = vunpack.c.l.b16 %v4223_v53  ;;  %v15016_v44 = vld [vmem:[#allocation13_spill] sm:$0xff]  ;;  %v15020_v53 = vld [vmem:[#allocation14_spill] sm:$0xff] }
 0x57d   :  { %v3292_v28 = vmax.f32 %v3290_v5, %v3291_v52  ;;  %v3898_v25 = vpack.c.bf16 %v3278_v42, %v3278_v42  ;;  %v4226_v7 = vperm.slane %v3896_v50, 0  ;;  %v3899_v15 = vpack.c.bf16 %v3285_v37, %v3285_v37  ;;  %v15018_v52 = vld [vmem:[#allocation15_spill] sm:$0xff] }
 0x57e   :  { %v4227_v9 = vperm.slane %v3897_v59, 0  ;;  %v4352_v17 = vunpack.c.l.b16 %v4224_v40  ;;  %v4353_v20 = vunpack.c.l.b16 %v4225_v58  ;;  %v15013_v54 = vmax.f32 %v15012_v13, 0.0 }
 0x57f   :  { %v3900_v33 = vpack.c.bf16 %v3292_v28, %v3292_v28  ;;  %v4228_v22 = vperm.slane %v3898_v25, 0  ;;  %v4354_v36 = vunpack.c.l.b16 %v4226_v7  ;;  %v15015_v4 = vmax.f32 %v15014_v56, 0.0 }
 0x580   :  { %v4355_v45 = vunpack.c.l.b16 %v4227_v9  ;;  %v4481_v32 = vsel %vm4439_vm6, %v4352_v17, %v4351_v48  ;;  %v11281_v19 = vsel %vm2029_vm14, %v15013_v54, -inf  ;;  %v4229_v12 = vperm.slane %v3899_v15, 0 }
 0x581   :  { %v11286_v41 = vsel %vm2029_vm14, %v15015_v4, -inf  ;;  %v4230_v5 = vperm.slane %v3900_v33, 0  ;;  %v4356_v27 = vunpack.c.l.b16 %v4228_v22  ;;  %v4482_v1 = vsel %vm4441_vm8, %v4353_v20, %v4481_v32 }
 0x582   :  { %v4483_v26 = vsel %vm4443_vm9, %v4354_v36, %v4482_v1  ;;  %v15017_v42 = vmax.f32 %v15016_v44, 0.0  ;;  %v15019_v50 = vmax.f32 %v15018_v52, 0.0  ;;  %v15021_v40 = vmax.f32 %v15020_v53, 0.0 }
 0x583   :  { %v4357_v37 = vunpack.c.l.b16 %v4229_v12  ;;  %v4358_v28 = vunpack.c.l.b16 %v4230_v5  ;;  %v4484_v25 = vsel %vm4445_vm11, %v4355_v45, %v4483_v26  ;;  %v15022_v7 = vmax.f32 %v10988_v16, 0.0 }
 0x584   :  { %v2660_v55 = vsel %vm2029_vm14, %v15017_v42, -inf  ;;  %v2661_v59 = vsel %vm2029_vm14, %v15019_v50, -inf  ;;  %v2663_v58 = vsel %vm2029_vm14, %v15021_v40, -inf  ;;  %v4485_v48 = vsel %vm4447_vm12, %v4356_v27, %v4484_v25 }
 0x585   :  { %v2664_v9 = vsel %vm2029_vm14, %v15022_v7, -inf  ;;  %v15023_v17 = vmax.f32 %v11010_v30, 0.0  ;;  %v15024_v15 = vmax.f32 %v11019_v11, 0.0  ;;  %v15025_v22 = vmax.f32 %v11015_v2, 0.0 }
 0x586   :  { %v4486_v16 = vsel %vm4449_vm13, %v4357_v37, %v4485_v48  ;;  %v15026_v45 = vmax.f32 %v11023_v6, 0.0  ;;  %v15027_v30 = vmax.f32 %v11028_v47, 0.0  ;;  %v15028_v11 = vmax.f32 %v11036_v29, 0.0 }
 0x587   :  { %v11307_v20 = vsel %vm2029_vm14, %v15023_v17, -inf  ;;  %v11312_v33 = vsel %vm2029_vm14, %v15024_v15, -inf  ;;  %v11317_v36 = vsel %vm2029_vm14, %v15025_v22, -inf  ;;  %v4487_v2 = vsel %vm4451_vm15, %v4358_v28, %v4486_v16 }
 0x588   :  { %v11323_v32 = vsel %vm2029_vm14, %v15026_v45, -inf  ;;  %v11328_v13 = vsel %vm2029_vm14, %v15027_v30, -inf  ;;  %v11333_v54 = vsel %vm2029_vm14, %v15028_v11, -inf  ;;  %v15029_v56 = vmax.f32 %v11032_v3, 0.0 }
 0x589   :  { %v15030_v6 = vmax.f32 %v11041_v34, 0.0  ;;  %v15031_v47 = vmax.f32 %v11045_v46, 0.0  ;;  %v4563_v29 = vpack.c.b16 %v4487_v2, %v4487_v2  ;;  %v15032_v27 = vmax.f32 %v11054_v39, 0.0 }
 0x58a   :  { %v11339_v4 = vsel %vm2029_vm14, %v15029_v56, -inf  ;;  %v15033_v3 = vmax.f32 %v11049_v14, 0.0  ;;  %v15034_v34 = vmax.f32 %v11058_v18, 0.0  ;;  %v15035_v46 = vmax.f32 %v11062_v61, 0.0 }
 0x58b   :  { %v11344_v12 = vsel %vm2029_vm14, %v15030_v6, -inf  ;;  %v11349_v5 = vsel %vm2029_vm14, %v15031_v47, -inf  ;;  %v11354_v1 = vsel %vm2029_vm14, %v15032_v27, -inf  ;;  %v15036_v39 = vmax.f32 %v11070_v57, 0.0 }
 0x58c   :  { %v11359_v26 = vsel %vm2029_vm14, %v15033_v3, -inf  ;;  %v11364_v44 = vsel %vm2029_vm14, %v15034_v34, -inf  ;;  %v11369_v42 = vsel %vm2029_vm14, %v15035_v46, -inf  ;;  %v15037_v14 = vmax.f32 %v11066_v62, 0.0 }
 0x58d   :  { %v11374_v52 = vsel %vm2029_vm14, %v15036_v39, -inf  ;;  %v15038_v18 = vmax.f32 %v11074_v10, 0.0  ;;  %v4610_v40 = vshrl.u32 %v4563_v29, 16  ;;  %v4613_v61 = vshll.u32 %v4563_v29, 16 }
 0x58e   :  { %v11379_v50 = vsel %vm2029_vm14, %v15037_v14, -inf  ;;  %v15039_v37 = vmax.f32 %v11078_v35, 0.0  ;;  %v15040_v57 = vmax.f32 %v11086_v38, 0.0  ;;  %v15041_v62 = vmax.f32 %v11082_v24, 0.0 }
 0x58f   :  { %v11384_v53 = vsel %vm2029_vm14, %v15038_v18, -inf  ;;  %v15042_v10 = vmax.f32 %v11090_v49, 0.0  ;;  %v15043_v35 = vmax.f32 %v11094_v21, 0.0  ;;  %v15044_v38 = vmax.f32 %v11102_v0, 0.0 }
 0x590   :  { %v11389_v28 = vsel %vm2029_vm14, %v15039_v37, -inf  ;;  %v11394_v25 = vsel %vm2029_vm14, %v15040_v57, -inf  ;;  %v11399_v7 = vsel %vm2029_vm14, %v15041_v62, -inf  ;;  %v4612_v22 = vrot.slane %v4610_v40, 7  ;;  %v15063_v40 = vld [vmem:[#allocation31_spill] sm:$0xff]  ;;  %v15066_v57 = vld [vmem:[#allocation29_spill] sm:$0xff] }
 0x591   :  { %v11404_v48 = vsel %vm2029_vm14, %v15042_v10, -inf  ;;  %v11409_v17 = vsel %vm2029_vm14, %v15043_v35, -inf  ;;  %v11414_v15 = vsel %vm2029_vm14, %v15044_v38, -inf  ;;  %v15045_v24 = vmax.f32 %v11098_v31, 0.0  ;;  %v15069_v35 = vld [vmem:[#allocation33_spill] sm:$0xff] }
 0x592   :  { %v15046_v49 = vmax.f32 %v11106_v8, 0.0  ;;  %v15047_v21 = vmax.f32 %v11110_v51, 0.0  ;;  %v15048_v0 = vmax.f32 %v14991_v63, 0.0  ;;  %v15049_v31 = vmax.f32 %v14990_v60, 0.0  ;;  %v15052_v63 = vld [vmem:[#allocation19_spill] sm:$0xff]  ;;  %v15054_v60 = vld [vmem:[#allocation16_spill] sm:$0xff] }
 0x593   :  { %v11419_v16 = vsel %vm2029_vm14, %v15045_v24, -inf  ;;  %v15050_v8 = vmax.f32 %v14992_v43, 0.0  ;;  %v15051_v51 = vmax.f32 %v14993_v23, 0.0  ;;  %v4615_v47 = vor.u32 %v4613_v61, %v4612_v22  ;;  %v15057_v43 = vld [vmem:[#allocation22_spill] sm:$0xff]  ;;  %v15060_v23 = vld [vmem:[#allocation25_spill] sm:$0xff] }
 0x594   :  { %v11424_v45 = vsel %vm2029_vm14, %v15046_v49, -inf  ;;  %v11429_v30 = vsel %vm2029_vm14, %v15047_v21, -inf  ;;  %v11434_v11 = vsel %vm2029_vm14, %v15048_v0, -inf  ;;  %v11439_v2 = vsel %vm2029_vm14, %v15049_v31, -inf  ;;  %v15073_v21 = vld [vmem:[#allocation18_spill] sm:$0xff] }
 0x595   :  { %v11444_v56 = vsel %vm2029_vm14, %v15050_v8, -inf  ;;  %v11449_v6 = vsel %vm2029_vm14, %v15051_v51, -inf  ;;  %v15053_v29 = vmax.f32 %v15052_v63, 0.0  ;;  %v15055_v3 = vmax.f32 %v15054_v60, 0.0  ;;  %v15076_v8 = vld [vmem:[#allocation21_spill] sm:$0xff] }
 0x596   :  { %v15058_v46 = vmax.f32 %v15057_v43, 0.0  ;;  %v15061_v14 = vmax.f32 %v15060_v23, 0.0  ;;  %v15064_v61 = vmax.f32 %v15063_v40, 0.0  ;;  %v15067_v62 = vmax.f32 %v15066_v57, 0.0  ;;  %v15082_v23 = vld [vmem:[#allocation30_spill] sm:$0xff] }
 0x597   :  { %v11454_v27 = vsel %vm2029_vm14, %v15053_v29, -inf  ;;  %v11459_v34 = vsel %vm2029_vm14, %v15055_v3, -inf  ;;  %v15070_v38 = vmax.f32 %v15069_v35, 0.0  ;;  %v4707_v49 = vsel %vm8932_vm2, 0, %v4615_v47 }
 0x598   :  { %15056 = vst [vmem:[#allocation35_spill] sm:$0xff] %v11459_v34  ;;  %v11464_v39 = vsel %vm2029_vm14, %v15058_v46, -inf  ;;  %v11469_v18 = vsel %vm2029_vm14, %v15061_v14, -inf  ;;  %v11474_v37 = vsel %vm2029_vm14, %v15064_v61, -inf  ;;  %v11479_v10 = vsel %vm2029_vm14, %v15067_v62, -inf  ;;  %v15081_v46 = vld [vmem:[#allocation32_spill] sm:$0xff] }
 0x599   :  { %15059 = vst [vmem:[#allocation36_spill] sm:$0xff] %v11464_v39  ;;  %v11484_v22 = vsel %vm2029_vm14, %v15070_v38, -inf  ;;  %v15074_v0 = vmax.f32 %v15073_v21, 0.0  ;;  %v15077_v51 = vmax.f32 %v15076_v8, 0.0  ;;  %v2662_v29 = vmax.f32 %v2660_v55, %v2661_v59 }
 0x59a   :  { %15062 = vst [vmem:[#allocation10_spill] sm:$0xff] %v11469_v18  ;;  %v11500_v3 = vsel %vm10854_vm5, %v4707_v49, 0  ;;  %v2665_v43 = vmax.f32 %v2663_v58, %v2664_v9  ;;  %v11504_v14 = vmax.f32 %v15082_v23, %v15081_v46  ;;  %v11508_v47 = vmax.f32 %v11281_v19, %v11286_v41 }
 0x59b   :  { %15065 = vst [vmem:[#allocation37_spill] sm:$0xff] %v11474_v37  ;;  %v11491_v31 = vsel %vm2029_vm14, %v15074_v0, -inf  ;;  %v11496_v63 = vsel %vm2029_vm14, %v15077_v51, -inf  ;;  %v4781_v40 = vshrl.u32 %v11500_v3, 16  ;;  %v4783_v61 = vshll.u32 %v11500_v3, 16 }
 0x59c   :  { %15068 = vst [vmem:[#allocation17_spill] sm:$0xff] %v11479_v10  ;;  %v2788_v57 = vrot.slane %v2662_v29, 2  ;;  %v2789_v62 = vrot.slane %v2662_v29, 4  ;;  %v2790_v55 = vrot.slane %v2662_v29, 6  ;;  %v2791_v59 = vrot.slane %v2665_v43, 2 }
 0x59d   :  { %15071 = vst [vmem:[#allocation20_spill] sm:$0xff] %v11484_v22  ;;  %v2792_v35 = vrot.slane %v2665_v43, 4  ;;  %v2793_v38 = vrot.slane %v2665_v43, 6  ;;  %v4785_v49 = vrot.slane %v4783_v61, 1  ;;  %v3181_v58 = vsel %vm2956_vm4, %v2662_v29, -inf }
 0x59e   :  { %15075 = vst [vmem:[#allocation23_spill] sm:$0xff] %v11491_v31  ;;  %v3188_v9 = vsel %vm2956_vm4, %v2788_v57, -inf  ;;  %v3195_v21 = vsel %vm2956_vm4, %v2789_v62, -inf  ;;  %v3182_v0 = vrot.slane %v3181_v58, 4  ;;  %v3202_v8 = vsel %vm2956_vm4, %v2790_v55, -inf }
 0x59f   :  { %15078 = vst [vmem:[#allocation26_spill] sm:$0xff] %v11496_v63  ;;  %v3189_v19 = vrot.slane %v3188_v9, 4  ;;  %v3196_v41 = vrot.slane %v3195_v21, 4  ;;  %v4786_v51 = vor.u32 %v4785_v49, %v4781_v40  ;;  %v3203_v46 = vrot.slane %v3202_v8, 4 }
 0x5a0   :  { %15080 = vst [vmem:[#allocation38_spill] sm:$0xff] %v11500_v3  ;;  %v3209_v23 = vsel %vm2956_vm4, %v2665_v43, -inf  ;;  %v3216_v3 = vsel %vm2956_vm4, %v2791_v59, -inf  ;;  %v3183_v60 = vmax.f32 %v3181_v58, %v3182_v0  ;;  %v3223_v62 = vsel %vm2956_vm4, %v2792_v35, -inf }
 0x5a1   :  { %15083 = vst [vmem:[#allocation11_spill] sm:$0xff] %v11504_v14  ;;  %v3190_v24 = vmax.f32 %v3188_v9, %v3189_v19  ;;  %v3197_v61 = vmax.f32 %v3195_v21, %v3196_v41  ;;  %4869 = vrot.lane.b32.xlu2 %v4786_v51, %s8846_s3  ;;  %v3204_v29 = vmax.f32 %v3202_v8, %v3203_v46  ;;  %v3217_v57 = vrot.slane %v3216_v3, 4 }
 0x5a2   :  { %15084 = vst [vmem:[#allocation39_spill] sm:$0xff] %v11508_v47  ;;  %v3210_v47 = vrot.slane %v3209_v23, 4  ;;  %v3230_v14 = vsel %vm2956_vm4, %v2793_v38, -inf  ;;  %v3184_v31 = vrot.slane %v3183_v60, 2  ;;  %v3224_v10 = vrot.slane %v3223_v62, 4 }
 0x5a3   :  { %v3191_v55 = vrot.slane %v3190_v24, 2  ;;  %v3198_v40 = vrot.slane %v3197_v61, 2  ;;  %v3205_v63 = vrot.slane %v3204_v29, 2  ;;  %v3218_v43 = vmax.f32 %v3216_v3, %v3217_v57 }
 0x5a4   :  { %v3211_v49 = vmax.f32 %v3209_v23, %v3210_v47  ;;  %v3231_v59 = vrot.slane %v3230_v14, 4  ;;  %v3185_v58 = vmax.f32 %v3183_v60, %v3184_v31  ;;  %v3225_v8 = vmax.f32 %v3223_v62, %v3224_v10 }
 0x5a5   :  { %v3192_v9 = vmax.f32 %v3190_v24, %v3191_v55  ;;  %v3199_v21 = vmax.f32 %v3197_v61, %v3198_v40  ;;  %v3206_v19 = vmax.f32 %v3204_v29, %v3205_v63  ;;  %v3219_v41 = vrot.slane %v3218_v43, 2 }
 0x5a6   :  { %v3212_v0 = vrot.slane %v3211_v49, 2  ;;  %v3232_v51 = vmax.f32 %v3230_v14, %v3231_v59  ;;  %v3186_v46 = vrot.slane %v3185_v58, 1  ;;  %v3226_v34 = vrot.slane %v3225_v8, 2 }
 0x5a7   :  { %v3193_v35 = vrot.slane %v3192_v9, 1  ;;  %v3200_v22 = vrot.slane %v3199_v21, 1  ;;  %v3207_v18 = vrot.slane %v3206_v19, 1  ;;  %v3220_v37 = vmax.f32 %v3218_v43, %v3219_v41 }
 0x5a8   :  { %v3213_v38 = vmax.f32 %v3211_v49, %v3212_v0  ;;  %v3233_v47 = vrot.slane %v3232_v51, 2  ;;  %v3187_v23 = vmax.f32 %v3185_v58, %v3186_v46  ;;  %v3227_v60 = vmax.f32 %v3225_v8, %v3226_v34 }
 0x5a9   :  { %v3194_v3 = vmax.f32 %v3192_v9, %v3193_v35  ;;  %v3201_v57 = vmax.f32 %v3199_v21, %v3200_v22  ;;  %v3208_v31 = vmax.f32 %v3206_v19, %v3207_v18  ;;  %v3221_v24 = vrot.slane %v3220_v37, 1 }
 0x5aa   :  { %v3214_v39 = vrot.slane %v3213_v38, 1  ;;  %v3234_v61 = vmax.f32 %v3232_v51, %v3233_v47  ;;  %v3885_v29 = vpack.c.bf16 %v3187_v23, %v3187_v23  ;;  %v3228_v55 = vrot.slane %v3227_v60, 1 }
 0x5ab   :  { %v3886_v10 = vpack.c.bf16 %v3194_v3, %v3194_v3  ;;  %v3887_v14 = vpack.c.bf16 %v3201_v57, %v3201_v57  ;;  %v3222_v62 = vmax.f32 %v3220_v37, %v3221_v24  ;;  %v3888_v49 = vpack.c.bf16 %v3208_v31, %v3208_v31 }
 0x5ac   :  { %v3215_v63 = vmax.f32 %v3213_v38, %v3214_v39  ;;  %v3235_v40 = vrot.slane %v3234_v61, 1  ;;  %v4215_v43 = vperm.slane %v3885_v29, 0  ;;  %v3229_v58 = vmax.f32 %v3227_v60, %v3228_v55 }
 0x5ad   :  { %v4216_v0 = vperm.slane %v3886_v10, 0  ;;  %v4217_v41 = vperm.slane %v3887_v14, 0  ;;  %v3890_v22 = vpack.c.bf16 %v3222_v62, %v3222_v62  ;;  %v4218_v21 = vperm.slane %v3888_v49, 0  ;;  %v15093_v14 = vld [vmem:[#allocation11_spill] sm:$0xff] }
 0x5ae   :  { %v3889_v59 = vpack.c.bf16 %v3215_v63, %v3215_v63  ;;  %v3236_v9 = vmax.f32 %v3234_v61, %v3235_v40  ;;  %v4343_v19 = vunpack.c.l.b16 %v4215_v43  ;;  %v3891_v39 = vpack.c.bf16 %v3229_v58, %v3229_v58  ;;  %v15094_v49 = vld [vmem:[#allocation39_spill] sm:$0xff] }
 0x5af   :  { %v4344_v34 = vunpack.c.l.b16 %v4216_v0  ;;  %v4345_v8 = vunpack.c.l.b16 %v4217_v41  ;;  %v4220_v46 = vperm.slane %v3890_v22, 0  ;;  %v4346_v35 = vunpack.c.l.b16 %v4218_v21 }
 0x5b0   :  { %v4219_v18 = vperm.slane %v3889_v59, 0  ;;  %v3892_v51 = vpack.c.bf16 %v3236_v9, %v3236_v9  ;;  %v11524_v47 = vmax.f32 %v11307_v20, %v11312_v33  ;;  %v11528_v23 = vmax.f32 %v11317_v36, %v11323_v32 }
 0x5b1   :  { %v4474_v38 = vsel %vm4439_vm6, %v4344_v34, %v4343_v19  ;;  %v4221_v3 = vperm.slane %v3891_v39, 0  ;;  %v4348_v31 = vunpack.c.l.b16 %v4220_v46  ;;  %v11534_v61 = vmax.f32 %v11328_v13, %v11333_v54 }
 0x5b2   :  { %v4347_v37 = vunpack.c.l.b16 %v4219_v18  ;;  %v4222_v57 = vperm.slane %v3892_v51, 0  ;;  %v4475_v24 = vsel %vm4441_vm8, %v4345_v8, %v4474_v38  ;;  %v11538_v63 = vmax.f32 %v11339_v4, %v11344_v12 }
 0x5b3   :  { %v4476_v60 = vsel %vm4443_vm9, %v4346_v35, %v4475_v24  ;;  %v11542_v20 = vmax.f32 %v11349_v5, %v11354_v1  ;;  %v4349_v33 = vunpack.c.l.b16 %v4221_v3  ;;  %v11547_v29 = vmax.f32 %v11359_v26, %v11364_v44 }
 0x5b4   :  { %v4350_v36 = vunpack.c.l.b16 %v4222_v57  ;;  %v4477_v32 = vsel %vm4445_vm11, %v4347_v37, %v4476_v60  ;;  %v11552_v13 = vmax.f32 %v11369_v42, %v11374_v52  ;;  %v11556_v54 = vmax.f32 %v11379_v50, %v11384_v53 }
 0x5b5   :  { %v4478_v10 = vsel %vm4447_vm12, %v4348_v31, %v4477_v32  ;;  %v11560_v4 = vmax.f32 %v11389_v28, %v11394_v25  ;;  %v11565_v5 = vmax.f32 %v11399_v7, %v11404_v48  ;;  %v11569_v1 = vmax.f32 %v11409_v17, %v11414_v15  ;;  %v15085_v28 = vld [vmem:[#allocation36_spill] sm:$0xff]  ;;  %v15086_v25 = vld [vmem:[#allocation35_spill] sm:$0xff]  ;;  %v15087_v48 = vld [vmem:[#allocation37_spill] sm:$0xff] }
 0x5b6   :  { %v4479_v12 = vsel %vm4449_vm13, %v4349_v33, %v4478_v10  ;;  %v11573_v26 = vmax.f32 %v11419_v16, %v11424_v45  ;;  %v11578_v42 = vmax.f32 %v11429_v30, %v11434_v11  ;;  %v11582_v52 = vmax.f32 %v11439_v2, %v11444_v56  ;;  %v15088_v17 = vld [vmem:[#allocation10_spill] sm:$0xff]  ;;  %v15089_v16 = vld [vmem:[#allocation20_spill] sm:$0xff]  ;;  %v15090_v45 = vld [vmem:[#allocation17_spill] sm:$0xff] }
 0x5b7   :  { %v4480_v44 = vsel %vm4451_vm15, %v4350_v36, %v4479_v12  ;;  %v11586_v50 = vmax.f32 %v11449_v6, %v11454_v27  ;;  %v11590_v7 = vmax.f32 %v15086_v25, %v15085_v28  ;;  %v11594_v15 = vmax.f32 %v15088_v17, %v15087_v48  ;;  %v15091_v11 = vld [vmem:[#allocation26_spill] sm:$0xff]  ;;  %v15092_v2 = vld [vmem:[#allocation23_spill] sm:$0xff] }
 0x5b8   :  { %v4562_v53 = vpack.c.b16 %v4480_v44, %v4480_v44  ;;  %v11598_v30 = vmax.f32 %v15090_v45, %v15089_v16  ;;  %v11602_v56 = vmax.f32 %v15092_v2, %v15091_v11  ;;  %v2782_v6 = vrot.slane %v15093_v14, 2 }
 0x5b9   :  { %v2783_v27 = vrot.slane %v15093_v14, 4  ;;  %v2784_v62 = vrot.slane %v15093_v14, 6  ;;  %v2785_v59 = vrot.slane %v15094_v49, 2  ;;  %v2786_v43 = vrot.slane %v15094_v49, 4 }
 0x5ba   :  { %v4603_v55 = vshrl.u32 %v4562_v53, 16  ;;  %v4606_v40 = vshll.u32 %v4562_v53, 16  ;;  %v2787_v0 = vrot.slane %v15094_v49, 6  ;;  %v3125_v41 = vsel %vm2956_vm4, %v15093_v14, -inf }
 0x5bb   :  { %v3132_v58 = vsel %vm2956_vm4, %v2782_v6, -inf  ;;  %v3139_v9 = vsel %vm2956_vm4, %v2783_v27, -inf  ;;  %v3126_v21 = vrot.slane %v3125_v41, 4  ;;  %v3146_v34 = vsel %vm2956_vm4, %v2784_v62, -inf }
 0x5bc   :  { %v4605_v22 = vrot.slane %v4603_v55, 7  ;;  %v3133_v18 = vrot.slane %v3132_v58, 4  ;;  %v3140_v19 = vrot.slane %v3139_v9, 4  ;;  %v3153_v8 = vsel %vm2956_vm4, %v15094_v49, -inf }
 0x5bd   :  { %v3160_v39 = vsel %vm2956_vm4, %v2785_v59, -inf  ;;  %v3167_v51 = vsel %vm2956_vm4, %v2786_v43, -inf  ;;  %v3127_v35 = vmax.f32 %v3125_v41, %v3126_v21  ;;  %v3147_v3 = vrot.slane %v3146_v34, 4 }
 0x5be   :  { %v4608_v46 = vor.u32 %v4606_v40, %v4605_v22  ;;  %v3134_v37 = vmax.f32 %v3132_v58, %v3133_v18  ;;  %v3141_v38 = vmax.f32 %v3139_v9, %v3140_v19  ;;  %v3154_v57 = vrot.slane %v3153_v8, 4 }
 0x5bf   :  { %v3161_v31 = vrot.slane %v3160_v39, 4  ;;  %v3168_v24 = vrot.slane %v3167_v51, 4  ;;  %v3128_v36 = vrot.slane %v3127_v35, 2  ;;  %v3148_v53 = vmax.f32 %v3146_v34, %v3147_v3 }
 0x5c0   :  { %v4706_v33 = vsel %vm8932_vm2, 0, %v4608_v46  ;;  %v3135_v32 = vrot.slane %v3134_v37, 2  ;;  %v3142_v10 = vrot.slane %v3141_v38, 2  ;;  %v3155_v28 = vmax.f32 %v3153_v8, %v3154_v57 }
 0x5c1   :  { %v11623_v44 = vsel %vm10854_vm5, %v4706_v33, 0  ;;  %v3162_v25 = vmax.f32 %v3160_v39, %v3161_v31  ;;  %v3129_v16 = vmax.f32 %v3127_v35, %v3128_v36  ;;  %v3149_v2 = vrot.slane %v3148_v53, 2 }
 0x5c2   :  { %15097 = vst [vmem:[#allocation12_spill] sm:$0xff] %v11623_v44  ;;  %v4774_v48 = vshrl.u32 %v11623_v44, 16  ;;  %v4776_v17 = vshll.u32 %v11623_v44, 16  ;;  %v3136_v45 = vmax.f32 %v3134_v37, %v3135_v32  ;;  %v3143_v11 = vmax.f32 %v3141_v38, %v3142_v10 }
 0x5c3   :  { %v3156_v14 = vrot.slane %v3155_v28, 2  ;;  %v3163_v6 = vrot.slane %v3162_v25, 2  ;;  %v3130_v62 = vrot.slane %v3129_v16, 1  ;;  %v3169_v40 = vmax.f32 %v3167_v51, %v3168_v24 }
 0x5c4   :  { %v4778_v27 = vrot.slane %v4776_v17, 1  ;;  %v3137_v55 = vrot.slane %v3136_v45, 1  ;;  %v3144_v49 = vrot.slane %v3143_v11, 1  ;;  %v3150_v59 = vmax.f32 %v3148_v53, %v3149_v2 }
 0x5c5   :  { %v3157_v43 = vmax.f32 %v3155_v28, %v3156_v14  ;;  %v3164_v41 = vmax.f32 %v3162_v25, %v3163_v6  ;;  %v3131_v9 = vmax.f32 %v3129_v16, %v3130_v62  ;;  %v3170_v21 = vrot.slane %v3169_v40, 2  ;;  %v15098_v14 = vld [vmem:[#allocation41_spill] sm:$0xff] }
 0x5c6   :  { %v4779_v58 = vor.u32 %v4778_v27, %v4774_v48  ;;  %v3138_v22 = vmax.f32 %v3136_v45, %v3137_v55  ;;  %v3145_v18 = vmax.f32 %v3143_v11, %v3144_v49  ;;  %v3151_v19 = vrot.slane %v3150_v59, 1  ;;  %v15100_v49 = vld [vmem:[#allocation43_spill] sm:$0xff] }
 0x5c7   :  { %v3158_v34 = vrot.slane %v3157_v43, 1  ;;  %v3165_v8 = vrot.slane %v3164_v41, 1  ;;  %v3171_v39 = vmax.f32 %v3169_v40, %v3170_v21  ;;  %v3174_v46 = vsel %vm2956_vm4, %v2787_v0, -inf  ;;  %v15101_v21 = vld [vmem:[#allocation40_spill] sm:$0xff] }
 0x5c8   :  { %4867 = vrot.lane.b32.xlu1 %v4779_v58, %s8846_s3  ;;  %v3877_v35 = vpack.c.bf16 %v3131_v9, %v3131_v9  ;;  %v3878_v37 = vpack.c.bf16 %v3138_v22, %v3138_v22  ;;  %v3152_v51 = vmax.f32 %v3150_v59, %v3151_v19  ;;  %v3175_v57 = vrot.slane %v3174_v46, 4 }
 0x5c9   :  { %v3159_v38 = vmax.f32 %v3157_v43, %v3158_v34  ;;  %v3166_v3 = vmax.f32 %v3164_v41, %v3165_v8  ;;  %v3172_v31 = vrot.slane %v3171_v39, 1  ;;  %v3879_v24 = vpack.c.bf16 %v3145_v18, %v3145_v18 }
 0x5ca   :  { %v4207_v33 = vperm.slane %v3877_v35, 0  ;;  %v4208_v36 = vperm.slane %v3878_v37, 0  ;;  %v3176_v32 = vmax.f32 %v3174_v46, %v3175_v57  ;;  %v3880_v10 = vpack.c.bf16 %v3152_v51, %v3152_v51  ;;  %v15104_v46 = vld [vmem:[#allocation42_spill] sm:$0xff] }
 0x5cb   :  { %v3881_v53 = vpack.c.bf16 %v3159_v38, %v3159_v38  ;;  %v3882_v28 = vpack.c.bf16 %v3166_v3, %v3166_v3  ;;  %v3173_v25 = vmax.f32 %v3171_v39, %v3172_v31  ;;  %v4209_v48 = vperm.slane %v3879_v24, 0 }
 0x5cc   :  { %v4335_v17 = vunpack.c.l.b16 %v4207_v33  ;;  %v4336_v16 = vunpack.c.l.b16 %v4208_v36  ;;  %v3177_v45 = vrot.slane %v3176_v32, 2  ;;  %v4210_v0 = vperm.slane %v3880_v10, 0 }
 0x5cd   :  { %v4211_v11 = vperm.slane %v3881_v53, 0  ;;  %v4212_v2 = vperm.slane %v3882_v28, 0  ;;  %v15099_v6 = vrot.slane %v15098_v14, 1  ;;  %v3883_v62 = vpack.c.bf16 %v3173_v25, %v3173_v25 }
 0x5ce   :  { %v4337_v55 = vunpack.c.l.b16 %v4209_v48  ;;  %v4467_v40 = vsel %vm4439_vm6, %v4336_v16, %v4335_v17  ;;  %v3977_v59 = vpack.c.bf16 %v15100_v49, %v15100_v49  ;;  %v3178_v43 = vmax.f32 %v3176_v32, %v3177_v45  ;;  %v15109_v32 = vld [vmem:[#allocation6_spill] sm:$0xff] }
 0x5cf   :  { %v3838_v27 = vmax.f32 %v15098_v14, %v15099_v6  ;;  %v4338_v41 = vunpack.c.l.b16 %v4210_v0  ;;  %v4213_v58 = vperm.slane %v3883_v62, 0  ;;  %v4339_v9 = vunpack.c.l.b16 %v4211_v11 }
 0x5d0   :  { %v4468_v22 = vsel %vm4441_vm8, %v4337_v55, %v4467_v40  ;;  %v15102_v18 = vrot.slane %v15101_v21, 2  ;;  %v3179_v34 = vrot.slane %v3178_v43, 1  ;;  %v4340_v8 = vunpack.c.l.b16 %v4212_v2 }
 0x5d1   :  { %v4469_v39 = vsel %vm4443_vm9, %v4338_v41, %v4468_v22  ;;  %v3844_v35 = vrot.slane %v15104_v46, 1  ;;  %v3978_v37 = vpack.c.bf16 %v3838_v27, %v3838_v27  ;;  %v4341_v51 = vunpack.c.l.b16 %v4213_v58 }
 0x5d2   :  { %v11639_v19 = vmax.f32 %v15101_v21, %v15102_v18  ;;  %v4470_v38 = vsel %vm4445_vm11, %v4339_v9, %v4469_v39  ;;  %v11644_v3 = vperm.slane %v3977_v59, 0  ;;  %v3180_v57 = vmax.f32 %v3178_v43, %v3179_v34 }
 0x5d3   :  { %v4471_v31 = vsel %vm4447_vm12, %v4340_v8, %v4470_v38  ;;  %v11649_v36 = vmax.f32 %v15104_v46, %v3844_v35  ;;  %v11652_v10 = vperm.slane %v3978_v37, 0  ;;  %v2800_v25 = vrot.slane %v11524_v47, 2 }
 0x5d4   :  { %15103 = vst [vmem:[#allocation13_spill] sm:$0xff] %v11639_v19  ;;  %v4472_v24 = vsel %vm4449_vm13, %v4341_v51, %v4471_v31  ;;  %v3884_v33 = vpack.c.bf16 %v3180_v57, %v3180_v57  ;;  %v2801_v48 = vrot.slane %v11524_v47, 4  ;;  %v2802_v17 = vrot.slane %v11524_v47, 6 }
 0x5d5   :  { %15105 = vst [vmem:[#allocation15_spill] sm:$0xff] %v11644_v3  ;;  %v2803_v16 = vrot.slane %v11528_v23, 2  ;;  %v2804_v45 = vrot.slane %v11528_v23, 4  ;;  %v2805_v0 = vrot.slane %v11528_v23, 6  ;;  %v2806_v2 = vrot.slane %v11534_v61, 2 }
 0x5d6   :  { %15106 = vst [vmem:[#allocation14_spill] sm:$0xff] %v11649_v36  ;;  %v4214_v28 = vperm.slane %v3884_v33, 0  ;;  %v2807_v14 = vrot.slane %v11534_v61, 4  ;;  %v2808_v6 = vrot.slane %v11534_v61, 6  ;;  %v2809_v27 = vrot.slane %v11538_v63, 2 }
 0x5d7   :  { %15107 = vst [vmem:[#allocation19_spill] sm:$0xff] %v11652_v10  ;;  %v11732_v31 = vsel %vm2956_vm4, %v11528_v23, -inf  ;;  %v11746_v38 = vsel %vm2956_vm4, %v11542_v20, -inf  ;;  %v11754_v35 = vsel %vm2956_vm4, %v11552_v13, -inf  ;;  %v11763_v39 = vsel %vm2956_vm4, %v11560_v4, -inf }
 0x5d8   :  { %v4342_v11 = vunpack.c.l.b16 %v4214_v28  ;;  %v11767_v8 = vsel %vm2956_vm4, %v11565_v5, -inf  ;;  %v11771_v34 = vsel %vm2956_vm4, %v11569_v1, -inf  ;;  %v11775_v18 = vsel %vm2956_vm4, %v11573_v26, -inf }
 0x5d9   :  { %15111 = vst [vmem:[#allocation25_spill] sm:$0xff] %v11767_v8  ;;  %v11787_v21 = vsel %vm2956_vm4, %v11586_v50, -inf  ;;  %v11791_v9 = vsel %vm2956_vm4, %v11590_v7, -inf  ;;  %v11795_v41 = vsel %vm2956_vm4, %v11594_v15, -inf  ;;  %v11799_v43 = vsel %vm2956_vm4, %v11598_v30, -inf }
 0x5da   :  { %v4473_v49 = vsel %vm4451_vm15, %v4342_v11, %v4472_v24  ;;  %v11750_v24 = vsel %vm2956_vm4, %v11547_v29, -inf  ;;  %15112 = vst [vmem:[#allocation31_spill] sm:$0xff] %v11775_v18  ;;  %v11803_v59 = vsel %vm2956_vm4, %v11602_v56, -inf  ;;  %v11815_v40 = vsel %vm2956_vm4, %v2801_v48, -inf }
 0x5db   :  { %v4561_v58 = vpack.c.b16 %v4473_v49, %v4473_v49  ;;  %v11738_v49 = vsel %vm2956_vm4, %v11534_v61, -inf  ;;  %15114 = vst [vmem:[#allocation33_spill] sm:$0xff] %v11787_v21  ;;  %v11820_v55 = vsel %vm2956_vm4, %v2802_v17, -inf  ;;  %v3322_v62 = vrot.slane %v11732_v31, 4 }
 0x5dc   :  { %15115 = vst [vmem:[#allocation18_spill] sm:$0xff] %v11791_v9  ;;  %v11836_v48 = vsel %vm2956_vm4, %v2805_v0, -inf  ;;  %v11842_v17 = vsel %vm2956_vm4, %v2806_v2, -inf  ;;  %v11858_v0 = vsel %vm2956_vm4, %v2809_v27, -inf  ;;  %v15119_v2 = vrot.slane %v11538_v63, 4 }
 0x5dd   :  { %v4596_v46 = vshrl.u32 %v4561_v58, 16  ;;  %v4599_v28 = vshll.u32 %v4561_v58, 16  ;;  %15116 = vst [vmem:[#allocation21_spill] sm:$0xff] %v11795_v41  ;;  %v15122_v27 = vrot.slane %v11542_v20, 4  ;;  %v3343_v41 = vrot.slane %v11836_v48, 4 }
 0x5de   :  { %15117 = vst [vmem:[#allocation32_spill] sm:$0xff] %v11799_v43 }
 0x5df   :  { %v4598_v33 = vrot.slane %v4596_v46, 7  ;;  %15118 = vst [vmem:[#allocation30_spill] sm:$0xff] %v11803_v59  ;;  %v3357_v59 = vrot.slane %v11842_v17, 4 }
 0x5e1   :  { %v4601_v37 = vor.u32 %v4599_v28, %v4598_v33  ;;  %v11728_v33 = vsel %vm2956_vm4, %v11524_v47, -inf  ;;  %v11742_v28 = vsel %vm2956_vm4, %v11538_v63, -inf  ;;  %v11863_v47 = vsel %vm2956_vm4, %v15119_v2, -inf }
 0x5e2   :  { %v15123_v2 = vrot.slane %v11542_v20, 6  ;;  %v15169_v21 = vrot.slane %v11728_v33, 4 }
 0x5e3   :  { %v4705_v51 = vsel %vm8932_vm2, 0, %v4601_v37  ;;  %v11724_v37 = vsel %vm10854_vm5, %v15109_v32, 0  ;;  %v11879_v32 = vsel %vm2956_vm4, %v15122_v27, -inf  ;;  %v15126_v27 = vrot.slane %v11547_v29, 6 }
 0x5e4   :  { %v11706_v46 = vsel %vm10854_vm5, %v4705_v51, 0  ;;  %15110 = vst [vmem:[#allocation22_spill] sm:$0xff] %v11724_v37  ;;  %v4739_v58 = vshrl.u32 %v11724_v37, 16  ;;  %v4741_v51 = vshll.u32 %v11724_v37, 16  ;;  %v11884_v3 = vsel %vm2956_vm4, %v15123_v2, -inf }
 0x5e5   :  { %15108 = vst [vmem:[#allocation16_spill] sm:$0xff] %v11706_v46  ;;  %v4769_v53 = vshll.u32 %v11706_v46, 16  ;;  %v4767_v11 = vshrl.u32 %v11706_v46, 16  ;;  %v11900_v36 = vsel %vm2956_vm4, %v15126_v27, -inf  ;;  %v15127_v2 = vrot.slane %v11552_v13, 2 }
 0x5e6   :  { %v15130_v27 = vrot.slane %v11556_v54, 2 }
 0x5e7   :  { %v4771_v57 = vrot.slane %v4769_v53, 1 }
 0x5e9   :  { %v4772_v53 = vor.u32 %v4771_v57, %v4767_v11  ;;  %v11758_v57 = vsel %vm2956_vm4, %v11556_v54, -inf  ;;  %v4743_v11 = vrot.slane %v4741_v51, 1  ;;  %v11779_v51 = vsel %vm2956_vm4, %v11578_v42, -inf }
 0x5eb   :  { %4865 = vrot.lane.b32.xlu0 %v4772_v53, %s8846_s3  ;;  %v11783_v53 = vsel %vm2956_vm4, %v11582_v52, -inf  ;;  %v4744_v22 = vor.u32 %v4743_v11, %v4739_v58  ;;  %v11810_v11 = vsel %vm2956_vm4, %v2800_v25, -inf  ;;  %v11831_v25 = vsel %vm2956_vm4, %v2804_v45, -inf }
 0x5ec   :  { %15113 = vst [vmem:[#allocation29_spill] sm:$0xff] %v11783_v53  ;;  %v11852_v45 = vsel %vm2956_vm4, %v2808_v6, -inf  ;;  %v15121_v6 = vrot.slane %v11542_v20, 2  ;;  %v11922_v20 = vsel %vm2956_vm4, %v15130_v27, -inf  ;;  %v15135_v27 = vrot.slane %v11560_v4, 4 }
 0x5ed   :  { %4857 = vrot.lane.b32.xlu2 %v4744_v22, %s8846_s3  ;;  %v11826_v22 = vsel %vm2956_vm4, %v2803_v16, -inf  ;;  %v11847_v16 = vsel %vm2956_vm4, %v2807_v14, -inf  ;;  %v15120_v14 = vrot.slane %v11538_v63, 6  ;;  %v11906_v63 = vsel %vm2956_vm4, %v15127_v2, -inf }
 0x5ee   :  { %v11874_v23 = vsel %vm2956_vm4, %v15121_v6, -inf  ;;  %v15125_v6 = vrot.slane %v11547_v29, 4  ;;  %v15131_v2 = vrot.slane %v11556_v54, 4  ;;  %v11943_v60 = vsel %vm2956_vm4, %v15135_v27, -inf }
 0x5ef   :  { %v11868_v58 = vsel %vm2956_vm4, %v15120_v14, -inf  ;;  %v15124_v14 = vrot.slane %v11547_v29, 2  ;;  %15136 = vst [vmem:[#allocation35_spill] sm:$0xff] %v11943_v60  ;;  %v15141_v27 = vrot.slane %v11565_v5, 6  ;;  %v3315_v53 = vrot.slane %v11820_v55, 4 }
 0x5f0   :  { %v11895_v10 = vsel %vm2956_vm4, %v15125_v6, -inf  ;;  %v15129_v6 = vrot.slane %v11552_v13, 6  ;;  %v11927_v46 = vsel %vm2956_vm4, %v15131_v2, -inf  ;;  %v15137_v2 = vrot.slane %v11560_v4, 6 }
 0x5f1   :  { %v11890_v61 = vsel %vm2956_vm4, %v15124_v14, -inf  ;;  %v15128_v14 = vrot.slane %v11552_v13, 4  ;;  %v11964_v60 = vsel %vm2956_vm4, %v15141_v27, -inf  ;;  %v15147_v27 = vrot.slane %v11573_v26, 2 }
 0x5f2   :  { %v11916_v44 = vsel %vm2956_vm4, %v15129_v6, -inf  ;;  %v15133_v6 = vrot.slane %v11560_v4, 2  ;;  %v11948_v37 = vsel %vm2956_vm4, %v15137_v2, -inf  ;;  %v15142_v2 = vrot.slane %v11569_v1, 2 }
 0x5f3   :  { %v11911_v19 = vsel %vm2956_vm4, %v15128_v14, -inf  ;;  %v15132_v14 = vrot.slane %v11556_v54, 6  ;;  %v11986_v4 = vsel %vm2956_vm4, %v15147_v27, -inf  ;;  %v15153_v27 = vrot.slane %v11578_v42, 4 }
 0x5f4   :  { %v11938_v29 = vsel %vm2956_vm4, %v15133_v6, -inf  ;;  %v15139_v6 = vrot.slane %v11565_v5, 4  ;;  %v11970_v54 = vsel %vm2956_vm4, %v15142_v2, -inf  ;;  %v15148_v2 = vrot.slane %v11573_v26, 4 }
 0x5f5   :  { %v11932_v12 = vsel %vm2956_vm4, %v15132_v14, -inf  ;;  %15134 = vst [vmem:[#allocation36_spill] sm:$0xff] %v11938_v29  ;;  %v15138_v14 = vrot.slane %v11565_v5, 2  ;;  %v12007_v18 = vsel %vm2956_vm4, %v15153_v27, -inf  ;;  %v15161_v27 = vrot.slane %v11582_v52, 6 }
 0x5f6   :  { %v11959_v29 = vsel %vm2956_vm4, %v15139_v6, -inf  ;;  %15143 = vst [vmem:[#allocation10_spill] sm:$0xff] %v11970_v54  ;;  %v15146_v6 = vrot.slane %v11569_v1, 6  ;;  %v11991_v54 = vsel %vm2956_vm4, %v15148_v2, -inf  ;;  %v15155_v2 = vrot.slane %v11578_v42, 6 }
 0x5f7   :  { %v11954_v13 = vsel %vm2956_vm4, %v15138_v14, -inf  ;;  %15140 = vst [vmem:[#allocation37_spill] sm:$0xff] %v11959_v29  ;;  %v15144_v14 = vrot.slane %v11569_v1, 4  ;;  %v3399_v9 = vrot.slane %v11868_v58, 4 }
 0x5f8   :  { %v11980_v29 = vsel %vm2956_vm4, %v15146_v6, -inf  ;;  %15149 = vst [vmem:[#allocation17_spill] sm:$0xff] %v11991_v54  ;;  %v15151_v6 = vrot.slane %v11578_v42, 2  ;;  %v12012_v54 = vsel %vm2956_vm4, %v15155_v2, -inf  ;;  %v3301_v2 = vrot.slane %v11810_v11, 4 }
 0x5f9   :  { %v11975_v8 = vsel %vm2956_vm4, %v15144_v14, -inf  ;;  %v15150_v14 = vrot.slane %v11573_v26, 6  ;;  %15154 = vst [vmem:[#allocation23_spill] sm:$0xff] %v12007_v18  ;;  %v12028_v18 = vsel %vm2956_vm4, %v15161_v27, -inf  ;;  %v3308_v26 = vrot.slane %v11815_v40, 4 }
 0x5fa   :  { %15145 = vst [vmem:[#allocation20_spill] sm:$0xff] %v11975_v8  ;;  %v12002_v5 = vsel %vm2956_vm4, %v15151_v6, -inf  ;;  %v15159_v6 = vrot.slane %v11582_v52, 4  ;;  %v15167_v27 = vrot.slane %v11586_v50, 6 }
 0x5fb   :  { %v11996_v8 = vsel %vm2956_vm4, %v15150_v14, -inf  ;;  %15152 = vst [vmem:[#allocation26_spill] sm:$0xff] %v12002_v5  ;;  %v15157_v14 = vrot.slane %v11582_v52, 2 }
 0x5fc   :  { %15156 = vst [vmem:[#allocation11_spill] sm:$0xff] %v12012_v54  ;;  %v12023_v5 = vsel %vm2956_vm4, %v15159_v6, -inf  ;;  %v15165_v6 = vrot.slane %v11586_v50, 4  ;;  %v12047_v42 = vsel %vm2956_vm4, %v15167_v27, -inf  ;;  %v15170_v54 = vrot.slane %v11590_v7, 2 }
 0x5fd   :  { %v12018_v1 = vsel %vm2956_vm4, %v15157_v14, -inf  ;;  %15160 = vst [vmem:[#allocation41_spill] sm:$0xff] %v12023_v5  ;;  %v15163_v14 = vrot.slane %v11586_v50, 2  ;;  %v15172_v50 = vrot.slane %v11590_v7, 4  ;;  %v3336_v5 = vrot.slane %v11831_v25, 4 }
 0x5fe   :  { %15158 = vst [vmem:[#allocation39_spill] sm:$0xff] %v12018_v1  ;;  %v12042_v52 = vsel %vm2956_vm4, %v15165_v6, -inf  ;;  %v3329_v6 = vrot.slane %v11826_v22, 4 }
 0x5ff   :  { %15162 = vst [vmem:[#allocation43_spill] sm:$0xff] %v12028_v18  ;;  %v12037_v1 = vsel %vm2956_vm4, %v15163_v14, -inf  ;;  %v3295_v18 = vmax.f32 %v11728_v33, %v15169_v21  ;;  %v12056_v14 = vsel %vm2956_vm4, %v15170_v54, -inf  ;;  %v12063_v27 = vsel %vm2956_vm4, %v15172_v50, -inf }
 0x600   :  { %15164 = vst [vmem:[#allocation40_spill] sm:$0xff] %v12037_v1  ;;  %v3323_v1 = vmax.f32 %v11732_v31, %v3322_v62  ;;  %v3302_v33 = vmax.f32 %v11810_v11, %v3301_v2  ;;  %v15176_v62 = vrot.slane %v11594_v15, 2  ;;  %v3316_v50 = vmax.f32 %v11820_v55, %v3315_v53 }
 0x601   :  { %15166 = vst [vmem:[#allocation42_spill] sm:$0xff] %v12042_v52  ;;  %v15180_v11 = vrot.slane %v11594_v15, 6  ;;  %v3296_v54 = vrot.slane %v3295_v18, 2  ;;  %v3330_v53 = vmax.f32 %v11826_v22, %v3329_v6 }
 0x602   :  { %15168 = vst [vmem:[#allocation44_spill] sm:$0xff] %v12047_v42  ;;  %v15174_v42 = vrot.slane %v11590_v7, 6  ;;  %v12076_v31 = vsel %vm2956_vm4, %v15176_v62, -inf  ;;  %v15178_v7 = vrot.slane %v11594_v15, 4  ;;  %v3324_v55 = vrot.slane %v3323_v1, 2 }
 0x603   :  { %15171 = vst [vmem:[#allocation45_spill] sm:$0xff] %v12056_v14  ;;  %v3309_v14 = vmax.f32 %v11815_v40, %v3308_v26  ;;  %v12088_v2 = vsel %vm2956_vm4, %v15180_v11, -inf  ;;  %v15184_v26 = vrot.slane %v11598_v30, 4  ;;  %v3337_v62 = vmax.f32 %v11831_v25, %v3336_v5 }
 0x604   :  { %15173 = vst [vmem:[#allocation46_spill] sm:$0xff] %v12063_v27  ;;  %v12068_v21 = vsel %vm2956_vm4, %v15174_v42, -inf  ;;  %v12083_v42 = vsel %vm2956_vm4, %v15178_v7, -inf  ;;  %v15186_v7 = vrot.slane %v11598_v30, 6  ;;  %v3317_v6 = vrot.slane %v3316_v50, 2 }
 0x605   :  { %15175 = vst [vmem:[#allocation47_spill] sm:$0xff] %v12068_v21  ;;  %v12101_v15 = vsel %vm2956_vm4, %v15184_v26, -inf  ;;  %v3310_v22 = vrot.slane %v3309_v14, 2  ;;  %v15190_v26 = vrot.slane %v11602_v56, 4  ;;  %v15193_v5 = vrot.slane %v11602_v56, 6 }
 0x606   :  { %15177 = vst [vmem:[#allocation48_spill] sm:$0xff] %v12076_v31  ;;  %v15182_v31 = vrot.slane %v11598_v30, 2  ;;  %v12106_v11 = vsel %vm2956_vm4, %v15186_v7, -inf  ;;  %v3297_v30 = vmax.f32 %v3295_v18, %v3296_v54  ;;  %v3344_v7 = vmax.f32 %v11836_v48, %v3343_v41 }
 0x607   :  { %15179 = vst [vmem:[#allocation49_spill] sm:$0xff] %v12083_v42  ;;  %v12127_v43 = vsel %vm2956_vm4, %v15193_v5, -inf  ;;  %v3338_v21 = vrot.slane %v3337_v62, 2  ;;  %v3371_v18 = vrot.slane %v11852_v45, 4  ;;  %v3311_v41 = vmax.f32 %v3309_v14, %v3310_v22 }
 0x608   :  { %15181 = vst [vmem:[#allocation50_spill] sm:$0xff] %v12088_v2  ;;  %v12095_v40 = vsel %vm2956_vm4, %v15182_v31, -inf  ;;  %v3303_v2 = vrot.slane %v3302_v33, 2  ;;  %v15188_v31 = vrot.slane %v11602_v56, 2  ;;  %v3318_v48 = vmax.f32 %v3316_v50, %v3317_v6 }
 0x609   :  { %15183 = vst [vmem:[#allocation51_spill] sm:$0xff] %v12095_v40  ;;  %v3358_v54 = vmax.f32 %v11842_v17, %v3357_v59  ;;  %v3298_v56 = vrot.slane %v3297_v30, 1  ;;  %v12139_v14 = vmax.f32 %v3337_v62, %v3338_v21  ;;  %v3372_v59 = vmax.f32 %v11852_v45, %v3371_v18 }
 0x60a   :  { %15185 = vst [vmem:[#allocation52_spill] sm:$0xff] %v12101_v15  ;;  %v12113_v40 = vsel %vm2956_vm4, %v15188_v31, -inf  ;;  %v12118_v15 = vsel %vm2956_vm4, %v15190_v26, -inf  ;;  %v3325_v31 = vmax.f32 %v3323_v1, %v3324_v55  ;;  %v3304_v42 = vmax.f32 %v3302_v33, %v3303_v2 }
 0x60b   :  { %15187 = vst [vmem:[#allocation53_spill] sm:$0xff] %v12106_v11  ;;  %v15192_v11 = vrot.slane %v11738_v49, 4  ;;  %v3364_v26 = vrot.slane %v11847_v16, 4  ;;  %v15195_v1 = vrot.slane %v11742_v28, 4  ;;  %v3312_v50 = vrot.slane %v3311_v41, 1 }
 0x60c   :  { %15189 = vst [vmem:[#allocation54_spill] sm:$0xff] %v12113_v40  ;;  %v3331_v40 = vrot.slane %v3330_v53, 2  ;;  %v3305_v27 = vrot.slane %v3304_v42, 1  ;;  %v3319_v22 = vrot.slane %v3318_v48, 1  ;;  %v3359_v6 = vrot.slane %v3358_v54, 2 }
 0x60d   :  { %15191 = vst [vmem:[#allocation55_spill] sm:$0xff] %v12118_v15  ;;  %v3351_v25 = vmax.f32 %v11738_v49, %v15192_v11  ;;  %v3385_v49 = vrot.slane %v11858_v0, 4  ;;  %v3345_v11 = vrot.slane %v3344_v7, 2  ;;  %v3379_v55 = vmax.f32 %v11742_v28, %v15195_v1 }
 0x60e   :  { %15194 = vst [vmem:[#allocation56_spill] sm:$0xff] %v12127_v43  ;;  %v3326_v43 = vrot.slane %v3325_v31, 1  ;;  %v3332_v33 = vmax.f32 %v3330_v53, %v3331_v40  ;;  %v3365_v2 = vmax.f32 %v11847_v16, %v3364_v26  ;;  %v3392_v15 = vrot.slane %v11863_v47, 4 }
 0x60f   :  { %v3352_v5 = vrot.slane %v3351_v25, 2  ;;  %15196 = vst [vmem:[#allocation57_spill] sm:$0xff] %v12139_v14  ;;  %v3386_v17 = vmax.f32 %v11858_v0, %v3385_v49  ;;  %v12144_v52 = vmax.f32 %v3297_v30, %v3298_v56  ;;  %v12146_v28 = vmax.f32 %v3344_v7, %v3345_v11 }
 0x610   :  { %v3380_v16 = vrot.slane %v3379_v55, 2  ;;  %v12148_v53 = vmax.f32 %v3325_v31, %v3326_v43  ;;  %v3333_v26 = vrot.slane %v3332_v33, 1  ;;  %v3366_v21 = vrot.slane %v3365_v2, 2 }
 0x611   :  { %15197 = vst [vmem:[#allocation58_spill] sm:$0xff] %v12146_v28  ;;  %v3353_v40 = vmax.f32 %v3351_v25, %v3352_v5  ;;  %v3393_v62 = vmax.f32 %v11863_v47, %v3392_v15  ;;  %v12151_v45 = vmax.f32 %v3304_v42, %v3305_v27  ;;  %v3373_v18 = vrot.slane %v3372_v59, 2 }
 0x612   :  { %v3387_v49 = vrot.slane %v3386_v17, 2  ;;  %v12154_v1 = vmax.f32 %v3311_v41, %v3312_v50  ;;  %v12156_v30 = vmax.f32 %v3318_v48, %v3319_v22  ;;  %v3360_v7 = vmax.f32 %v3358_v54, %v3359_v6 }
 0x613   :  { %v3400_v25 = vmax.f32 %v11868_v58, %v3399_v9  ;;  %v3354_v56 = vrot.slane %v3353_v40, 1  ;;  %v3381_v43 = vmax.f32 %v3379_v55, %v3380_v16  ;;  %v15198_v31 = vrot.slane %v11746_v38, 4 }
 0x614   :  { %v3413_v47 = vrot.slane %v11874_v23, 4  ;;  %v3367_v27 = vmax.f32 %v3365_v2, %v3366_v21  ;;  %v3394_v42 = vrot.slane %v3393_v62, 2  ;;  %v3420_v15 = vrot.slane %v11879_v32, 4 }
 0x615   :  { %v3407_v11 = vmax.f32 %v11746_v38, %v15198_v31  ;;  %v3427_v41 = vrot.slane %v11884_v3, 4  ;;  %v12165_v5 = vmax.f32 %v3332_v33, %v3333_v26  ;;  %v3374_v48 = vmax.f32 %v3372_v59, %v3373_v18 }
 0x616   :  { %v3388_v54 = vmax.f32 %v3386_v17, %v3387_v49  ;;  %v15200_v9 = vrot.slane %v11750_v24, 4  ;;  %v3361_v55 = vrot.slane %v3360_v7, 1  ;;  %v3401_v50 = vrot.slane %v3400_v25, 2 }
 0x617   :  { %15199 = vst [vmem:[#allocation59_spill] sm:$0xff] %v12165_v5  ;;  %v3414_v38 = vmax.f32 %v11874_v23, %v3413_v47  ;;  %v3441_v22 = vrot.slane %v11890_v61, 4  ;;  %v3382_v2 = vrot.slane %v3381_v43, 1  ;;  %v3408_v6 = vrot.slane %v3407_v11, 2 }
 0x618   :  { %v3435_v58 = vmax.f32 %v11750_v24, %v15200_v9  ;;  %v3421_v16 = vmax.f32 %v11879_v32, %v3420_v15  ;;  %v3448_v21 = vrot.slane %v11895_v10, 4  ;;  %v12174_v33 = vmax.f32 %v3353_v40, %v3354_v56 }
 0x619   :  { %v3368_v59 = vrot.slane %v3367_v27, 1  ;;  %v12176_v17 = vmax.f32 %v3393_v62, %v3394_v42  ;;  %v3428_v26 = vmax.f32 %v11884_v3, %v3427_v41  ;;  %v3375_v24 = vrot.slane %v3374_v48, 1 }
 0x61a   :  { %v3389_v18 = vrot.slane %v3388_v54, 1  ;;  %v3436_v49 = vrot.slane %v3435_v58, 2  ;;  %v3455_v23 = vrot.slane %v11900_v36, 4  ;;  %v12180_v31 = vmax.f32 %v3360_v7, %v3361_v55 }
 0x61b   :  { %15201 = vst [vmem:[#allocation60_spill] sm:$0xff] %v12176_v17  ;;  %v12182_v47 = vmax.f32 %v3400_v25, %v3401_v50  ;;  %v3415_v9 = vrot.slane %v3414_v38, 2  ;;  %v3442_v32 = vmax.f32 %v11890_v61, %v3441_v22  ;;  %v12185_v15 = vmax.f32 %v3381_v43, %v3382_v2 }
 0x61c   :  { %v3409_v40 = vmax.f32 %v3407_v11, %v3408_v6  ;;  %v3422_v56 = vrot.slane %v3421_v16, 2  ;;  %v3449_v62 = vmax.f32 %v11895_v10, %v3448_v21  ;;  %v12188_v42 = vmax.f32 %v3367_v27, %v3368_v59 }
 0x61d   :  { %15202 = vst [vmem:[#allocation61_spill] sm:$0xff] %v12182_v47  ;;  %v3429_v41 = vrot.slane %v3428_v26, 2  ;;  %v15203_v0 = vrot.slane %v11754_v35, 4  ;;  %v12194_v25 = vmax.f32 %v3374_v48, %v3375_v24  ;;  %v12196_v55 = vmax.f32 %v3388_v54, %v3389_v18 }
 0x61e   :  { %v3437_v61 = vmax.f32 %v3435_v58, %v3436_v49  ;;  %v3456_v43 = vmax.f32 %v11900_v36, %v3455_v23  ;;  %v3416_v11 = vmax.f32 %v3414_v38, %v3415_v9  ;;  %v3443_v50 = vrot.slane %v3442_v32, 2 }
 0x61f   :  { %v3463_v7 = vmax.f32 %v11754_v35, %v15203_v0  ;;  %15204 = vst [vmem:[#allocation62_spill] sm:$0xff] %v12196_v55  ;;  %v3469_v10 = vrot.slane %v11906_v63, 4  ;;  %v3476_v27 = vrot.slane %v11911_v19, 4  ;;  %v3410_v22 = vrot.slane %v3409_v40, 1 }
 0x620   :  { %v3423_v2 = vmax.f32 %v3421_v16, %v3422_v56  ;;  %v3450_v6 = vrot.slane %v3449_v62, 2  ;;  %v3483_v21 = vrot.slane %v11916_v44, 4  ;;  %v3430_v59 = vmax.f32 %v3428_v26, %v3429_v41 }
 0x621   :  { %v3464_v35 = vrot.slane %v3463_v7, 2  ;;  %v15205_v0 = vrot.slane %v11758_v57, 4  ;;  %v3497_v54 = vrot.slane %v11922_v20, 4  ;;  %v3438_v36 = vrot.slane %v3437_v61, 1 }
 0x622   :  { %v3457_v58 = vrot.slane %v3456_v43, 2  ;;  %v3470_v38 = vmax.f32 %v11906_v63, %v3469_v10  ;;  %v3477_v24 = vmax.f32 %v11911_v19, %v3476_v27  ;;  %v3417_v18 = vrot.slane %v3416_v11, 1 }
 0x623   :  { %v3491_v48 = vmax.f32 %v11758_v57, %v15205_v0  ;;  %v3444_v49 = vmax.f32 %v3442_v32, %v3443_v50  ;;  %v3484_v16 = vmax.f32 %v11916_v44, %v3483_v21  ;;  %v3504_v23 = vrot.slane %v11927_v46, 4 }
 0x624   :  { %v12210_v26 = vmax.f32 %v3409_v40, %v3410_v22  ;;  %v3424_v9 = vrot.slane %v3423_v2, 1  ;;  %v12212_v56 = vmax.f32 %v3449_v62, %v3450_v6  ;;  %v3498_v57 = vmax.f32 %v11922_v20, %v3497_v54 }
 0x625   :  { %v3431_v41 = vrot.slane %v3430_v59, 1  ;;  %v3465_v0 = vmax.f32 %v3463_v7, %v3464_v35  ;;  %v3492_v3 = vrot.slane %v3491_v48, 2  ;;  %v3511_v63 = vrot.slane %v11932_v12, 4 }
 0x626   :  { %15206 = vst [vmem:[#allocation63_spill] sm:$0xff] %v12212_v56  ;;  %v12216_v10 = vmax.f32 %v3437_v61, %v3438_v36  ;;  %v12218_v19 = vmax.f32 %v3456_v43, %v3457_v58  ;;  %v3471_v32 = vrot.slane %v3470_v38, 2  ;;  %v3478_v44 = vrot.slane %v3477_v24, 2  ;;  %v15209_v58 = vld [vmem:[#allocation36_spill] sm:$0xff] }
 0x627   :  { %v12220_v50 = vmax.f32 %v3416_v11, %v3417_v18  ;;  %v3445_v40 = vrot.slane %v3444_v49, 1  ;;  %v3485_v27 = vrot.slane %v3484_v16, 2  ;;  %v3505_v62 = vmax.f32 %v11927_v46, %v3504_v23  ;;  %v15210_v46 = vld [vmem:[#allocation35_spill] sm:$0xff] }
 0x628   :  { %15207 = vst [vmem:[#allocation64_spill] sm:$0xff] %v12218_v19  ;;  %v12223_v22 = vmax.f32 %v3423_v2, %v3424_v9  ;;  %v3499_v7 = vrot.slane %v3498_v57, 2  ;;  %v15208_v6 = vrot.slane %v11763_v39, 4  ;;  %v12229_v21 = vmax.f32 %v3430_v59, %v3431_v41  ;;  %v15212_v41 = vld [vmem:[#allocation25_spill] sm:$0xff] }
 0x629   :  { %v3466_v43 = vrot.slane %v3465_v0, 1  ;;  %v3493_v35 = vmax.f32 %v3491_v48, %v3492_v3  ;;  %v3512_v11 = vmax.f32 %v11932_v12, %v3511_v63  ;;  %v3472_v54 = vmax.f32 %v3470_v38, %v3471_v32 }
 0x62a   :  { %v3519_v61 = vmax.f32 %v11763_v39, %v15208_v6  ;;  %v3479_v36 = vmax.f32 %v3477_v24, %v3478_v44  ;;  %v3525_v18 = vrot.slane %v15209_v58, 4  ;;  %v3532_v2 = vrot.slane %v15210_v46, 4 }
 0x62b   :  { %v3486_v23 = vmax.f32 %v3484_v16, %v3485_v27  ;;  %v3506_v9 = vrot.slane %v3505_v62, 2  ;;  %v3539_v20 = vrot.slane %v11948_v37, 4  ;;  %v3553_v19 = vrot.slane %v11954_v13, 4  ;;  %v15214_v27 = vld [vmem:[#allocation37_spill] sm:$0xff] }
 0x62c   :  { %v12236_v56 = vmax.f32 %v3444_v49, %v3445_v40  ;;  %v3500_v39 = vmax.f32 %v3498_v57, %v3499_v7  ;;  %v3520_v59 = vrot.slane %v3519_v61, 2  ;;  %v15213_v3 = vrot.slane %v15212_v41, 4 }
 0x62d   :  { %v12241_v48 = vmax.f32 %v3465_v0, %v3466_v43  ;;  %v3494_v38 = vrot.slane %v3493_v35, 1  ;;  %v3513_v24 = vrot.slane %v3512_v11, 2  ;;  %v3526_v63 = vmax.f32 %v15209_v58, %v3525_v18 }
 0x62e   :  { %15211 = vst [vmem:[#allocation36_spill] sm:$0xff] %v12236_v56  ;;  %v3547_v12 = vmax.f32 %v15212_v41, %v15213_v3  ;;  %v3473_v16 = vrot.slane %v3472_v54, 1  ;;  %v3480_v32 = vrot.slane %v3479_v36, 1  ;;  %v3533_v44 = vmax.f32 %v15210_v46, %v3532_v2 }
 0x62f   :  { %v3560_v6 = vrot.slane %v15214_v27, 4  ;;  %v3487_v49 = vrot.slane %v3486_v23, 1  ;;  %v12246_v40 = vmax.f32 %v3505_v62, %v3506_v9  ;;  %v3540_v57 = vmax.f32 %v11948_v37, %v3539_v20 }
 0x630   :  { %v3554_v7 = vmax.f32 %v11954_v13, %v3553_v19  ;;  %v3501_v41 = vrot.slane %v3500_v39, 1  ;;  %v3521_v0 = vmax.f32 %v3519_v61, %v3520_v59  ;;  %v3548_v43 = vrot.slane %v3547_v12, 2 }
 0x631   :  { %15215 = vst [vmem:[#allocation35_spill] sm:$0xff] %v12246_v40  ;;  %v15216_v3 = vrot.slane %v11771_v34, 4  ;;  %v12253_v18 = vmax.f32 %v3493_v35, %v3494_v38  ;;  %v12255_v28 = vmax.f32 %v3512_v11, %v3513_v24  ;;  %v3527_v46 = vrot.slane %v3526_v63, 2 }
 0x632   :  { %v3567_v2 = vrot.slane %v11964_v60, 4  ;;  %v12258_v62 = vmax.f32 %v3472_v54, %v3473_v16  ;;  %v12260_v9 = vmax.f32 %v3479_v36, %v3480_v32  ;;  %v3534_v37 = vrot.slane %v3533_v44, 2  ;;  %v15222_v16 = vld [vmem:[#allocation10_spill] sm:$0xff]  ;;  %v15223_v32 = vld [vmem:[#allocation20_spill] sm:$0xff] }
 0x633   :  { %v3575_v58 = vmax.f32 %v11771_v34, %v15216_v3  ;;  %15217 = vst [vmem:[#allocation25_spill] sm:$0xff] %v12253_v18  ;;  %v3561_v13 = vmax.f32 %v15214_v27, %v3560_v6  ;;  %v12263_v19 = vmax.f32 %v3486_v23, %v3487_v49  ;;  %v3541_v61 = vrot.slane %v3540_v57, 2 }
 0x634   :  { %15218 = vst [vmem:[#allocation37_spill] sm:$0xff] %v12255_v28  ;;  %v3555_v34 = vrot.slane %v3554_v7, 2  ;;  %v12266_v35 = vmax.f32 %v3500_v39, %v3501_v41  ;;  %v3522_v11 = vrot.slane %v3521_v0, 1  ;;  %v3549_v59 = vmax.f32 %v3547_v12, %v3548_v43  ;;  %v15224_v39 = vld [vmem:[#allocation17_spill] sm:$0xff] }
 0x635   :  { %15219 = vst [vmem:[#allocation65_spill] sm:$0xff] %v12260_v9  ;;  %v3576_v38 = vrot.slane %v3575_v58, 2  ;;  %v3528_v24 = vmax.f32 %v3526_v63, %v3527_v46  ;;  %v3568_v54 = vmax.f32 %v11964_v60, %v3567_v2  ;;  %v3581_v36 = vrot.slane %v15222_v16, 4  ;;  %v15225_v46 = vld [vmem:[#allocation31_spill] sm:$0xff]  ;;  %v15287_v9 = vld [vmem:[#allocation56_spill] sm:$0xff] }
 0x636   :  { %15220 = vst [vmem:[#allocation66_spill] sm:$0xff] %v12263_v19  ;;  %v3588_v3 = vrot.slane %v15223_v32, 4  ;;  %v3535_v14 = vmax.f32 %v3533_v44, %v3534_v37  ;;  %v3562_v27 = vrot.slane %v3561_v13, 2  ;;  %v3595_v23 = vrot.slane %v11980_v29, 4 }
 0x637   :  { %15221 = vst [vmem:[#allocation67_spill] sm:$0xff] %v12266_v35  ;;  %v3609_v6 = vrot.slane %v11986_v4, 4  ;;  %v3542_v49 = vmax.f32 %v3540_v57, %v3541_v61  ;;  %v3556_v20 = vmax.f32 %v3554_v7, %v3555_v34  ;;  %v3616_v41 = vrot.slane %v15224_v39, 4  ;;  %v15255_v35 = vld [vmem:[#allocation42_spill] sm:$0xff] }
 0x638   :  { %v3623_v12 = vrot.slane %v11996_v8, 4  ;;  %v3550_v43 = vrot.slane %v3549_v59, 1  ;;  %v3577_v63 = vmax.f32 %v3575_v58, %v3576_v38  ;;  %v3582_v60 = vmax.f32 %v15222_v16, %v3581_v36 }
 0x639   :  { %v15226_v2 = vrot.slane %v15225_v46, 4  ;;  %v3529_v44 = vrot.slane %v3528_v24, 1  ;;  %v3569_v37 = vrot.slane %v3568_v54, 2  ;;  %v3589_v17 = vmax.f32 %v15223_v32, %v3588_v3 }
 0x63a   :  { %v3596_v28 = vmax.f32 %v11980_v29, %v3595_v23  ;;  %v12281_v57 = vmax.f32 %v3521_v0, %v3522_v11  ;;  %v3536_v7 = vrot.slane %v3535_v14, 1  ;;  %v3610_v61 = vmax.f32 %v11986_v4, %v3609_v6 }
 0x63b   :  { %v3603_v47 = vmax.f32 %v15225_v46, %v15226_v2  ;;  %v3617_v34 = vmax.f32 %v15224_v39, %v3616_v41  ;;  %v3543_v58 = vrot.slane %v3542_v49, 1  ;;  %v3557_v38 = vrot.slane %v3556_v20, 1 }
 0x63c   :  { %15227 = vst [vmem:[#allocation10_spill] sm:$0xff] %v12281_v57  ;;  %v12285_v16 = vmax.f32 %v3561_v13, %v3562_v27  ;;  %v3624_v36 = vmax.f32 %v11996_v8, %v3623_v12  ;;  %v12288_v46 = vmax.f32 %v3549_v59, %v3550_v43  ;;  %v3578_v2 = vrot.slane %v3577_v63, 1  ;;  %v15237_v43 = vld [vmem:[#allocation26_spill] sm:$0xff] }
 0x63d   :  { %v3583_v40 = vrot.slane %v3582_v60, 2  ;;  %v3604_v32 = vrot.slane %v3603_v47, 2  ;;  %v12290_v3 = vmax.f32 %v3528_v24, %v3529_v44  ;;  %v12292_v29 = vmax.f32 %v3568_v54, %v3569_v37 }
 0x63e   :  { %15228 = vst [vmem:[#allocation20_spill] sm:$0xff] %v12285_v16  ;;  %v3590_v0 = vrot.slane %v3589_v17, 2  ;;  %v3597_v11 = vrot.slane %v3596_v28, 2  ;;  %v12294_v4 = vmax.f32 %v3535_v14, %v3536_v7  ;;  %v3611_v23 = vrot.slane %v3610_v61, 2  ;;  %v15238_v7 = vld [vmem:[#allocation23_spill] sm:$0xff] }
 0x63f   :  { %15229 = vst [vmem:[#allocation17_spill] sm:$0xff] %v12288_v46  ;;  %v3618_v6 = vrot.slane %v3617_v34, 2  ;;  %v15233_v13 = vrot.slane %v11779_v51, 4  ;;  %v12299_v8 = vmax.f32 %v3542_v49, %v3543_v58  ;;  %v12301_v59 = vmax.f32 %v3556_v20, %v3557_v38  ;;  %v15239_v46 = vld [vmem:[#allocation11_spill] sm:$0xff] }
 0x640   :  { %15230 = vst [vmem:[#allocation31_spill] sm:$0xff] %v12290_v3  ;;  %v3625_v24 = vrot.slane %v3624_v36, 2  ;;  %v12304_v41 = vmax.f32 %v3577_v63, %v3578_v2  ;;  %v3584_v54 = vmax.f32 %v3582_v60, %v3583_v40  ;;  %v3605_v12 = vmax.f32 %v3603_v47, %v3604_v32  ;;  %v15240_v20 = vld [vmem:[#allocation39_spill] sm:$0xff]  ;;  %v15241_v63 = vld [vmem:[#allocation29_spill] sm:$0xff] }
 0x641   :  { %15231 = vst [vmem:[#allocation68_spill] sm:$0xff] %v12292_v29  ;;  %v3631_v27 = vmax.f32 %v11779_v51, %v15233_v13  ;;  %v3637_v14 = vrot.slane %v15237_v43, 4  ;;  %v3591_v44 = vmax.f32 %v3589_v17, %v3590_v0  ;;  %v3598_v37 = vmax.f32 %v3596_v28, %v3597_v11  ;;  %v15243_v40 = vld [vmem:[#allocation41_spill] sm:$0xff]  ;;  %v15244_v11 = vld [vmem:[#allocation43_spill] sm:$0xff] }
 0x642   :  { %15232 = vst [vmem:[#allocation69_spill] sm:$0xff] %v12294_v4  ;;  %v3644_v29 = vrot.slane %v15238_v7, 4  ;;  %v3651_v4 = vrot.slane %v15239_v46, 4  ;;  %v3612_v51 = vmax.f32 %v3610_v61, %v3611_v23  ;;  %v3619_v49 = vmax.f32 %v3617_v34, %v3618_v6  ;;  %v15245_v23 = vld [vmem:[#allocation33_spill] sm:$0xff] }
 0x643   :  { %15234 = vst [vmem:[#allocation70_spill] sm:$0xff] %v12299_v8  ;;  %v3632_v58 = vrot.slane %v3631_v27, 2  ;;  %v3665_v38 = vrot.slane %v15240_v20, 4  ;;  %v3626_v13 = vmax.f32 %v3624_v36, %v3625_v24  ;;  %v3638_v39 = vmax.f32 %v15237_v43, %v3637_v14 }
 0x644   :  { %15235 = vst [vmem:[#allocation71_spill] sm:$0xff] %v12301_v59  ;;  %v15242_v2 = vrot.slane %v15241_v63, 4  ;;  %v3672_v60 = vrot.slane %v15243_v40, 4  ;;  %v3585_v17 = vrot.slane %v3584_v54, 1  ;;  %v3606_v28 = vrot.slane %v3605_v12, 1 }
 0x645   :  { %15236 = vst [vmem:[#allocation72_spill] sm:$0xff] %v12304_v41  ;;  %v3645_v32 = vmax.f32 %v15238_v7, %v3644_v29  ;;  %v3652_v0 = vmax.f32 %v15239_v46, %v3651_v4  ;;  %v3666_v61 = vmax.f32 %v15240_v20, %v3665_v38  ;;  %v3679_v36 = vrot.slane %v15244_v11, 4 }
 0x646   :  { %v3659_v47 = vmax.f32 %v15241_v63, %v15242_v2  ;;  %v3673_v34 = vmax.f32 %v15243_v40, %v3672_v60  ;;  %v15246_v6 = vrot.slane %v15245_v23, 4  ;;  %v3592_v43 = vrot.slane %v3591_v44, 1 }
 0x647   :  { %v3599_v14 = vrot.slane %v3598_v37, 1  ;;  %v3613_v63 = vrot.slane %v3612_v51, 1  ;;  %v3633_v2 = vmax.f32 %v3631_v27, %v3632_v58  ;;  %v3620_v16 = vrot.slane %v3619_v49, 1 }
 0x648   :  { %v3687_v24 = vmax.f32 %v15245_v23, %v15246_v6  ;;  %v3627_v41 = vrot.slane %v3626_v13, 1  ;;  %v3639_v59 = vrot.slane %v3638_v39, 2  ;;  %v3660_v29 = vrot.slane %v3659_v47, 2 }
 0x649   :  { %v12323_v7 = vmax.f32 %v3584_v54, %v3585_v17  ;;  %v12325_v46 = vmax.f32 %v3605_v12, %v3606_v28  ;;  %v3646_v4 = vrot.slane %v3645_v32, 2  ;;  %v3653_v20 = vrot.slane %v3652_v0, 2 }
 0x64a   :  { %v3667_v38 = vrot.slane %v3666_v61, 2  ;;  %v3674_v40 = vrot.slane %v3673_v34, 2  ;;  %v3680_v60 = vmax.f32 %v15244_v11, %v3679_v36  ;;  %v3688_v8 = vrot.slane %v3687_v24, 2 }
 0x64b   :  { %15247 = vst [vmem:[#allocation26_spill] sm:$0xff] %v12323_v7  ;;  %v12328_v23 = vmax.f32 %v3591_v44, %v3592_v43  ;;  %v12330_v6 = vmax.f32 %v3598_v37, %v3599_v14  ;;  %v12332_v27 = vmax.f32 %v3612_v51, %v3613_v63  ;;  %v3634_v58 = vrot.slane %v3633_v2, 1  ;;  %v15254_v7 = vld [vmem:[#allocation40_spill] sm:$0xff] }
 0x64c   :  { %15248 = vst [vmem:[#allocation23_spill] sm:$0xff] %v12325_v46  ;;  %v12334_v3 = vmax.f32 %v3619_v49, %v3620_v16  ;;  %v12336_v54 = vmax.f32 %v3626_v13, %v3627_v41  ;;  %v3640_v12 = vmax.f32 %v3638_v39, %v3639_v59  ;;  %v3661_v17 = vmax.f32 %v3659_v47, %v3660_v29  ;;  %v15257_v51 = vld [vmem:[#allocation44_spill] sm:$0xff]  ;;  %v15258_v16 = vld [vmem:[#allocation18_spill] sm:$0xff]  ;;  %v15260_v59 = vld [vmem:[#allocation45_spill] sm:$0xff] }
 0x64d   :  { %15249 = vst [vmem:[#allocation11_spill] sm:$0xff] %v12328_v23  ;;  %v3647_v28 = vmax.f32 %v3645_v32, %v3646_v4  ;;  %v3654_v46 = vmax.f32 %v3652_v0, %v3653_v20  ;;  %v3693_v57 = vrot.slane %v15254_v7, 4  ;;  %v3700_v11 = vrot.slane %v15255_v35, 4  ;;  %v15261_v0 = vld [vmem:[#allocation46_spill] sm:$0xff] }
 0x64e   :  { %15250 = vst [vmem:[#allocation39_spill] sm:$0xff] %v12330_v6  ;;  %v3668_v36 = vmax.f32 %v3666_v61, %v3667_v38  ;;  %v3675_v44 = vmax.f32 %v3673_v34, %v3674_v40  ;;  %v3681_v43 = vrot.slane %v3680_v60, 2  ;;  %v3689_v37 = vmax.f32 %v3687_v24, %v3688_v8  ;;  %v15262_v24 = vld [vmem:[#allocation47_spill] sm:$0xff] }
 0x64f   :  { %15251 = vst [vmem:[#allocation29_spill] sm:$0xff] %v12332_v27  ;;  %v12340_v14 = vmax.f32 %v3633_v2, %v3634_v58  ;;  %v3707_v63 = vrot.slane %v15257_v51, 4  ;;  %v15259_v49 = vrot.slane %v15258_v16, 4  ;;  %v3721_v39 = vrot.slane %v15260_v59, 4 }
 0x650   :  { %15252 = vst [vmem:[#allocation41_spill] sm:$0xff] %v12334_v3  ;;  %v3641_v13 = vrot.slane %v3640_v12, 1  ;;  %v3694_v47 = vmax.f32 %v15254_v7, %v3693_v57  ;;  %v3701_v32 = vmax.f32 %v15255_v35, %v3700_v11  ;;  %v3728_v61 = vrot.slane %v15261_v0, 4  ;;  %v15264_v57 = vld [vmem:[#allocation21_spill] sm:$0xff] }
 0x651   :  { %15253 = vst [vmem:[#allocation43_spill] sm:$0xff] %v12336_v54  ;;  %v3715_v41 = vmax.f32 %v15258_v16, %v15259_v49  ;;  %v3648_v34 = vrot.slane %v3647_v28, 1  ;;  %v3655_v29 = vrot.slane %v3654_v46, 1  ;;  %v3662_v8 = vrot.slane %v3661_v17, 1 }
 0x652   :  { %15256 = vst [vmem:[#allocation33_spill] sm:$0xff] %v12340_v14  ;;  %v3735_v2 = vrot.slane %v15262_v24, 4  ;;  %v3669_v4 = vrot.slane %v3668_v36, 1  ;;  %v3676_v20 = vrot.slane %v3675_v44, 1  ;;  %v12351_v38 = vmax.f32 %v3680_v60, %v3681_v43 }
 0x653   :  { %v3690_v40 = vrot.slane %v3689_v37, 1  ;;  %v3708_v58 = vmax.f32 %v15257_v51, %v3707_v63  ;;  %v3716_v16 = vrot.slane %v3715_v41, 2  ;;  %v3722_v49 = vmax.f32 %v15260_v59, %v3721_v39  ;;  %v15279_v39 = vld [vmem:[#allocation52_spill] sm:$0xff] }
 0x654   :  { %15263 = vst [vmem:[#allocation40_spill] sm:$0xff] %v12351_v38  ;;  %v15265_v7 = vrot.slane %v15264_v57, 4  ;;  %v12358_v11 = vmax.f32 %v3640_v12, %v3641_v13  ;;  %v3695_v14 = vrot.slane %v3694_v47, 2  ;;  %v3702_v54 = vrot.slane %v3701_v32, 2 }
 0x655   :  { %v3729_v3 = vmax.f32 %v15261_v0, %v3728_v61  ;;  %v12361_v27 = vmax.f32 %v3647_v28, %v3648_v34  ;;  %v12363_v60 = vmax.f32 %v3654_v46, %v3655_v29  ;;  %v12365_v43 = vmax.f32 %v3661_v17, %v3662_v8  ;;  %v8684_v46 = vld [vmem:[%s14554_s4 + $0x38] sm:$0xff]  ;;  %v15273_v34 = vld [vmem:[#allocation48_spill] sm:$0xff] }
 0x656   :  { %v3743_v35 = vmax.f32 %v15264_v57, %v15265_v7  ;;  %15266 = vst [vmem:[#allocation42_spill] sm:$0xff] %v12358_v11  ;;  %v3736_v51 = vmax.f32 %v15262_v24, %v3735_v2  ;;  %v12368_v63 = vmax.f32 %v3668_v36, %v3669_v4  ;;  %v12370_v59 = vmax.f32 %v3675_v44, %v3676_v20  ;;  %v15274_v44 = vld [vmem:[#allocation49_spill] sm:$0xff]  ;;  %v15275_v24 = vld [vmem:[#allocation50_spill] sm:$0xff] }
 0x657   :  { %15267 = vst [vmem:[#allocation44_spill] sm:$0xff] %v12361_v27  ;;  %v12373_v12 = vmax.f32 %v3689_v37, %v3690_v40  ;;  %v3709_v13 = vrot.slane %v3708_v58, 2  ;;  %v3717_v57 = vmax.f32 %v3715_v41, %v3716_v16  ;;  %v3723_v7 = vrot.slane %v3722_v49, 2  ;;  %v15276_v37 = vld [vmem:[#allocation32_spill] sm:$0xff]  ;;  %5484 = vmatpush.bf16.msrb.mxu1 %v8684_v46  ;;  %v15278_v40 = vld [vmem:[#allocation51_spill] sm:$0xff] }
 0x658   :  { %15268 = vst [vmem:[#allocation18_spill] sm:$0xff] %v12363_v60  ;;  %v3744_v0 = vrot.slane %v3743_v35, 2  ;;  %v3696_v17 = vmax.f32 %v3694_v47, %v3695_v14  ;;  %v3703_v28 = vmax.f32 %v3701_v32, %v3702_v54  ;;  %v3730_v61 = vrot.slane %v3729_v3, 2  ;;  %v15280_v54 = vld [vmem:[#allocation53_spill] sm:$0xff] }
 0x659   :  { %15269 = vst [vmem:[#allocation45_spill] sm:$0xff] %v12365_v43  ;;  %v3749_v36 = vrot.slane %v15273_v34, 4  ;;  %v3737_v29 = vrot.slane %v3736_v51, 2  ;;  %v3756_v8 = vrot.slane %v15274_v44, 4  ;;  %v3763_v2 = vrot.slane %v15275_v24, 4 }
 0x65a   :  { %15270 = vst [vmem:[#allocation46_spill] sm:$0xff] %v12368_v63  ;;  %v15277_v4 = vrot.slane %v15276_v37, 4  ;;  %v3777_v16 = vrot.slane %v15278_v40, 4  ;;  %v3784_v14 = vrot.slane %v15279_v39, 4  ;;  %v3791_v47 = vrot.slane %v15280_v54, 4 }
 0x65b   :  { %15271 = vst [vmem:[#allocation47_spill] sm:$0xff] %v12370_v59  ;;  %v3750_v20 = vmax.f32 %v15273_v34, %v3749_v36  ;;  %v3710_v32 = vmax.f32 %v3708_v58, %v3709_v13  ;;  %v3757_v59 = vmax.f32 %v15274_v44, %v3756_v8  ;;  %v3764_v38 = vmax.f32 %v15275_v24, %v3763_v2 }
 0x65c   :  { %15272 = vst [vmem:[#allocation21_spill] sm:$0xff] %v12373_v12  ;;  %v3771_v41 = vmax.f32 %v15276_v37, %v15277_v4  ;;  %v15281_v12 = vld [vmem:[#allocation30_spill] sm:$0xff]  ;;  %v3718_v60 = vrot.slane %v3717_v57, 1  ;;  %v3724_v37 = vmax.f32 %v3722_v49, %v3723_v7  ;;  %v3778_v46 = vmax.f32 %v15278_v40, %v3777_v16 }
 0x65d   :  { %v15282_v63 = vrot.slane %v15281_v12, 4  ;;  %v3785_v34 = vmax.f32 %v15279_v39, %v3784_v14  ;;  %v3745_v36 = vmax.f32 %v3743_v35, %v3744_v0  ;;  %v3751_v4 = vrot.slane %v3750_v20, 2 }
 0x65e   :  { %v3772_v27 = vrot.slane %v3771_v41, 2  ;;  %v3792_v11 = vmax.f32 %v15280_v54, %v3791_v47  ;;  %v3697_v58 = vrot.slane %v3696_v17, 1  ;;  %v3704_v13 = vrot.slane %v3703_v28, 1 }
 0x65f   :  { %v3799_v43 = vmax.f32 %v15281_v12, %v15282_v63  ;;  %v3758_v44 = vrot.slane %v3757_v59, 2  ;;  %v3765_v8 = vrot.slane %v3764_v38, 2  ;;  %v3731_v24 = vmax.f32 %v3729_v3, %v3730_v61 }
 0x660   :  { %v12396_v2 = vmax.f32 %v3736_v51, %v3737_v29  ;;  %v3779_v6 = vrot.slane %v3778_v46, 2  ;;  %v3711_v12 = vrot.slane %v3710_v32, 1  ;;  %v12398_v49 = vmax.f32 %v3717_v57, %v3718_v60  ;;  %v15285_v29 = vld [vmem:[#allocation54_spill] sm:$0xff] }
 0x661   :  { %v3800_v63 = vrot.slane %v3799_v43, 2  ;;  %v3725_v7 = vrot.slane %v3724_v37, 1  ;;  %v3786_v40 = vrot.slane %v3785_v34, 2  ;;  %v3746_v39 = vrot.slane %v3745_v36, 1  ;;  %v15317_v56 = vld [vmem:[#allocation46_spill] sm:$0xff] }
 0x662   :  { %15283 = vst [vmem:[#allocation48_spill] sm:$0xff] %v12396_v2  ;;  %v3752_v35 = vmax.f32 %v3750_v20, %v3751_v4  ;;  %v3773_v0 = vmax.f32 %v3771_v41, %v3772_v27  ;;  %v3793_v16 = vrot.slane %v3792_v11, 2  ;;  %v12400_v14 = vmax.f32 %v3696_v17, %v3697_v58  ;;  %v15316_v2 = vld [vmem:[#allocation45_spill] sm:$0xff] }
 0x663   :  { %15284 = vst [vmem:[#allocation49_spill] sm:$0xff] %v12398_v49  ;;  %v12402_v54 = vmax.f32 %v3703_v28, %v3704_v13  ;;  %v3759_v47 = vmax.f32 %v3757_v59, %v3758_v44  ;;  %v3766_v23 = vmax.f32 %v3764_v38, %v3765_v8  ;;  %v3732_v3 = vrot.slane %v3731_v24, 1  ;;  %v15286_v49 = vld [vmem:[#allocation55_spill] sm:$0xff]  ;;  %v15318_v5 = vld [vmem:[#allocation21_spill] sm:$0xff] }
 0x664   :  { %v3780_v51 = vmax.f32 %v3778_v46, %v3779_v6  ;;  %v3801_v61 = vmax.f32 %v3799_v43, %v3800_v63  ;;  %v3805_v18 = vrot.slane %v15285_v29, 4  ;;  %v3787_v57 = vmax.f32 %v3785_v34, %v3786_v40 }
 0x665   :  { %v3812_v19 = vrot.slane %v15286_v49, 4  ;;  %v3819_v20 = vrot.slane %v15287_v9, 4  ;;  %v3753_v27 = vrot.slane %v3752_v35, 1  ;;  %v3774_v41 = vrot.slane %v3773_v0, 1 }
 0x666   :  { %v12408_v17 = vmax.f32 %v3792_v11, %v3793_v16  ;;  %v3806_v28 = vmax.f32 %v15285_v29, %v3805_v18  ;;  %v3760_v59 = vrot.slane %v3759_v47, 1  ;;  %v3767_v38 = vrot.slane %v3766_v23, 1  ;;  %v15306_v29 = vld [vmem:[#allocation11_spill] sm:$0xff] }
 0x667   :  { %v3813_v6 = vmax.f32 %v15286_v49, %v3812_v19  ;;  %v3820_v43 = vmax.f32 %v15287_v9, %v3819_v20  ;;  %v12413_v46 = vmax.f32 %v3710_v32, %v3711_v12  ;;  %v3781_v4 = vrot.slane %v3780_v51, 1  ;;  %v15293_v32 = vld [vmem:[#allocation65_spill] sm:$0xff] }
 0x668   :  { %15288 = vst [vmem:[#allocation50_spill] sm:$0xff] %v12408_v17  ;;  %v3802_v34 = vrot.slane %v3801_v61, 1  ;;  %v3807_v58 = vrot.slane %v3806_v28, 2  ;;  %v12415_v13 = vmax.f32 %v3724_v37, %v3725_v7  ;;  %v3788_v44 = vrot.slane %v3787_v57, 1 }
 0x669   :  { %v3814_v8 = vrot.slane %v3813_v6, 2  ;;  %v3821_v63 = vrot.slane %v3820_v43, 2  ;;  %v12417_v11 = vmax.f32 %v3731_v24, %v3732_v3  ;;  %v12419_v40 = vmax.f32 %v3745_v36, %v3746_v39 }
 0x66a   :  { %v12421_v18 = vmax.f32 %v3752_v35, %v3753_v27  ;;  %v12423_v16 = vmax.f32 %v3773_v0, %v3774_v41  ;;  %v12425_v19 = vmax.f32 %v3759_v47, %v3760_v59  ;;  %v12427_v9 = vmax.f32 %v3766_v23, %v3767_v38  ;;  %v15294_v47 = vld [vmem:[#allocation66_spill] sm:$0xff] }
 0x66b   :  { %15289 = vst [vmem:[#allocation32_spill] sm:$0xff] %v12417_v11  ;;  %v3808_v12 = vmax.f32 %v3806_v28, %v3807_v58  ;;  %v12430_v37 = vmax.f32 %v3780_v51, %v3781_v4  ;;  %v12432_v49 = vmax.f32 %v3801_v61, %v3802_v34  ;;  %v3815_v7 = vmax.f32 %v3813_v6, %v3814_v8  ;;  %v15295_v4 = vld [vmem:[#allocation25_spill] sm:$0xff]  ;;  %v15297_v6 = vld [vmem:[#allocation67_spill] sm:$0xff]  ;;  %v15298_v38 = vld [vmem:[#allocation10_spill] sm:$0xff] }
 0x66c   :  { %15290 = vst [vmem:[#allocation51_spill] sm:$0xff] %v12423_v16  ;;  %v3822_v24 = vmax.f32 %v3820_v43, %v3821_v63  ;;  %v12434_v3 = vmax.f32 %v3787_v57, %v3788_v44  ;;  %v3927_v60 = vpack.c.bf16 %v15293_v32, %v15293_v32  ;;  %v3928_v59 = vpack.c.bf16 %v15294_v47, %v15294_v47  ;;  %v15300_v32 = vld [vmem:[#allocation69_spill] sm:$0xff]  ;;  %v15301_v47 = vld [vmem:[#allocation70_spill] sm:$0xff]  ;;  %v15314_v11 = vld [vmem:[#allocation44_spill] sm:$0xff] }
 0x66d   :  { %15291 = vst [vmem:[#allocation52_spill] sm:$0xff] %v12430_v37  ;;  %v3809_v61 = vrot.slane %v3808_v12, 1  ;;  %v3816_v27 = vrot.slane %v3815_v7, 1  ;;  %v3929_v34 = vpack.c.bf16 %v15295_v4, %v15295_v4  ;;  %v3935_v28 = vpack.c.bf16 %v15300_v32, %v15300_v32  ;;  %v15302_v4 = vld [vmem:[#allocation17_spill] sm:$0xff]  ;;  %v15305_v57 = vld [vmem:[#allocation26_spill] sm:$0xff] }
 0x66e   :  { %15292 = vst [vmem:[#allocation53_spill] sm:$0xff] %v12434_v3  ;;  %v3823_v41 = vrot.slane %v3822_v24, 1  ;;  %v3936_v20 = vpack.c.bf16 %v15301_v47, %v15301_v47  ;;  %v8683_v32 = vld [vmem:[%s14554_s4 + $0x30] sm:$0xff]  ;;  %v15307_v47 = vld [vmem:[#allocation39_spill] sm:$0xff]  ;;  %v3960_v55 = vpack.c.bf16 %v12413_v46, %v12413_v46 }
 0x66f   :  { %v12476_v63 = vmax.f32 %v3808_v12, %v3809_v61  ;;  %v12484_v43 = vmax.f32 %v3815_v7, %v3816_v27  ;;  %v3933_v12 = vpack.c.bf16 %v15298_v38, %v15298_v38  ;;  %v15299_v61 = vld [vmem:[#allocation31_spill] sm:$0xff]  ;;  %v3937_v7 = vpack.c.bf16 %v15302_v4, %v15302_v4  ;;  %v15309_v27 = vld [vmem:[#allocation29_spill] sm:$0xff]  ;;  %v15313_v3 = vld [vmem:[#allocation42_spill] sm:$0xff]  ;;  %5485 = vmatpush.bf16.msrb.mxu1 %v8683_v32 }
 0x670   :  { %v12486_v58 = vmax.f32 %v3822_v24, %v3823_v41  ;;  %v3934_v8 = vpack.c.bf16 %v15299_v61, %v15299_v61  ;;  %v15304_v41 = vld [vmem:[#allocation72_spill] sm:$0xff]  ;;  %v3942_v38 = vpack.c.bf16 %v15305_v57, %v15305_v57  ;;  %v3943_v61 = vpack.c.bf16 %v15306_v29, %v15306_v29  ;;  %v15308_v4 = vld [vmem:[#allocation23_spill] sm:$0xff]  ;;  %v15312_v29 = vld [vmem:[#allocation33_spill] sm:$0xff] }
 0x671   :  { %v3941_v44 = vpack.c.bf16 %v15304_v41, %v15304_v41  ;;  %v3944_v51 = vpack.c.bf16 %v15307_v47, %v15307_v47  ;;  %v3945_v0 = vpack.c.bf16 %v15308_v4, %v15308_v4  ;;  %v3946_v35 = vpack.c.bf16 %v15309_v27, %v15309_v27  ;;  %v15310_v41 = vld [vmem:[#allocation41_spill] sm:$0xff]  ;;  %v15311_v57 = vld [vmem:[#allocation43_spill] sm:$0xff]  ;;  %v15315_v4 = vld [vmem:[#allocation18_spill] sm:$0xff] }
 0x672   :  { %15296 = vst [vmem:[#allocation30_spill] sm:$0xff] %v12486_v58  ;;  %v3947_v23 = vpack.c.bf16 %v15310_v41, %v15310_v41  ;;  %v3948_v39 = vpack.c.bf16 %v15311_v57, %v15311_v57  ;;  %v3949_v36 = vpack.c.bf16 %v15312_v29, %v15312_v29  ;;  %v3950_v17 = vpack.c.bf16 %v15313_v3, %v15313_v3  ;;  %v8682_v27 = vld [vmem:[%s14554_s4 + $0x28] sm:$0xff] }
 0x673   :  { %v3951_v47 = vpack.c.bf16 %v15314_v11, %v15314_v11  ;;  %v3952_v41 = vpack.c.bf16 %v15315_v4, %v15315_v4  ;;  %v3953_v57 = vpack.c.bf16 %v15316_v2, %v15316_v2  ;;  %v3954_v29 = vpack.c.bf16 %v15317_v56, %v15317_v56  ;;  %v15319_v24 = vld [vmem:[#allocation49_spill] sm:$0xff]  ;;  %5486 = vmatpush.bf16.msrb.mxu1 %v8682_v27 }
 0x674   :  { %v3957_v3 = vpack.c.bf16 %v15318_v5, %v15318_v5  ;;  %v3958_v11 = vpack.c.bf16 %v12400_v14, %v12400_v14  ;;  %v3959_v32 = vpack.c.bf16 %v12402_v54, %v12402_v54  ;;  %v3961_v4 = vpack.c.bf16 %v15319_v24, %v15319_v24 }
 0x675   :  { %v3962_v2 = vpack.c.bf16 %v12415_v13, %v12415_v13  ;;  %v3965_v56 = vpack.c.bf16 %v12419_v40, %v12419_v40  ;;  %v3966_v5 = vpack.c.bf16 %v12421_v18, %v12421_v18  ;;  %v3967_v14 = vpack.c.bf16 %v12425_v19, %v12425_v19 }
 0x676   :  { %v3968_v54 = vpack.c.bf16 %v12427_v9, %v12427_v9  ;;  %v3973_v13 = vpack.c.bf16 %v12432_v49, %v12432_v49  ;;  %v3974_v40 = vpack.c.bf16 %v12476_v63, %v12476_v63  ;;  %v3975_v18 = vpack.c.bf16 %v12484_v43, %v12484_v43 }
 0x677   :  { %v15320_v9 = vpack.c.bf16 %v12144_v52, %v12144_v52  ;;  %v15321_v24 = vpack.c.bf16 %v12151_v45, %v12151_v45  ;;  %v15322_v49 = vpack.c.bf16 %v12154_v1, %v12154_v1  ;;  %v15323_v43 = vpack.c.bf16 %v12156_v30, %v12156_v30 }
 0x678   :  { %v15324_v52 = vpack.c.bf16 %v12148_v53, %v12148_v53  ;;  %v15325_v45 = vpack.c.bf16 %v12174_v33, %v12174_v33  ;;  %v15326_v1 = vpack.c.bf16 %v12180_v31, %v12180_v31  ;;  %v15327_v30 = vpack.c.bf16 %v12188_v42, %v12188_v42 }
 0x679   :  { %v12571_v46 = vperm.slane %v15320_v9, 0  ;;  %v12576_v37 = vperm.slane %v15321_v24, 0  ;;  %v12581_v63 = vperm.slane %v15322_v49, 0  ;;  %v12586_v27 = vperm.slane %v15323_v43, 0 }
 0x67a   :  { %v12591_v9 = vperm.slane %v15324_v52, 0  ;;  %v12596_v24 = vperm.slane %v15325_v45, 0  ;;  %v12601_v49 = vperm.slane %v15326_v1, 0  ;;  %v12606_v43 = vperm.slane %v15327_v30, 0 }
 0x67b   :  { %v15328_v53 = vpack.c.bf16 %v12194_v25, %v12194_v25  ;;  %v15329_v33 = vpack.c.bf16 %v12185_v15, %v12185_v15  ;;  %v15330_v31 = vpack.c.bf16 %v12210_v26, %v12210_v26  ;;  %v15331_v42 = vpack.c.bf16 %v12220_v50, %v12220_v50 }
 0x67c   :  { %v15332_v25 = vpack.c.bf16 %v12223_v22, %v12223_v22  ;;  %v15333_v15 = vpack.c.bf16 %v12229_v21, %v12229_v21  ;;  %v15334_v26 = vpack.c.bf16 %v12216_v10, %v12216_v10  ;;  %v15335_v50 = vpack.c.bf16 %v12241_v48, %v12241_v48 }
 0x67d   :  { %v12611_v52 = vperm.slane %v15328_v53, 0  ;;  %v12616_v45 = vperm.slane %v15329_v33, 0  ;;  %v12621_v1 = vperm.slane %v15330_v31, 0  ;;  %v12626_v30 = vperm.slane %v15331_v42, 0 }
 0x67e   :  { %v12631_v53 = vperm.slane %v15332_v25, 0  ;;  %v12636_v33 = vperm.slane %v15333_v15, 0  ;;  %v12641_v31 = vperm.slane %v15334_v26, 0  ;;  %v12646_v42 = vperm.slane %v15335_v50, 0 }
 0x67f   :  { %v15336_v22 = vpack.c.bf16 %v12258_v62, %v12258_v62  ;;  %v12653_v19 = vperm.slane %v3927_v60, 0  ;;  %v12655_v21 = vperm.slane %v3928_v59, 0  ;;  %v12657_v15 = vperm.slane %v3929_v34, 0 }
 0x680   :  { %v12659_v16 = vperm.slane %v3933_v12, 0  ;;  %v12661_v10 = vperm.slane %v3934_v8, 0  ;;  %v12663_v26 = vperm.slane %v3935_v28, 0  ;;  %v12665_v48 = vperm.slane %v3936_v20, 0 }
 0x681   :  { %v12651_v25 = vperm.slane %v15336_v22, 0  ;;  %v12667_v50 = vperm.slane %v3937_v7, 0  ;;  %v12669_v58 = vperm.slane %v3941_v44, 0  ;;  %v12671_v62 = vperm.slane %v3942_v38, 0 }
 0x682   :  { %v12673_v60 = vperm.slane %v3943_v61, 0  ;;  %v12675_v59 = vperm.slane %v3944_v51, 0  ;;  %v12677_v34 = vperm.slane %v3945_v0, 0  ;;  %v12679_v12 = vperm.slane %v3946_v35, 0 }
 0x683   :  { %v12681_v8 = vperm.slane %v3947_v23, 0  ;;  %v12683_v28 = vperm.slane %v3948_v39, 0  ;;  %v12685_v20 = vperm.slane %v3949_v36, 0  ;;  %v12687_v7 = vperm.slane %v3950_v17, 0  ;;  %v4864_v23 = vpop.permute.xlu2 %4863 }
 0x684   :  { %v12689_v44 = vperm.slane %v3951_v47, 0  ;;  %v12691_v38 = vperm.slane %v3952_v41, 0  ;;  %v12693_v61 = vperm.slane %v3953_v57, 0  ;;  %v12695_v51 = vperm.slane %v3954_v29, 0 }
 0x685   :  { %v12697_v0 = vperm.slane %v3957_v3, 0  ;;  %v12699_v35 = vperm.slane %v3958_v11, 0  ;;  %v12701_v22 = vperm.slane %v3959_v32, 0  ;;  %v12703_v39 = vperm.slane %v3960_v55, 0 }
 0x686   :  { %v12705_v36 = vperm.slane %v3961_v4, 0  ;;  %v12707_v17 = vperm.slane %v3962_v2, 0  ;;  %v12709_v47 = vperm.slane %v3965_v56, 0  ;;  %v12711_v41 = vperm.slane %v3966_v5, 0 }
 0x687   :  { %v12713_v57 = vperm.slane %v3967_v14, 0  ;;  %v12715_v29 = vperm.slane %v3968_v54, 0  ;;  %v12717_v3 = vperm.slane %v3973_v13, 0  ;;  %v12719_v11 = vperm.slane %v3974_v40, 0 }
 0x688   :  { %15337 = vst [vmem:[#allocation54_spill] sm:$0xff] %v12705_v36  ;;  %v12721_v32 = vperm.slane %v3975_v18, 0  ;;  %v4367_v14 = vunpack.c.l.b16 %v12596_v24  ;;  %v4368_v54 = vunpack.c.l.b16 %v12601_v49  ;;  %v4383_v24 = vunpack.c.l.b16 %v12646_v42  ;;  %v8680_v42 = vld [vmem:[%s14554_s4 + $0x18] sm:$0xff] }
 0x689   :  { %15338 = vst [vmem:[#allocation55_spill] sm:$0xff] %v12709_v47  ;;  %v4384_v49 = vunpack.c.l.b16 %v12651_v25  ;;  %v4385_v13 = vunpack.c.l.b16 %v12653_v19  ;;  %v4386_v40 = vunpack.c.l.b16 %v12655_v21  ;;  %v4387_v18 = vunpack.c.l.b16 %v12657_v15  ;;  %v15344_v25 = vld [vmem:[#allocation34_spill] sm:$0xff] }
 0x68a   :  { %15339 = vst [vmem:[#allocation56_spill] sm:$0xff] %v12711_v41  ;;  %v4391_v55 = vunpack.c.l.b16 %v12659_v16  ;;  %v4392_v4 = vunpack.c.l.b16 %v12661_v10  ;;  %v4393_v2 = vunpack.c.l.b16 %v12663_v26  ;;  %v4394_v56 = vunpack.c.l.b16 %v12665_v48  ;;  %v8681_v16 = vld [vmem:[%s14554_s4 + $0x20] sm:$0xff] }
 0x68b   :  { %15340 = vst [vmem:[#allocation65_spill] sm:$0xff] %v12713_v57  ;;  %v4395_v5 = vunpack.c.l.b16 %v12667_v50  ;;  %5487 = vmatpush.bf16.msrb.mxu1 %v8681_v16  ;;  %v4509_v48 = vsel %vm4439_vm6, %v4384_v49, %v4383_v24  ;;  %v4495_v21 = vsel %vm4439_vm6, %v4368_v54, %v4367_v14  ;;  %v12777_v16 = vsel %vm2029_vm14, %v15344_v25, %v4864_v23  ;;  %v15345_v10 = vld [vmem:[#allocation35_spill] sm:$0xff]  ;;  %v15347_v24 = vld [vmem:[#allocation37_spill] sm:$0xff]  ;;  %v15349_v23 = vld [vmem:[#allocation20_spill] sm:$0xff] }
 0x68c   :  { %15341 = vst [vmem:[#allocation66_spill] sm:$0xff] %v12715_v29  ;;  %v12752_v29 = vpop.permute.xlu2 %4869  ;;  %4983 = vrot.lane.b32.xlu2 %v12777_v16, %s8846_s3  ;;  %v15346_v15 = vrot.slane %v15345_v10, 1  ;;  %v3515_v49 = vrot.slane %v15347_v24, 1  ;;  %v15348_v19 = vpack.c.bf16 %v15297_v6, %v15297_v6  ;;  %v4510_v14 = vsel %vm4441_vm8, %v4385_v13, %v4509_v48  ;;  %v15352_v57 = vld [vmem:[#allocation71_spill] sm:$0xff] }
 0x68d   :  { %15342 = vst [vmem:[#allocation25_spill] sm:$0xff] %v12721_v32  ;;  %v15350_v54 = vrot.slane %v15349_v23, 1  ;;  %v15353_v47 = vpack.c.bf16 %v15352_v57, %v15352_v57  ;;  %v4511_v6 = vsel %vm4443_vm9, %v4386_v40, %v4510_v14  ;;  %v4860_v14 = vpop.permute.xlu0 %4859 }
 0x68e   :  { %15343 = vst [vmem:[#allocation67_spill] sm:$0xff] %v12752_v29  ;;  %v4516_v29 = vsel %vm4439_vm6, %v4392_v4, %v4391_v55  ;;  %v3509_v26 = vmax.f32 %v15345_v10, %v15346_v15  ;;  %v4260_v50 = vperm.slane %v15348_v19, 0  ;;  %v15351_v4 = vld [vmem:[#allocation68_spill] sm:$0xff]  ;;  %v3516_v15 = vmax.f32 %v15347_v24, %v3515_v49 }
 0x68f   :  { %5488 = vmatpush.bf16.msrb.mxu1 %v8680_v42  ;;  %v3565_v55 = vmax.f32 %v15349_v23, %v15350_v54  ;;  %v3571_v25 = vrot.slane %v15351_v4, 1  ;;  %v4268_v41 = vperm.slane %v15353_v47, 0  ;;  %v4512_v19 = vsel %vm4445_vm11, %v4387_v18, %v4511_v6  ;;  %v8679_v23 = vld [vmem:[%s14554_s4 + $0x10] sm:$0xff] }
 0x690   :  { %v3931_v10 = vpack.c.bf16 %v3509_v26, %v3509_v26  ;;  %v4388_v36 = vunpack.c.l.b16 %v4260_v50  ;;  %v3932_v32 = vpack.c.bf16 %v3516_v15, %v3516_v15  ;;  %v4517_v26 = vsel %vm4441_vm8, %v4393_v2, %v4516_v29  ;;  %v4862_v50 = vpop.permute.xlu1 %4861 }
 0x691   :  { %v3572_v13 = vmax.f32 %v15351_v4, %v3571_v25  ;;  %v3939_v42 = vpack.c.bf16 %v3565_v55, %v3565_v55  ;;  %v4396_v48 = vunpack.c.l.b16 %v4268_v41  ;;  %v4518_v18 = vsel %vm4443_vm9, %v4394_v56, %v4517_v26  ;;  %v8678_v41 = vld [vmem:[%s14554_s4 + $0x8] sm:$0xff]  ;;  %v15354_v25 = vld [vmem:[#allocation22_spill] sm:$0xff] }
 0x692   :  { %v4261_v57 = vperm.slane %v3931_v10, 0  ;;  %v4513_v47 = vsel %vm4447_vm12, %v4388_v36, %v4512_v19  ;;  %v4262_v55 = vperm.slane %v3932_v32, 0  ;;  %v4519_v36 = vsel %vm4445_vm11, %v4395_v5, %v4518_v18  ;;  %v15355_v56 = vld [vmem:[#allocation24_spill] sm:$0xff]  ;;  %v15358_v5 = vld [vmem:[#allocation27_spill] sm:$0xff] }
 0x693   :  { %v3940_v24 = vpack.c.bf16 %v3572_v13, %v3572_v13  ;;  %v4269_v40 = vperm.slane %v3939_v42, 0  ;;  %5489 = vmatpush.bf16.msrb.mxu1 %v8679_v23  ;;  %v4520_v10 = vsel %vm4447_vm12, %v4396_v48, %v4519_v36  ;;  %v12818_v6 = vsel %vm2029_vm14, %v15355_v56, %v4862_v50  ;;  %v15359_v26 = vld [vmem:[#allocation60_spill] sm:$0xff] }
 0x694   :  { %v4858_v54 = vpop.permute.xlu2 %4857  ;;  %v4389_v4 = vunpack.c.l.b16 %v4261_v57  ;;  %v15356_v19 = vunpack.c.l.b16 %v12571_v46  ;;  %v15357_v13 = vunpack.c.l.b16 %v12576_v37  ;;  %v4390_v32 = vunpack.c.l.b16 %v4262_v55  ;;  %4979 = vrot.lane.b32.xlu1 %v12818_v6, %s8846_s3  ;;  %v8677_v37 = vld [vmem:[%s14554_s4] sm:$0xff] }
 0x695   :  { %v4926_v49 = vsel %vm2029_vm14, %v15354_v25, %v4858_v54  ;;  %v4270_v29 = vperm.slane %v3940_v24, 0  ;;  %v4397_v2 = vunpack.c.l.b16 %v4269_v40  ;;  %v4928_v54 = vsel %vm2029_vm14, %v15358_v5, %v4860_v14  ;;  %v15361_v40 = vld [vmem:[#allocation61_spill] sm:$0xff] }
 0x696   :  { %v12813_v15 = vunpack.c.l.b16 %v4926_v49  ;;  %v4488_v42 = vsel %vm4439_vm6, %v15357_v13, %v15356_v19  ;;  %v4514_v23 = vsel %vm4449_vm13, %v4389_v4, %v4513_v47  ;;  %4975 = vrot.lane.b32.xlu0 %v4928_v54, %s8846_s3  ;;  %v5125_v46 = vunpack.c.l.b16 %v4928_v54  ;;  %v15362_v49 = vld [vmem:[#allocation62_spill] sm:$0xff] }
 0x697   :  { %v4398_v48 = vunpack.c.l.b16 %v4270_v29  ;;  %v4521_v57 = vsel %vm4449_vm13, %v4397_v2, %v4520_v10  ;;  %5490 = vmatpush.bf16.msrb.mxu1 %v8678_v41  ;;  %v15360_v50 = vrot.slane %v15359_v26, 1  ;;  %v4515_v24 = vsel %vm4451_vm15, %v4390_v32, %v4514_v23 }
 0x698   :  { %v3403_v18 = vrot.slane %v15361_v40, 1  ;;  %v15363_v14 = vpack.c.bf16 %v15362_v49, %v15362_v49  ;;  %v15364_v41 = vunpack.c.l.b16 %v12606_v43  ;;  %v4567_v36 = vpack.c.b16 %v4515_v24, %v4515_v24 }
 0x699   :  { %v3397_v47 = vmax.f32 %v15359_v26, %v15360_v50  ;;  %v4522_v29 = vsel %vm4451_vm15, %v4398_v48, %v4521_v57  ;;  %v5184_v2 = vpack.c.b16 %v5125_v46, %v12813_v15  ;;  %v15365_v23 = vunpack.c.l.b16 %v12611_v52 }
 0x69a   :  { %v4244_v55 = vperm.slane %v15363_v14, 0  ;;  %v4496_v4 = vsel %vm4441_vm8, %v15364_v41, %v4495_v21  ;;  %v4568_v19 = vpack.c.b16 %v4522_v29, %v4522_v29  ;;  %v3404_v13 = vmax.f32 %v15361_v40, %v3403_v18  ;;  %v15367_v18 = vld [vmem:[#allocation57_spill] sm:$0xff] }
 0x69b   :  { %v3915_v10 = vpack.c.bf16 %v3397_v47, %v3397_v47  ;;  %v4497_v54 = vsel %vm4443_vm9, %v15365_v23, %v4496_v4  ;;  %v4638_v26 = vshrl.u32 %v4567_v36, 16  ;;  %v4641_v50 = vshll.u32 %v4567_v36, 16  ;;  %5491 = vmatpush.bf16.msrb.mxu1 %v8677_v37  ;;  %v15370_v36 = vld [vmem:[#allocation59_spill] sm:$0xff] }
 0x69c   :  { %v4372_v32 = vunpack.c.l.b16 %v4244_v55  ;;  %v15366_v21 = vunpack.c.l.b16 %v12616_v45  ;;  %v4645_v48 = vshrl.u32 %v4568_v19, 16  ;;  %v4648_v57 = vshll.u32 %v4568_v19, 16  ;;  %v15369_v55 = vld [vmem:[#allocation58_spill] sm:$0xff] }
 0x69d   :  { %v4245_v43 = vperm.slane %v3915_v10, 0  ;;  %v3916_v46 = vpack.c.bf16 %v3404_v13, %v3404_v13  ;;  %v4640_v49 = vrot.slane %v4638_v26, 7  ;;  %v15368_v14 = vrot.slane %v15367_v18, 1 }
 0x69e   :  { %v4498_v24 = vsel %vm4445_vm11, %v15366_v21, %v4497_v54  ;;  %v3347_v41 = vrot.slane %v15369_v55, 1  ;;  %v4647_v4 = vrot.slane %v4645_v48, 7  ;;  %5492 = vmatmul.bf16.vlgmr.msrb.gmra.mxu1 %v5184_v2  ;;  %v15371_v45 = vpack.c.bf16 %v15370_v36, %v15370_v36 }
 0x69f   :  { %v4499_v47 = vsel %vm4447_vm12, %v4372_v32, %v4498_v24  ;;  %v4373_v40 = vunpack.c.l.b16 %v4245_v43  ;;  %v3341_v52 = vmax.f32 %v15367_v18, %v15368_v14  ;;  %v4246_v37 = vperm.slane %v3916_v46, 0 }
 0x6a0   :  { %v4236_v29 = vperm.slane %v15371_v45, 0  ;;  %v15372_v10 = vunpack.c.l.b16 %v12581_v63  ;;  %v4643_v13 = vor.u32 %v4641_v50, %v4640_v49  ;;  %v3348_v23 = vmax.f32 %v15369_v55, %v3347_v41 }
 0x6a1   :  { %v4500_v32 = vsel %vm4449_vm13, %v4373_v40, %v4499_v47  ;;  %v3907_v54 = vpack.c.bf16 %v3341_v52, %v3341_v52  ;;  %v4650_v26 = vor.u32 %v4648_v57, %v4647_v4  ;;  %v4374_v43 = vunpack.c.l.b16 %v4246_v37 }
 0x6a2   :  { %v4489_v19 = vsel %vm4441_vm8, %v15372_v10, %v4488_v42  ;;  %v4364_v21 = vunpack.c.l.b16 %v4236_v29  ;;  %v15373_v2 = vunpack.c.l.b16 %v12586_v27  ;;  %v4711_v46 = vsel %vm8932_vm2, 0, %v4643_v13 }
 0x6a3   :  { %v3908_v18 = vpack.c.bf16 %v3348_v23, %v3348_v23  ;;  %v4237_v63 = vperm.slane %v3907_v54, 0  ;;  %v15375_v42 = vunpack.c.l.b16 %v12591_v9  ;;  %v12878_v49 = vsel %vm10854_vm5, %v4711_v46, 0 }
 0x6a4   :  { %v4490_v24 = vsel %vm4443_vm9, %v15373_v2, %v4489_v19  ;;  %v4712_v57 = vsel %vm8932_vm2, 0, %v4650_v26  ;;  %v4501_v27 = vsel %vm4451_vm15, %v4374_v43, %v4500_v32  ;;  %v15377_v14 = vunpack.c.l.b16 %v12621_v1  ;;  %v15381_v43 = vld [vmem:[#allocation64_spill] sm:$0xff] }
 0x6a5   :  { %v4491_v50 = vsel %vm4445_vm11, %v15375_v42, %v4490_v24  ;;  %v15378_v52 = vunpack.c.l.b16 %v12626_v30  ;;  %v4811_v9 = vshll.u32 %v12878_v49, 16  ;;  %v12892_v41 = vsel %vm10854_vm5, %v4712_v57, 0  ;;  %v15379_v30 = vld [vmem:[#allocation63_spill] sm:$0xff] }
 0x6a6   :  { %v4492_v40 = vsel %vm4447_vm12, %v4364_v21, %v4491_v50  ;;  %v4565_v4 = vpack.c.b16 %v4501_v27, %v4501_v27  ;;  %v4809_v37 = vshrl.u32 %v12878_v49, 16  ;;  %v5123_v36 = vunpack.c.l.b16 %v12818_v6  ;;  %v15382_v6 = vld [vmem:[#allocation36_spill] sm:$0xff] }
 0x6a7   :  { %v4502_v55 = vsel %vm4439_vm6, %v15378_v52, %v15377_v14  ;;  %v4238_v45 = vperm.slane %v3908_v18, 0  ;;  %v4365_v29 = vunpack.c.l.b16 %v4237_v63  ;;  %v4813_v10 = vrot.slane %v4811_v9, 1 }
 0x6a8   :  { %v4818_v1 = vshll.u32 %v12892_v41, 16  ;;  %v4624_v19 = vshrl.u32 %v4565_v4, 16  ;;  %v15380_v13 = vrot.slane %v15379_v30, 1  ;;  %v4627_v23 = vshll.u32 %v4565_v4, 16 }
 0x6a9   :  { %v4366_v54 = vunpack.c.l.b16 %v4238_v45  ;;  %v4493_v26 = vsel %vm4449_vm13, %v4365_v29, %v4492_v40  ;;  %v3459_v21 = vrot.slane %v15381_v43, 1  ;;  %v4814_v2 = vor.u32 %v4813_v10, %v4809_v37 }
 0x6aa   :  { %v3453_v32 = vmax.f32 %v15379_v30, %v15380_v13  ;;  %v4626_v24 = vrot.slane %v4624_v19, 7  ;;  %v15383_v18 = vpack.c.bf16 %v15382_v6, %v15382_v6  ;;  %v15384_v42 = vunpack.c.l.b16 %v12669_v58 }
 0x6ab   :  { %v15385_v50 = vunpack.c.l.b16 %v12671_v62  ;;  %v4494_v27 = vsel %vm4451_vm15, %v4366_v54, %v4493_v26  ;;  %v3460_v14 = vmax.f32 %v15381_v43, %v3459_v21  ;;  %v15386_v40 = vunpack.c.l.b16 %v12631_v53  ;;  %4877 = vrot.lane.b32.xlu2 %v4814_v2, %s8846_s3  ;;  %v4868_v26 = vpop.permute.xlu1 %4867 }
 0x6ac   :  { %v3923_v46 = vpack.c.bf16 %v3453_v32, %v3453_v32  ;;  %v4252_v63 = vperm.slane %v15383_v18, 0  ;;  %v5128_v9 = vunpack.c.l.b16 %v12777_v16  ;;  %v4629_v4 = vor.u32 %v4627_v23, %v4626_v24  ;;  %v4866_v16 = vpop.permute.xlu0 %4865 }
 0x6ad   :  { %v4523_v57 = vsel %vm4439_vm6, %v15385_v50, %v15384_v42  ;;  %v4503_v52 = vsel %vm4441_vm8, %v15386_v40, %v4502_v55  ;;  %v4564_v37 = vpack.c.b16 %v4494_v27, %v4494_v27  ;;  %v4816_v58 = vshrl.u32 %v12892_v41, 16 }
 0x6ae   :  { %v4253_v45 = vperm.slane %v3923_v46, 0  ;;  %v4820_v62 = vrot.slane %v4818_v1, 1  ;;  %v3924_v29 = vpack.c.bf16 %v3460_v14, %v3460_v14  ;;  %v15387_v10 = vunpack.c.l.b16 %v12636_v33  ;;  %v15391_v14 = vld [vmem:[#allocation16_spill] sm:$0xff] }
 0x6af   :  { %v4709_v53 = vsel %vm8932_vm2, 0, %v4629_v4  ;;  %v4617_v30 = vshrl.u32 %v4564_v37, 16  ;;  %v4380_v55 = vunpack.c.l.b16 %v4252_v63  ;;  %v12923_v13 = vpack.c.b16 %v5128_v9, %v5123_v36 }
 0x6b0   :  { %v4504_v19 = vsel %vm4443_vm9, %v15387_v10, %v4503_v52  ;;  %v12927_v32 = vsel %vm10854_vm5, %v4709_v53, 0  ;;  %v4254_v23 = vperm.slane %v3924_v29, 0  ;;  %v4381_v54 = vunpack.c.l.b16 %v4253_v45  ;;  %v15392_v52 = vld [vmem:[#allocation12_spill] sm:$0xff] }
 0x6b1   :  { %v15388_v1 = vunpack.c.l.b16 %v12641_v31  ;;  %v4797_v43 = vshll.u32 %v12927_v32, 16  ;;  %v4619_v21 = vrot.slane %v4617_v30, 7  ;;  %v4620_v2 = vshll.u32 %v4564_v37, 16  ;;  %5497 = vmatmul.bf16.gmra.mxu1 %v12923_v13  ;;  %v15394_v37 = vld [vmem:[#allocation40_spill] sm:$0xff] }
 0x6b2   :  { %v15389_v36 = vunpack.c.l.b16 %v12685_v20  ;;  %v15390_v46 = vunpack.c.l.b16 %v12687_v7  ;;  %v4821_v18 = vor.u32 %v4820_v62, %v4816_v58  ;;  %v4382_v63 = vunpack.c.l.b16 %v4254_v23 }
 0x6b3   :  { %v4505_v33 = vsel %vm4445_vm11, %v15388_v1, %v4504_v19  ;;  %v4795_v31 = vshrl.u32 %v12927_v32, 16  ;;  %v4799_v50 = vrot.slane %v4797_v43, 1  ;;  %v4622_v27 = vor.u32 %v4620_v2, %v4619_v21 }
 0x6b4   :  { %v4506_v24 = vsel %vm4447_vm12, %v4380_v55, %v4505_v33  ;;  %v4530_v6 = vsel %vm4439_vm6, %v15390_v46, %v15389_v36  ;;  %v12944_v40 = vsel %vm2029_vm14, %v15391_v14, %v4866_v16  ;;  %v12949_v7 = vsel %vm2029_vm14, %v15392_v52, %v4868_v26  ;;  %4879 = vrot.lane.b32.xlu2 %v4821_v18, %s8846_s3  ;;  %v15398_v16 = vld [vmem:[#allocation47_spill] sm:$0xff] }
 0x6b5   :  { %v4507_v42 = vsel %vm4449_vm13, %v4381_v54, %v4506_v24  ;;  %v15393_v9 = vunpack.c.l.b16 %v12673_v60  ;;  %v15395_v45 = vrot.slane %v15394_v37, 1  ;;  %v4800_v62 = vor.u32 %v4799_v50, %v4795_v31 }
 0x6b6   :  { %v4508_v20 = vsel %vm4451_vm15, %v4382_v63, %v4507_v42  ;;  %v4708_v29 = vsel %vm8932_vm2, 0, %v4622_v27  ;;  %v15396_v19 = vunpack.c.l.b16 %v12675_v59  ;;  %v15397_v30 = vunpack.c.l.b16 %v12677_v34 }
 0x6b7   :  { %v4524_v4 = vsel %vm4441_vm8, %v15393_v9, %v4523_v57  ;;  %v3684_v58 = vmax.f32 %v15394_v37, %v15395_v45  ;;  %v4566_v10 = vpack.c.b16 %v4508_v20, %v4508_v20  ;;  %v12965_v60 = vsel %vm10854_vm5, %v4708_v29, 0  ;;  %4873 = vrot.lane.b32.xlu1 %v4800_v62, %s8846_s3 }
 0x6b8   :  { %v4525_v53 = vsel %vm4443_vm9, %v15396_v19, %v4524_v4  ;;  %v4406_v57 = vunpack.c.l.b16 %v12683_v28  ;;  %v3955_v23 = vpack.c.bf16 %v15398_v16, %v15398_v16  ;;  %v4788_v54 = vshrl.u32 %v12965_v60, 16 }
 0x6b9   :  { %v4526_v55 = vsel %vm4445_vm11, %v15397_v30, %v4525_v53  ;;  %v4790_v59 = vshll.u32 %v12965_v60, 16  ;;  %v4631_v1 = vshrl.u32 %v4566_v10, 16  ;;  %v4634_v33 = vshll.u32 %v4566_v10, 16 }
 0x6ba   :  { %v15399_v26 = vunpack.c.l.b16 %v12679_v12  ;;  %v3956_v28 = vpack.c.bf16 %v3684_v58, %v3684_v58  ;;  %v4285_v21 = vperm.slane %v3955_v23, 0  ;;  %v4412_v34 = vunpack.c.l.b16 %v12695_v51 }
 0x6bb   :  { %v4792_v2 = vrot.slane %v4790_v59, 1  ;;  %v4633_v24 = vrot.slane %v4631_v1, 7  ;;  %v15400_v36 = vunpack.c.l.b16 %v12681_v8  ;;  %v15401_v18 = vunpack.c.l.b16 %v12689_v44 }
 0x6bc   :  { %v4527_v43 = vsel %vm4447_vm12, %v15399_v26, %v4526_v55  ;;  %v4286_v31 = vperm.slane %v3956_v28, 0  ;;  %v4413_v12 = vunpack.c.l.b16 %v4285_v21  ;;  %v15402_v50 = vunpack.c.l.b16 %v12691_v38 }
 0x6bd   :  { %v4528_v46 = vsel %vm4449_vm13, %v15400_v36, %v4527_v43  ;;  %v4531_v63 = vsel %vm4441_vm8, %v15401_v18, %v4530_v6  ;;  %v4793_v20 = vor.u32 %v4792_v2, %v4788_v54  ;;  %v4636_v51 = vor.u32 %v4634_v33, %v4633_v24  ;;  %v15406_v54 = vld [vmem:[#allocation48_spill] sm:$0xff] }
 0x6be   :  { %v4529_v42 = vsel %vm4451_vm15, %v4406_v57, %v4528_v46  ;;  %v4532_v27 = vsel %vm4443_vm9, %v15402_v50, %v4531_v63  ;;  %v15403_v4 = vunpack.c.l.b16 %v12693_v61  ;;  %v5132_v37 = vunpack.c.l.b16 %v12944_v40  ;;  %v15411_v63 = vld [vmem:[#allocation30_spill] sm:$0xff] }
 0x6bf   :  { %v4569_v9 = vpack.c.b16 %v4529_v42, %v4529_v42  ;;  %v5136_v44 = vunpack.c.l.b16 %v12949_v7  ;;  %v4414_v6 = vunpack.c.l.b16 %v4286_v31  ;;  %v15404_v58 = vunpack.c.l.b16 %v12697_v0  ;;  %4871 = vrot.lane.b32.xlu0 %v4793_v20, %s8846_s3  ;;  %v15413_v31 = vld [vmem:[#allocation25_spill] sm:$0xff] }
 0x6c0   :  { %v4533_v8 = vsel %vm4445_vm11, %v15403_v4, %v4532_v27  ;;  %v15405_v38 = vunpack.c.l.b16 %v12699_v35  ;;  %v4710_v61 = vsel %vm8932_vm2, 0, %v4636_v51  ;;  %v4431_v19 = vunpack.c.l.b16 %v12717_v3  ;;  %v15408_v3 = vld [vmem:[#allocation32_spill] sm:$0xff]  ;;  %v15414_v27 = vld [vmem:[#allocation54_spill] sm:$0xff] }
 0x6c1   :  { %v4534_v45 = vsel %vm4447_vm12, %v4412_v34, %v4533_v8  ;;  %v4652_v29 = vshrl.u32 %v4569_v9, 16  ;;  %v4432_v53 = vunpack.c.l.b16 %v12719_v11  ;;  %v13009_v57 = vsel %vm10854_vm5, %v4710_v61, 0 }
 0x6c2   :  { %v4537_v62 = vsel %vm4439_vm6, %v15405_v38, %v15404_v58  ;;  %v4535_v10 = vsel %vm4449_vm13, %v4413_v12, %v4534_v45  ;;  %v4804_v35 = vshll.u32 %v13009_v57, 16  ;;  %v4655_v55 = vshll.u32 %v4569_v9, 16 }
 0x6c3   :  { %v4536_v0 = vsel %vm4451_vm15, %v4414_v6, %v4535_v10  ;;  %v4654_v30 = vrot.slane %v4652_v29, 7  ;;  %v13013_v23 = vpack.c.b16 %v5136_v44, %v5132_v37  ;;  %v15407_v59 = vrot.slane %v15406_v54, 1  ;;  %v15418_v6 = vld [vmem:[#allocation56_spill] sm:$0xff]  ;;  %v15419_v29 = vld [vmem:[#allocation13_spill] sm:$0xff] }
 0x6c4   :  { %v4570_v16 = vpack.c.b16 %v4536_v0, %v4536_v0  ;;  %v3963_v11 = vpack.c.bf16 %v15408_v3, %v15408_v3  ;;  %v15409_v33 = vunpack.c.l.b16 %v12701_v22  ;;  %v4802_v43 = vshrl.u32 %v13009_v57, 16 }
 0x6c5   :  { %v3740_v1 = vmax.f32 %v15406_v54, %v15407_v59  ;;  %v4806_v28 = vrot.slane %v4804_v35, 1  ;;  %v4657_v21 = vor.u32 %v4655_v55, %v4654_v30  ;;  %5502 = vmatmul.bf16.gmra.mxu1 %v13013_v23  ;;  %v4420_v36 = vunpack.c.l.b16 %v12707_v17  ;;  %v15422_v35 = vld [vmem:[#allocation55_spill] sm:$0xff] }
 0x6c6   :  { %v4538_v26 = vsel %vm4441_vm8, %v15409_v33, %v4537_v62  ;;  %v4659_v34 = vshrl.u32 %v4570_v16, 16  ;;  %v4293_v24 = vperm.slane %v3963_v11, 0  ;;  %v15410_v46 = vunpack.c.l.b16 %v12703_v39  ;;  %v15416_v39 = vld [vmem:[#allocation51_spill] sm:$0xff]  ;;  %v15423_v33 = vld [vmem:[#allocation52_spill] sm:$0xff] }
 0x6c7   :  { %v3964_v2 = vpack.c.bf16 %v3740_v1, %v3740_v1  ;;  %v15412_v22 = vpack.c.bf16 %v15411_v63, %v15411_v63  ;;  %v4433_v12 = vunpack.c.l.b16 %v15413_v31  ;;  %v4807_v50 = vor.u32 %v4806_v28, %v4802_v43  ;;  %4987 = vrot.lane.b32.xlu0 %v12944_v40, %s8846_s3  ;;  %v15425_v28 = vld [vmem:[#allocation65_spill] sm:$0xff]  ;;  %v15430_v31 = vld [vmem:[#allocation38_spill] sm:$0xff] }
 0x6c8   :  { %v4539_v18 = vsel %vm4443_vm9, %v15410_v46, %v4538_v26  ;;  %v15415_v20 = vunpack.c.l.b16 %v15414_v27  ;;  %v4551_v9 = vsel %vm4439_vm6, %v4432_v53, %v4431_v19  ;;  %v4421_v8 = vunpack.c.l.b16 %v4293_v24  ;;  %v15421_v53 = vld [vmem:[#allocation14_spill] sm:$0xff]  ;;  %v15426_v24 = vld [vmem:[#allocation19_spill] sm:$0xff] }
 0x6c9   :  { %v4306_v42 = vperm.slane %v15412_v22, 0  ;;  %v4294_v4 = vperm.slane %v3964_v2, 0  ;;  %v15417_v37 = vpack.c.bf16 %v15416_v39, %v15416_v39  ;;  %v4424_v45 = vunpack.c.l.b16 %v15418_v6  ;;  %4875 = vrot.lane.b32.xlu1 %v4807_v50, %s8846_s3  ;;  %v15434_v6 = vld [vmem:[#allocation66_spill] sm:$0xff] }
 0x6ca   :  { %v4540_v51 = vsel %vm4445_vm11, %v15415_v20, %v4539_v18  ;;  %v4713_v58 = vsel %vm8932_vm2, 0, %v4657_v21  ;;  %v4661_v38 = vrot.slane %v4659_v34, 7  ;;  %v15420_v10 = vrot.slane %v15419_v29, 1  ;;  %v15427_v18 = vld [vmem:[#allocation50_spill] sm:$0xff]  ;;  %v15431_v20 = vld [vmem:[#allocation15_spill] sm:$0xff] }
 0x6cb   :  { %v4541_v17 = vsel %vm4447_vm12, %v4420_v36, %v4540_v51  ;;  %v4299_v44 = vperm.slane %v15417_v37, 0  ;;  %v4422_v62 = vunpack.c.l.b16 %v4294_v4  ;;  %v3979_v0 = vpack.c.bf16 %v15421_v53, %v15421_v53 }
 0x6cc   :  { %v4542_v61 = vsel %vm4449_vm13, %v4421_v8, %v4541_v17  ;;  %v3852_v19 = vmax.f32 %v15419_v29, %v15420_v10  ;;  %v4423_v30 = vunpack.c.l.b16 %v15422_v35  ;;  %v4434_v55 = vunpack.c.l.b16 %v4306_v42  ;;  %v15429_v42 = vld [vmem:[#allocation67_spill] sm:$0xff]  ;;  %v15433_v17 = vld [vmem:[#allocation53_spill] sm:$0xff] }
 0x6cd   :  { %v4662_v54 = vshll.u32 %v4570_v16, 16  ;;  %v4552_v40 = vsel %vm4441_vm8, %v4433_v12, %v4551_v9  ;;  %v13057_v59 = vsel %vm10854_vm5, %v4713_v58, 0  ;;  %v13060_v1 = vsel %vm4451_vm15, %v4422_v62, %v4542_v61 }
 0x6ce   :  { %v3980_v3 = vpack.c.bf16 %v3852_v19, %v3852_v19  ;;  %v4309_v11 = vperm.slane %v3979_v0, 0  ;;  %v15424_v26 = vpack.c.bf16 %v15423_v33, %v15423_v33  ;;  %v4425_v21 = vunpack.c.l.b16 %v15425_v28 }
 0x6cf   :  { %v4544_v34 = vsel %vm4439_vm6, %v4424_v45, %v4423_v30  ;;  %v4664_v16 = vor.u32 %v4662_v54, %v4661_v38  ;;  %v4436_v36 = vunpack.c.l.b16 %v15426_v24  ;;  %v4553_v46 = vsel %vm4443_vm9, %v4434_v55, %v4552_v40  ;;  %4991 = vrot.lane.b32.xlu0 %v12949_v7, %s8846_s3  ;;  %v8689_v24 = vld [vmem:[%s14554_s4 + $0x60] sm:$0xff] }
 0x6d0   :  { %v4300_v43 = vperm.slane %v15424_v26, 0  ;;  %v4310_v2 = vperm.slane %v3980_v3, 0  ;;  %v15428_v63 = vrot.slane %v15427_v18, 1  ;;  %v13075_v12 = vsel %vm2029_vm14, %v15430_v31, %v15429_v42 }
 0x6d1   :  { %v4825_v50 = vshll.u32 %v13057_v59, 16  ;;  %v4437_v27 = vunpack.c.l.b16 %v4309_v11  ;;  %v15432_v51 = vunpack.c.l.b16 %v15431_v20  ;;  %v3971_v39 = vpack.c.bf16 %v15433_v17, %v15433_v17  ;;  %4995 = vrot.lane.b32.xlu1 %v13075_v12, %s8846_s3 }
 0x6d2   :  { %v3796_v22 = vmax.f32 %v15427_v18, %v15428_v63  ;;  %v4438_v4 = vunpack.c.l.b16 %v4310_v2  ;;  %v4426_v45 = vunpack.c.l.b16 %v15434_v6  ;;  %v4427_v58 = vunpack.c.l.b16 %v4299_v44  ;;  %v8690_v2 = vld [vmem:[%s14554_s4 + $0x68] sm:$0xff]  ;;  %v8687_v18 = vld [vmem:[%s14554_s4 + $0x50] sm:$0xff] }
 0x6d3   :  { %v4554_v9 = vsel %vm4445_vm11, %v15432_v51, %v4553_v46  ;;  %v4714_v38 = vsel %vm8932_vm2, 0, %v4664_v16  ;;  %v4301_v29 = vperm.slane %v3971_v39, 0  ;;  %v4545_v19 = vsel %vm4441_vm8, %v4425_v21, %v4544_v34  ;;  %v8692_v34 = vld [vmem:[%s14554_s4 + $0x78] sm:$0xff]  ;;  %v8691_v16 = vld [vmem:[%s14554_s4 + $0x70] sm:$0xff] }
 0x6d4   :  { %v4555_v8 = vsel %vm4447_vm12, %v4436_v36, %v4554_v9  ;;  %v3972_v37 = vpack.c.bf16 %v3796_v22, %v3796_v22  ;;  %v4827_v53 = vrot.slane %v4825_v50, 1  ;;  %v4428_v0 = vunpack.c.l.b16 %v4300_v43  ;;  %5533 = vmatpush.bf16.msra.mxu2 %v8692_v34  ;;  %v8688_v46 = vld [vmem:[%s14554_s4 + $0x58] sm:$0xff]  ;;  %v8686_v22 = vld [vmem:[%s14554_s4 + $0x48] sm:$0xff] }
 0x6d5   :  { %v4556_v62 = vsel %vm4449_vm13, %v4437_v27, %v4555_v8  ;;  %v4546_v44 = vsel %vm4443_vm9, %v4426_v45, %v4545_v19  ;;  %v13097_v35 = vsel %vm10854_vm5, %v4714_v38, 0  ;;  %v4429_v7 = vunpack.c.l.b16 %v4301_v29  ;;  %v8685_v27 = vld [vmem:[%s14554_s4 + $0x40] sm:$0xff] }
 0x6d6   :  { %v4557_v61 = vsel %vm4451_vm15, %v4438_v4, %v4556_v62  ;;  %v4302_v10 = vperm.slane %v3972_v37, 0  ;;  %v4547_v30 = vsel %vm4445_vm11, %v4427_v58, %v4546_v44  ;;  %v4823_v55 = vshrl.u32 %v13057_v59, 16 }
 0x6d7   :  { %v4548_v40 = vsel %vm4447_vm12, %v4428_v0, %v4547_v30  ;;  %v4832_v33 = vshll.u32 %v13097_v35, 16  ;;  %v4830_v28 = vshrl.u32 %v13097_v35, 16  ;;  %v4909_v50 = vrot.slane %v15358_v5, 1 }
 0x6d8   :  { %v4430_v54 = vunpack.c.l.b16 %v4302_v10  ;;  %v4549_v3 = vsel %vm4449_vm13, %v4429_v7, %v4548_v40  ;;  %v4828_v11 = vor.u32 %v4827_v53, %v4823_v55  ;;  %5534 = vmatpush.bf16.msra.mxu2 %v8691_v16  ;;  %v13141_v51 = vrot.slane %v15354_v25, 1 }
 0x6d9   :  { %v4834_v43 = vrot.slane %v4832_v33, 1  ;;  %v4571_v45 = vpack.c.b16 %v13060_v1, %v13060_v1  ;;  %v4573_v62 = vpack.c.b16 %v4557_v61, %v4557_v61  ;;  %v13329_v5 = vrot.slane %v12892_v41, 1 }
 0x6da   :  { %v4550_v26 = vsel %vm4451_vm15, %v4430_v54, %v4549_v3  ;;  %4881 = vrot.lane.b32.xlu0 %v4828_v11, %s8846_s3 }
 0x6db   :  { %v4835_v21 = vor.u32 %v4834_v43, %v4830_v28  ;;  %v4666_v58 = vshrl.u32 %v4571_v45, 16  ;;  %v4572_v29 = vpack.c.b16 %v4550_v26, %v4550_v26  ;;  %v4669_v10 = vshll.u32 %v4571_v45, 16 }
 0x6dc   :  { %5535 = vmatpush.bf16.msra.mxu2 %v8690_v2  ;;  %v4680_v53 = vshrl.u32 %v4573_v62, 16  ;;  %v4683_v1 = vshll.u32 %v4573_v62, 16 }
 0x6dd   :  { %v4668_v38 = vrot.slane %v4666_v58, 7  ;;  %v4673_v0 = vshrl.u32 %v4572_v29, 16  ;;  %v4676_v61 = vshll.u32 %v4572_v29, 16 }
 0x6de   :  { %v4682_v30 = vrot.slane %v4680_v53, 7 }
 0x6df   :  { %v4671_v19 = vor.u32 %v4669_v10, %v4668_v38  ;;  %v4675_v55 = vrot.slane %v4673_v0, 7 }
 0x6e0   :  { %5536 = vmatpush.bf16.msra.mxu2 %v8689_v24  ;;  %v4685_v11 = vor.u32 %v4683_v1, %v4682_v30  ;;  %v13221_v1 = vrot.slane %v15392_v52, 1 }
 0x6e1   :  { %v4715_v7 = vsel %vm8932_vm2, 0, %v4671_v19  ;;  %v4678_v33 = vor.u32 %v4676_v61, %v4675_v55  ;;  %v13224_v61 = vrot.slane %v15391_v14, 1 }
 0x6e2   :  { %4883 = vrot.lane.b32.xlu0 %v4835_v21, %s8846_s3  ;;  %v13167_v40 = vsel %vm10854_vm5, %v4715_v7, 0  ;;  %v5140_v21 = vunpack.c.l.b16 %v13075_v12  ;;  %v4717_v2 = vsel %vm8932_vm2, 0, %v4685_v11 }
 0x6e3   :  { %v4839_v28 = vshll.u32 %v13167_v40, 16  ;;  %v4716_v24 = vsel %vm8932_vm2, 0, %v4678_v33  ;;  %v13187_v12 = vsel %vm10854_vm5, %v4717_v2, 0 }
 0x6e4   :  { %5537 = vmatpush.bf16.msra.mxu2 %v8688_v46  ;;  %v4851_v19 = vshrl.u32 %v13187_v12, 16 }
 0x6e6   :  { %v13120_v36 = vpop.permute.xlu2 %4983 }
 0x6e8   :  { %5538 = vmatpush.bf16.msra.mxu2 %v8687_v18 }
 0x6ec   :  { %5539 = vmatpush.bf16.msra.mxu2 %v8686_v22  ;;  %v13183_v22 = vrot.slane %v15355_v56, 1 }
 0x6f0   :  { %5540 = vmatpush.bf16.msra.mxu2 %v8685_v27  ;;  %v4837_v27 = vshrl.u32 %v13167_v40, 16 }
 0x705   :  { %v4878_v63 = vpop.permute.xlu2 %4877 }
 0x706   :  { %v4946_v42 = vsel %vm2029_vm14, %v12878_v49, %v4878_v63  ;;  %v13138_v20 = vpop.permute.xlu1 %4979  ;;  %v4841_v63 = vrot.slane %v4839_v28, 1 }
 0x707   :  { %5011 = vrot.lane.b32.xlu0 %v4946_v42, %s8846_s3  ;;  %v5061_v9 = vsel %vm2029_vm14, %v4909_v50, %v13138_v20  ;;  %v5155_v26 = vunpack.c.l.b16 %v4946_v42  ;;  %v13191_v42 = vsel %vm10854_vm5, %v4716_v24, 0 }
 0x708   :  { %v13147_v4 = vpop.permute.xlu0 %4975  ;;  %v5126_v8 = vunpack.c.l.b16 %v5061_v9  ;;  %v5064_v9 = vsel %vm2029_vm14, %v13183_v22, %v13120_v36  ;;  %v4846_v47 = vshll.u32 %v13191_v42, 16  ;;  %v4844_v53 = vshrl.u32 %v13191_v42, 16 }
 0x709   :  { %v5058_v17 = vsel %vm2029_vm14, %v13141_v51, %v13147_v4  ;;  %v5130_v58 = vunpack.c.l.b16 %v5064_v9  ;;  %v8707_v9 = vld [vmem:[%s14554_s4 + $0xf0] sm:$0xff] }
 0x70a   :  { %v5121_v37 = vunpack.c.l.b16 %v5058_v17  ;;  %v4848_v10 = vrot.slane %v4846_v47, 1 }
 0x70c   :  { %v5185_v25 = vpack.c.b16 %v5126_v8, %v5121_v37  ;;  %v15435_v8 = vld [vmem:[#allocation34_spill] sm:$0xff]  ;;  %v4842_v37 = vor.u32 %v4841_v63, %v4837_v27  ;;  %v4849_v30 = vor.u32 %v4848_v10, %v4844_v53 }
 0x70d   :  { %v13199_v17 = vrot.slane %v15435_v8, 1  ;;  %v8708_v27 = vld [vmem:[%s14554_s4 + $0xf8] sm:$0xff]  ;;  %v8706_v8 = vld [vmem:[%s14554_s4 + $0xe8] sm:$0xff] }
 0x70e   :  { %v4880_v39 = vpop.permute.xlu2 %4879  ;;  %5541 = vmatmul.bf16.vlgmr.msra.gmra.mxu2 %v5185_v25  ;;  %5631 = vmatpush.bf16.msra.mxu1 %v8708_v27  ;;  %v8712_v10 = vld [vmem:[%s14554_s4 + $0x118] sm:$0xff]  ;;  %v13320_v27 = vrot.slane %v13057_v59, 1 }
 0x70f   :  { %v4948_v6 = vsel %vm2029_vm14, %v12892_v41, %v4880_v39  ;;  %5684 = vmatpush.bf16.msrb.mxu2 %v8712_v10  ;;  %v8711_v41 = vld [vmem:[%s14554_s4 + $0x110] sm:$0xff]  ;;  %v4924_v10 = vrot.slane %v13187_v12, 1 }
 0x710   :  { %5015 = vrot.lane.b32.xlu0 %v4948_v6, %s8846_s3  ;;  %v5160_v3 = vunpack.c.l.b16 %v4948_v6  ;;  %v4853_v6 = vshll.u32 %v13187_v12, 16 }
 0x712   :  { %v13178_v46 = vpack.c.b16 %v5160_v3, %v5155_v26  ;;  %v4855_v29 = vrot.slane %v4853_v6, 1  ;;  %5632 = vmatpush.bf16.msra.mxu1 %v8707_v9  ;;  %v8704_v6 = vld [vmem:[%s14554_s4 + $0xd8] sm:$0xff] }
 0x713   :  { %5685 = vmatpush.bf16.msrb.mxu2 %v8711_v41 }
 0x714   :  { %v4856_v7 = vor.u32 %v4855_v29, %v4851_v19  ;;  %v8702_v29 = vld [vmem:[%s14554_s4 + $0xc8] sm:$0xff] }
 0x716   :  { %5633 = vmatpush.bf16.msra.mxu1 %v8706_v8  ;;  %v13336_v8 = vrot.slane %v12878_v49, 1 }
 0x729   :  { %v4874_v44 = vpop.permute.xlu1 %4873 }
 0x72a   :  { %v13161_v54 = vsel %vm2029_vm14, %v12927_v32, %v4874_v44 }
 0x72b   :  { %5003 = vrot.lane.b32.xlu2 %v13161_v54, %s8846_s3 }
 0x731   :  { %v4872_v43 = vpop.permute.xlu0 %4871 }
 0x732   :  { %v4940_v34 = vsel %vm2029_vm14, %v12965_v60, %v4872_v43 }
 0x733   :  { %v5144_v16 = vunpack.c.l.b16 %v4940_v34  ;;  %4999 = vrot.lane.b32.xlu1 %v4940_v34, %s8846_s3 }
 0x735   :  { %v13180_v18 = vpack.c.b16 %v5144_v16, %v5140_v21 }
 0x737   :  { %5507 = vmatmul.bf16.gmra.mxu1 %v13180_v18 }
 0x739   :  { %v13201_v39 = vpop.permute.xlu0 %4987 }
 0x73a   :  { %v5067_v45 = vsel %vm2029_vm14, %v13199_v17, %v13201_v39 }
 0x73b   :  { %v4876_v56 = vpop.permute.xlu1 %4875  ;;  %v5134_v38 = vunpack.c.l.b16 %v5067_v45  ;;  %4885 = vrot.lane.b32.xlu1 %v4842_v37, %s8846_s3  ;;  %v8705_v37 = vld [vmem:[%s14554_s4 + $0xe0] sm:$0xff]  ;;  %v8703_v45 = vld [vmem:[%s14554_s4 + $0xd0] sm:$0xff] }
 0x73c   :  { %v4944_v25 = vsel %vm2029_vm14, %v13009_v57, %v4876_v56  ;;  %5634 = vmatpush.bf16.msra.mxu1 %v8705_v37 }
 0x73d   :  { %5007 = vrot.lane.b32.xlu2 %v4944_v25, %s8846_s3  ;;  %v5189_v62 = vpack.c.b16 %v5134_v38, %v5130_v58  ;;  %v5157_v0 = vunpack.c.l.b16 %v4944_v25  ;;  %v13272_v58 = vrot.slane %v12965_v60, 1 }
 0x73f   :  { %5546 = vmatmul.bf16.gmra.mxu2 %v5189_v62  ;;  %v5201_v3 = vpack.c.b16 %v5157_v0, %v12813_v15  ;;  %v13278_v62 = vrot.slane %v15430_v31, 1  ;;  %v8701_v31 = vld [vmem:[%s14554_s4 + $0xc0] sm:$0xff] }
 0x740   :  { %5635 = vmatpush.bf16.msra.mxu1 %v8704_v6 }
 0x741   :  { %v13214_v44 = vpop.permute.xlu0 %4991 }
 0x742   :  { %v5070_v33 = vsel %vm2029_vm14, %v13224_v61, %v13214_v44 }
 0x743   :  { %v13216_v55 = vpop.permute.xlu1 %4995  ;;  %4887 = vrot.lane.b32.xlu1 %v4849_v30, %s8846_s3  ;;  %v5138_v43 = vunpack.c.l.b16 %v5070_v33  ;;  %v4917_v33 = vrot.slane %v13009_v57, 1 }
 0x744   :  { %v5073_v11 = vsel %vm2029_vm14, %v13221_v1, %v13216_v55  ;;  %5636 = vmatpush.bf16.msra.mxu1 %v8703_v45 }
 0x745   :  { %4889 = vrot.lane.b32.xlu2 %v4856_v7, %s8846_s3  ;;  %v5142_v26 = vunpack.c.l.b16 %v5073_v11 }
 0x747   :  { %5512 = vmatmul.bf16.gmra.mxu1 %v5201_v3  ;;  %v5193_v14 = vpack.c.b16 %v5142_v26, %v5138_v43 }
 0x748   :  { %5637 = vmatpush.bf16.msra.mxu1 %v8702_v29  ;;  %v13367_v29 = vrot.slane %v13097_v35, 1 }
 0x74c   :  { %v4882_v28 = vpop.permute.xlu0 %4881  ;;  %5638 = vmatpush.bf16.msra.mxu1 %v8701_v31 }
 0x74d   :  { %v4950_v52 = vsel %vm2029_vm14, %v13057_v59, %v4882_v28 }
 0x74e   :  { %5019 = vrot.lane.b32.xlu1 %v4950_v52, %s8846_s3  ;;  %v5164_v2 = vunpack.c.l.b16 %v4950_v52 }
 0x74f   :  { %5551 = vmatmul.bf16.gmra.mxu2 %v5193_v14 }
 0x754   :  { %v4884_v21 = vpop.permute.xlu0 %4883 }
 0x755   :  { %v4952_v34 = vsel %vm2029_vm14, %v13097_v35, %v4884_v21  ;;  %v8710_v35 = vld [vmem:[%s14554_s4 + $0x108] sm:$0xff] }
 0x756   :  { %5023 = vrot.lane.b32.xlu2 %v4952_v34, %s8846_s3  ;;  %v5168_v16 = vunpack.c.l.b16 %v4952_v34  ;;  %5686 = vmatpush.bf16.msrb.mxu2 %v8710_v35 }
 0x757   :  { %5517 = vmatmul.bf16.gmra.mxu1 %v13178_v46 }
 0x758   :  { %v13240_v24 = vpack.c.b16 %v5168_v16, %v5164_v2 }
 0x767   :  { %5522 = vmatmul.bf16.gmra.mxu1 %v13240_v24 }
 0x779   :  { %v13301_v11 = vpop.permute.xlu0 %5011 }
 0x77a   :  { %v5084_v43 = vsel %vm2029_vm14, %v4917_v33, %v13301_v11 }
 0x77b   :  { %v5158_v21 = vunpack.c.l.b16 %v5084_v43 }
 0x785   :  { %v13243_v63 = vpop.permute.xlu2 %5003 }
 0x786   :  { %v5079_v38 = vsel %vm2029_vm14, %v13272_v58, %v13243_v63 }
 0x787   :  { %v5150_v53 = vunpack.c.l.b16 %v5079_v38  ;;  %v4916_v38 = vrot.slane %v12927_v32, 1 }
 0x797   :  { %v13254_v56 = vpop.permute.xlu2 %5007 }
 0x798   :  { %v5081_v26 = vsel %vm2029_vm14, %v13141_v51, %v13254_v56 }
 0x799   :  { %v5153_v28 = vunpack.c.l.b16 %v5081_v26  ;;  %v8693_v26 = vld [vmem:[%s14554_s4 + $0x80] sm:$0xff] }
 0x79b   :  { %v5202_v2 = vpack.c.b16 %v5158_v21, %v5153_v28 }
 0x79f   :  { %v4890_v47 = vpop.permute.xlu2 %4889 }
 0x7a0   :  { %v13264_v25 = vsel %vm2029_vm14, %v13187_v12, %v4890_v47  ;;  %v13348_v47 = vrot.slane %v13191_v42, 1 }
 0x7a1   :  { %5035 = vrot.lane.b32.xlu2 %v13264_v25, %s8846_s3 }
 0x7a5   :  { %v13286_v19 = vpop.permute.xlu1 %4999 }
 0x7a6   :  { %v5076_v60 = vsel %vm2029_vm14, %v13278_v62, %v13286_v19 }
 0x7a7   :  { %v5146_v0 = vunpack.c.l.b16 %v5076_v60  ;;  %v13379_v60 = vrot.slane %v13167_v40, 1 }
 0x7a9   :  { %4985 = vrot.lane.b32.xlu2 %v13199_v17, %s8846_s3  ;;  %v5197_v7 = vpack.c.b16 %v5150_v53, %v5146_v0  ;;  %v5148_v53 = vunpack.c.l.b16 %v13161_v54  ;;  %v13397_v0 = vpop.f32.mrf.mxu1  ;;  %v8709_v54 = vld [vmem:[%s14554_s4 + $0x100] sm:$0xff] }
 0x7aa   :  { %5687 = vmatpush.bf16.msrb.mxu2 %v8709_v54  ;;  %v13455_v54 = vpop.f32.mrf.mxu2 }
 0x7ab   :  { %5556 = vmatmul.bf16.gmra.mxu2 %v5197_v7  ;;  %v5199_v31 = vpack.c.b16 %v12813_v15, %v5148_v53  ;;  %v8696_v7 = vld [vmem:[%s14554_s4 + $0x98] sm:$0xff] }
 0x7ad   :  { %v4886_v30 = vpop.permute.xlu1 %4885 }
 0x7ae   :  { %v4954_v3 = vsel %vm2029_vm14, %v13167_v40, %v4886_v30  ;;  %v8697_v40 = vld [vmem:[%s14554_s4 + $0xa0] sm:$0xff] }
 0x7af   :  { %5027 = vrot.lane.b32.xlu0 %v4954_v3, %s8846_s3  ;;  %v5172_v34 = vunpack.c.l.b16 %v4954_v3 }
 0x7b0   :  { %v13423_v28 = vpop.permute.xlu2 %5023 }
 0x7b1   :  { %4997 = vrot.lane.b32.xlu2 %v13278_v62, %s8846_s3  ;;  %v13403_v30 = vpop.f32.mrf.mxu1 }
 0x7b5   :  { %v4888_v52 = vpop.permute.xlu1 %4887 }
 0x7b6   :  { %v4956_v14 = vsel %vm2029_vm14, %v13191_v42, %v4888_v52  ;;  %v8700_v42 = vld [vmem:[%s14554_s4 + $0xb8] sm:$0xff] }
 0x7b7   :  { %v5176_v16 = vunpack.c.l.b16 %v4956_v14  ;;  %4977 = vrot.lane.b32.xlu0 %v4909_v50, %s8846_s3  ;;  %5031 = vrot.lane.b32.xlu1 %v4956_v14, %s8846_s3  ;;  %v13333_v50 = vpop.permute.xlu0 %5015 }
 0x7b8   :  { %v5087_v37 = vsel %vm2029_vm14, %v13336_v8, %v13333_v50  ;;  %5582 = vmatpush.bf16.msrb.mxu3 %v8700_v42 }
 0x7b9   :  { %5009 = vrot.lane.b32.xlu2 %v4917_v33, %s8846_s3  ;;  %v13316_v57 = vpack.c.b16 %v5176_v16, %v5172_v34  ;;  %v5162_v45 = vunpack.c.l.b16 %v5087_v37  ;;  %v13411_v3 = vpop.f32.mrf.mxu1  ;;  %v8694_v33 = vld [vmem:[%s14554_s4 + $0x88] sm:$0xff] }
 0x7bb   :  { %5527 = vmatmul.bf16.gmra.mxu1 %v13316_v57  ;;  %5561 = vmatmul.bf16.gmra.mxu2 %v5202_v2 }
 0x7bf   :  { %4989 = vrot.lane.b32.xlu0 %v13224_v61, %s8846_s3  ;;  %4981 = vrot.lane.b32.xlu1 %v13183_v22, %s8846_s3 }
 0x7c0   :  { %v13322_v9 = vpop.permute.xlu1 %5019 }
 0x7c1   :  { %5021 = vrot.lane.b32.xlu2 %v13320_v27, %s8846_s3  ;;  %v5090_v59 = vsel %vm2029_vm14, %v13329_v5, %v13322_v9  ;;  %v13420_v43 = vpop.f32.mrf.mxu1 }
 0x7c2   :  { %v5166_v6 = vunpack.c.l.b16 %v5090_v59 }
 0x7c4   :  { %v5206_v49 = vpack.c.b16 %v5166_v6, %v5162_v45 }
 0x7c7   :  { %5001 = vrot.lane.b32.xlu0 %v13272_v58, %s8846_s3  ;;  %4993 = vrot.lane.b32.xlu1 %v13221_v1, %s8846_s3 }
 0x7c9   :  { %5033 = vrot.lane.b32.xlu2 %v13348_v47, %s8846_s3  ;;  %v13425_v52 = vpop.f32.mrf.mxu1 }
 0x7cb   :  { %5566 = vmatmul.bf16.gmra.mxu2 %v5206_v49  ;;  %5639 = vmatmul.bf16.vlgmr.msra.gmra.mxu1 %v12923_v13  ;;  %v8699_v13 = vld [vmem:[%s14554_s4 + $0xb0] sm:$0xff] }
 0x7cc   :  { %5583 = vmatpush.bf16.msrb.mxu3 %v8699_v13 }
 0x7cf   :  { %5013 = vrot.lane.b32.xlu0 %v13336_v8, %s8846_s3  ;;  %5005 = vrot.lane.b32.xlu1 %v4916_v38, %s8846_s3 }
 0x7d1   :  { %v13435_v59 = vpop.f32.mrf.mxu1 }
 0x7d7   :  { %5025 = vrot.lane.b32.xlu0 %v13367_v29, %s8846_s3  ;;  %5017 = vrot.lane.b32.xlu1 %v13329_v5, %s8846_s3 }
 0x7d9   :  { %v13450_v42 = vpop.f32.mrf.mxu1 }
 0x7db   :  { %5644 = vmatmul.bf16.gmra.mxu1 %v13013_v23  ;;  %v8698_v23 = vld [vmem:[%s14554_s4 + $0xa8] sm:$0xff] }
 0x7dc   :  { %5584 = vmatpush.bf16.msrb.mxu3 %v8698_v23 }
 0x7df   :  { %5037 = vrot.lane.b32.xlu0 %v4924_v10, %s8846_s3  ;;  %5029 = vrot.lane.b32.xlu1 %v13379_v60, %s8846_s3 }
 0x7e0   :  { %5585 = vmatpush.bf16.msrb.mxu3 %v8697_v40 }
 0x7e4   :  { %5586 = vmatpush.bf16.msrb.mxu3 %v8696_v7 }
 0x7eb   :  { %5649 = vmatmul.bf16.gmra.mxu1 %v13180_v18  ;;  %v8695_v18 = vld [vmem:[%s14554_s4 + $0x90] sm:$0xff] }
 0x7ec   :  { %5587 = vmatpush.bf16.msrb.mxu3 %v8695_v18 }
 0x7f0   :  { %5588 = vmatpush.bf16.msrb.mxu3 %v8694_v33  ;;  %v13458_v33 = vpop.f32.mrf.mxu1 }
 0x7f4   :  { %5589 = vmatpush.bf16.msrb.mxu3 %v8693_v26 }
 0x7fb   :  { %5654 = vmatmul.bf16.gmra.mxu1 %v5199_v31  ;;  %v13440_v37 = vpop.permute.xlu2 %5035  ;;  %v5180_v31 = vunpack.c.l.b16 %v13264_v25 }
 0x7fc   :  { %v5102_v45 = vsel %vm2029_vm14, %v13348_v47, %v13440_v37 }
 0x7fd   :  { %v5182_v35 = vunpack.c.l.b16 %v5102_v45 }
 0x80b   :  { %5659 = vmatmul.bf16.gmra.mxu1 %v13178_v46  ;;  %v5093_v46 = vsel %vm2029_vm14, %v13320_v27, %v13423_v28 }
 0x80c   :  { %v5170_v34 = vunpack.c.l.b16 %v5093_v46  ;;  %v4986_v46 = vpop.permute.xlu2 %4985 }
 0x80d   :  { %v5042_v25 = vsel %vm2029_vm14, %v13120_v36, %v4986_v46 }
 0x81b   :  { %5664 = vmatmul.bf16.gmra.mxu1 %v13240_v24 }
 0x821   :  { %v13430_v14 = vpop.permute.xlu0 %5027 }
 0x822   :  { %v5096_v21 = vsel %vm2029_vm14, %v13367_v29, %v13430_v14 }
 0x823   :  { %v5174_v16 = vunpack.c.l.b16 %v5096_v21  ;;  %v13462_v21 = vpop.f32.mrf.mxu2 }
 0x825   :  { %v5210_v2 = vpack.c.b16 %v5174_v16, %v5170_v34  ;;  %v5124_v16 = vunpack.c.l.b16 %v13183_v22  ;;  %v5133_v22 = vunpack.c.l.b16 %v13224_v61 }
 0x827   :  { %5571 = vmatmul.bf16.gmra.mxu2 %v5210_v2  ;;  %v5129_v2 = vunpack.c.l.b16 %v13199_v17  ;;  %v5137_v17 = vunpack.c.l.b16 %v13221_v1 }
 0x829   :  { %v13437_v24 = vpop.permute.xlu1 %5031  ;;  %v4978_v41 = vpop.permute.xlu0 %4977 }
 0x82a   :  { %v5099_v6 = vsel %vm2029_vm14, %v13379_v60, %v13437_v24  ;;  %v5040_v49 = vsel %vm2029_vm14, %v13147_v4, %v4978_v41  ;;  %v5216_v4 = vpack.c.b16 %v12813_v15, %v5180_v31  ;;  %v5131_v41 = vunpack.c.l.b16 %v5042_v25  ;;  %v13480_v31 = vpop.f32.mrf.mxu1 }
 0x82b   :  { %5669 = vmatmul.bf16.gmra.mxu1 %v13316_v57  ;;  %v5178_v13 = vunpack.c.l.b16 %v5099_v6  ;;  %v5122_v40 = vunpack.c.l.b16 %v5040_v49  ;;  %v5188_v6 = vpack.c.b16 %v5129_v2, %v5124_v16  ;;  %v13469_v45 = vpop.f32.mrf.mxu2 }
 0x82c   :  { %v5548_v12 = vadd.f32 %v13469_v45, %v13411_v3 }
 0x82d   :  { %v5214_v7 = vpack.c.b16 %v5182_v35, %v5178_v13 }
 0x831   :  { %v4982_v23 = vpop.permute.xlu1 %4981  ;;  %v4990_v26 = vpop.permute.xlu0 %4989 }
 0x832   :  { %v5041_v57 = vsel %vm2029_vm14, %v13138_v20, %v4982_v23  ;;  %v5043_v20 = vsel %vm2029_vm14, %v13201_v39, %v4990_v26  ;;  %v4998_v39 = vpop.permute.xlu2 %4997  ;;  %v5145_v26 = vunpack.c.l.b16 %v13272_v58 }
 0x833   :  { %v5127_v53 = vunpack.c.l.b16 %v5041_v57  ;;  %v5135_v34 = vunpack.c.l.b16 %v5043_v20  ;;  %v5045_v36 = vsel %vm2029_vm14, %v13216_v55, %v4998_v39  ;;  %v13477_v35 = vpop.f32.mrf.mxu2  ;;  %v13490_v20 = vpop.f32.mrf.mxu1 }
 0x834   :  { %v5143_v57 = vunpack.c.l.b16 %v5045_v36 }
 0x835   :  { %v5186_v18 = vpack.c.b16 %v5127_v53, %v5122_v40  ;;  %v5190_v15 = vpack.c.b16 %v5135_v34, %v5131_v41  ;;  %v5192_v53 = vpack.c.b16 %v5137_v17, %v5133_v22 }
 0x837   :  { %5576 = vmatmul.bf16.gmra.mxu2 %v5214_v7  ;;  %5590 = vmatmul.bf16.vlgmr.msrb.gmra.mxu3 %v5186_v18 }
 0x839   :  { %v4994_v49 = vpop.permute.xlu1 %4993 }
 0x83a   :  { %v5044_v13 = vsel %vm2029_vm14, %v13214_v44, %v4994_v49  ;;  %v5002_v44 = vpop.permute.xlu0 %5001  ;;  %v5152_v49 = vunpack.c.l.b16 %v13141_v51  ;;  %v5156_v51 = vunpack.c.l.b16 %v13336_v8 }
 0x83b   :  { %5674 = vmatmul.bf16.gmra.mxu1 %v5216_v4  ;;  %v5139_v23 = vunpack.c.l.b16 %v5044_v13  ;;  %v13482_v18 = vpop.f32.mrf.mxu2  ;;  %v5046_v1 = vsel %vm2029_vm14, %v13286_v19, %v5002_v44  ;;  %v5141_v4 = vunpack.c.l.b16 %v13278_v62  ;;  %v13497_v41 = vpop.f32.mrf.mxu1 }
 0x83c   :  { %v5147_v46 = vunpack.c.l.b16 %v5046_v1 }
 0x83d   :  { %v5194_v40 = vpack.c.b16 %v5143_v57, %v5139_v23  ;;  %v5196_v34 = vpack.c.b16 %v5145_v26, %v5141_v4  ;;  %v5161_v57 = vunpack.c.l.b16 %v13329_v5  ;;  %v5165_v26 = vunpack.c.l.b16 %v13320_v27 }
 0x841   :  { %v5006_v7 = vpop.permute.xlu1 %5005 }
 0x842   :  { %v5047_v55 = vsel %vm2029_vm14, %v13243_v63, %v5006_v7  ;;  %v5014_v2 = vpop.permute.xlu0 %5013  ;;  %v5010_v63 = vpop.permute.xlu2 %5009 }
 0x843   :  { %v5151_v61 = vunpack.c.l.b16 %v5047_v55  ;;  %v13493_v16 = vpop.f32.mrf.mxu2  ;;  %v5049_v19 = vsel %vm2029_vm14, %v13301_v11, %v5014_v2  ;;  %v5048_v58 = vsel %vm2029_vm14, %v13254_v56, %v5010_v63  ;;  %v13507_v11 = vpop.f32.mrf.mxu1  ;;  %v5205_v55 = vpack.c.b16 %v5161_v57, %v5156_v51 }
 0x844   :  { %v5154_v39 = vunpack.c.l.b16 %v5048_v58 }
 0x845   :  { %v5198_v25 = vpack.c.b16 %v5151_v61, %v5147_v46  ;;  %v5169_v46 = vunpack.c.l.b16 %v13367_v29 }
 0x847   :  { %5595 = vmatmul.bf16.gmra.mxu3 %v5190_v15  ;;  %8342 = vmatmul.msk.bf16.vlgmr.msrb.gmra.mxu2 %vm2029_vm14, %v5188_v6  ;;  %v5159_v15 = vunpack.c.l.b16 %v5049_v19  ;;  %v5149_v6 = vunpack.c.l.b16 %v4916_v38  ;;  %v5209_v63 = vpack.c.b16 %v5169_v46, %v5165_v26  ;;  %v5553_v46 = vadd.f32 %v13482_v18, %v13425_v52 }
 0x849   :  { %v5203_v13 = vpack.c.b16 %v5159_v15, %v5154_v39  ;;  %v5200_v36 = vpack.c.b16 %v5152_v49, %v5149_v6  ;;  %v5018_v22 = vpop.permute.xlu1 %5017  ;;  %v5173_v6 = vunpack.c.l.b16 %v13379_v60  ;;  %v5177_v39 = vunpack.c.l.b16 %v13348_v47 }
 0x84a   :  { %v5022_v56 = vpop.permute.xlu2 %5021  ;;  %v5050_v17 = vsel %vm2029_vm14, %v13333_v50, %v5018_v22  ;;  %v5026_v61 = vpop.permute.xlu0 %5025  ;;  %v5543_v47 = vadd.f32 %v13455_v54, %v13397_v0 }
 0x84b   :  { %v13501_v62 = vpop.f32.mrf.mxu2  ;;  %v5051_v32 = vsel %vm2029_vm14, %v13322_v9, %v5022_v56  ;;  %v5163_v38 = vunpack.c.l.b16 %v5050_v17  ;;  %v5052_v5 = vsel %vm2029_vm14, %v13423_v28, %v5026_v61  ;;  %v5213_v56 = vpack.c.b16 %v5177_v39, %v5173_v6 }
 0x851   :  { %v5030_v1 = vpop.permute.xlu1 %5029 }
 0x852   :  { %v5053_v8 = vsel %vm2029_vm14, %v13430_v14, %v5030_v1  ;;  %v5038_v58 = vpop.permute.xlu0 %5037  ;;  %v5034_v28 = vpop.permute.xlu2 %5033 }
 0x853   :  { %v13509_v23 = vpop.f32.mrf.mxu2  ;;  %v5175_v4 = vunpack.c.l.b16 %v5053_v8  ;;  %v5055_v14 = vsel %vm2029_vm14, %v13440_v37, %v5038_v58  ;;  %v5054_v27 = vsel %vm2029_vm14, %v13437_v24, %v5034_v28 }
 0x854   :  { %v5183_v29 = vunpack.c.l.b16 %v5055_v14 }
 0x857   :  { %5600 = vmatmul.bf16.gmra.mxu3 %v5194_v40  ;;  %8343 = vmatmul.msk.bf16.gmra.mxu2 %vm2029_vm14, %v5192_v53  ;;  %v13517_v40 = vpop.f32.mrf.mxu1  ;;  %v5167_v53 = vunpack.c.l.b16 %v5051_v32  ;;  %v5181_v32 = vunpack.c.l.b16 %v4924_v10 }
 0x859   :  { %v5207_v44 = vpack.c.b16 %v5167_v53, %v5163_v38  ;;  %v5217_v60 = vpack.c.b16 %v5152_v49, %v5181_v32 }
 0x85b   :  { %v13519_v7 = vpop.f32.mrf.mxu2 }
 0x85f   :  { %v13522_v50 = vpop.f32.mrf.mxu1 }
 0x863   :  { %v13524_v9 = vpop.f32.mrf.mxu2 }
 0x867   :  { %5605 = vmatmul.bf16.gmra.mxu3 %v5198_v25  ;;  %8344 = vmatmul.msk.bf16.gmra.mxu2 %vm2029_vm14, %v5196_v34  ;;  %v5171_v25 = vunpack.c.l.b16 %v5052_v5  ;;  %v13532_v34 = vpop.f32.mrf.mxu1 }
 0x869   :  { %v5211_v2 = vpack.c.b16 %v5175_v4, %v5171_v25 }
 0x86b   :  { %v13535_v19 = vpop.f32.mrf.mxu2 }
 0x86f   :  { %v13539_v15 = vpop.f32.mrf.mxu1 }
 0x877   :  { %5610 = vmatmul.bf16.gmra.mxu3 %v5203_v13  ;;  %8345 = vmatmul.msk.bf16.gmra.mxu2 %vm2029_vm14, %v5200_v36  ;;  %v13545_v13 = vpop.f32.mrf.mxu2  ;;  %v5179_v36 = vunpack.c.l.b16 %v5054_v27  ;;  %v5640_v37 = vpop.f32.mrf.mxu1 }
 0x879   :  { %v5215_v22 = vpack.c.b16 %v5183_v29, %v5179_v36 }
 0x87f   :  { %v5642_v38 = vpop.f32.mrf.mxu1 }
 0x887   :  { %5615 = vmatmul.bf16.gmra.mxu3 %v5207_v44  ;;  %8346 = vmatmul.msk.bf16.gmra.mxu2 %vm2029_vm14, %v5205_v55  ;;  %v5645_v44 = vpop.f32.mrf.mxu1 }
 0x88f   :  { %v5647_v61 = vpop.f32.mrf.mxu1 }
 0x897   :  { %5620 = vmatmul.bf16.gmra.mxu3 %v5211_v2  ;;  %8347 = vmatmul.msk.bf16.gmra.mxu2 %vm2029_vm14, %v5209_v63  ;;  %v5650_v26 = vpop.f32.mrf.mxu1 }
 0x89f   :  { %v5652_v58 = vpop.f32.mrf.mxu1 }
 0x8a7   :  { %5625 = vmatmul.bf16.gmra.mxu3 %v5215_v22  ;;  %8348 = vmatmul.msk.bf16.gmra.mxu2 %vm2029_vm14, %v5213_v56  ;;  %v5655_v29 = vpop.f32.mrf.mxu1 }
 0x8aa   :  { %v13548_v17 = vpop.f32.mrf.mxu2 }
 0x8af   :  { %v5657_v22 = vpop.f32.mrf.mxu1 }
 0x8b2   :  { %v13552_v24 = vpop.f32.mrf.mxu2 }
 0x8b7   :  { %8349 = vmatmul.msk.bf16.gmra.mxu2 %vm2029_vm14, %v5217_v60  ;;  %v13571_v32 = vpop.f32.mrf.mxu1 }
 0x8ba   :  { %v13557_v51 = vpop.f32.mrf.mxu2  ;;  %v5591_v57 = vpop.f32.mrf.mxu3 }
 0x8bb   :  { %v5592_v53 = vadd.f32 %v5591_v57, %v5543_v47 }
 0x8bd   :  { %v5641_v10 = vadd.f32 %v5640_v37, %v5592_v53 }
 0x8bf   :  { %v13573_v57 = vpop.f32.mrf.mxu1 }
 0x8c2   :  { %v13559_v55 = vpop.f32.mrf.mxu2  ;;  %v5593_v1 = vpop.f32.mrf.mxu3 }
 0x8c3   :  { %15436 = vst [vmem:[#allocation10_spill] sm:$0xff] %v13559_v55 }
 0x8ca   :  { %v5596_v8 = vpop.f32.mrf.mxu3  ;;  %v5689_v49 = vpop.f32.mrf.mxu2 }
 0x8cb   :  { %v5597_v5 = vadd.f32 %v5596_v8, %v5548_v12  ;;  %v13563_v4 = vadd.f32 %v5689_v49, %v5641_v10  ;;  %v13577_v12 = vpop.f32.mrf.mxu1  ;;  %v5545_v49 = vadd.f32 %v13462_v21, %v13403_v30  ;;  %v5558_v30 = vadd.f32 %v13501_v62, %v13450_v42 }
 0x8cc   :  { %v5563_v62 = vadd.f32 %v13519_v7, %v13480_v31 }
 0x8cd   :  { %v5646_v25 = vadd.f32 %v5645_v44, %v5597_v5 }
 0x8d2   :  { %v5598_v0 = vpop.f32.mrf.mxu3  ;;  %v5691_v54 = vpop.f32.mrf.mxu2 }
 0x8d3   :  { %v13585_v5 = vpop.f32.mrf.mxu1 }
 0x8da   :  { %v5601_v2 = vpop.f32.mrf.mxu3  ;;  %v5694_v63 = vpop.f32.mrf.mxu2 }
 0x8db   :  { %v5602_v14 = vadd.f32 %v5601_v2, %v5553_v46  ;;  %v13567_v28 = vadd.f32 %v5694_v63, %v5646_v25  ;;  %v5550_v2 = vadd.f32 %v13477_v35, %v13420_v43  ;;  %v13599_v21 = vpop.f32.mrf.mxu1  ;;  %v5560_v43 = vadd.f32 %v13509_v23, %v13458_v33 }
 0x8dc   :  { %v5767_v35 = vmul.f32 %v13563_v4, %v13563_v4  ;;  %v5568_v33 = vadd.f32 %v13535_v19, %v13497_v41 }
 0x8dd   :  { %v5651_v3 = vadd.f32 %v5650_v26, %v5602_v14  ;;  %v5594_v26 = vadd.f32 %v5593_v1, %v5545_v49  ;;  %v5599_v14 = vadd.f32 %v5598_v0, %v5550_v2  ;;  %v5769_v42 = vmul.f32 %v13567_v28, %v13567_v28 }
 0x8df   :  { %v5643_v63 = vadd.f32 %v5642_v38, %v5594_v26  ;;  %v5648_v55 = vadd.f32 %v5647_v61, %v5599_v14  ;;  %v5565_v61 = vadd.f32 %v13524_v9, %v13490_v20  ;;  %v5732_v20 = vsel %vm2029_vm14, %v13567_v28, 0.0 }
 0x8e0   :  { %v5786_v41 = vsel %vm2029_vm14, %v5769_v42, 0.0 }
 0x8e2   :  { %v5603_v45 = vpop.f32.mrf.mxu3  ;;  %v5696_v27 = vpop.f32.mrf.mxu2 }
 0x8ea   :  { %v5606_v6 = vpop.f32.mrf.mxu3  ;;  %v5699_v39 = vpop.f32.mrf.mxu2 }
 0x8eb   :  { %v13569_v36 = vadd.f32 %v5699_v39, %v5651_v3  ;;  %v13593_v3 = vadd.f32 %v5691_v54, %v5643_v63  ;;  %v5555_v39 = vadd.f32 %v13493_v16, %v13435_v59  ;;  %v5607_v38 = vadd.f32 %v5606_v6, %v5558_v30 }
 0x8ec   :  { %v13613_v16 = vadd.f32 %v5696_v27, %v5648_v55  ;;  %v5570_v54 = vadd.f32 %v13545_v13, %v13507_v11  ;;  %v5783_v6 = vsel %vm2029_vm14, %v5767_v35, 0.0 }
 0x8ed   :  { %v5768_v49 = vmul.f32 %v13593_v3, %v13593_v3  ;;  %v5604_v48 = vadd.f32 %v5603_v45, %v5555_v39  ;;  %v5730_v59 = vsel %vm2029_vm14, %v13593_v3, 0.0  ;;  %v5729_v45 = vsel %vm2029_vm14, %v13563_v4, 0.0 }
 0x8ee   :  { %v5731_v31 = vadd.f32 %v5730_v59, %v5729_v45  ;;  %v5656_v26 = vadd.f32 %v5655_v29, %v5607_v38  ;;  %v5770_v9 = vmul.f32 %v13613_v16, %v13613_v16  ;;  %v5575_v29 = vadd.f32 %v13552_v24, %v13522_v50 }
 0x8ef   :  { %v5784_v55 = vsel %vm2029_vm14, %v5768_v49, 0.0  ;;  %v5653_v27 = vadd.f32 %v5652_v58, %v5604_v48  ;;  %v5734_v2 = vsel %vm2029_vm14, %v13613_v16, 0.0  ;;  %v5771_v63 = vmul.f32 %v13569_v36, %v13569_v36 }
 0x8f0   :  { %v5785_v19 = vadd.f32 %v5784_v55, %v5783_v6  ;;  %v5733_v14 = vadd.f32 %v5732_v20, %v5731_v31 }
 0x8f2   :  { %v5608_v56 = vpop.f32.mrf.mxu3  ;;  %v5701_v37 = vpop.f32.mrf.mxu2  ;;  %v5787_v39 = vadd.f32 %v5786_v41, %v5785_v19  ;;  %v5735_v24 = vadd.f32 %v5734_v2, %v5733_v14 }
 0x8f3   :  { %v5609_v23 = vadd.f32 %v5608_v56, %v5560_v43  ;;  %v13632_v11 = vadd.f32 %v5701_v37, %v5653_v27  ;;  %v5672_v37 = vpop.f32.mrf.mxu1  ;;  %v5790_v43 = vsel %vm2029_vm14, %v5771_v63, 0.0 }
 0x8f5   :  { %v5658_v48 = vadd.f32 %v5657_v22, %v5609_v23  ;;  %v5772_v50 = vmul.f32 %v13632_v11, %v13632_v11  ;;  %v5738_v35 = vsel %vm2029_vm14, %v13632_v11, 0.0 }
 0x8fa   :  { %v5611_v52 = vpop.f32.mrf.mxu3  ;;  %v5704_v18 = vpop.f32.mrf.mxu2 }
 0x8fb   :  { %v5612_v7 = vadd.f32 %v5611_v52, %v5563_v62  ;;  %v13634_v13 = vadd.f32 %v5704_v18, %v5656_v26  ;;  %v5573_v52 = vadd.f32 %v13548_v17, %v13517_v40  ;;  %v5736_v40 = vsel %vm2029_vm14, %v13569_v36, 0.0 }
 0x8fc   :  { %v5737_v59 = vadd.f32 %v5736_v40, %v5735_v24 }
 0x8fd   :  { %v5661_v22 = vadd.f32 %v13571_v32, %v5612_v7  ;;  %v5773_v30 = vmul.f32 %v13634_v13, %v13634_v13  ;;  %v5578_v32 = vadd.f32 %v13557_v51, %v13532_v34  ;;  %v5740_v34 = vsel %vm2029_vm14, %v13634_v13, 0.0 }
 0x8ff   :  { %v5794_v23 = vsel %vm2029_vm14, %v5773_v30, 0.0 }
 0x902   :  { %v5613_v60 = vpop.f32.mrf.mxu3  ;;  %v5706_v47 = vpop.f32.mrf.mxu2 }
 0x903   :  { %v5614_v56 = vadd.f32 %v5613_v60, %v5565_v61  ;;  %v13644_v18 = vadd.f32 %v5706_v47, %v5658_v48  ;;  %v5788_v60 = vsel %vm2029_vm14, %v5770_v9, 0.0  ;;  %v5675_v9 = vpop.f32.mrf.mxu1 }
 0x905   :  { %v5663_v47 = vadd.f32 %v13573_v57, %v5614_v56  ;;  %v5774_v42 = vmul.f32 %v13644_v18, %v13644_v18  ;;  %v5792_v57 = vsel %vm2029_vm14, %v5772_v50, 0.0 }
 0x90a   :  { %v5616_v53 = vpop.f32.mrf.mxu3  ;;  %v13575_v44 = vpop.f32.mrf.mxu2 }
 0x90b   :  { %v5617_v17 = vadd.f32 %v5616_v53, %v5568_v33  ;;  %v13655_v49 = vadd.f32 %v13575_v44, %v5661_v22  ;;  %v5789_v53 = vadd.f32 %v5788_v60, %v5787_v39  ;;  %v15437_v60 = vld [vmem:[#allocation10_spill] sm:$0xff] }
 0x90c   :  { %v5580_v40 = vadd.f32 %v15437_v60, %v13539_v15 }
 0x90d   :  { %v5666_v61 = vadd.f32 %v13577_v12, %v5617_v17  ;;  %v5791_v33 = vadd.f32 %v5790_v43, %v5789_v53  ;;  %v5796_v12 = vsel %vm2029_vm14, %v5774_v42, 0.0  ;;  %v5744_v26 = vsel %vm2029_vm14, %v13655_v49, 0.0 }
 0x912   :  { %v13579_v10 = vpop.f32.mrf.mxu3  ;;  %v13581_v8 = vpop.f32.mrf.mxu2 }
 0x913   :  { %v5619_v38 = vadd.f32 %v13579_v10, %v5570_v54  ;;  %v13667_v44 = vadd.f32 %v13581_v8, %v5663_v47  ;;  %v5739_v10 = vadd.f32 %v5738_v35, %v5737_v59  ;;  %v5775_v54 = vmul.f32 %v13655_v49, %v13655_v49 }
 0x914   :  { %v5742_v8 = vsel %vm2029_vm14, %v13644_v18, 0.0 }
 0x915   :  { %v5668_v6 = vadd.f32 %v13585_v5, %v5619_v38  ;;  %v5741_v31 = vadd.f32 %v5740_v34, %v5739_v10  ;;  %v5776_v7 = vmul.f32 %v13667_v44, %v13667_v44  ;;  %v5798_v5 = vsel %vm2029_vm14, %v5775_v54, 0.0 }
 0x916   :  { %v5746_v56 = vsel %vm2029_vm14, %v13667_v44, 0.0 }
 0x917   :  { %v5743_v19 = vadd.f32 %v5742_v8, %v5741_v31  ;;  %v5800_v63 = vsel %vm2029_vm14, %v5776_v7, 0.0 }
 0x91a   :  { %v13587_v46 = vpop.f32.mrf.mxu2  ;;  %v13589_v25 = vpop.f32.mrf.mxu3 }
 0x91b   :  { %v5622_v51 = vadd.f32 %v13589_v25, %v5573_v52  ;;  %v13680_v55 = vadd.f32 %v13587_v46, %v5666_v61  ;;  %v5793_v25 = vadd.f32 %v5792_v57, %v5791_v33  ;;  %v5677_v61 = vpop.f32.mrf.mxu1 }
 0x91d   :  { %v5671_v46 = vadd.f32 %v13599_v21, %v5622_v51  ;;  %v5777_v48 = vmul.f32 %v13680_v55, %v13680_v55  ;;  %v5748_v21 = vsel %vm2029_vm14, %v13680_v55, 0.0 }
 0x91f   :  { %v5802_v24 = vsel %vm2029_vm14, %v5777_v48, 0.0 }
 0x922   :  { %v13601_v1 = vpop.f32.mrf.mxu2  ;;  %v5623_v0 = vpop.f32.mrf.mxu3 }
 0x923   :  { %v5624_v27 = vadd.f32 %v5623_v0, %v5575_v29  ;;  %v13689_v20 = vadd.f32 %v13601_v1, %v5668_v6  ;;  %v5795_v0 = vadd.f32 %v5794_v23, %v5793_v25  ;;  %v5745_v1 = vadd.f32 %v5744_v26, %v5743_v19 }
 0x925   :  { %v5673_v29 = vadd.f32 %v5672_v37, %v5624_v27  ;;  %v5797_v2 = vadd.f32 %v5796_v12, %v5795_v0  ;;  %v5778_v14 = vmul.f32 %v13689_v20, %v13689_v20  ;;  %v5750_v30 = vsel %vm2029_vm14, %v13689_v20, 0.0 }
 0x927   :  { %v5799_v50 = vadd.f32 %v5798_v5, %v5797_v2  ;;  %v5804_v38 = vsel %vm2029_vm14, %v5778_v14, 0.0 }
 0x929   :  { %v5801_v43 = vadd.f32 %v5800_v63, %v5799_v50 }
 0x92a   :  { %v5719_v58 = vpop.f32.mrf.mxu2  ;;  %v5626_v62 = vpop.f32.mrf.mxu3 }
 0x92b   :  { %v5627_v41 = vadd.f32 %v5626_v62, %v5578_v32  ;;  %v13697_v52 = vadd.f32 %v5719_v58, %v5671_v46  ;;  %v5747_v58 = vadd.f32 %v5746_v56, %v5745_v1  ;;  %v5803_v42 = vadd.f32 %v5802_v24, %v5801_v43 }
 0x92d   :  { %v5676_v22 = vadd.f32 %v5675_v9, %v5627_v41  ;;  %v5779_v47 = vmul.f32 %v13697_v52, %v13697_v52  ;;  %v5749_v35 = vadd.f32 %v5748_v21, %v5747_v58  ;;  %v5752_v15 = vsel %vm2029_vm14, %v13697_v52, 0.0 }
 0x92e   :  { %v5805_v33 = vadd.f32 %v5804_v38, %v5803_v42 }
 0x92f   :  { %v5751_v62 = vadd.f32 %v5750_v30, %v5749_v35  ;;  %v5806_v57 = vsel %vm2029_vm14, %v5779_v47, 0.0 }
 0x930   :  { %v5807_v8 = vadd.f32 %v5806_v57, %v5805_v33  ;;  %v8747_v33 = vld [vmem:[%s14557_s7 + $0x110] sm:$0xff] }
 0x931   :  { %v5753_v10 = vadd.f32 %v5752_v15, %v5751_v62  ;;  %v4053_v15 = vld [vmem:[%s14555_s5] sm:$0x1]  ;;  %v8748_v62 = vld [vmem:[%s14557_s7 + $0x118] sm:$0xff] }
 0x932   :  { %v5721_v45 = vpop.f32.mrf.mxu2  ;;  %v5628_v17 = vpop.f32.mrf.mxu3  ;;  %7137 = vmatpush.bf16.msrb.mxu1 %v8748_v62 }
 0x933   :  { %v13704_v39 = vadd.f32 %v5721_v45, %v5673_v29  ;;  %v5629_v53 = vadd.f32 %v5628_v17, %v5580_v40 }
 0x935   :  { %v5780_v59 = vmul.f32 %v13704_v39, %v13704_v39  ;;  %v5754_v34 = vsel %vm2029_vm14, %v13704_v39, 0.0  ;;  %v5678_v45 = vadd.f32 %v5677_v61, %v5629_v53  ;;  %v13749_v61 = vld [vmem:[%s14556_s6] ss:$0 sm:$0xff] }
 0x936   :  { %v5755_v27 = vadd.f32 %v5754_v34, %v5753_v10  ;;  %7138 = vmatpush.bf16.msrb.mxu1 %v8747_v33 }
 0x937   :  { %v5808_v23 = vsel %vm2029_vm14, %v5780_v59, 0.0 }
 0x938   :  { %v5809_v12 = vadd.f32 %v5808_v23, %v5807_v8 }
 0x93a   :  { %v5724_v37 = vpop.f32.mrf.mxu2 }
 0x93b   :  { %v13713_v32 = vadd.f32 %v5724_v37, %v5676_v22 }
 0x93d   :  { %v5781_v51 = vmul.f32 %v13713_v32, %v13713_v32  ;;  %v5756_v54 = vsel %vm2029_vm14, %v13713_v32, 0.0 }
 0x93e   :  { %v5757_v7 = vadd.f32 %v5756_v54, %v5755_v27 }
 0x93f   :  { %v5810_v25 = vsel %vm2029_vm14, %v5781_v51, 0.0 }
 0x940   :  { %v5811_v46 = vadd.f32 %v5810_v25, %v5809_v12 }
 0x942   :  { %v5726_v6 = vpop.f32.mrf.mxu2 }
 0x943   :  { %v5727_v31 = vadd.f32 %v5726_v6, %v5678_v45 }
 0x945   :  { %v5758_v26 = vsel %vm2029_vm14, %v5727_v31, 0.0  ;;  %v5782_v41 = vmul.f32 %v5727_v31, %v5727_v31 }
 0x946   :  { %v5759_v9 = vadd.f32 %v5758_v26, %v5757_v7 }
 0x947   :  { %v5812_v0 = vsel %vm2029_vm14, %v5782_v41, 0.0 }
 0x948   :  { %v5760_v19 = vrot.slane %v5759_v9, 4  ;;  %v5813_v5 = vadd.f32 %v5812_v0, %v5811_v46 }
 0x94a   :  { %v5761_v56 = vadd.f32 %v5760_v19, %v5759_v9  ;;  %v5814_v48 = vrot.slane %v5813_v5, 4 }
 0x94c   :  { %v5762_v29 = vrot.slane %v5761_v56, 2  ;;  %v5815_v2 = vadd.f32 %v5814_v48, %v5813_v5 }
 0x94e   :  { %v5763_v1 = vadd.f32 %v5762_v29, %v5761_v56  ;;  %v5816_v63 = vrot.slane %v5815_v2, 2 }
 0x950   :  { %v5764_v21 = vrot.slane %v5763_v1, 1  ;;  %v5817_v14 = vadd.f32 %v5816_v63, %v5815_v2 }
 0x952   :  { %v5765_v22 = vadd.f32 %v5764_v21, %v5763_v1  ;;  %v5818_v60 = vrot.slane %v5817_v14, 1 }
 0x954   :  { %v13731_v40 = vmul.f32 0.0078125, %v5765_v22  ;;  %v5819_v50 = vadd.f32 %v5818_v60, %v5817_v14 }
 0x956   :  { %v5820_v58 = vmul.f32 0.0078125, %v5819_v50  ;;  %v5821_v17 = vmul.f32 %v13731_v40, %v13731_v40  ;;  %v5849_v57 = vsub.f32 %v13713_v32, %v13731_v40  ;;  %v5850_v34 = vsub.f32 %v5727_v31, %v13731_v40 }
 0x957   :  { %v5839_v10 = vsub.f32 %v13569_v36, %v13731_v40  ;;  %v5840_v32 = vsub.f32 %v13632_v11, %v13731_v40  ;;  %v8746_v36 = vld [vmem:[%s14557_s7 + $0x108] sm:$0xff] }
 0x958   :  { %v5822_v37 = vsub.f32 %v5820_v58, %v5821_v17  ;;  %7139 = vmatpush.bf16.msrb.mxu1 %v8746_v36 }
 0x95a   :  { %v5823_v24 = vadd.f32 1e-05, %v5822_v37 }
 0x95c   :  { %8809 = vrsqrt.f32 %v5823_v24  ;;  %vm5830_vm11 = vweird.f32 %v5823_v24 }
 0x962   :  { %v8810_v30 = vpop.eup %8809 }
 0x963   :  { %v5825_v47 = vmul.f32 %v8810_v30, %v5823_v24  ;;  %vm5831_vm5 = vweird.f32 %v8810_v30 }
 0x964   :  { %vm5832_vm12 = vmor %vm5830_vm11, %vm5831_vm5  ;;  %vm7479_vm5 = vsmask.f32 1280 }
 0x965   :  { %v5826_v43 = vmul.f32 %v8810_v30, %v5825_v47 }
 0x967   :  { %v5827_v35 = vmul.f32 0.5, %v5826_v43 }
 0x969   :  { %v5828_v38 = vsub.f32 1.5, %v5827_v35 }
 0x96b   :  { %v5829_v53 = vmul.f32 %v8810_v30, %v5828_v38 }
 0x96d   :  { %v5833_v59 = vsel %vm5832_vm12, %v8810_v30, %v5829_v53 }
 0x96e   :  { %v5834_v42 = vmul.f32 %v5833_v59, %v4053_v15 }
 0x970   :  { %v13744_v51 = vperm.slane %v5834_v42, 0 }
 0x972   :  { %v5866_v23 = vmul.f32 %v13744_v51, %v5849_v57  ;;  %v5867_v54 = vmul.f32 %v13744_v51, %v5850_v34  ;;  %v5856_v45 = vmul.f32 %v13744_v51, %v5839_v10  ;;  %v5857_v8 = vmul.f32 %v13744_v51, %v5840_v32 }
 0x973   :  { %v5837_v10 = vsub.f32 %v13567_v28, %v13731_v40  ;;  %v5838_v32 = vsub.f32 %v13613_v16, %v13731_v40 }
 0x974   :  { %v5885_v27 = vadd.f32 %v13749_v61, %v5866_v23  ;;  %v5886_v6 = vadd.f32 %v13749_v61, %v5867_v54  ;;  %v5875_v25 = vadd.f32 %v13749_v61, %v5856_v45  ;;  %v5876_v11 = vadd.f32 %v13749_v61, %v5857_v8 }
 0x976   :  { %v5901_v31 = vmax.f32 %v5885_v27, 0.0  ;;  %v5902_v12 = vmax.f32 %v5886_v6, 0.0  ;;  %v5891_v7 = vmax.f32 %v5875_v25, 0.0  ;;  %v5892_v26 = vmax.f32 %v5876_v11, 0.0 }
 0x977   :  { %v5854_v27 = vmul.f32 %v13744_v51, %v5837_v10  ;;  %v5855_v6 = vmul.f32 %v13744_v51, %v5838_v32 }
 0x978   :  { %v5924_v41 = vsel %vm2029_vm14, %v5901_v31, -inf  ;;  %v5925_v46 = vsel %vm2029_vm14, %v5902_v12, -inf  ;;  %v5909_v9 = vsel %vm2029_vm14, %v5891_v7, -inf  ;;  %v5910_v0 = vsel %vm2029_vm14, %v5892_v26, -inf }
 0x979   :  { %v13773_v19 = vmax.f32 %v5924_v41, %v5925_v46  ;;  %v5911_v5 = vmax.f32 %v5909_v9, %v5910_v0  ;;  %v5873_v12 = vadd.f32 %v13749_v61, %v5854_v27  ;;  %v5874_v7 = vadd.f32 %v13749_v61, %v5855_v6 }
 0x97b   :  { %v5941_v56 = vrot.slane %v5911_v5, 2  ;;  %v5942_v48 = vrot.slane %v5911_v5, 4  ;;  %v5943_v29 = vrot.slane %v5911_v5, 6  ;;  %v6039_v2 = vsel %vm2956_vm4, %v5911_v5, -inf }
 0x97c   :  { %v6040_v1 = vrot.slane %v6039_v2, 4  ;;  %v5889_v16 = vmax.f32 %v5873_v12, 0.0  ;;  %v5890_v46 = vmax.f32 %v5874_v7, 0.0 }
 0x97d   :  { %v6046_v63 = vsel %vm2956_vm4, %v5941_v56, -inf  ;;  %v6053_v21 = vsel %vm2956_vm4, %v5942_v48, -inf  ;;  %v6060_v14 = vsel %vm2956_vm4, %v5943_v29, -inf }
 0x97e   :  { %v6041_v22 = vmax.f32 %v6039_v2, %v6040_v1  ;;  %v6047_v60 = vrot.slane %v6046_v63, 4  ;;  %v6054_v50 = vrot.slane %v6053_v21, 4  ;;  %v6061_v58 = vrot.slane %v6060_v14, 4 }
 0x97f   :  { %v5906_v56 = vsel %vm2029_vm14, %v5889_v16, -inf  ;;  %v5907_v48 = vsel %vm2029_vm14, %v5890_v46, -inf }
 0x980   :  { %v6042_v17 = vrot.slane %v6041_v22, 2  ;;  %v6048_v37 = vmax.f32 %v6046_v63, %v6047_v60  ;;  %v6055_v24 = vmax.f32 %v6053_v21, %v6054_v50  ;;  %v6062_v30 = vmax.f32 %v6060_v14, %v6061_v58 }
 0x981   :  { %v5908_v1 = vmax.f32 %v5906_v56, %v5907_v48 }
 0x982   :  { %v6043_v47 = vmax.f32 %v6041_v22, %v6042_v17  ;;  %v6049_v43 = vrot.slane %v6048_v37, 2  ;;  %v6056_v35 = vrot.slane %v6055_v24, 2  ;;  %v6063_v38 = vrot.slane %v6062_v30, 2 }
 0x983   :  { %v5938_v14 = vrot.slane %v5908_v1, 2  ;;  %v5939_v22 = vrot.slane %v5908_v1, 4  ;;  %v5940_v60 = vrot.slane %v5908_v1, 6  ;;  %v6011_v58 = vsel %vm2956_vm4, %v5908_v1, -inf }
 0x984   :  { %v6044_v15 = vrot.slane %v6043_v47, 1  ;;  %v6050_v53 = vmax.f32 %v6048_v37, %v6049_v43  ;;  %v6057_v59 = vmax.f32 %v6055_v24, %v6056_v35  ;;  %v6064_v42 = vmax.f32 %v6062_v30, %v6063_v38 }
 0x985   :  { %v6012_v17 = vrot.slane %v6011_v58, 4  ;;  %v6018_v37 = vsel %vm2956_vm4, %v5938_v14, -inf  ;;  %v6025_v24 = vsel %vm2956_vm4, %v5939_v22, -inf  ;;  %v6032_v30 = vsel %vm2956_vm4, %v5940_v60, -inf }
 0x986   :  { %v6045_v62 = vmax.f32 %v6043_v47, %v6044_v15  ;;  %v6051_v57 = vrot.slane %v6050_v53, 1  ;;  %v6058_v34 = vrot.slane %v6057_v59, 1  ;;  %v6065_v33 = vrot.slane %v6064_v42, 1 }
 0x987   :  { %v6019_v43 = vrot.slane %v6018_v37, 4  ;;  %v6026_v35 = vrot.slane %v6025_v24, 4  ;;  %v6013_v38 = vmax.f32 %v6011_v58, %v6012_v17  ;;  %v6033_v15 = vrot.slane %v6032_v30, 4 }
 0x988   :  { %v6052_v23 = vmax.f32 %v6050_v53, %v6051_v57  ;;  %v6059_v54 = vmax.f32 %v6057_v59, %v6058_v34  ;;  %v6066_v45 = vmax.f32 %v6064_v42, %v6065_v33  ;;  %v6215_v8 = vpack.c.bf16 %v6045_v62, %v6045_v62 }
 0x989   :  { %v6020_v42 = vmax.f32 %v6018_v37, %v6019_v43  ;;  %v6027_v62 = vmax.f32 %v6025_v24, %v6026_v35  ;;  %v6014_v57 = vrot.slane %v6013_v38, 2  ;;  %v6034_v34 = vmax.f32 %v6032_v30, %v6033_v15 }
 0x98a   :  { %v6216_v36 = vpack.c.bf16 %v6052_v23, %v6052_v23  ;;  %v6217_v25 = vpack.c.bf16 %v6059_v54, %v6059_v54  ;;  %v6218_v11 = vpack.c.bf16 %v6066_v45, %v6066_v45  ;;  %v6353_v31 = vperm.slane %v6215_v8, 0 }
 0x98b   :  { %v6021_v10 = vrot.slane %v6020_v42, 2  ;;  %v6028_v32 = vrot.slane %v6027_v62, 2  ;;  %v6015_v23 = vmax.f32 %v6013_v38, %v6014_v57  ;;  %v6035_v54 = vrot.slane %v6034_v34, 2 }
 0x98c   :  { %v6354_v28 = vperm.slane %v6216_v36, 0  ;;  %v6355_v26 = vperm.slane %v6217_v25, 0  ;;  %v6356_v41 = vperm.slane %v6218_v11, 0  ;;  %v6385_v9 = vunpack.c.l.b16 %v6353_v31 }
 0x98d   :  { %v5835_v45 = vsub.f32 %v13563_v4, %v13731_v40  ;;  %v6022_v6 = vmax.f32 %v6020_v42, %v6021_v10  ;;  %v6029_v36 = vmax.f32 %v6027_v62, %v6028_v32  ;;  %v5836_v25 = vsub.f32 %v13593_v3, %v13731_v40 }
 0x98e   :  { %v6386_v0 = vunpack.c.l.b16 %v6354_v28  ;;  %v6387_v5 = vunpack.c.l.b16 %v6355_v26  ;;  %v6388_v29 = vunpack.c.l.b16 %v6356_v41  ;;  %v6016_v12 = vrot.slane %v6015_v23, 1 }
 0x98f   :  { %v6036_v7 = vmax.f32 %v6034_v34, %v6035_v54  ;;  %v5852_v28 = vmul.f32 %v13744_v51, %v5835_v45  ;;  %v6023_v41 = vrot.slane %v6022_v6, 1  ;;  %v6030_v46 = vrot.slane %v6029_v36, 1 }
 0x990   :  { %v6415_v2 = vsel %vm4439_vm6, %v6386_v0, %v6385_v9  ;;  %v6017_v16 = vmax.f32 %v6015_v23, %v6016_v12  ;;  %v5853_v0 = vmul.f32 %v13744_v51, %v5836_v25 }
 0x991   :  { %v6416_v63 = vsel %vm4441_vm8, %v6387_v5, %v6415_v2  ;;  %v6037_v9 = vrot.slane %v6036_v7, 1  ;;  %v6024_v56 = vmax.f32 %v6022_v6, %v6023_v41  ;;  %v5871_v48 = vadd.f32 %v13749_v61, %v5852_v28 }
 0x992   :  { %v6417_v21 = vsel %vm4443_vm9, %v6388_v29, %v6416_v63  ;;  %v6031_v29 = vmax.f32 %v6029_v36, %v6030_v46  ;;  %v6211_v1 = vpack.c.bf16 %v6017_v16, %v6017_v16  ;;  %v5872_v63 = vadd.f32 %v13749_v61, %v5853_v0 }
 0x993   :  { %v6435_v50 = vpack.c.b16 %v6417_v21, %v6417_v21  ;;  %v6038_v2 = vmax.f32 %v6036_v7, %v6037_v9  ;;  %v6212_v14 = vpack.c.bf16 %v6024_v56, %v6024_v56  ;;  %v5887_v22 = vmax.f32 %v5871_v48, 0.0 }
 0x994   :  { %v6213_v60 = vpack.c.bf16 %v6031_v29, %v6031_v29  ;;  %v6349_v58 = vperm.slane %v6211_v1, 0  ;;  %v5888_v17 = vmax.f32 %v5872_v63, 0.0  ;;  %v8745_v29 = vld [vmem:[%s14557_s7 + $0x100] sm:$0xff]  ;;  %v5842_v1 = vsub.f32 %v13644_v18, %v13731_v40 }
 0x995   :  { %v6456_v47 = vshrl.u32 %v6435_v50, 16  ;;  %v6459_v59 = vshll.u32 %v6435_v50, 16  ;;  %v6214_v50 = vpack.c.bf16 %v6038_v2, %v6038_v2  ;;  %v6350_v37 = vperm.slane %v6212_v14, 0  ;;  %7140 = vmatpush.bf16.msrb.mxu1 %v8745_v29 }
 0x996   :  { %v5903_v24 = vsel %vm2029_vm14, %v5887_v22, -inf  ;;  %v6351_v30 = vperm.slane %v6213_v60, 0  ;;  %v5904_v43 = vsel %vm2029_vm14, %v5888_v17, -inf  ;;  %v6381_v35 = vunpack.c.l.b16 %v6349_v58 }
 0x997   :  { %v6458_v53 = vrot.slane %v6456_v47, 7  ;;  %v6352_v47 = vperm.slane %v6214_v50, 0  ;;  %v6382_v38 = vunpack.c.l.b16 %v6350_v37  ;;  %v5905_v15 = vmax.f32 %v5903_v24, %v5904_v43 }
 0x998   :  { %v5841_v2 = vsub.f32 %v13634_v13, %v13731_v40  ;;  %v5859_v58 = vmul.f32 %v13744_v51, %v5842_v1  ;;  %v5956_v43 = vrot.slane %v13773_v19, 2 }
 0x999   :  { %v6461_v33 = vor.u32 %v6459_v59, %v6458_v53  ;;  %v6383_v53 = vunpack.c.l.b16 %v6351_v30  ;;  %v6384_v59 = vunpack.c.l.b16 %v6352_v47  ;;  %v6412_v42 = vsel %vm4439_vm6, %v6382_v38, %v6381_v35 }
 0x99a   :  { %v5935_v62 = vrot.slane %v5905_v15, 2  ;;  %v5936_v57 = vrot.slane %v5905_v15, 4  ;;  %v5937_v34 = vrot.slane %v5905_v15, 6  ;;  %v5983_v10 = vsel %vm2956_vm4, %v5905_v15, -inf }
 0x99b   :  { %v6507_v27 = vsel %vm8932_vm2, 0, %v6461_v33  ;;  %v6413_v33 = vsel %vm4441_vm8, %v6383_v53, %v6412_v42  ;;  %v5984_v23 = vrot.slane %v5983_v10, 4  ;;  %v5858_v50 = vmul.f32 %v13744_v51, %v5841_v2 }
 0x99c   :  { %v13804_v31 = vsel %vm8982_vm7, %v6507_v27, 0  ;;  %v6414_v32 = vsel %vm4443_vm9, %v6384_v59, %v6413_v33  ;;  %v5990_v54 = vsel %vm2956_vm4, %v5935_v62, -inf  ;;  %v5997_v45 = vsel %vm2956_vm4, %v5936_v57, -inf }
 0x99d   :  { %v6549_v26 = vshll.u32 %v13804_v31, 16  ;;  %v13809_v4 = vrot.slane %v13804_v31, 1  ;;  %v6547_v3 = vshrl.u32 %v13804_v31, 16  ;;  %v6434_v27 = vpack.c.b16 %v6414_v32, %v6414_v32 }
 0x99e   :  { %v5991_v6 = vrot.slane %v5990_v54, 4  ;;  %v5998_v36 = vrot.slane %v5997_v45, 4  ;;  %v6004_v25 = vsel %vm2956_vm4, %v5937_v34, -inf  ;;  %v5985_v12 = vmax.f32 %v5983_v10, %v5984_v23 }
 0x99f   :  { %v6551_v5 = vrot.slane %v6549_v26, 1  ;;  %6804 = vst [vmem:[#allocation1 + $0x21] ss:$4 sm:$0xff] %v13809_v4  ;;  %v6005_v7 = vrot.slane %v6004_v25, 4  ;;  %v6449_v28 = vshrl.u32 %v6434_v27, 16  ;;  %v6452_v0 = vshll.u32 %v6434_v27, 16 }
 0x9a0   :  { %v5992_v26 = vmax.f32 %v5990_v54, %v5991_v6  ;;  %v5999_v41 = vmax.f32 %v5997_v45, %v5998_v36  ;;  %v5986_v16 = vrot.slane %v5985_v12, 2  ;;  %v5877_v47 = vadd.f32 %v13749_v61, %v5858_v50 }
 0x9a1   :  { %v6552_v21 = vor.u32 %v6551_v5, %v6547_v3  ;;  %v6006_v46 = vmax.f32 %v6004_v25, %v6005_v7  ;;  %v6451_v9 = vrot.slane %v6449_v28, 7  ;;  %v5878_v62 = vadd.f32 %v13749_v61, %v5859_v58 }
 0x9a2   :  { %v5993_v3 = vrot.slane %v5992_v26, 2  ;;  %v6000_v5 = vrot.slane %v5999_v41, 2  ;;  %v5987_v56 = vmax.f32 %v5985_v12, %v5986_v16  ;;  %v5893_v10 = vmax.f32 %v5877_v47, 0.0 }
 0x9a3   :  { %6594 = vrot.lane.b32.xlu0 %v6552_v21, %s8846_s3  ;;  %v6007_v48 = vrot.slane %v6006_v46, 2  ;;  %v6454_v63 = vor.u32 %v6452_v0, %v6451_v9  ;;  %v5894_v45 = vmax.f32 %v5878_v62, 0.0  ;;  %v6179_v27 = vsel %vm2956_vm4, %v13773_v19, -inf }
 0x9a4   :  { %v5994_v21 = vmax.f32 %v5992_v26, %v5993_v3  ;;  %v6001_v14 = vmax.f32 %v5999_v41, %v6000_v5  ;;  %v5988_v22 = vrot.slane %v5987_v56, 1  ;;  %v5912_v25 = vsel %vm2029_vm14, %v5893_v10, -inf }
 0x9a5   :  { %v6008_v60 = vmax.f32 %v6006_v46, %v6007_v48  ;;  %v6506_v17 = vsel %vm8932_vm2, 0, %v6454_v63  ;;  %v5957_v12 = vrot.slane %v13773_v19, 4  ;;  %v5913_v26 = vsel %vm2029_vm14, %v5894_v45, -inf }
 0x9a6   :  { %v5995_v37 = vrot.slane %v5994_v21, 1  ;;  %v6002_v24 = vrot.slane %v6001_v14, 1  ;;  %v13839_v13 = vsel %vm8982_vm7, %v6506_v17, 0  ;;  %v5989_v18 = vmax.f32 %v5987_v56, %v5988_v22 }
 0x9a7   :  { %v6009_v30 = vrot.slane %v6008_v60, 1  ;;  %v6542_v35 = vshll.u32 %v13839_v13, 16  ;;  %v13845_v38 = vrot.slane %v13839_v13, 1  ;;  %v6540_v57 = vshrl.u32 %v13839_v13, 16 }
 0x9a8   :  { %v5996_v15 = vmax.f32 %v5994_v21, %v5995_v37  ;;  %v6003_v53 = vmax.f32 %v6001_v14, %v6002_v24  ;;  %v6207_v42 = vpack.c.bf16 %v5989_v18, %v5989_v18  ;;  %v5914_v46 = vmax.f32 %v5912_v25, %v5913_v26 }
 0x9a9   :  { %v6010_v59 = vmax.f32 %v6008_v60, %v6009_v30  ;;  %v6544_v34 = vrot.slane %v6542_v35, 1  ;;  %6802 = vst [vmem:[#allocation1 + $0x20] ss:$4 sm:$0xff] %v13845_v38  ;;  %v5958_v9 = vrot.slane %v13773_v19, 6  ;;  %v6180_v0 = vrot.slane %v6179_v27, 4 }
 0x9aa   :  { %v6208_v33 = vpack.c.bf16 %v5996_v15, %v5996_v15  ;;  %v6209_v32 = vpack.c.bf16 %v6003_v53, %v6003_v53  ;;  %v6345_v54 = vperm.slane %v6207_v42, 0  ;;  %v5944_v48 = vrot.slane %v5914_v46, 2 }
 0x9ab   :  { %v6210_v23 = vpack.c.bf16 %v6010_v59, %v6010_v59  ;;  %v6545_v6 = vor.u32 %v6544_v34, %v6540_v57  ;;  %v5945_v29 = vrot.slane %v5914_v46, 4  ;;  %v5946_v2 = vrot.slane %v5914_v46, 6 }
 0x9ac   :  { %v6346_v36 = vperm.slane %v6208_v33, 0  ;;  %v6347_v7 = vperm.slane %v6209_v32, 0  ;;  %v6377_v41 = vunpack.c.l.b16 %v6345_v54  ;;  %v6186_v1 = vsel %vm2956_vm4, %v5956_v43, -inf }
 0x9ad   :  { %v6348_v28 = vperm.slane %v6210_v23, 0  ;;  %6592 = vrot.lane.b32.xlu2 %v6545_v6, %s8846_s3  ;;  %v6193_v63 = vsel %vm2956_vm4, %v5957_v12, -inf  ;;  %v6067_v14 = vsel %vm2956_vm4, %v5914_v46, -inf  ;;  %v6074_v19 = vsel %vm2956_vm4, %v5944_v48, -inf }
 0x9ae   :  { %v6378_v16 = vunpack.c.l.b16 %v6346_v36  ;;  %v6379_v3 = vunpack.c.l.b16 %v6347_v7  ;;  %v6068_v60 = vrot.slane %v6067_v14, 4  ;;  %v6081_v50 = vsel %vm2956_vm4, %v5945_v29, -inf }
 0x9af   :  { %v6380_v5 = vunpack.c.l.b16 %v6348_v28  ;;  %v6075_v17 = vrot.slane %v6074_v19, 4  ;;  %v6082_v37 = vrot.slane %v6081_v50, 4  ;;  %v6088_v24 = vsel %vm2956_vm4, %v5946_v2, -inf }
 0x9b0   :  { %v6409_v56 = vsel %vm4439_vm6, %v6378_v16, %v6377_v41  ;;  %v6200_v18 = vsel %vm2956_vm4, %v5958_v9, -inf  ;;  %v6069_v30 = vmax.f32 %v6067_v14, %v6068_v60  ;;  %v6089_v47 = vrot.slane %v6088_v24, 4 }
 0x9b1   :  { %v6410_v21 = vsel %vm4441_vm8, %v6379_v3, %v6409_v56  ;;  %v6181_v43 = vmax.f32 %v6179_v27, %v6180_v0  ;;  %v6076_v15 = vmax.f32 %v6074_v19, %v6075_v17  ;;  %v6083_v53 = vmax.f32 %v6081_v50, %v6082_v37 }
 0x9b2   :  { %v6411_v22 = vsel %vm4443_vm9, %v6380_v5, %v6410_v21  ;;  %v6187_v59 = vrot.slane %v6186_v1, 4  ;;  %v6194_v42 = vrot.slane %v6193_v63, 4  ;;  %v6070_v62 = vrot.slane %v6069_v30, 2  ;;  %v15440_v5 = vld [vmem:[#allocation8_spill] sm:$0xff] }
 0x9b3   :  { %v6433_v58 = vpack.c.b16 %v6411_v22, %v6411_v22  ;;  %v6090_v57 = vmax.f32 %v6088_v24, %v6089_v47  ;;  %v6077_v10 = vrot.slane %v6076_v15, 2  ;;  %v6084_v32 = vrot.slane %v6083_v53, 2 }
 0x9b4   :  { %v6071_v23 = vmax.f32 %v6069_v30, %v6070_v62  ;;  %v6201_v45 = vrot.slane %v6200_v18, 4  ;;  %v6182_v12 = vrot.slane %v6181_v43, 2  ;;  %v6188_v7 = vmax.f32 %v6186_v1, %v6187_v59 }
 0x9b5   :  { %v6442_v35 = vshrl.u32 %v6433_v58, 16  ;;  %v6445_v33 = vshll.u32 %v6433_v58, 16  ;;  %v6091_v54 = vrot.slane %v6090_v57, 2  ;;  %v6078_v36 = vmax.f32 %v6076_v15, %v6077_v10 }
 0x9b6   :  { %v6085_v25 = vmax.f32 %v6083_v53, %v6084_v32  ;;  %v6072_v27 = vrot.slane %v6071_v23, 1  ;;  %v6195_v26 = vmax.f32 %v6193_v63, %v6194_v42  ;;  %v6526_v56 = vshrl.u32 %v15440_v5, 16 }
 0x9b7   :  { %v6444_v34 = vrot.slane %v6442_v35, 7  ;;  %v6092_v28 = vmax.f32 %v6090_v57, %v6091_v54  ;;  %v6079_v16 = vrot.slane %v6078_v36, 1  ;;  %v6528_v14 = vshll.u32 %v15440_v5, 16 }
 0x9b8   :  { %v6086_v46 = vrot.slane %v6085_v25, 1  ;;  %v6073_v0 = vmax.f32 %v6071_v23, %v6072_v27  ;;  %v5843_v22 = vsub.f32 %v13655_v49, %v13731_v40  ;;  %v5844_v58 = vsub.f32 %v13667_v44, %v13731_v40 }
 0x9b9   :  { %v6447_v6 = vor.u32 %v6445_v33, %v6444_v34  ;;  %v6093_v3 = vrot.slane %v6092_v28, 1  ;;  %v6080_v2 = vmax.f32 %v6078_v36, %v6079_v16  ;;  %v6530_v24 = vrot.slane %v6528_v14, 1 }
 0x9ba   :  { %v6087_v1 = vmax.f32 %v6085_v25, %v6086_v46  ;;  %v6219_v21 = vpack.c.bf16 %v6073_v0, %v6073_v0  ;;  %v5860_v30 = vmul.f32 %v13744_v51, %v5843_v22  ;;  %v5861_v53 = vmul.f32 %v13744_v51, %v5844_v58 }
 0x9bb   :  { %v6505_v41 = vsel %vm8932_vm2, 0, %v6447_v6  ;;  %v6094_v63 = vmax.f32 %v6092_v28, %v6093_v3  ;;  %v6220_v19 = vpack.c.bf16 %v6080_v2, %v6080_v2  ;;  %v6189_v59 = vrot.slane %v6188_v7, 2 }
 0x9bc   :  { %v13871_v9 = vsel %vm8982_vm7, %v6505_v41, 0  ;;  %v6221_v50 = vpack.c.bf16 %v6087_v1, %v6087_v1  ;;  %v6357_v37 = vperm.slane %v6219_v21, 0  ;;  %v6531_v62 = vor.u32 %v6530_v24, %v6526_v56 }
 0x9bd   :  { %v6533_v48 = vshrl.u32 %v13871_v9, 16  ;;  %v6535_v29 = vshll.u32 %v13871_v9, 16  ;;  %v6222_v17 = vpack.c.bf16 %v6094_v63, %v6094_v63  ;;  %v6358_v35 = vperm.slane %v6220_v19, 0 }
 0x9be   :  { %v6359_v15 = vperm.slane %v6221_v50, 0  ;;  %v5879_v49 = vadd.f32 %v13749_v61, %v5860_v30  ;;  %v6389_v57 = vunpack.c.l.b16 %v6357_v37  ;;  %v5880_v33 = vadd.f32 %v13749_v61, %v5861_v53  ;;  %6588 = vrot.lane.b32.xlu0 %v6531_v62, %s8846_s3 }
 0x9bf   :  { %v6537_v60 = vrot.slane %v6535_v29, 1  ;;  %v6360_v42 = vperm.slane %v6222_v17, 0  ;;  %v6390_v34 = vunpack.c.l.b16 %v6358_v35  ;;  %v6202_v10 = vmax.f32 %v6200_v18, %v6201_v45 }
 0x9c0   :  { %v6391_v44 = vunpack.c.l.b16 %v6359_v15  ;;  %v5895_v32 = vmax.f32 %v5879_v49, 0.0  ;;  %v6183_v23 = vmax.f32 %v6181_v43, %v6182_v12  ;;  %v5896_v36 = vmax.f32 %v5880_v33, 0.0 }
 0x9c1   :  { %v6538_v47 = vor.u32 %v6537_v60, %v6533_v48  ;;  %v6392_v54 = vunpack.c.l.b16 %v6360_v42  ;;  %v6418_v6 = vsel %vm4439_vm6, %v6390_v34, %v6389_v57  ;;  %v6196_v25 = vrot.slane %v6195_v26, 2 }
 0x9c2   :  { %v6419_v27 = vsel %vm4441_vm8, %v6391_v44, %v6418_v6  ;;  %v5915_v28 = vsel %vm2029_vm14, %v5895_v32, -inf  ;;  %v6190_v41 = vmax.f32 %v6188_v7, %v6189_v59  ;;  %v5916_v46 = vsel %vm2029_vm14, %v5896_v36, -inf }
 0x9c3   :  { %6590 = vrot.lane.b32.xlu1 %v6538_v47, %s8846_s3  ;;  %v6420_v16 = vsel %vm4443_vm9, %v6392_v54, %v6419_v27  ;;  %v5917_v18 = vmax.f32 %v5915_v28, %v5916_v46  ;;  %v6184_v45 = vrot.slane %v6183_v23, 1  ;;  %v6203_v3 = vrot.slane %v6202_v10, 2 }
 0x9c4   :  { %v6436_v0 = vpack.c.b16 %v6420_v16, %v6420_v16  ;;  %v6197_v56 = vmax.f32 %v6195_v26, %v6196_v25  ;;  %v6191_v29 = vrot.slane %v6190_v41, 1  ;;  %v5845_v34 = vsub.f32 %v13680_v55, %v13731_v40 }
 0x9c5   :  { %v5947_v12 = vrot.slane %v5917_v18, 2  ;;  %v5948_v48 = vrot.slane %v5917_v18, 4  ;;  %v5949_v1 = vrot.slane %v5917_v18, 6  ;;  %v6095_v63 = vsel %vm2956_vm4, %v5917_v18, -inf }
 0x9c6   :  { %v6463_v43 = vshrl.u32 %v6436_v0, 16  ;;  %v6466_v2 = vshll.u32 %v6436_v0, 16  ;;  %v6096_v14 = vrot.slane %v6095_v63, 4  ;;  %v13896_v58 = vmax.f32 %v6202_v10, %v6203_v3 }
 0x9c7   :  { %v6102_v7 = vsel %vm2956_vm4, %v5947_v12, -inf  ;;  %v6109_v22 = vsel %vm2956_vm4, %v5948_v48, -inf  ;;  %v6116_v50 = vsel %vm2956_vm4, %v5949_v1, -inf  ;;  %v6185_v24 = vmax.f32 %v6183_v23, %v6184_v45 }
 0x9c8   :  { %v6465_v21 = vrot.slane %v6463_v43, 7  ;;  %v6103_v60 = vrot.slane %v6102_v7, 4  ;;  %v6110_v19 = vrot.slane %v6109_v22, 4  ;;  %v6097_v17 = vmax.f32 %v6095_v63, %v6096_v14 }
 0x9c9   :  { %v6117_v37 = vrot.slane %v6116_v50, 4  ;;  %v6198_v30 = vrot.slane %v6197_v56, 1  ;;  %v6192_v15 = vmax.f32 %v6190_v41, %v6191_v29  ;;  %v5846_v32 = vsub.f32 %v13689_v20, %v13731_v40 }
 0x9ca   :  { %v6468_v26 = vor.u32 %v6466_v2, %v6465_v21  ;;  %v6104_v47 = vmax.f32 %v6102_v7, %v6103_v60  ;;  %v6111_v35 = vmax.f32 %v6109_v22, %v6110_v19  ;;  %v6098_v59 = vrot.slane %v6097_v17, 2 }
 0x9cb   :  { %v6118_v42 = vmax.f32 %v6116_v50, %v6117_v37  ;;  %v5862_v36 = vmul.f32 %v13744_v51, %v5845_v34  ;;  %v5863_v28 = vmul.f32 %v13744_v51, %v5846_v32  ;;  %v13916_v0 = vmax.f32 %v6197_v56, %v6198_v30 }
 0x9cc   :  { %v6508_v53 = vsel %vm8932_vm2, 0, %v6468_v26  ;;  %v6105_v49 = vrot.slane %v6104_v47, 2  ;;  %v6112_v57 = vrot.slane %v6111_v35, 2  ;;  %v6099_v33 = vmax.f32 %v6097_v17, %v6098_v59 }
 0x9cd   :  { %v13902_v62 = vsel %vm8982_vm7, %v6508_v53, 0  ;;  %v6119_v10 = vrot.slane %v6118_v42, 2  ;;  %v5881_v20 = vadd.f32 %v13749_v61, %v5862_v36  ;;  %v5882_v3 = vadd.f32 %v13749_v61, %v5863_v28  ;;  %v15441_v53 = vld [vmem:[#allocation9_spill] sm:$0xff] }
 0x9ce   :  { %v6619_v44 = vrot.slane %v13902_v62, 1  ;;  %v6106_v23 = vmax.f32 %v6104_v47, %v6105_v49  ;;  %v6113_v54 = vmax.f32 %v6111_v35, %v6112_v57  ;;  %v6556_v6 = vshll.u32 %v13902_v62, 16 }
 0x9cf   :  { %v6100_v25 = vrot.slane %v6099_v33, 1  ;;  %v6120_v27 = vmax.f32 %v6118_v42, %v6119_v10  ;;  %v6554_v55 = vshrl.u32 %v13902_v62, 16  ;;  %v5897_v29 = vmax.f32 %v5881_v20, 0.0 }
 0x9d0   :  { %6807 = vst [vmem:[#allocation1 + $0x22] ss:$4 sm:$0xff] %v6619_v44  ;;  %v6107_v41 = vrot.slane %v6106_v23, 1  ;;  %v6114_v16 = vrot.slane %v6113_v54, 1  ;;  %v6558_v46 = vrot.slane %v6556_v6, 1  ;;  %v6235_v2 = vpack.c.bf16 %v6185_v24, %v6185_v24 }
 0x9d1   :  { %v6101_v18 = vmax.f32 %v6099_v33, %v6100_v25  ;;  %v6121_v45 = vrot.slane %v6120_v27, 1  ;;  %v5898_v21 = vmax.f32 %v5882_v3, 0.0  ;;  %v5918_v22 = vsel %vm2029_vm14, %v5897_v29, -inf }
 0x9d2   :  { %v6108_v43 = vmax.f32 %v6106_v23, %v6107_v41  ;;  %v6115_v12 = vmax.f32 %v6113_v54, %v6114_v16  ;;  %v6559_v48 = vor.u32 %v6558_v46, %v6554_v55  ;;  %v6236_v56 = vpack.c.bf16 %v6192_v15, %v6192_v15 }
 0x9d3   :  { %v6122_v1 = vmax.f32 %v6120_v27, %v6121_v45  ;;  %v6223_v63 = vpack.c.bf16 %v6101_v18, %v6101_v18  ;;  %v5919_v50 = vsel %vm2029_vm14, %v5898_v21, -inf  ;;  %v6205_v26 = vrot.slane %v13896_v58, 1 }
 0x9d4   :  { %v6224_v14 = vpack.c.bf16 %v6108_v43, %v6108_v43  ;;  %v6225_v7 = vpack.c.bf16 %v6115_v12, %v6115_v12  ;;  %6596 = vrot.lane.b32.xlu1 %v6559_v48, %s8846_s3  ;;  %v5920_v24 = vmax.f32 %v5918_v22, %v5919_v50  ;;  %v6237_v47 = vpack.c.bf16 %v13916_v0, %v13916_v0 }
 0x9d5   :  { %v6226_v60 = vpack.c.bf16 %v6122_v1, %v6122_v1  ;;  %v6361_v19 = vperm.slane %v6223_v63, 0  ;;  %v6373_v35 = vperm.slane %v6235_v2, 0  ;;  %v6374_v33 = vperm.slane %v6236_v56, 0 }
 0x9d6   :  { %v6362_v37 = vperm.slane %v6224_v14, 0  ;;  %v6363_v30 = vperm.slane %v6225_v7, 0  ;;  %v5950_v57 = vrot.slane %v5920_v24, 2  ;;  %v5951_v34 = vrot.slane %v5920_v24, 4 }
 0x9d7   :  { %v6814_v17 = vld.sshfl [vmem:[#allocation1 + $0x20] sm:$0xff pattern:$0x73625140]  ;;  %v6364_v59 = vperm.slane %v6226_v60, 0  ;;  %v6393_v15 = vunpack.c.l.b16 %v6361_v19  ;;  %v5952_v32 = vrot.slane %v5920_v24, 6  ;;  %v6123_v23 = vsel %vm2956_vm4, %v5920_v24, -inf }
 0x9d8   :  { %8494 = vmatmul.msk.bf16.vlgmr.msrb.gmra.mxu1 %vm2029_vm14, %v6814_v17  ;;  %6823 = vst [vmem:[#allocation1 + $0x23] ss:$4 sm:$0xff] %v15441_v53  ;;  %v6394_v42 = vunpack.c.l.b16 %v6362_v37  ;;  %v6395_v49 = vunpack.c.l.b16 %v6363_v30  ;;  %v6124_v6 = vrot.slane %v6123_v23, 4  ;;  %v6130_v36 = vsel %vm2956_vm4, %v5950_v57, -inf }
 0x9d9   :  { %v6396_v10 = vunpack.c.l.b16 %v6364_v59  ;;  %v6137_v25 = vsel %vm2956_vm4, %v5951_v34, -inf  ;;  %v6131_v55 = vrot.slane %v6130_v36, 4  ;;  %v6144_v41 = vsel %vm2956_vm4, %v5952_v32, -inf }
 0x9da   :  { %v6421_v54 = vsel %vm4439_vm6, %v6394_v42, %v6393_v15  ;;  %v6138_v28 = vrot.slane %v6137_v25, 4  ;;  %v6405_v16 = vunpack.c.l.b16 %v6373_v35  ;;  %v6125_v20 = vmax.f32 %v6123_v23, %v6124_v6 }
 0x9db   :  { %v6422_v27 = vsel %vm4441_vm8, %v6395_v49, %v6421_v54  ;;  %v6145_v0 = vrot.slane %v6144_v41, 4  ;;  %v6406_v18 = vunpack.c.l.b16 %v6374_v33  ;;  %v6132_v3 = vmax.f32 %v6130_v36, %v6131_v55 }
 0x9dc   :  { %v6423_v46 = vsel %vm4443_vm9, %v6396_v10, %v6422_v27  ;;  %v6139_v43 = vmax.f32 %v6137_v25, %v6138_v28  ;;  %v6126_v12 = vrot.slane %v6125_v20, 2  ;;  %v5847_v29 = vsub.f32 %v13697_v52, %v13731_v40 }
 0x9dd   :  { %v6437_v45 = vpack.c.b16 %v6423_v46, %v6423_v46  ;;  %v6146_v48 = vmax.f32 %v6144_v41, %v6145_v0  ;;  %v5848_v2 = vsub.f32 %v13704_v39, %v13731_v40  ;;  %v6133_v21 = vrot.slane %v6132_v3, 2 }
 0x9de   :  { %v6140_v14 = vrot.slane %v6139_v43, 2  ;;  %v6127_v7 = vmax.f32 %v6125_v20, %v6126_v12  ;;  %v6206_v56 = vmax.f32 %v13896_v58, %v6205_v26  ;;  %v6375_v60 = vperm.slane %v6237_v47, 0 }
 0x9df   :  { %v6470_v1 = vshrl.u32 %v6437_v45, 16  ;;  %v6473_v63 = vshll.u32 %v6437_v45, 16  ;;  %v6147_v22 = vrot.slane %v6146_v48, 2  ;;  %v6134_v50 = vmax.f32 %v6132_v3, %v6133_v21 }
 0x9e0   :  { %v6141_v17 = vmax.f32 %v6139_v43, %v6140_v14  ;;  %v6430_v37 = vsel %vm4439_vm6, %v6406_v18, %v6405_v16  ;;  %v6128_v30 = vrot.slane %v6127_v7, 1  ;;  %v6238_v52 = vpack.c.bf16 %v6206_v56, %v6206_v56 }
 0x9e1   :  { %v6472_v19 = vrot.slane %v6470_v1, 7  ;;  %v6148_v24 = vmax.f32 %v6146_v48, %v6147_v22  ;;  %v6407_v35 = vunpack.c.l.b16 %v6375_v60  ;;  %v6135_v39 = vrot.slane %v6134_v50, 1 }
 0x9e2   :  { %v6142_v40 = vrot.slane %v6141_v17, 1  ;;  %v5864_v15 = vmul.f32 %v13744_v51, %v5847_v29  ;;  %v6129_v42 = vmax.f32 %v6127_v7, %v6128_v30  ;;  %v6376_v57 = vperm.slane %v6238_v52, 0 }
 0x9e3   :  { %v6475_v59 = vor.u32 %v6473_v63, %v6472_v19  ;;  %v6149_v49 = vrot.slane %v6148_v24, 1  ;;  %v6431_v58 = vsel %vm4441_vm8, %v6407_v35, %v6430_v37  ;;  %v6136_v47 = vmax.f32 %v6134_v50, %v6135_v39 }
 0x9e4   :  { %v6143_v34 = vmax.f32 %v6141_v17, %v6142_v40  ;;  %v5865_v33 = vmul.f32 %v13744_v51, %v5848_v2  ;;  %v6227_v23 = vpack.c.bf16 %v6129_v42, %v6129_v42  ;;  %v6408_v54 = vunpack.c.l.b16 %v6376_v57 }
 0x9e5   :  { %v6509_v26 = vsel %vm8932_vm2, 0, %v6475_v59  ;;  %v6150_v32 = vmax.f32 %v6148_v24, %v6149_v49  ;;  %v6228_v25 = vpack.c.bf16 %v6136_v47, %v6136_v47  ;;  %v5883_v16 = vadd.f32 %v13749_v61, %v5864_v15 }
 0x9e6   :  { %v13947_v10 = vsel %vm8982_vm7, %v6509_v26, 0  ;;  %v6229_v27 = vpack.c.bf16 %v6143_v34, %v6143_v34  ;;  %v6365_v28 = vperm.slane %v6227_v23, 0  ;;  %v6432_v41 = vsel %vm4443_vm9, %v6408_v54, %v6431_v58 }
 0x9e7   :  { %v6561_v6 = vshrl.u32 %v13947_v10, 16  ;;  %v6563_v36 = vshll.u32 %v13947_v10, 16  ;;  %v6230_v55 = vpack.c.bf16 %v6150_v32, %v6150_v32  ;;  %v6366_v46 = vperm.slane %v6228_v25, 0 }
 0x9e8   :  { %v6367_v20 = vperm.slane %v6229_v27, 0  ;;  %v6440_v0 = vpack.c.b16 %v6432_v41, %v6432_v41  ;;  %v6397_v45 = vunpack.c.l.b16 %v6365_v28  ;;  %v5884_v3 = vadd.f32 %v13749_v61, %v5865_v33 }
 0x9e9   :  { %v6565_v51 = vrot.slane %v6563_v36, 1  ;;  %v6368_v18 = vperm.slane %v6230_v55, 0  ;;  %v5899_v43 = vmax.f32 %v5883_v16, 0.0  ;;  %v6398_v48 = vunpack.c.l.b16 %v6366_v46 }
 0x9ea   :  { %v6399_v29 = vunpack.c.l.b16 %v6367_v20  ;;  %v6491_v2 = vshrl.u32 %v6440_v0, 16  ;;  %v5900_v1 = vmax.f32 %v5884_v3, 0.0  ;;  %v6494_v22 = vshll.u32 %v6440_v0, 16 }
 0x9eb   :  { %v6566_v12 = vor.u32 %v6565_v51, %v6561_v6  ;;  %v5921_v63 = vsel %vm2029_vm14, %v5899_v43, -inf  ;;  %v6400_v21 = vunpack.c.l.b16 %v6368_v18  ;;  %v6424_v14 = vsel %vm4439_vm6, %v6398_v48, %v6397_v45 }
 0x9ec   :  { %v6493_v7 = vrot.slane %v6491_v2, 7  ;;  %v6425_v56 = vsel %vm4441_vm8, %v6399_v29, %v6424_v14  ;;  %v5922_v60 = vsel %vm2029_vm14, %v5900_v1, -inf  ;;  %v6620_v11 = vrot.slane %v13947_v10, 1 }
 0x9ed   :  { %6598 = vrot.lane.b32.xlu2 %v6566_v12, %s8846_s3  ;;  %v6426_v61 = vsel %vm4443_vm9, %v6400_v21, %v6425_v56  ;;  %v5923_v50 = vmax.f32 %v5921_v63, %v5922_v60 }
 0x9ee   :  { %v6496_v19 = vor.u32 %v6494_v22, %v6493_v7  ;;  %v6438_v17 = vpack.c.b16 %v6426_v61, %v6426_v61 }
 0x9ef   :  { %v5953_v30 = vrot.slane %v5923_v50, 2  ;;  %v5954_v24 = vrot.slane %v5923_v50, 4  ;;  %v5955_v52 = vrot.slane %v5923_v50, 6  ;;  %v6151_v40 = vsel %vm2956_vm4, %v5923_v50, -inf }
 0x9f0   :  { %v6512_v37 = vsel %vm8932_vm2, 0, %v6496_v19  ;;  %v6477_v35 = vshrl.u32 %v6438_v17, 16  ;;  %v6480_v59 = vshll.u32 %v6438_v17, 16  ;;  %v6152_v57 = vrot.slane %v6151_v40, 4 }
 0x9f1   :  { %v13964_v39 = vsel %vm8982_vm7, %v6512_v37, 0  ;;  %v6158_v26 = vsel %vm2956_vm4, %v5953_v30, -inf  ;;  %v6165_v47 = vsel %vm2956_vm4, %v5954_v24, -inf  ;;  %v6172_v34 = vsel %vm2956_vm4, %v5955_v52, -inf }
 0x9f2   :  { %v6582_v15 = vshrl.u32 %v13964_v39, 16  ;;  %v6584_v42 = vshll.u32 %v13964_v39, 16  ;;  %v6623_v49 = vrot.slane %v13964_v39, 1  ;;  %v6479_v58 = vrot.slane %v6477_v35, 7 }
 0x9f3   :  { %v6153_v32 = vmax.f32 %v6151_v40, %v6152_v57  ;;  %v6159_v23 = vrot.slane %v6158_v26, 4  ;;  %v6166_v54 = vrot.slane %v6165_v47, 4  ;;  %v6173_v36 = vrot.slane %v6172_v34, 4 }
 0x9f4   :  { %v6586_v33 = vrot.slane %v6584_v42, 1  ;;  %6822 = vst [vmem:[#allocation1 + $0x22] ss:$4 sm:$0xff] %v6623_v49  ;;  %v6482_v6 = vor.u32 %v6480_v59, %v6479_v58  ;;  %v6616_v19 = vrot.slane %v13871_v9, 1 }
 0x9f5   :  { %v6154_v27 = vrot.slane %v6153_v32, 2  ;;  %v6160_v55 = vmax.f32 %v6158_v26, %v6159_v23  ;;  %v6167_v28 = vmax.f32 %v6165_v47, %v6166_v54  ;;  %v6174_v16 = vmax.f32 %v6172_v34, %v6173_v36 }
 0x9f6   :  { %v6587_v25 = vor.u32 %v6586_v33, %v6582_v15  ;;  %v6510_v41 = vsel %vm8932_vm2, 0, %v6482_v6 }
 0x9f7   :  { %v13979_v51 = vsel %vm8982_vm7, %v6510_v41, 0  ;;  %v6155_v46 = vmax.f32 %v6153_v32, %v6154_v27  ;;  %v6161_v20 = vrot.slane %v6160_v55, 2  ;;  %v6168_v0 = vrot.slane %v6167_v28, 2 }
 0x9f8   :  { %6604 = vrot.lane.b32.xlu2 %v6587_v25, %s8846_s3  ;;  %v6570_v18 = vshll.u32 %v13979_v51, 16  ;;  %v13984_v45 = vrot.slane %v13979_v51, 1  ;;  %v6175_v3 = vrot.slane %v6174_v16, 2  ;;  %v6568_v29 = vshrl.u32 %v13979_v51, 16 }
 0x9f9   :  { %v6156_v43 = vrot.slane %v6155_v46, 1  ;;  %v6162_v12 = vmax.f32 %v6160_v55, %v6161_v20  ;;  %v6169_v48 = vmax.f32 %v6167_v28, %v6168_v0 }
 0x9fa   :  { %v6572_v2 = vrot.slane %v6570_v18, 1  ;;  %6819 = vst [vmem:[#allocation1 + $0x20] ss:$4 sm:$0xff] %v13984_v45  ;;  %v6176_v1 = vmax.f32 %v6174_v16, %v6175_v3  ;;  %v8720_v3 = vld [vmem:[%s14557_s7 + $0x38] sm:$0xff] }
 0x9fb   :  { %v6157_v63 = vmax.f32 %v6155_v46, %v6156_v43  ;;  %v6163_v21 = vrot.slane %v6162_v12, 1  ;;  %v6170_v14 = vrot.slane %v6169_v48, 1  ;;  %7057 = vmatpush.bf16.msra.mxu3 %v8720_v3 }
 0x9fc   :  { %v6573_v7 = vor.u32 %v6572_v2, %v6568_v29  ;;  %v6177_v22 = vrot.slane %v6176_v1, 1 }
 0x9fd   :  { %v6164_v56 = vmax.f32 %v6162_v12, %v6163_v21  ;;  %v6171_v60 = vmax.f32 %v6169_v48, %v6170_v14  ;;  %v6231_v61 = vpack.c.bf16 %v6157_v63, %v6157_v63  ;;  %v8719_v21 = vld [vmem:[%s14557_s7 + $0x30] sm:$0xff] }
 0x9fe   :  { %6600 = vrot.lane.b32.xlu0 %v6573_v7, %s8846_s3  ;;  %v6178_v50 = vmax.f32 %v6176_v1, %v6177_v22  ;;  %v8718_v22 = vld [vmem:[%s14557_s7 + $0x28] sm:$0xff] }
 0x9ff   :  { %v6232_v17 = vpack.c.bf16 %v6164_v56, %v6164_v56  ;;  %v6233_v37 = vpack.c.bf16 %v6171_v60, %v6171_v60  ;;  %v6369_v30 = vperm.slane %v6231_v61, 0  ;;  %7058 = vmatpush.bf16.msra.mxu3 %v8719_v21  ;;  %v8716_v61 = vld [vmem:[%s14557_s7 + $0x18] sm:$0xff] }
 0xa00   :  { %6652 = vrot.lane.b32.xlu2 %v6616_v19, %s8846_s3  ;;  %v6234_v24 = vpack.c.bf16 %v6178_v50, %v6178_v50 }
 0xa01   :  { %v6370_v52 = vperm.slane %v6232_v17, 0  ;;  %v6371_v35 = vperm.slane %v6233_v37, 0  ;;  %v6401_v40 = vunpack.c.l.b16 %v6369_v30  ;;  %v8715_v30 = vld [vmem:[%s14557_s7 + $0x10] sm:$0xff] }
 0xa02   :  { %v6372_v59 = vperm.slane %v6234_v24, 0 }
 0xa03   :  { %v6402_v15 = vunpack.c.l.b16 %v6370_v52  ;;  %v6403_v42 = vunpack.c.l.b16 %v6371_v35  ;;  %7059 = vmatpush.bf16.msra.mxu3 %v8718_v22 }
 0xa04   :  { %v6404_v57 = vunpack.c.l.b16 %v6372_v59 }
 0xa05   :  { %v6427_v58 = vsel %vm4439_vm6, %v6402_v15, %v6401_v40 }
 0xa06   :  { %v6428_v26 = vsel %vm4441_vm8, %v6403_v42, %v6427_v58  ;;  %6660 = vrot.lane.b32.xlu0 %v13809_v4, %s8846_s3  ;;  %vm6748_vm8 = vcmask 1045508  }
 0xa07   :  { %v6429_v47 = vsel %vm4443_vm9, %v6404_v57, %v6428_v26  ;;  %v6593_v36 = vpop.permute.xlu2 %6592 }
 0xa08   :  { %6664 = vrot.lane.b32.xlu2 %v6619_v44, %s8846_s3  ;;  %v6439_v34 = vpack.c.b16 %v6429_v47, %v6429_v47  ;;  %v14011_v44 = vsel %vm2029_vm14, %v13839_v13, %v6593_v36 }
 0xa0a   :  { %v6484_v33 = vshrl.u32 %v6439_v34, 16  ;;  %v6487_v23 = vshll.u32 %v6439_v34, 16 }
 0xa0c   :  { %v6486_v32 = vrot.slane %v6484_v33, 7 }
 0xa0e   :  { %v6489_v54 = vor.u32 %v6487_v23, %v6486_v32  ;;  %6672 = vrot.lane.b32.xlu0 %v13984_v45, %s8846_s3 }
 0xa10   :  { %v6511_v6 = vsel %vm8932_vm2, 0, %v6489_v54  ;;  %v8714_v54 = vld [vmem:[%s14557_s7 + $0x8] sm:$0xff] }
 0xa11   :  { %v6523_v25 = vsel %vm8982_vm7, %v6511_v6, 0  ;;  %vm6745_vm7 = vcmask 1041408  }
 0xa12   :  { %v6577_v27 = vshll.u32 %v6523_v25, 16  ;;  %v14007_v55 = vrot.slane %v6523_v25, 1  ;;  %v6575_v28 = vshrl.u32 %v6523_v25, 16  ;;  %vm14293_vm11 = vmand %vm6745_vm7, %vm7479_vm5 }
 0xa14   :  { %v6579_v41 = vrot.slane %v6577_v27, 1  ;;  %6820 = vst [vmem:[#allocation1 + $0x21] ss:$4 sm:$0xff] %v14007_v55  ;;  %v6724_v27 = vrot.slane %v14011_v44, 2 }
 0xa15   :  { %v6595_v13 = vpop.permute.xlu0 %6594 }
 0xa16   :  { %v6580_v16 = vor.u32 %v6579_v41, %v6575_v28  ;;  %6654 = vrot.lane.b32.xlu0 %v14011_v44, %s8846_s3  ;;  %v14026_v20 = vsel %vm2029_vm14, %v13804_v31, %v6595_v13 }
 0xa17   :  { %6658 = vrot.lane.b32.xlu2 %v14026_v20, %s8846_s3  ;;  %v6727_v47 = vrot.slane %v14026_v20, 2 }
 0xa18   :  { %6602 = vrot.lane.b32.xlu1 %v6580_v16, %s8846_s3 }
 0xa1b   :  { %v6828_v46 = vld.sshfl [vmem:[#allocation1 + $0x20] sm:$0xff pattern:$0x73625140] }
 0xa1c   :  { %8495 = vmatmul.msk.bf16.gmra.mxu1 %vm2029_vm14, %v6828_v46 }
 0xa20   :  { %6656 = vrot.lane.b32.xlu1 %v13845_v38, %s8846_s3 }
 0xa28   :  { %6668 = vrot.lane.b32.xlu1 %v6620_v11, %s8846_s3 }
 0xa30   :  { %v6589_v1 = vpop.permute.xlu0 %6588 }
 0xa31   :  { %v14111_v16 = vsel %vm2029_vm14, %v15440_v5, %v6589_v1 }
 0xa35   :  { %v6591_v0 = vpop.permute.xlu1 %6590 }
 0xa36   :  { %v6627_v18 = vsel %vm2029_vm14, %v13871_v9, %v6591_v0 }
 0xa37   :  { %6650 = vrot.lane.b32.xlu1 %v6627_v18, %s8846_s3 }
 0xa46   :  { %v6597_v43 = vpop.permute.xlu1 %6596 }
 0xa47   :  { %v6599_v12 = vpop.permute.xlu2 %6598  ;;  %v6633_v31 = vsel %vm2029_vm14, %v13902_v62, %v6597_v43 }
 0xa48   :  { %v14040_v48 = vsel %vm2029_vm14, %v13947_v10, %v6599_v12  ;;  %6662 = vrot.lane.b32.xlu1 %v6633_v31, %s8846_s3  ;;  %v6730_v15 = vrot.slane %v6633_v31, 2  ;;  %v6733_v12 = vrot.slane %v14111_v16, 2  ;;  %v8727_v10 = vld [vmem:[%s14557_s7 + $0x70] sm:$0xff] }
 0xa49   :  { %6666 = vrot.lane.b32.xlu0 %v14040_v48, %s8846_s3 }
 0xa52   :  { %v6605_v29 = vpop.permute.xlu2 %6604 }
 0xa53   :  { %v14047_v2 = vsel %vm2029_vm14, %v13964_v39, %v6605_v29  ;;  %v8713_v39 = vld [vmem:[%s14557_s7] sm:$0xff] }
 0xa54   :  { %6678 = vrot.lane.b32.xlu0 %v14047_v2, %s8846_s3 }
 0xa5a   :  { %v6653_v7 = vpop.permute.xlu2 %6652 }
 0xa62   :  { %v6665_v60 = vpop.permute.xlu2 %6664 }
 0xa70   :  { %v6601_v63 = vpop.permute.xlu0 %6600 }
 0xa71   :  { %v14053_v62 = vsel %vm2029_vm14, %v13979_v51, %v6601_v63  ;;  %v8717_v51 = vld [vmem:[%s14557_s7 + $0x20] sm:$0xff]  ;;  %v6659_v52 = vpop.permute.xlu2 %6658 }
 0xa72   :  { %6670 = vrot.lane.b32.xlu2 %v14053_v62, %s8846_s3  ;;  %7060 = vmatpush.bf16.msra.mxu3 %v8717_v51  ;;  %v6698_v40 = vsel %vm2029_vm14, %v13845_v38, %v6659_v52  ;;  %v6736_v22 = vrot.slane %v14053_v62, 2 }
 0xa73   :  { %v6728_v42 = vrot.slane %v6698_v40, 6 }
 0xa75   :  { %v6760_v9 = vsel %vm6745_vm7, %v14011_v44, %v6728_v42 }
 0xa76   :  { %7061 = vmatpush.bf16.msra.mxu3 %v8716_v61 }
 0xa78   :  { %v6661_v14 = vpop.permute.xlu0 %6660 }
 0xa79   :  { %v6684_v59 = vsel %vm2029_vm14, %v6659_v52, %v6661_v14 }
 0xa7a   :  { %6676 = vrot.lane.b32.xlu2 %v14007_v55, %s8846_s3  ;;  %7062 = vmatpush.bf16.msra.mxu3 %v8715_v30  ;;  %v6729_v57 = vrot.slane %v6684_v59, 4 }
 0xa7e   :  { %7063 = vmatpush.bf16.msra.mxu3 %v8714_v54 }
 0xa80   :  { %v14065_v56 = vpop.permute.xlu0 %6672 }
 0xa82   :  { %7064 = vmatpush.bf16.msra.mxu3 %v8713_v39  ;;  %v8721_v39 = vld [vmem:[%s14557_s7 + $0x40] sm:$0xff] }
 0xa88   :  { %v6655_v17 = vpop.permute.xlu0 %6654 }
 0xa89   :  { %v6695_v24 = vsel %vm2029_vm14, %v6616_v19, %v6655_v17  ;;  %v6763_v19 = vsel %vm6748_vm8, %v6729_v57, %v6730_v15 }
 0xa8a   :  { %v6603_v50 = vpop.permute.xlu1 %6602  ;;  %v6725_v35 = vrot.slane %v6695_v24, 6  ;;  %v6764_v33 = vsel %vm1856_vm10, %v6760_v9, %v6763_v19 }
 0xa8b   :  { %v14074_v37 = vsel %vm2029_vm14, %v6523_v25, %v6603_v50  ;;  %6798 = vst [vmem:[#allocation1 + $0x2] ss:$4 sm:$0xff] %v6764_v33  ;;  %v6742_v33 = vrot.slane %v14047_v2, 2  ;;  %v8736_v2 = vld [vmem:[%s14557_s7 + $0xb8] sm:$0xff] }
 0xa8c   :  { %6674 = vrot.lane.b32.xlu1 %v14074_v37, %s8846_s3  ;;  %v6754_v38 = vsel %vm6745_vm7, %v6627_v18, %v6725_v35  ;;  %v6739_v35 = vrot.slane %v14074_v37, 2 }
 0xa92   :  { %v6657_v58 = vpop.permute.xlu1 %6656 }
 0xa93   :  { %v6683_v26 = vsel %vm2029_vm14, %v6655_v17, %v6657_v58  ;;  %v8724_v58 = vld [vmem:[%s14557_s7 + $0x58] sm:$0xff] }
 0xa94   :  { %6680 = vrot.lane.b32.xlu1 %v6623_v49, %s8846_s3  ;;  %v6726_v34 = vrot.slane %v6683_v26, 4  ;;  %v8723_v26 = vld [vmem:[%s14557_s7 + $0x50] sm:$0xff] }
 0xa96   :  { %v6757_v32 = vsel %vm6748_vm8, %v6726_v34, %v6727_v47  ;;  %v8722_v47 = vld [vmem:[%s14557_s7 + $0x48] sm:$0xff] }
 0xa97   :  { %v6758_v23 = vsel %vm1856_vm10, %v6754_v38, %v6757_v32 }
 0xa98   :  { %6796 = vst [vmem:[#allocation1 + $0x1] ss:$4 sm:$0xff] %v6758_v23 }
 0xa9a   :  { %v6669_v6 = vpop.permute.xlu1 %6668 }
 0xaa9   :  { %v6651_v36 = vpop.permute.xlu1 %6650 }
 0xaaa   :  { %v6682_v49 = vsel %vm2029_vm14, %v6651_v36, %v6653_v7  ;;  %v6692_v25 = vsel %vm2029_vm14, %v15441_v53, %v6651_v36 }
 0xaab   :  { %v6722_v28 = vrot.slane %v6692_v25, 6  ;;  %v6723_v41 = vrot.slane %v6682_v49, 4 }
 0xaad   :  { %v6747_v46 = vsel %vm6745_vm7, %v14111_v16, %v6722_v28  ;;  %v6751_v13 = vsel %vm6748_vm8, %v6723_v41, %v6724_v27  ;;  %v8735_v28 = vld [vmem:[%s14557_s7 + $0xb0] sm:$0xff] }
 0xaae   :  { %v6752_v0 = vsel %vm1856_vm10, %v6747_v46, %v6751_v13 }
 0xaaf   :  { %6794 = vst [vmem:[#allocation1] ss:$4 sm:$0xff] %v6752_v0  ;;  %v8734_v0 = vld [vmem:[%s14557_s7 + $0xa8] sm:$0xff] }
 0xaba   :  { %v6663_v18 = vpop.permute.xlu1 %6662 }
 0xabb   :  { %v6667_v3 = vpop.permute.xlu0 %6666  ;;  %v6685_v43 = vsel %vm2029_vm14, %v6663_v18, %v6665_v60  ;;  %v6701_v44 = vsel %vm2029_vm14, %v13809_v4, %v6663_v18  ;;  %v8733_v18 = vld [vmem:[%s14557_s7 + $0xa0] sm:$0xff] }
 0xabc   :  { %v6731_v31 = vrot.slane %v6701_v44, 6  ;;  %v6732_v5 = vrot.slane %v6685_v43, 4  ;;  %v6686_v29 = vsel %vm2029_vm14, %v6667_v3, %v6669_v6  ;;  %v6703_v1 = vsel %vm2029_vm14, %v15441_v53, %v6667_v3  ;;  %v8730_v43 = vld [vmem:[%s14557_s7 + $0x88] sm:$0xff]  ;;  %v8729_v44 = vld [vmem:[%s14557_s7 + $0x80] sm:$0xff] }
 0xabd   :  { %v6734_v4 = vrot.slane %v6703_v1, 6  ;;  %v6735_v7 = vrot.slane %v6686_v29, 4  ;;  %v8741_v29 = vld [vmem:[%s14557_s7 + $0xe0] sm:$0xff] }
 0xabe   :  { %v6766_v63 = vsel %vm6745_vm7, %v14026_v20, %v6731_v31  ;;  %v6769_v21 = vsel %vm6748_vm8, %v6732_v5, %v6733_v12  ;;  %v8743_v31 = vld [vmem:[%s14557_s7 + $0xf0] sm:$0xff]  ;;  %v8742_v5 = vld [vmem:[%s14557_s7 + $0xe8] sm:$0xff] }
 0xabf   :  { %v6770_v14 = vsel %vm1856_vm10, %v6766_v63, %v6769_v21  ;;  %v6772_v51 = vsel %vm6745_vm7, %v14111_v16, %v6734_v4  ;;  %v6775_v60 = vsel %vm6748_vm8, %v6735_v7, %v6736_v22  ;;  %v8731_v16 = vld [vmem:[%s14557_s7 + $0x90] sm:$0xff]  ;;  %v8740_v63 = vld [vmem:[%s14557_s7 + $0xd8] sm:$0xff]  ;;  %v8737_v4 = vld [vmem:[%s14557_s7 + $0xc0] sm:$0xff] }
 0xac0   :  { %6800 = vst [vmem:[#allocation1 + $0x3] ss:$4 sm:$0xff] %v6770_v14  ;;  %v6776_v20 = vsel %vm1856_vm10, %v6772_v51, %v6775_v60  ;;  %v8739_v21 = vld [vmem:[%s14557_s7 + $0xd0] sm:$0xff]  ;;  %v8738_v14 = vld [vmem:[%s14557_s7 + $0xc8] sm:$0xff] }
 0xac6   :  { %v6679_v32 = vpop.permute.xlu0 %6678 }
 0xac7   :  { %v6810_v53 = vld.sshfl [vmem:[#allocation1] sm:$0xff pattern:$0x73625140]  ;;  %v14134_v61 = vld.sshfl [vmem:[#allocation1 + $0x8] sm:$0xff pattern:$0x73625140]  ;;  %v6712_v49 = vsel %vm2029_vm14, %v14007_v55, %v6679_v32 }
 0xac8   :  { %v14137_v50 = vld.sshfl [vmem:[#allocation1 + $0x10] sm:$0xff pattern:$0x73625140]  ;;  %v14139_v17 = vld.sshfl [vmem:[#allocation1 + $0x18] sm:$0xff pattern:$0x73625140]  ;;  %7065 = vmatmul.bf16.vlgmr.msra.gmra.mxu3 %v6810_v53 }
 0xac9   :  { %6815 = vst [vmem:[#allocation1] ss:$4 sm:$0xff] %v6776_v20  ;;  %v6743_v25 = vrot.slane %v6712_v49, 6 }
 0xacb   :  { %v6790_v55 = vsel %vm6745_vm7, %v14074_v37, %v6743_v25  ;;  %v8732_v37 = vld [vmem:[%s14557_s7 + $0x98] sm:$0xff] }
 0xacc   :  { %v6671_v30 = vpop.permute.xlu2 %6670 }
 0xacd   :  { %v6687_v24 = vsel %vm2029_vm14, %v6671_v30, %v14065_v56  ;;  %v6706_v52 = vsel %vm2029_vm14, %v6620_v11, %v6671_v30  ;;  %v8728_v56 = vld [vmem:[%s14557_s7 + $0x78] sm:$0xff]  ;;  %v8726_v11 = vld [vmem:[%s14557_s7 + $0x68] sm:$0xff] }
 0xace   :  { %v6737_v59 = vrot.slane %v6706_v52, 6  ;;  %v6738_v40 = vrot.slane %v6687_v24, 4  ;;  %7076 = vmatpush.bf16.msrb.mxu3 %v8728_v56 }
 0xad0   :  { %v6778_v15 = vsel %vm6745_vm7, %v14040_v48, %v6737_v59  ;;  %v6781_v42 = vsel %vm6748_vm8, %v6738_v40, %v6739_v35  ;;  %v8725_v48 = vld [vmem:[%s14557_s7 + $0x60] sm:$0xff] }
 0xad1   :  { %v6782_v57 = vsel %vm1856_vm10, %v6778_v15, %v6781_v42 }
 0xad2   :  { %6816 = vst [vmem:[#allocation1 + $0x1] ss:$4 sm:$0xff] %v6782_v57  ;;  %7077 = vmatpush.bf16.msrb.mxu3 %v8727_v10  ;;  %v7142_v57 = vpop.f32.mrf.mxu1 }
 0xad4   :  { %v6677_v9 = vpop.permute.xlu2 %6676 }
 0xad6   :  { %7078 = vmatpush.bf16.msrb.mxu3 %v8726_v11 }
 0xada   :  { %7079 = vmatpush.bf16.msrb.mxu3 %v8725_v48  ;;  %v7144_v48 = vpop.f32.mrf.mxu1 }
 0xade   :  { %7080 = vmatpush.bf16.msrb.mxu3 %v8724_v58 }
 0xae2   :  { %7081 = vmatpush.bf16.msrb.mxu3 %v8723_v26 }
 0xae6   :  { %7082 = vmatpush.bf16.msrb.mxu3 %v8722_v47 }
 0xaea   :  { %7083 = vmatpush.bf16.msrb.mxu3 %v8721_v39  ;;  %v7147_v39 = vpop.f32.mrf.mxu1 }
 0xaee   :  { %7095 = vmatpush.bf16.msra.mxu3 %v8736_v2 }
 0xaf2   :  { %7096 = vmatpush.bf16.msra.mxu3 %v8735_v28 }
 0xaf6   :  { %7097 = vmatpush.bf16.msra.mxu3 %v8734_v0 }
 0xafa   :  { %7098 = vmatpush.bf16.msra.mxu3 %v8733_v18 }
 0xafe   :  { %v6675_v19 = vpop.permute.xlu1 %6674  ;;  %7099 = vmatpush.bf16.msra.mxu3 %v8732_v37 }
 0xaff   :  { %v6688_v34 = vsel %vm2029_vm14, %v6675_v19, %v6677_v9  ;;  %v6709_v38 = vsel %vm2029_vm14, %v13984_v45, %v6675_v19 }
 0xb00   :  { %v6740_v23 = vrot.slane %v6709_v38, 6  ;;  %v6741_v54 = vrot.slane %v6688_v34, 4 }
 0xb02   :  { %v6784_v6 = vsel %vm6745_vm7, %v14053_v62, %v6740_v23  ;;  %v6787_v36 = vsel %vm6748_vm8, %v6741_v54, %v6742_v33  ;;  %7100 = vmatpush.bf16.msra.mxu3 %v8731_v16 }
 0xb03   :  { %v6788_v45 = vsel %vm1856_vm10, %v6784_v6, %v6787_v36 }
 0xb04   :  { %6817 = vst [vmem:[#allocation1 + $0x2] ss:$4 sm:$0xff] %v6788_v45 }
 0xb06   :  { %v6681_v27 = vpop.permute.xlu1 %6680  ;;  %7101 = vmatpush.bf16.msra.mxu3 %v8730_v43 }
 0xb07   :  { %v6689_v62 = vsel %vm2029_vm14, %v6679_v32, %v6681_v27 }
 0xb08   :  { %v6744_v41 = vrot.slane %v6689_v62, 4 }
 0xb0a   :  { %v6792_v46 = vsel %vm6748_vm8, %v6744_v41, %v6733_v12  ;;  %7102 = vmatpush.bf16.msra.mxu3 %v8729_v44  ;;  %v8744_v12 = vld [vmem:[%s14557_s7 + $0xf8] sm:$0xff] }
 0xb0b   :  { %v6793_v13 = vsel %vm1856_vm10, %v6790_v55, %v6792_v46 }
 0xb0c   :  { %6818 = vst [vmem:[#allocation1 + $0x3] ss:$4 sm:$0xff] %v6793_v13 }
 0xb13   :  { %v6824_v3 = vld.sshfl [vmem:[#allocation1] sm:$0xff pattern:$0x73625140]  ;;  %v6825_v1 = vld.sshfl [vmem:[#allocation1 + $0x8] sm:$0xff pattern:$0x73625140] }
 0xb14   :  { %7070 = vmatmul.bf16.gmra.mxu3 %v6824_v3  ;;  %v6826_v7 = vld.sshfl [vmem:[#allocation1 + $0x10] sm:$0xff pattern:$0x73625140]  ;;  %v6827_v22 = vld.sshfl [vmem:[#allocation1 + $0x18] sm:$0xff pattern:$0x73625140]  ;;  %v7149_v3 = vpop.f32.mrf.mxu1 }
 0xb24   :  { %7084 = vmatmul.bf16.vlgmr.msrb.gmra.mxu3 %v14134_v61 }
 0xb25   :  { %7114 = vmatpush.bf16.msrb.mxu3 %v8744_v12 }
 0xb29   :  { %7115 = vmatpush.bf16.msrb.mxu3 %v8743_v31 }
 0xb2d   :  { %7116 = vmatpush.bf16.msrb.mxu3 %v8742_v5 }
 0xb31   :  { %7117 = vmatpush.bf16.msrb.mxu3 %v8741_v29 }
 0xb34   :  { %7089 = vmatmul.bf16.gmra.mxu3 %v6825_v1 }
 0xb35   :  { %7118 = vmatpush.bf16.msrb.mxu3 %v8740_v63 }
 0xb39   :  { %7119 = vmatpush.bf16.msrb.mxu3 %v8739_v21 }
 0xb3d   :  { %7120 = vmatpush.bf16.msrb.mxu3 %v8738_v14 }
 0xb41   :  { %7121 = vmatpush.bf16.msrb.mxu3 %v8737_v4 }
 0xb44   :  { %7103 = vmatmul.bf16.vlgmr.msra.gmra.mxu3 %v14137_v50 }
 0xb4b   :  { %v7066_v51 = vpop.f32.mrf.mxu3 }
 0xb53   :  { %v7068_v60 = vpop.f32.mrf.mxu3 }
 0xb54   :  { %7108 = vmatmul.bf16.gmra.mxu3 %v6826_v7 }
 0xb64   :  { %7122 = vmatmul.bf16.vlgmr.msrb.gmra.mxu3 %v14139_v17 }
 0xb74   :  { %7127 = vmatmul.bf16.gmra.mxu3 %v6827_v22 }
 0xb97   :  { %v7071_v53 = vpop.f32.mrf.mxu3 }
 0xb9f   :  { %v7073_v61 = vpop.f32.mrf.mxu3 }
 0xba7   :  { %v7085_v20 = vpop.f32.mrf.mxu3 }
 0xba8   :  { %v7086_v56 = vadd.f32 %v7085_v20, %v7066_v51 }
 0xbaf   :  { %v7087_v30 = vpop.f32.mrf.mxu3 }
 0xbb0   :  { %v7088_v24 = vadd.f32 %v7087_v30, %v7068_v60 }
 0xbb7   :  { %v7090_v52 = vpop.f32.mrf.mxu3 }
 0xbb8   :  { %v7091_v35 = vadd.f32 %v7090_v52, %v7071_v53 }
 0xbbf   :  { %v7092_v59 = vpop.f32.mrf.mxu3 }
 0xbc0   :  { %v7093_v27 = vadd.f32 %v7092_v59, %v7073_v61 }
 0xbc7   :  { %v7104_v40 = vpop.f32.mrf.mxu3 }
 0xbc8   :  { %v7105_v17 = vadd.f32 %v7104_v40, %v7086_v56 }
 0xbcf   :  { %v7106_v15 = vpop.f32.mrf.mxu3 }
 0xbd0   :  { %v7107_v58 = vadd.f32 %v7106_v15, %v7088_v24 }
 0xbd7   :  { %v7109_v42 = vpop.f32.mrf.mxu3 }
 0xbd8   :  { %v7110_v54 = vadd.f32 %v7109_v42, %v7091_v35 }
 0xbdf   :  { %v7111_v50 = vpop.f32.mrf.mxu3 }
 0xbe0   :  { %v7112_v55 = vadd.f32 %v7111_v50, %v7093_v27 }
 0xbe7   :  { %v7123_v10 = vpop.f32.mrf.mxu3 }
 0xbe8   :  { %v7124_v11 = vadd.f32 %v7123_v10, %v7105_v17  ;;  %v6311_v17 = vld [vmem:[%s14558_s8] sm:$0x1]  ;;  %s8848_s8 = smov 1  }
 0xbea   :  { %v14243_v26 = vadd.f32 %v7142_v57, %v7124_v11 }
 0xbec   :  { %v7166_v47 = vmul.f32 %v14243_v26, %v14243_v26  ;;  %v7152_v38 = vsel %vm2029_vm14, %v14243_v26, 0.0 }
 0xbee   :  { %v7170_v6 = vsel %vm2029_vm14, %v7166_v47, 0.0 }
 0xbef   :  { %v7125_v9 = vpop.f32.mrf.mxu3 }
 0xbf0   :  { %v7126_v19 = vadd.f32 %v7125_v9, %v7107_v58  ;;  %v8805_v9 = vld [vmem:[%s14559_s9] ss:$0 sm:$0xff] }
 0xbf2   :  { %v14247_v34 = vadd.f32 %v7144_v48, %v7126_v19 }
 0xbf4   :  { %v7153_v33 = vsel %vm2029_vm14, %v14247_v34, 0.0  ;;  %v7167_v32 = vmul.f32 %v14247_v34, %v14247_v34 }
 0xbf5   :  { %v7154_v23 = vadd.f32 %v7153_v33, %v7152_v38 }
 0xbf6   :  { %v7171_v36 = vsel %vm2029_vm14, %v7167_v32, 0.0 }
 0xbf7   :  { %v7172_v49 = vadd.f32 %v7171_v36, %v7170_v6  ;;  %v7128_v45 = vpop.f32.mrf.mxu3 }
 0xbf8   :  { %v7129_v2 = vadd.f32 %v7128_v45, %v7110_v54 }
 0xbfa   :  { %v7148_v25 = vadd.f32 %v7147_v39, %v7129_v2 }
 0xbfc   :  { %v7155_v62 = vsel %vm2029_vm14, %v7148_v25, 0.0  ;;  %v7168_v28 = vmul.f32 %v7148_v25, %v7148_v25 }
 0xbfd   :  { %v7156_v41 = vadd.f32 %v7155_v62, %v7154_v23 }
 0xbfe   :  { %v7173_v46 = vsel %vm2029_vm14, %v7168_v28, 0.0 }
 0xbff   :  { %v7174_v13 = vadd.f32 %v7173_v46, %v7172_v49  ;;  %v7130_v0 = vpop.f32.mrf.mxu3 }
 0xc00   :  { %v7131_v18 = vadd.f32 %v7130_v0, %v7112_v55 }
 0xc02   :  { %v7150_v37 = vadd.f32 %v7149_v3, %v7131_v18 }
 0xc04   :  { %v7157_v16 = vsel %vm2029_vm14, %v7150_v37, 0.0  ;;  %v7169_v43 = vmul.f32 %v7150_v37, %v7150_v37 }
 0xc05   :  { %v7158_v44 = vadd.f32 %v7157_v16, %v7156_v41 }
 0xc06   :  { %v7175_v12 = vsel %vm2029_vm14, %v7169_v43, 0.0 }
 0xc07   :  { %v7159_v31 = vrot.slane %v7158_v44, 4  ;;  %v7176_v5 = vadd.f32 %v7175_v12, %v7174_v13 }
 0xc09   :  { %v7160_v29 = vadd.f32 %v7159_v31, %v7158_v44  ;;  %v7177_v1 = vrot.slane %v7176_v5, 4 }
 0xc0b   :  { %v7161_v63 = vrot.slane %v7160_v29, 2  ;;  %v7178_v21 = vadd.f32 %v7177_v1, %v7176_v5 }
 0xc0d   :  { %v7162_v14 = vadd.f32 %v7161_v63, %v7160_v29  ;;  %v7179_v4 = vrot.slane %v7178_v21, 2 }
 0xc0f   :  { %v7163_v7 = vrot.slane %v7162_v14, 1  ;;  %v7180_v22 = vadd.f32 %v7179_v4, %v7178_v21 }
 0xc11   :  { %v7164_v51 = vadd.f32 %v7163_v7, %v7162_v14  ;;  %v7181_v60 = vrot.slane %v7180_v22, 1 }
 0xc13   :  { %v7165_v53 = vmul.f32 0.03125, %v7164_v51  ;;  %v7182_v61 = vadd.f32 %v7181_v60, %v7180_v22 }
 0xc15   :  { %v7183_v20 = vmul.f32 0.03125, %v7182_v61  ;;  %v7184_v30 = vmul.f32 %v7165_v53, %v7165_v53  ;;  %v7198_v24 = vsub.f32 %v14243_v26, %v7165_v53  ;;  %v7199_v52 = vsub.f32 %v14247_v34, %v7165_v53 }
 0xc16   :  { %v7200_v35 = vsub.f32 %v7148_v25, %v7165_v53  ;;  %v7201_v59 = vsub.f32 %v7150_v37, %v7165_v53 }
 0xc17   :  { %v7185_v40 = vsub.f32 %v7183_v20, %v7184_v30 }
 0xc19   :  { %v7186_v15 = vadd.f32 1e-05, %v7185_v40 }
 0xc1b   :  { %8811 = vrsqrt.f32 %v7186_v15  ;;  %vm7193_vm13 = vweird.f32 %v7186_v15 }
 0xc21   :  { %v8812_v42 = vpop.eup %8811 }
 0xc22   :  { %v7188_v50 = vmul.f32 %v8812_v42, %v7186_v15  ;;  %vm7194_vm10 = vweird.f32 %v8812_v42 }
 0xc23   :  { %vm7195_vm15 = vmor %vm7193_vm13, %vm7194_vm10 }
 0xc24   :  { %v7189_v57 = vmul.f32 %v8812_v42, %v7188_v50 }
 0xc26   :  { %v7190_v56 = vmul.f32 0.5, %v7189_v57 }
 0xc28   :  { %v7191_v10 = vsub.f32 1.5, %v7190_v56 }
 0xc2a   :  { %v7192_v11 = vmul.f32 %v8812_v42, %v7191_v10 }
 0xc2c   :  { %v7196_v48 = vsel %vm7195_vm15, %v8812_v42, %v7192_v11 }
 0xc2d   :  { %v7197_v58 = vmul.f32 %v7196_v48, %v6311_v17 }
 0xc2f   :  { %v7202_v26 = vperm.slane %v7197_v58, 0 }
 0xc31   :  { %v7203_v19 = vmul.f32 %v7202_v26, %v7198_v24  ;;  %v7204_v47 = vmul.f32 %v7202_v26, %v7199_v52  ;;  %v7205_v34 = vmul.f32 %v7202_v26, %v7200_v35  ;;  %v7206_v38 = vmul.f32 %v7202_v26, %v7201_v59 }
 0xc33   :  { %v7210_v33 = vadd.f32 %v8805_v9, %v7203_v19  ;;  %v7211_v32 = vadd.f32 %v8805_v9, %v7204_v47  ;;  %v7212_v23 = vadd.f32 %v8805_v9, %v7205_v34  ;;  %v7213_v54 = vadd.f32 %v8805_v9, %v7206_v38 }
 0xc35   :  { %v7214_v6 = vmax.f32 %v7210_v33, 0.0  ;;  %v7215_v36 = vmax.f32 %v7211_v32, 0.0  ;;  %v7216_v39 = vmax.f32 %v7212_v23, 0.0  ;;  %v7217_v49 = vmax.f32 %v7213_v54, 0.0 }
 0xc37   :  { %v7222_v45 = vrot.slane %v7214_v6, 4  ;;  %v7223_v2 = vrot.slane %v7215_v36, 4  ;;  %v7224_v25 = vrot.slane %v7216_v39, 4  ;;  %v7225_v27 = vrot.slane %v7217_v49, 4 }
 0xc38   :  { %v7231_v62 = vsel %vm7230_vm1, %v7214_v6, -inf  ;;  %v7234_v28 = vsel %vm7230_vm1, %v7215_v36, -inf  ;;  %v7237_v41 = vsel %vm7230_vm1, %v7216_v39, -inf  ;;  %v7240_v55 = vsel %vm7230_vm1, %v7217_v49, -inf }
 0xc39   :  { %v7232_v46 = vsel %vm7230_vm1, %v7222_v45, -inf  ;;  %v7235_v13 = vsel %vm7230_vm1, %v7223_v2, -inf  ;;  %v7238_v0 = vsel %vm7230_vm1, %v7224_v25, -inf  ;;  %v7241_v18 = vsel %vm7230_vm1, %v7225_v27, -inf }
 0xc3a   :  { %v7233_v3 = vmax.f32 %v7231_v62, %v7232_v46  ;;  %v7236_v37 = vmax.f32 %v7234_v28, %v7235_v13  ;;  %v7239_v16 = vmax.f32 %v7237_v41, %v7238_v0  ;;  %v7242_v43 = vmax.f32 %v7240_v55, %v7241_v18 }
 0xc3c   :  { %v7247_v44 = vrot.slane %v7233_v3, 2  ;;  %v7248_v12 = vrot.slane %v7236_v37, 2  ;;  %v7249_v31 = vrot.slane %v7239_v16, 2  ;;  %v7250_v5 = vrot.slane %v7242_v43, 2 }
 0xc3e   :  { %v7253_v29 = vsel %vm7252_vm3, %v7233_v3, %v7247_v44  ;;  %v7256_v1 = vsel %vm7252_vm3, %v7236_v37, %v7248_v12  ;;  %v7259_v63 = vsel %vm7252_vm3, %v7239_v16, %v7249_v31  ;;  %v7261_v21 = vsel %vm6745_vm7, %v7242_v43, %v7250_v5 }
 0xc3f   :  { %v7254_v14 = vrot.slane %v7253_v29, 2  ;;  %v7257_v4 = vrot.slane %v7256_v1, 2  ;;  %v7260_v7 = vrot.slane %v7259_v63, 2  ;;  %v7262_v22 = vsel %vm7252_vm3, %v7242_v43, %v7250_v5 }
 0xc40   :  { %v7263_v51 = vrot.slane %v7262_v22, 2  ;;  %v7314_v60 = vsel %vm2956_vm4, %v7261_v21, -inf  ;;  %v7258_v53 = vsel %vm6745_vm7, %v7239_v16, %v7249_v31  ;;  %v7255_v19 = vsel %vm6745_vm7, %v7236_v37, %v7248_v12 }
 0xc41   :  { %v7279_v61 = vsel %vm2956_vm4, %v7254_v14, -inf  ;;  %v7293_v20 = vsel %vm2956_vm4, %v7257_v4, -inf  ;;  %v7307_v30 = vsel %vm2956_vm4, %v7260_v7, -inf  ;;  %v7315_v24 = vrot.slane %v7314_v60, 4 }
 0xc42   :  { %v7294_v52 = vrot.slane %v7293_v20, 4  ;;  %v7308_v35 = vrot.slane %v7307_v30, 4  ;;  %v7321_v59 = vsel %vm2956_vm4, %v7263_v51, -inf  ;;  %v7300_v42 = vsel %vm2956_vm4, %v7258_v53, -inf }
 0xc43   :  { %v7316_v40 = vmax.f32 %v7314_v60, %v7315_v24  ;;  %v7322_v15 = vrot.slane %v7321_v59, 4  ;;  %v7280_v50 = vrot.slane %v7279_v61, 4  ;;  %v7301_v10 = vrot.slane %v7300_v42, 4 }
 0xc44   :  { %v7295_v57 = vmax.f32 %v7293_v20, %v7294_v52  ;;  %v7309_v56 = vmax.f32 %v7307_v30, %v7308_v35  ;;  %v7286_v32 = vsel %vm2956_vm4, %v7255_v19, -inf  ;;  %v7251_v41 = vsel %vm6745_vm7, %v7233_v3, %v7247_v44 }
 0xc45   :  { %v7317_v17 = vrot.slane %v7316_v40, 2  ;;  %v7323_v11 = vmax.f32 %v7321_v59, %v7322_v15  ;;  %v7302_v48 = vmax.f32 %v7300_v42, %v7301_v10  ;;  %v7281_v34 = vmax.f32 %v7279_v61, %v7280_v50 }
 0xc46   :  { %v7310_v58 = vrot.slane %v7309_v56, 2  ;;  %v7296_v47 = vrot.slane %v7295_v57, 2  ;;  %v7287_v6 = vrot.slane %v7286_v32, 4  ;;  %v7272_v16 = vsel %vm2956_vm4, %v7251_v41, -inf }
 0xc47   :  { %v7318_v26 = vmax.f32 %v7316_v40, %v7317_v17  ;;  %v7324_v9 = vrot.slane %v7323_v11, 2  ;;  %v7303_v38 = vrot.slane %v7302_v48, 2  ;;  %v7282_v55 = vrot.slane %v7281_v34, 2 }
 0xc48   :  { %v7311_v33 = vmax.f32 %v7309_v56, %v7310_v58  ;;  %v7297_v36 = vmax.f32 %v7295_v57, %v7296_v47  ;;  %v7288_v25 = vmax.f32 %v7286_v32, %v7287_v6  ;;  %v7273_v29 = vrot.slane %v7272_v16, 4 }
 0xc49   :  { %v7319_v23 = vrot.slane %v7318_v26, 1  ;;  %v7325_v54 = vmax.f32 %v7323_v11, %v7324_v9  ;;  %v7304_v39 = vmax.f32 %v7302_v48, %v7303_v38  ;;  %v7283_v43 = vmax.f32 %v7281_v34, %v7282_v55 }
 0xc4a   :  { %v7312_v49 = vrot.slane %v7311_v33, 1  ;;  %v7298_v27 = vrot.slane %v7297_v36, 1  ;;  %v7289_v13 = vrot.slane %v7288_v25, 2  ;;  %v7274_v4 = vmax.f32 %v7272_v16, %v7273_v29 }
 0xc4b   :  { %v7320_v45 = vmax.f32 %v7318_v26, %v7319_v23  ;;  %v7326_v2 = vrot.slane %v7325_v54, 1  ;;  %v7305_v62 = vrot.slane %v7304_v39, 1  ;;  %v7284_v21 = vrot.slane %v7283_v43, 1 }
 0xc4c   :  { %v7313_v28 = vmax.f32 %v7311_v33, %v7312_v49  ;;  %v7299_v0 = vmax.f32 %v7297_v36, %v7298_v27  ;;  %v7290_v31 = vmax.f32 %v7288_v25, %v7289_v13  ;;  %v7275_v53 = vrot.slane %v7274_v4, 2 }
 0xc4d   :  { %v7327_v46 = vmax.f32 %v7325_v54, %v7326_v2  ;;  %v7306_v18 = vmax.f32 %v7304_v39, %v7305_v62  ;;  %v7334_v12 = vpack.c.bf16 %v7320_v45, %v7320_v45  ;;  %v7285_v44 = vmax.f32 %v7283_v43, %v7284_v21 }
 0xc4e   :  { %v7333_v37 = vpack.c.bf16 %v7313_v28, %v7313_v28  ;;  %v7331_v5 = vpack.c.bf16 %v7299_v0, %v7299_v0  ;;  %v7291_v14 = vrot.slane %v7290_v31, 1  ;;  %v7276_v52 = vmax.f32 %v7274_v4, %v7275_v53 }
 0xc4f   :  { %v7332_v1 = vpack.c.bf16 %v7306_v18, %v7306_v18  ;;  %v7335_v22 = vpack.c.bf16 %v7327_v46, %v7327_v46  ;;  %v7424_v61 = vperm.slane %v7334_v12, 0  ;;  %v7329_v35 = vpack.c.bf16 %v7285_v44, %v7285_v44 }
 0xc50   :  { %v7423_v63 = vperm.slane %v7333_v37, 0  ;;  %v7292_v51 = vmax.f32 %v7290_v31, %v7291_v14  ;;  %v7421_v60 = vperm.slane %v7331_v5, 0  ;;  %v7277_v56 = vrot.slane %v7276_v52, 1 }
 0xc51   :  { %v7422_v7 = vperm.slane %v7332_v1, 0  ;;  %v7425_v30 = vperm.slane %v7335_v22, 0  ;;  %v7432_v40 = vunpack.c.l.b16 %v7424_v61  ;;  %v7419_v58 = vperm.slane %v7329_v35, 0 }
 0xc52   :  { %v7431_v3 = vunpack.c.l.b16 %v7423_v63  ;;  %v7330_v24 = vpack.c.bf16 %v7292_v51, %v7292_v51  ;;  %v7429_v57 = vunpack.c.l.b16 %v7421_v60  ;;  %v7278_v48 = vmax.f32 %v7276_v52, %v7277_v56  ;;  %v15444_v52 = vld [vmem:[#allocation6_spill] sm:$0xff]  ;;  %v8754_v56 = vld [vmem:[%s14560_s10 + $0x28] sm:$0xff] }
 0xc53   :  { %v7430_v20 = vunpack.c.l.b16 %v7422_v7  ;;  %v7433_v15 = vunpack.c.l.b16 %v7425_v30  ;;  %v7427_v54 = vunpack.c.l.b16 %v7419_v58  ;;  %v14341_v35 = vsel %vm14293_vm11, %v15444_v52, 0 }
 0xc54   :  { %v7420_v50 = vperm.slane %v7330_v24, 0  ;;  %v7328_v34 = vpack.c.bf16 %v7278_v48, %v7278_v48  ;;  %v8752_v48 = vld [vmem:[%s14560_s10 + $0x18] sm:$0xff] }
 0xc55   :  { %v7436_v59 = vsel %vm4439_vm6, %v7431_v3, %v7430_v20  ;;  %v7437_v10 = vsel %vm4439_vm6, %v7433_v15, %v7432_v40  ;;  %v7489_v40 = vshll.u32 %v14341_v35, 16 }
 0xc56   :  { %v7440_v42 = vpack.c.b16 %v7436_v59, %v7436_v59  ;;  %v7428_v11 = vunpack.c.l.b16 %v7420_v50  ;;  %v7441_v26 = vpack.c.b16 %v7437_v10, %v7437_v10  ;;  %v7418_v23 = vperm.slane %v7328_v34, 0  ;;  %v8756_v50 = vld [vmem:[%s14560_s10 + $0x38] sm:$0xff] }
 0xc57   :  { %v7487_v59 = vshrl.u32 %v14341_v35, 16  ;;  %v7491_v15 = vrot.slane %v7489_v40, 1  ;;  %7870 = vmatpush.bf16.msra.mxu2 %v8756_v50 }
 0xc58   :  { %v7457_v17 = vshrl.u32 %v7440_v42, 16  ;;  %v7460_v19 = vshll.u32 %v7440_v42, 16  ;;  %v7435_v47 = vsel %vm4439_vm6, %v7429_v57, %v7428_v11  ;;  %v7464_v36 = vshrl.u32 %v7441_v26, 16  ;;  %v8755_v57 = vld [vmem:[%s14560_s10 + $0x30] sm:$0xff]  ;;  %v8753_v11 = vld [vmem:[%s14560_s10 + $0x20] sm:$0xff] }
 0xc59   :  { %v7439_v38 = vpack.c.b16 %v7435_v47, %v7435_v47  ;;  %v7426_v49 = vunpack.c.l.b16 %v7418_v23  ;;  %v7467_v37 = vshll.u32 %v7441_v26, 16  ;;  %v7492_v42 = vor.u32 %v7491_v15, %v7487_v59  ;;  %v8757_v15 = vld [vmem:[%s14560_s10 + $0x40] sm:$0xff] }
 0xc5a   :  { %v7459_v9 = vrot.slane %v7457_v17, 7  ;;  %v7466_v55 = vrot.slane %v7464_v36, 7  ;;  %v8772_v36 = vld [vmem:[%s14560_s10 + $0xb8] sm:$0xff] }
 0xc5b   :  { %v7450_v6 = vshrl.u32 %v7439_v38, 16  ;;  %v7453_v25 = vshll.u32 %v7439_v38, 16  ;;  %v7434_v62 = vsel %vm4439_vm6, %v7427_v54, %v7426_v49  ;;  %7871 = vmatpush.bf16.msra.mxu2 %v8755_v57  ;;  %v8750_v54 = vld [vmem:[%s14560_s10 + $0x8] sm:$0xff]  ;;  %7896 = vmatpush.bf16.msra.mxu1 %v8772_v36  ;;  %v8771_v49 = vld [vmem:[%s14560_s10 + $0xb0] sm:$0xff]  ;;  %v8765_v57 = vld [vmem:[%s14560_s10 + $0x80] sm:$0xff] }
 0xc5c   :  { %v7462_v33 = vor.u32 %v7460_v19, %v7459_v9  ;;  %v7438_v41 = vpack.c.b16 %v7434_v62, %v7434_v62  ;;  %v7469_v29 = vor.u32 %v7467_v37, %v7466_v55  ;;  %v8751_v9 = vld [vmem:[%s14560_s10 + $0x10] sm:$0xff]  ;;  %v8749_v62 = vld [vmem:[%s14560_s10] sm:$0xff] }
 0xc5d   :  { %v7452_v2 = vrot.slane %v7450_v6, 7  ;;  %v8764_v6 = vld [vmem:[%s14560_s10 + $0x78] sm:$0xff] }
 0xc5e   :  { %v7476_v39 = vsel %vm8932_vm2, 0, %v7462_v33  ;;  %v7443_v18 = vshrl.u32 %v7438_v41, 16  ;;  %v7446_v5 = vshll.u32 %v7438_v41, 16  ;;  %v7477_v7 = vsel %vm8932_vm2, 0, %v7469_v29  ;;  %7883 = vmatpush.bf16.msra.mxu3 %v8764_v6  ;;  %v8780_v41 = vld [vmem:[%s14560_s10 + $0xf8] sm:$0xff]  ;;  %v8759_v29 = vld [vmem:[%s14560_s10 + $0x50] sm:$0xff] }
 0xc5f   :  { %v14301_v45 = vsel %vm14293_vm11, %v7476_v39, 0  ;;  %v7455_v28 = vor.u32 %v7453_v25, %v7452_v2  ;;  %v14327_v22 = vsel %vm14293_vm11, %v7477_v7, 0  ;;  %7872 = vmatpush.bf16.msra.mxu2 %v8754_v56  ;;  %v8763_v39 = vld [vmem:[%s14560_s10 + $0x70] sm:$0xff]  ;;  %v8762_v2 = vld [vmem:[%s14560_s10 + $0x68] sm:$0xff]  ;;  %7897 = vmatpush.bf16.msra.mxu1 %v8771_v49  ;;  %v8776_v56 = vld [vmem:[%s14560_s10 + $0xd8] sm:$0xff] }
 0xc60   :  { %v7510_v27 = vshll.u32 %v14301_v45, 16  ;;  %v7508_v46 = vshrl.u32 %v14301_v45, 16  ;;  %v7445_v31 = vrot.slane %v7443_v18, 7  ;;  %v7517_v61 = vshll.u32 %v14327_v22, 16  ;;  %v8770_v25 = vld [vmem:[%s14560_s10 + $0xa8] sm:$0xff]  ;;  %v8768_v18 = vld [vmem:[%s14560_s10 + $0x98] sm:$0xff] }
 0xc61   :  { %v7475_v0 = vsel %vm8932_vm2, 0, %v7455_v28  ;;  %v7515_v20 = vshrl.u32 %v14327_v22, 16  ;;  %v7540_v32 = vrot.slane %v14327_v22, 1  ;;  %v7539_v23 = vrot.slane %v14301_v45, 1  ;;  %v8769_v28 = vld [vmem:[%s14560_s10 + $0xa0] sm:$0xff]  ;;  %v8782_v6 = vld [vmem:[%s14560_s10 + $0x108] sm:$0xff] }
 0xc62   :  { %v7512_v13 = vrot.slane %v7510_v27, 1  ;;  %v14310_v43 = vsel %vm14293_vm11, %v7475_v0, 0  ;;  %v7448_v21 = vor.u32 %v7446_v5, %v7445_v31  ;;  %v7519_v8 = vrot.slane %v7517_v61, 1  ;;  %7884 = vmatpush.bf16.msra.mxu3 %v8763_v39  ;;  %v8761_v27 = vld [vmem:[%s14560_s10 + $0x60] sm:$0xff] }
 0xc63   :  { %v7503_v12 = vshll.u32 %v14310_v43, 16  ;;  %v7501_v1 = vshrl.u32 %v14310_v43, 16  ;;  %7873 = vmatpush.bf16.msra.mxu2 %v8753_v11  ;;  %v7538_v34 = vrot.slane %v14310_v43, 1  ;;  %7898 = vmatpush.bf16.msra.mxu1 %v8770_v25  ;;  %v8784_v11 = vld [vmem:[%s14560_s10 + $0x118] sm:$0xff] }
 0xc64   :  { %v7513_v16 = vor.u32 %v7512_v13, %v7508_v46  ;;  %v7474_v4 = vsel %vm8932_vm2, 0, %v7448_v21  ;;  %v7520_v30 = vor.u32 %v7519_v8, %v7515_v20  ;;  %v14429_v46 = vrot.slane %v14341_v35, 1  ;;  %v8760_v13 = vld [vmem:[%s14560_s10 + $0x58] sm:$0xff]  ;;  %v8767_v21 = vld [vmem:[%s14560_s10 + $0x90] sm:$0xff]  ;;  %v8766_v8 = vld [vmem:[%s14560_s10 + $0x88] sm:$0xff] }
 0xc65   :  { %v7505_v63 = vrot.slane %v7503_v12, 1  ;;  %v14321_v3 = vsel %vm14293_vm11, %v7474_v4, 0  ;;  %v7594_v4 = vrot.slane %v7538_v34, 4  ;;  %vm15445_vm2 = vcmask 1042432   ;;  %v8777_v20 = vld [vmem:[%s14560_s10 + $0xe0] sm:$0xff] }
 0xc66   :  { %7527 = vrot.lane.b32.xlu1 %v7513_v16, %s8846_s3  ;;  %v7496_v44 = vshll.u32 %v14321_v3, 16  ;;  %v7494_v51 = vshrl.u32 %v14321_v3, 16  ;;  %v7537_v24 = vrot.slane %v14321_v3, 1  ;;  %7885 = vmatpush.bf16.msra.mxu3 %v8762_v2  ;;  %v8779_v16 = vld [vmem:[%s14560_s10 + $0xf0] sm:$0xff]  ;;  %vm15446_vm6 = vmmov %vm15445_vm2  ;;  %v8781_v2 = vld [vmem:[%s14560_s10 + $0x100] sm:$0xff] }
 0xc67   :  { %v7506_v14 = vor.u32 %v7505_v63, %v7501_v1  ;;  %7874 = vmatpush.bf16.msra.mxu2 %v8752_v48  ;;  %7899 = vmatpush.bf16.msra.mxu1 %v8769_v28  ;;  %vm15447_vm12 = vmmov %vm15445_vm2 }
 0xc68   :  { %v7498_v60 = vrot.slane %v7496_v44, 1  ;;  %vm15448_vm8 = vmmov %vm15445_vm2 }
 0xc69   :  { %7525 = vrot.lane.b32.xlu0 %v7506_v14, %s8846_s3  ;;  %v8778_v14 = vld [vmem:[%s14560_s10 + $0xe8] sm:$0xff] }
 0xc6a   :  { %v7499_v53 = vor.u32 %v7498_v60, %v7494_v51  ;;  %7886 = vmatpush.bf16.msra.mxu3 %v8761_v27  ;;  %v8758_v60 = vld [vmem:[%s14560_s10 + $0x48] sm:$0xff] }
 0xc6b   :  { %7875 = vmatpush.bf16.msra.mxu2 %v8751_v9  ;;  %7900 = vmatpush.bf16.msra.mxu1 %v8768_v18 }
 0xc6c   :  { %7523 = vrot.lane.b32.xlu2 %v7499_v53, %s8846_s3 }
 0xc6e   :  { %7521 = vrot.lane.b32.xlu1 %v7492_v42, %s8846_s3  ;;  %7887 = vmatpush.bf16.msra.mxu3 %v8760_v13 }
 0xc6f   :  { %7876 = vmatpush.bf16.msra.mxu2 %v8750_v54  ;;  %7901 = vmatpush.bf16.msra.mxu1 %v8767_v21 }
 0xc72   :  { %7888 = vmatpush.bf16.msra.mxu3 %v8759_v29 }
 0xc73   :  { %7877 = vmatpush.bf16.msra.mxu2 %v8749_v62  ;;  %7902 = vmatpush.bf16.msra.mxu1 %v8766_v8 }
 0xc74   :  { %7529 = vrot.lane.b32.xlu2 %v7520_v30, %s8846_s3  ;;  %v7598_v30 = vrot.slane %v14429_v46, 4 }
 0xc76   :  { %7889 = vmatpush.bf16.msra.mxu3 %v8758_v60 }
 0xc77   :  { %7909 = vmatpush.bf16.msrb.mxu2 %v8780_v41  ;;  %7903 = vmatpush.bf16.msra.mxu1 %v8765_v57  ;;  %v7602_v41 = vrot.slane %v7540_v32, 4 }
 0xc7a   :  { %7890 = vmatpush.bf16.msra.mxu3 %v8757_v15 }
 0xc7b   :  { %7910 = vmatpush.bf16.msrb.mxu2 %v8779_v16 }
 0xc7c   :  { %7557 = vrot.lane.b32.xlu2 %v7537_v24, %s8846_s3 }
 0xc7e   :  { %7926 = vmatpush.bf16.msrb.mxu3 %v8784_v11 }
 0xc7f   :  { %7911 = vmatpush.bf16.msrb.mxu2 %v8778_v14 }
 0xc83   :  { %7912 = vmatpush.bf16.msrb.mxu2 %v8777_v20 }
 0xc87   :  { %7913 = vmatpush.bf16.msrb.mxu2 %v8776_v56 }
 0xcc6   :  { %v7524_v10 = vpop.permute.xlu2 %7523 }
 0xcc7   :  { %v14357_v17 = vsel %vm2029_vm14, %v14321_v3, %v7524_v10  ;;  %v8773_v3 = vld [vmem:[%s14560_s10 + $0xc0] sm:$0xff] }
 0xcc8   :  { %7555 = vrot.lane.b32.xlu0 %v14357_v17, %s8846_s3 }
 0xcce   :  { %v7530_v58 = vpop.permute.xlu2 %7529 }
 0xccf   :  { %v14369_v26 = vsel %vm2029_vm14, %v14327_v22, %v7530_v58 }
 0xcd0   :  { %7567 = vrot.lane.b32.xlu0 %v14369_v26, %s8846_s3  ;;  %v7601_v62 = vrot.slane %v14369_v26, 5 }
 0xcd8   :  { %v7528_v19 = vpop.permute.xlu1 %7527  ;;  %7561 = vrot.lane.b32.xlu0 %v7538_v34, %s8846_s3  ;;  %v8783_v34 = vld [vmem:[%s14560_s10 + $0x110] sm:$0xff] }
 0xcd9   :  { %v14378_v47 = vsel %vm2029_vm14, %v14301_v45, %v7528_v19  ;;  %v7558_v45 = vpop.permute.xlu2 %7557  ;;  %v8775_v19 = vld [vmem:[%s14560_s10 + $0xd0] sm:$0xff]  ;;  %7927 = vmatpush.bf16.msrb.mxu3 %v8783_v34 }
 0xcda   :  { %7563 = vrot.lane.b32.xlu2 %v14378_v47, %s8846_s3  ;;  %7914 = vmatpush.bf16.msrb.mxu2 %v8775_v19 }
 0xcdb   :  { %v7526_v38 = vpop.permute.xlu0 %7525 }
 0xcdc   :  { %v7546_v33 = vsel %vm2029_vm14, %v14310_v43, %v7526_v38 }
 0xcdd   :  { %7559 = vrot.lane.b32.xlu1 %v7546_v33, %s8846_s3  ;;  %v7593_v43 = vrot.slane %v7546_v33, 5  ;;  %7928 = vmatpush.bf16.msrb.mxu3 %v8782_v6 }
 0xcdf   :  { %v7612_v44 = vsel %vm4443_vm9, %v7593_v43, %v7594_v4 }
 0xce0   :  { %v7522_v0 = vpop.permute.xlu1 %7521 }
 0xce1   :  { %v14445_v5 = vsel %vm2029_vm14, %v14341_v35, %v7522_v0  ;;  %7929 = vmatpush.bf16.msrb.mxu3 %v8781_v2  ;;  %v7629_v0 = vsel %vm4443_vm9, %v7601_v62, %v7602_v41 }
 0xce2   :  { %7569 = vrot.lane.b32.xlu2 %v7540_v32, %s8846_s3  ;;  %v7597_v52 = vrot.slane %v14445_v5, 5 }
 0xce4   :  { %v7621_v10 = vsel %vm4443_vm9, %v7597_v52, %v7598_v30 }
 0xce5   :  { %7565 = vrot.lane.b32.xlu1 %v7539_v23, %s8846_s3 }
 0xd34   :  { %v14426_v55 = vpop.permute.xlu2 %7563 }
 0xd35   :  { %v7582_v49 = vsel %vm2029_vm14, %v14429_v46, %v14426_v55 }
 0xd36   :  { %v7599_v27 = vrot.slane %v7582_v49, 7 }
 0xd38   :  { %v7624_v13 = vsel %vm578_vm0, %v14445_v5, %v7599_v27 }
 0xd3a   :  { %v7556_v37 = vpop.permute.xlu0 %7555 }
 0xd3b   :  { %v7571_v12 = vsel %vm2029_vm14, %v7556_v37, %v7558_v45  ;;  %v7577_v31 = vsel %vm2029_vm14, %v14429_v46, %v7556_v37 }
 0xd3c   :  { %v7591_v1 = vrot.slane %v7577_v31, 7  ;;  %v7592_v63 = vrot.slane %v7571_v12, 6  ;;  %v7570_v61 = vpop.permute.xlu2 %7569 }
 0xd3e   :  { %v7607_v7 = vsel %vm578_vm0, %v14445_v5, %v7591_v1 }
 0xd3f   :  { %v7609_v51 = vsel %vm6745_vm7, %v7607_v7, %v7592_v63 }
 0xd40   :  { %v7614_v53 = vsel %vm15445_vm2, %v7609_v51, %v7612_v44 }
 0xd41   :  { %7636 = vst [vmem:[#allocation1] ss:$9 sm:$0xff] %v7614_v53 }
 0xd42   :  { %v7568_v35 = vpop.permute.xlu0 %7567 }
 0xd43   :  { %v7585_v59 = vsel %vm2029_vm14, %v7539_v23, %v7568_v35  ;;  %v7574_v40 = vsel %vm2029_vm14, %v7568_v35, %v7570_v61 }
 0xd44   :  { %v7603_v42 = vrot.slane %v7585_v59, 7  ;;  %v7604_v50 = vrot.slane %v7574_v40, 6 }
 0xd46   :  { %v7632_v48 = vsel %vm578_vm0, %v14378_v47, %v7603_v42  ;;  %v8774_v47 = vld [vmem:[%s14560_s10 + $0xc8] sm:$0xff] }
 0xd47   :  { %v7634_v58 = vsel %vm6745_vm7, %v7632_v48, %v7604_v50  ;;  %7915 = vmatpush.bf16.msrb.mxu2 %v8774_v47 }
 0xd48   :  { %v7635_v9 = vsel %vm15446_vm6, %v7634_v58, %v7621_v10 }
 0xd49   :  { %7642 = vst [vmem:[#allocation1 + $0x3] ss:$9 sm:$0xff] %v7635_v9 }
 0xd4a   :  { %v7562_v38 = vpop.permute.xlu0 %7561 }
 0xd4b   :  { %7916 = vmatpush.bf16.msrb.mxu2 %v8773_v3  ;;  %v8806_v3 = vld [vmem:[%s14562_s12] ss:$0 sm:$0xff] }
 0xd4f   :  { %v7560_v33 = vpop.permute.xlu1 %7559 }
 0xd50   :  { %v7572_v23 = vsel %vm2029_vm14, %v7560_v33, %v7562_v38  ;;  %v7580_v54 = vsel %vm2029_vm14, %v7537_v24, %v7560_v33 }
 0xd51   :  { %v7595_v36 = vrot.slane %v7580_v54, 7  ;;  %v7596_v39 = vrot.slane %v7572_v23, 6  ;;  %v7408_v54 = vld [vmem:[%s14561_s11] sm:$0x1] }
 0xd53   :  { %v7616_v45 = vsel %vm578_vm0, %v14357_v17, %v7595_v36 }
 0xd54   :  { %v7618_v24 = vsel %vm6745_vm7, %v7616_v45, %v7596_v39 }
 0xd55   :  { %v7622_v25 = vsel %vm15447_vm12, %v7618_v24, %v7621_v10 }
 0xd56   :  { %7638 = vst [vmem:[#allocation1 + $0x1] ss:$9 sm:$0xff] %v7622_v25 }
 0xd57   :  { %v7566_v28 = vpop.permute.xlu1 %7565 }
 0xd58   :  { %v7573_v17 = vsel %vm2029_vm14, %v14426_v55, %v7566_v28 }
 0xd59   :  { %v7600_v46 = vrot.slane %v7573_v17, 6 }
 0xd5b   :  { %v7626_v18 = vsel %vm6745_vm7, %v7624_v13, %v7600_v46  ;;  %vm8001_vm7 = vcmask 516096  }
 0xd5c   :  { %v7630_v37 = vsel %vm15448_vm8, %v7626_v18, %v7629_v0 }
 0xd5d   :  { %7640 = vst [vmem:[#allocation1 + $0x2] ss:$9 sm:$0xff] %v7630_v37 }
 0xd64   :  { %v7643_v26 = vld [vmem:[#allocation1] sm:$0xff]  ;;  %v7644_v16 = vld [vmem:[#allocation1 + $0x9] sm:$0xff]  ;;  %v7645_v43 = vld [vmem:[#allocation1 + $0x12] sm:$0xff] }
 0xd65   :  { %7878 = vmatmul.bf16.vlgmr.msra.gmra.mxu2 %v7643_v26  ;;  %7891 = vmatmul.bf16.vlgmr.msra.gmra.mxu3 %v7644_v16  ;;  %v7646_v55 = vld [vmem:[#allocation1 + $0x1b] sm:$0xff]  ;;  %v7647_v22 = vld [vmem:[#allocation1 + $0x24] sm:$0xff] }
 0xd66   :  { %7904 = vmatmul.bf16.vlgmr.msra.gmra.mxu1 %v7645_v43 }
 0xd75   :  { %7917 = vmatmul.bf16.vlgmr.msrb.gmra.mxu2 %v7646_v55  ;;  %8640 = vmatmul.msk.bf16.vlgmr.msrb.gmra.mxu3 %vm2029_vm14, %v7647_v22 }
 0xde3   :  { %v7905_v32 = vpop.f32.mrf.mxu1 }
 0xde8   :  { %v7879_v12 = vpop.f32.mrf.mxu2  ;;  %v7892_v31 = vpop.f32.mrf.mxu3 }
 0xde9   :  { %v7893_v63 = vadd.f32 %v7892_v31, %v7879_v12 }
 0xdeb   :  { %v7907_v5 = vpop.f32.mrf.mxu1  ;;  %v7906_v21 = vadd.f32 %v7905_v32, %v7893_v63 }
 0xdf0   :  { %v7881_v29 = vpop.f32.mrf.mxu2  ;;  %v7894_v1 = vpop.f32.mrf.mxu3 }
 0xdf8   :  { %v7918_v14 = vpop.f32.mrf.mxu2  ;;  %v7931_v4 = vpop.f32.mrf.mxu3 }
 0xdf9   :  { %v7919_v7 = vadd.f32 %v7918_v14, %v7906_v21 }
 0xdfb   :  { %v7932_v44 = vadd.f32 %v7931_v4, %v7919_v7 }
 0xdfd   :  { %v7935_v51 = vsel %vm2029_vm14, %v7932_v44, 0.0  ;;  %v7943_v60 = vmul.f32 %v7932_v44, %v7932_v44 }
 0xdfe   :  { %v7936_v53 = vrot.slane %v7935_v51, 4 }
 0xdff   :  { %v7944_v61 = vsel %vm2029_vm14, %v7943_v60, 0.0 }
 0xe00   :  { %v7937_v8 = vadd.f32 %v7936_v53, %v7935_v51  ;;  %v7945_v20 = vrot.slane %v7944_v61, 4  ;;  %v7920_v30 = vpop.f32.mrf.mxu2  ;;  %v7933_v52 = vpop.f32.mrf.mxu3 }
 0xe02   :  { %v7938_v35 = vrot.slane %v7937_v8, 2  ;;  %v7946_v59 = vadd.f32 %v7945_v20, %v7944_v61 }
 0xe04   :  { %v7939_v40 = vadd.f32 %v7938_v35, %v7937_v8  ;;  %v7947_v15 = vrot.slane %v7946_v59, 2 }
 0xe06   :  { %v7940_v42 = vrot.slane %v7939_v40, 1  ;;  %v7948_v50 = vadd.f32 %v7947_v15, %v7946_v59 }
 0xe08   :  { %v7941_v57 = vadd.f32 %v7940_v42, %v7939_v40  ;;  %v7949_v56 = vrot.slane %v7948_v50, 1 }
 0xe0a   :  { %v7942_v10 = vmul.f32 0.125, %v7941_v57  ;;  %v7950_v11 = vadd.f32 %v7949_v56, %v7948_v50 }
 0xe0c   :  { %v7951_v48 = vmul.f32 0.125, %v7950_v11  ;;  %v7952_v58 = vmul.f32 %v7942_v10, %v7942_v10  ;;  %v7966_v49 = vsub.f32 %v7932_v44, %v7942_v10 }
 0xe0e   :  { %v7953_v9 = vsub.f32 %v7951_v48, %v7952_v58 }
 0xe10   :  { %v7954_v19 = vadd.f32 1e-05, %v7953_v9 }
 0xe12   :  { %8813 = vrsqrt.f32 %v7954_v19  ;;  %vm7961_vm14 = vweird.f32 %v7954_v19 }
 0xe18   :  { %v8814_v34 = vpop.eup %8813 }
 0xe19   :  { %v7956_v38 = vmul.f32 %v8814_v34, %v7954_v19  ;;  %vm7962_vm0 = vweird.f32 %v8814_v34 }
 0xe1a   :  { %vm7963_vm9 = vmor %vm7961_vm14, %vm7962_vm0 }
 0xe1b   :  { %v7957_v33 = vmul.f32 %v8814_v34, %v7956_v38 }
 0xe1d   :  { %v7958_v47 = vmul.f32 0.5, %v7957_v33 }
 0xe1f   :  { %v7959_v23 = vsub.f32 1.5, %v7958_v47 }
 0xe21   :  { %v7960_v6 = vmul.f32 %v8814_v34, %v7959_v23 }
 0xe23   :  { %v7964_v36 = vsel %vm7963_vm9, %v8814_v34, %v7960_v6 }
 0xe24   :  { %v7965_v39 = vmul.f32 %v7964_v36, %v7408_v54 }
 0xe26   :  { %v7967_v45 = vperm.slane %v7965_v39, 0 }
 0xe28   :  { %v7968_v24 = vmul.f32 %v7967_v45, %v7966_v49 }
 0xe2a   :  { %v7972_v2 = vadd.f32 %v8806_v3, %v7968_v24 }
 0xe2c   :  { %v7973_v25 = vmax.f32 %v7972_v2, 0.0 }
 0xe2e   :  { %v7975_v27 = vrot.slane %v7973_v25, 2  ;;  %v7976_v62 = vrot.slane %v7973_v25, 4  ;;  %v7977_v28 = vrot.slane %v7973_v25, 6  ;;  %v7981_v17 = vsel %vm2956_vm4, %v7973_v25, -inf }
 0xe30   :  { %v7982_v41 = vsel %vm2956_vm4, %v7975_v27, -inf  ;;  %v7984_v46 = vsel %vm2956_vm4, %v7976_v62, -inf  ;;  %v7985_v13 = vsel %vm2956_vm4, %v7977_v28, -inf }
 0xe31   :  { %v7983_v0 = vmax.f32 %v7981_v17, %v7982_v41  ;;  %v7986_v18 = vmax.f32 %v7984_v46, %v7985_v13 }
 0xe33   :  { %v7987_v37 = vsel %vm2956_vm4, %v7983_v0, -inf  ;;  %v7994_v26 = vsel %vm2956_vm4, %v7986_v18, -inf }
 0xe34   :  { %v7988_v16 = vrot.slane %v7987_v37, 4  ;;  %v7995_v43 = vrot.slane %v7994_v26, 4 }
 0xe36   :  { %v7989_v55 = vmax.f32 %v7987_v37, %v7988_v16  ;;  %v7996_v22 = vmax.f32 %v7994_v26, %v7995_v43 }
 0xe38   :  { %v7990_v32 = vrot.slane %v7989_v55, 2  ;;  %v7997_v12 = vrot.slane %v7996_v22, 2 }
 0xe3a   :  { %v7991_v31 = vmax.f32 %v7989_v55, %v7990_v32  ;;  %v7998_v5 = vmax.f32 %v7996_v22, %v7997_v12 }
 0xe3c   :  { %v7992_v29 = vrot.slane %v7991_v31, 1  ;;  %v7999_v1 = vrot.slane %v7998_v5, 1 }
 0xe3e   :  { %v7993_v63 = vmax.f32 %v7991_v31, %v7992_v29  ;;  %v8000_v21 = vmax.f32 %v7998_v5, %v7999_v1 }
 0xe40   :  { %8002 = vst.msk [vmem:[#allocation2] sm:$0x1] %vm8001_vm7, %v7993_v63 }
 0xe41   :  { %8003 = vst.msk [vmem:[#allocation2 + $0x1] sm:$0x1] %vm8001_vm7, %v8000_v21 }
 0xe42   :  { %8016 = dma.vmem_to_hbm [thread:$0]  %s8009_s19, 32, %s8011_s15, [#allocation3], %s8841_s16, %s8841_s16, %s8848_s8  }
 0xe43   :  { %8839 = dma.done.wait [#allocation3], 32  }
 0xe44   :  { %8840 = vsyncadd [#allocation3], 4294967264 }
 0xe45   :  { %8021 = vsyncpa [#allocation3], 1 }

</bundles_post_ra>
